<compile_context>
chip_gen: v7x
topology: tpu7x:2x2x1
jax: 0.10.0
libtpu: 0.0.40
codegen_flags: <defaults>
</compile_context>

<pallas_src>
import functools

import jax
import jax.numpy as jnp
from jax.experimental import pallas as pl
from jax.experimental.pallas import tpu as pltpu

NUM_GCN_LAYERS = 29
SKIP_CONNECTION_POS = 3
BN_EPS = 1e-5
LEAKY_SLOPE = 0.2


def _fused_gcn_kernel(x_ref, a_ref, w_ref, gamma_ref, beta_ref, o_ref):
    """All 29 GCNBlocks fused: activation stays in registers/VMEM across layers.

    x_ref:     (B*V, C)        input node features (batch folded into rows)
    a_ref:     (K, B*V, B*V)   row-normalized adjacency, block-diagonal over batch
    w_ref:     (L, C, K*C)     per-layer stacked projection weights (skip-concat folded)
    gamma_ref: (L, 1, C)       BatchNorm weight
    beta_ref:  (L, 1, C)       BatchNorm bias
    o_ref:     (B*V, C)        output node features
    """
    BV, C = x_ref.shape
    K = a_ref.shape[0]
    L = w_ref.shape[0]

    x = x_ref[...]  # (B*V, C) float32

    for l in range(L):  # static unroll: 29 layers, everything resident in VMEM
        # ---- GraphConv (bias folded out: exact no-op under the training-mode BN below) ----
        # One fat projection over all K edge types: (B*V, C) @ (C, K*C) -> (B*V, K*C)
        h = jnp.dot(x, w_ref[l], preferred_element_type=jnp.float32)
        # Neighborhood aggregation: batch is folded into M via block-diagonal adjacency,
        # so each edge type is a single (B*V, B*V) @ (B*V, C) matmul.
        acc = jnp.dot(a_ref[0], h[:, 0:C], preferred_element_type=jnp.float32)
        for k in range(1, K):
            acc = acc + jnp.dot(
                a_ref[k], h[:, k * C:(k + 1) * C], preferred_element_type=jnp.float32
            )

        # ---- BatchNorm1d, training-mode batch stats over (batch, nodes), biased variance ----
        mean = jnp.mean(acc, axis=0, keepdims=True)                    # (1, C)
        var = jnp.mean((acc - mean) ** 2, axis=0, keepdims=True)       # (1, C)
        scale = gamma_ref[l] * jax.lax.rsqrt(var + BN_EPS)             # (1, C)
        shift = beta_ref[l] - mean * scale                             # (1, C)
        y = acc * scale + shift                                        # single FMA per element

        # ---- LeakyReLU(0.2) ----
        x = jnp.where(y >= 0, y, LEAKY_SLOPE * y)

    o_ref[...] = x


def init_params(key, net_size, num_edges):
    """Deterministic synthetic parameters mirroring the 29 GCNBlocks of the module."""
    params = []
    for idx in range(NUM_GCN_LAYERS):
        cin = net_size * 2 if idx % SKIP_CONNECTION_POS == 0 else net_size
        cout = net_size
        key, kw, kb = jax.random.split(key, 3)
        W = jax.random.normal(kw, (num_edges, cin, cout), jnp.float32) * (1.0 / jnp.sqrt(cin))
        b = jax.random.normal(kb, (cout,), jnp.float32) * 0.05   # GraphConv bias (see note below)
        gamma = jnp.ones((cout,), jnp.float32)                   # BatchNorm1d default init
        beta = jnp.zeros((cout,), jnp.float32)
        params.append((W, b, gamma, beta))
    return params


def prepare_packed_params(params, net_size, num_edges):
    """Fold the skip self-concat into the weights and stack all layers.

    concat([x, x], -1) @ W  ==  x @ (W[:, :C, :] + W[:, C:, :]),  so every layer becomes (C -> C).
    The GraphConv bias is dropped: a constant per-channel bias cancels exactly in the
    training-mode BatchNorm (acc + b - mean(acc + b) == acc - mean(acc)).
    """
    C, K = net_size, num_edges
    W_list, gamma_list, beta_list = [], [], []
    for (W, _b, gamma, beta) in params:
        if W.shape[1] == 2 * C:
            W = W[:, :C, :] + W[:, C:, :]                        # fold self-concat
        # (K, C, C) -> (C, K*C):  W_cat[d, k*C + c] = W[k, d, c]
        W_cat = jnp.transpose(W, (1, 0, 2)).reshape(C, K * C)
        W_list.append(W_cat)
        gamma_list.append(gamma.reshape(1, C))
        beta_list.append(beta.reshape(1, C))
    return (jnp.stack(W_list).astype(jnp.float32),
            jnp.stack(gamma_list).astype(jnp.float32),
            jnp.stack(beta_list).astype(jnp.float32))


def custom_gcn_sequential_forward(feats, A, W_stack, gamma_stack, beta_stack,
                                  preprocess_A=True):
    """feats: (B, V, net_size), A: (K, V, V). Returns (B, V, net_size)."""
    B, V, C = feats.shape
    K = A.shape[0]

    A = A.astype(jnp.float32)
    if preprocess_A:
        # Row-normalize adjacency per edge type (one-time, tiny glue op).
        deg = jnp.sum(A, axis=-1, keepdims=True)
        A = A / jnp.maximum(deg, 1e-6)

    # Fold batch into the M dimension: block-diagonal adjacency (K, B*V, B*V) so the
    # kernel does plain 2D matmuls (no broadcast copies of A, no batched dot_general).
    eyeB = jnp.eye(B, dtype=jnp.float32)
    A_bd = jnp.einsum("bc,kvw->kbvcw", eyeB, A).reshape(K, B * V, B * V)

    x2d = feats.reshape(B * V, C).astype(jnp.float32)

    vmem = pl.BlockSpec(memory_space=pltpu.MemorySpace.VMEM)
    out2d = pl.pallas_call(
        _fused_gcn_kernel,
        out_shape=jax.ShapeDtypeStruct((B * V, C), jnp.float32),
        in_specs=[vmem] * 5,
        out_specs=vmem,
    )(x2d, A_bd, W_stack, gamma_stack, beta_stack)

    return out2d.reshape(B, V, C)


if __name__ == "__main__":
    net_size = 32
    num_edges = 3
    B, V = 2, 16

    key = jax.random.PRNGKey(0)
    key, kf, ka, kp = jax.random.split(key, 4)

    feats = jax.random.normal(kf, (B, V, net_size), jnp.float32)
    A = jax.nn.relu(jax.random.normal(ka, (num_edges, V, V), jnp.float32)) + 0.1

    params = init_params(kp, net_size, num_edges)
    W_stack, gamma_stack, beta_stack = prepare_packed_params(params, net_size, num_edges)

    fwd = jax.jit(functools.partial(custom_gcn_sequential_forward, preprocess_A=True))
    out = fwd(feats, A, W_stack, gamma_stack, beta_stack)
    out = jax.block_until_ready(out)

    assert out.shape == (B, V, net_size), out.shape
    assert jnp.all(jnp.isfinite(out))
    print("KERNEL_OK")
</pallas_src>

<mosaic_0001>
module attributes {stable_mosaic.version = 11 : i64} {
  func.func @_fused_gcn_kernel(%arg0: memref<32x32xf32, #tpu.memory_space<vmem>>, %arg1: memref<3x32x32xf32, #tpu.memory_space<vmem>>, %arg2: memref<29x32x96xf32, #tpu.memory_space<vmem>>, %arg3: memref<29x1x32xf32, #tpu.memory_space<vmem>>, %arg4: memref<29x1x32xf32, #tpu.memory_space<vmem>>, %arg5: memref<32x32xf32, #tpu.memory_space<vmem>>) attributes {dimension_semantics = [], scalar_prefetch = 0 : i64, scratch_operands = 0 : i64, tpu.core_type = #tpu.core_type<tc>} {
    %c0 = arith.constant 0 : index
    %c0_0 = arith.constant 0 : index
    %0 = vector.load %arg0[%c0, %c0_0] : memref<32x32xf32, #tpu.memory_space<vmem>>, vector<32x32xf32>
    %c0_1 = arith.constant 0 : index
    %c0_2 = arith.constant 0 : index
    %c0_3 = arith.constant 0 : index
    %1 = vector.load %arg2[%c0_1, %c0_2, %c0_3] : memref<29x32x96xf32, #tpu.memory_space<vmem>>, vector<1x32x96xf32>
    %2 = vector.shape_cast %1 : vector<1x32x96xf32> to vector<32x96xf32>
    %cst = arith.constant dense<0.000000e+00> : vector<32x96xf32>
    %3 = tpu.matmul %0, %2, %cst {dimension_numbers = #tpu.dot_dimension_numbers<[1], [0], [0], [1], [0, 0, 1, 1], [], []>} : vector<32x32xf32>, vector<32x96xf32>, vector<32x96xf32> -> vector<32x96xf32>
    %c0_4 = arith.constant 0 : index
    %c0_5 = arith.constant 0 : index
    %c0_6 = arith.constant 0 : index
    %4 = vector.load %arg1[%c0_4, %c0_5, %c0_6] : memref<3x32x32xf32, #tpu.memory_space<vmem>>, vector<1x32x32xf32>
    %5 = vector.shape_cast %4 : vector<1x32x32xf32> to vector<32x32xf32>
    %6 = vector.extract_strided_slice %3 {offsets = [0, 0], sizes = [32, 32], strides = [1, 1]} : vector<32x96xf32> to vector<32x32xf32>
    %cst_7 = arith.constant dense<0.000000e+00> : vector<32x32xf32>
    %7 = tpu.matmul %5, %6, %cst_7 {dimension_numbers = #tpu.dot_dimension_numbers<[1], [0], [0], [1], [0, 0, 1, 1], [], []>} : vector<32x32xf32>, vector<32x32xf32>, vector<32x32xf32> -> vector<32x32xf32>
    %c1 = arith.constant 1 : index
    %c0_8 = arith.constant 0 : index
    %c0_9 = arith.constant 0 : index
    %8 = vector.load %arg1[%c1, %c0_8, %c0_9] : memref<3x32x32xf32, #tpu.memory_space<vmem>>, vector<1x32x32xf32>
    %9 = vector.shape_cast %8 : vector<1x32x32xf32> to vector<32x32xf32>
    %10 = vector.extract_strided_slice %3 {offsets = [0, 32], sizes = [32, 32], strides = [1, 1]} : vector<32x96xf32> to vector<32x32xf32>
    %cst_10 = arith.constant dense<0.000000e+00> : vector<32x32xf32>
    %11 = tpu.matmul %9, %10, %cst_10 {dimension_numbers = #tpu.dot_dimension_numbers<[1], [0], [0], [1], [0, 0, 1, 1], [], []>} : vector<32x32xf32>, vector<32x32xf32>, vector<32x32xf32> -> vector<32x32xf32>
    %12 = arith.addf %7, %11 : vector<32x32xf32>
    %c2 = arith.constant 2 : index
    %c0_11 = arith.constant 0 : index
    %c0_12 = arith.constant 0 : index
    %13 = vector.load %arg1[%c2, %c0_11, %c0_12] : memref<3x32x32xf32, #tpu.memory_space<vmem>>, vector<1x32x32xf32>
    %14 = vector.shape_cast %13 : vector<1x32x32xf32> to vector<32x32xf32>
    %15 = vector.extract_strided_slice %3 {offsets = [0, 64], sizes = [32, 32], strides = [1, 1]} : vector<32x96xf32> to vector<32x32xf32>
    %cst_13 = arith.constant dense<0.000000e+00> : vector<32x32xf32>
    %16 = tpu.matmul %14, %15, %cst_13 {dimension_numbers = #tpu.dot_dimension_numbers<[1], [0], [0], [1], [0, 0, 1, 1], [], []>} : vector<32x32xf32>, vector<32x32xf32>, vector<32x32xf32> -> vector<32x32xf32>
    %17 = arith.addf %12, %16 : vector<32x32xf32>
    %cst_14 = arith.constant dense<0.000000e+00> : vector<32xf32>
    %18 = vector.multi_reduction <add>, %17, %cst_14 [0] : vector<32x32xf32> to vector<32xf32>
    %19 = vector.shape_cast %18 : vector<32xf32> to vector<1x32xf32>
    %cst_15 = arith.constant 3.200000e+01 : f32
    %20 = vector.broadcast %cst_15 : f32 to vector<1x32xf32>
    %21 = arith.divf %19, %20 : vector<1x32xf32>
    %22 = vector.broadcast %21 : vector<1x32xf32> to vector<32x32xf32>
    %23 = arith.subf %17, %22 : vector<32x32xf32>
    %24 = arith.mulf %23, %23 : vector<32x32xf32>
    %cst_16 = arith.constant dense<0.000000e+00> : vector<32xf32>
    %25 = vector.multi_reduction <add>, %24, %cst_16 [0] : vector<32x32xf32> to vector<32xf32>
    %26 = vector.shape_cast %25 : vector<32xf32> to vector<1x32xf32>
    %cst_17 = arith.constant 3.200000e+01 : f32
    %27 = vector.broadcast %cst_17 : f32 to vector<1x32xf32>
    %28 = arith.divf %26, %27 : vector<1x32xf32>
    %c0_18 = arith.constant 0 : index
    %c0_19 = arith.constant 0 : index
    %c0_20 = arith.constant 0 : index
    %29 = vector.load %arg3[%c0_18, %c0_19, %c0_20] : memref<29x1x32xf32, #tpu.memory_space<vmem>>, vector<1x1x32xf32>
    %30 = vector.shape_cast %29 : vector<1x1x32xf32> to vector<1x32xf32>
    %cst_21 = arith.constant 9.99999974E-6 : f32
    %31 = vector.broadcast %cst_21 : f32 to vector<1x32xf32>
    %32 = arith.addf %28, %31 : vector<1x32xf32>
    %33 = math.rsqrt %32 : vector<1x32xf32>
    %34 = arith.mulf %30, %33 : vector<1x32xf32>
    %c0_22 = arith.constant 0 : index
    %c0_23 = arith.constant 0 : index
    %c0_24 = arith.constant 0 : index
    %35 = vector.load %arg4[%c0_22, %c0_23, %c0_24] : memref<29x1x32xf32, #tpu.memory_space<vmem>>, vector<1x1x32xf32>
    %36 = vector.shape_cast %35 : vector<1x1x32xf32> to vector<1x32xf32>
    %37 = arith.mulf %21, %34 : vector<1x32xf32>
    %38 = arith.subf %36, %37 : vector<1x32xf32>
    %39 = vector.broadcast %34 : vector<1x32xf32> to vector<32x32xf32>
    %40 = arith.mulf %17, %39 : vector<32x32xf32>
    %41 = vector.broadcast %38 : vector<1x32xf32> to vector<32x32xf32>
    %42 = arith.addf %40, %41 : vector<32x32xf32>
    %cst_25 = arith.constant 0.000000e+00 : f32
    %43 = vector.broadcast %cst_25 : f32 to vector<32x32xf32>
    %44 = arith.cmpf oge, %42, %43 : vector<32x32xf32>
    %cst_26 = arith.constant 2.000000e-01 : f32
    %45 = vector.broadcast %cst_26 : f32 to vector<32x32xf32>
    %46 = arith.mulf %45, %42 : vector<32x32xf32>
    %47 = arith.select %44, %42, %46 : vector<32x32xi1>, vector<32x32xf32>
    %c1_27 = arith.constant 1 : index
    %c0_28 = arith.constant 0 : index
    %c0_29 = arith.constant 0 : index
    %48 = vector.load %arg2[%c1_27, %c0_28, %c0_29] : memref<29x32x96xf32, #tpu.memory_space<vmem>>, vector<1x32x96xf32>
    %49 = vector.shape_cast %48 : vector<1x32x96xf32> to vector<32x96xf32>
    %cst_30 = arith.constant dense<0.000000e+00> : vector<32x96xf32>
    %50 = tpu.matmul %47, %49, %cst_30 {dimension_numbers = #tpu.dot_dimension_numbers<[1], [0], [0], [1], [0, 0, 1, 1], [], []>} : vector<32x32xf32>, vector<32x96xf32>, vector<32x96xf32> -> vector<32x96xf32>
    %c0_31 = arith.constant 0 : index
    %c0_32 = arith.constant 0 : index
    %c0_33 = arith.constant 0 : index
    %51 = vector.load %arg1[%c0_31, %c0_32, %c0_33] : memref<3x32x32xf32, #tpu.memory_space<vmem>>, vector<1x32x32xf32>
    %52 = vector.shape_cast %51 : vector<1x32x32xf32> to vector<32x32xf32>
    %53 = vector.extract_strided_slice %50 {offsets = [0, 0], sizes = [32, 32], strides = [1, 1]} : vector<32x96xf32> to vector<32x32xf32>
    %cst_34 = arith.constant dense<0.000000e+00> : vector<32x32xf32>
    %54 = tpu.matmul %52, %53, %cst_34 {dimension_numbers = #tpu.dot_dimension_numbers<[1], [0], [0], [1], [0, 0, 1, 1], [], []>} : vector<32x32xf32>, vector<32x32xf32>, vector<32x32xf32> -> vector<32x32xf32>
    %c1_35 = arith.constant 1 : index
    %c0_36 = arith.constant 0 : index
    %c0_37 = arith.constant 0 : index
    %55 = vector.load %arg1[%c1_35, %c0_36, %c0_37] : memref<3x32x32xf32, #tpu.memory_space<vmem>>, vector<1x32x32xf32>
    %56 = vector.shape_cast %55 : vector<1x32x32xf32> to vector<32x32xf32>
    %57 = vector.extract_strided_slice %50 {offsets = [0, 32], sizes = [32, 32], strides = [1, 1]} : vector<32x96xf32> to vector<32x32xf32>
    %cst_38 = arith.constant dense<0.000000e+00> : vector<32x32xf32>
    %58 = tpu.matmul %56, %57, %cst_38 {dimension_numbers = #tpu.dot_dimension_numbers<[1], [0], [0], [1], [0, 0, 1, 1], [], []>} : vector<32x32xf32>, vector<32x32xf32>, vector<32x32xf32> -> vector<32x32xf32>
    %59 = arith.addf %54, %58 : vector<32x32xf32>
    %c2_39 = arith.constant 2 : index
    %c0_40 = arith.constant 0 : index
    %c0_41 = arith.constant 0 : index
    %60 = vector.load %arg1[%c2_39, %c0_40, %c0_41] : memref<3x32x32xf32, #tpu.memory_space<vmem>>, vector<1x32x32xf32>
    %61 = vector.shape_cast %60 : vector<1x32x32xf32> to vector<32x32xf32>
    %62 = vector.extract_strided_slice %50 {offsets = [0, 64], sizes = [32, 32], strides = [1, 1]} : vector<32x96xf32> to vector<32x32xf32>
    %cst_42 = arith.constant dense<0.000000e+00> : vector<32x32xf32>
    %63 = tpu.matmul %61, %62, %cst_42 {dimension_numbers = #tpu.dot_dimension_numbers<[1], [0], [0], [1], [0, 0, 1, 1], [], []>} : vector<32x32xf32>, vector<32x32xf32>, vector<32x32xf32> -> vector<32x32xf32>
    %64 = arith.addf %59, %63 : vector<32x32xf32>
    %cst_43 = arith.constant dense<0.000000e+00> : vector<32xf32>
    %65 = vector.multi_reduction <add>, %64, %cst_43 [0] : vector<32x32xf32> to vector<32xf32>
    %66 = vector.shape_cast %65 : vector<32xf32> to vector<1x32xf32>
    %cst_44 = arith.constant 3.200000e+01 : f32
    %67 = vector.broadcast %cst_44 : f32 to vector<1x32xf32>
    %68 = arith.divf %66, %67 : vector<1x32xf32>
    %69 = vector.broadcast %68 : vector<1x32xf32> to vector<32x32xf32>
    %70 = arith.subf %64, %69 : vector<32x32xf32>
    %71 = arith.mulf %70, %70 : vector<32x32xf32>
    %cst_45 = arith.constant dense<0.000000e+00> : vector<32xf32>
    %72 = vector.multi_reduction <add>, %71, %cst_45 [0] : vector<32x32xf32> to vector<32xf32>
    %73 = vector.shape_cast %72 : vector<32xf32> to vector<1x32xf32>
    %cst_46 = arith.constant 3.200000e+01 : f32
    %74 = vector.broadcast %cst_46 : f32 to vector<1x32xf32>
    %75 = arith.divf %73, %74 : vector<1x32xf32>
    %c1_47 = arith.constant 1 : index
    %c0_48 = arith.constant 0 : index
    %c0_49 = arith.constant 0 : index
    %76 = vector.load %arg3[%c1_47, %c0_48, %c0_49] : memref<29x1x32xf32, #tpu.memory_space<vmem>>, vector<1x1x32xf32>
    %77 = vector.shape_cast %76 : vector<1x1x32xf32> to vector<1x32xf32>
    %cst_50 = arith.constant 9.99999974E-6 : f32
    %78 = vector.broadcast %cst_50 : f32 to vector<1x32xf32>
    %79 = arith.addf %75, %78 : vector<1x32xf32>
    %80 = math.rsqrt %79 : vector<1x32xf32>
    %81 = arith.mulf %77, %80 : vector<1x32xf32>
    %c1_51 = arith.constant 1 : index
    %c0_52 = arith.constant 0 : index
    %c0_53 = arith.constant 0 : index
    %82 = vector.load %arg4[%c1_51, %c0_52, %c0_53] : memref<29x1x32xf32, #tpu.memory_space<vmem>>, vector<1x1x32xf32>
    %83 = vector.shape_cast %82 : vector<1x1x32xf32> to vector<1x32xf32>
    %84 = arith.mulf %68, %81 : vector<1x32xf32>
    %85 = arith.subf %83, %84 : vector<1x32xf32>
    %86 = vector.broadcast %81 : vector<1x32xf32> to vector<32x32xf32>
    %87 = arith.mulf %64, %86 : vector<32x32xf32>
    %88 = vector.broadcast %85 : vector<1x32xf32> to vector<32x32xf32>
    %89 = arith.addf %87, %88 : vector<32x32xf32>
    %cst_54 = arith.constant 0.000000e+00 : f32
    %90 = vector.broadcast %cst_54 : f32 to vector<32x32xf32>
    %91 = arith.cmpf oge, %89, %90 : vector<32x32xf32>
    %cst_55 = arith.constant 2.000000e-01 : f32
    %92 = vector.broadcast %cst_55 : f32 to vector<32x32xf32>
    %93 = arith.mulf %92, %89 : vector<32x32xf32>
    %94 = arith.select %91, %89, %93 : vector<32x32xi1>, vector<32x32xf32>
    %c2_56 = arith.constant 2 : index
    %c0_57 = arith.constant 0 : index
    %c0_58 = arith.constant 0 : index
    %95 = vector.load %arg2[%c2_56, %c0_57, %c0_58] : memref<29x32x96xf32, #tpu.memory_space<vmem>>, vector<1x32x96xf32>
    %96 = vector.shape_cast %95 : vector<1x32x96xf32> to vector<32x96xf32>
    %cst_59 = arith.constant dense<0.000000e+00> : vector<32x96xf32>
    %97 = tpu.matmul %94, %96, %cst_59 {dimension_numbers = #tpu.dot_dimension_numbers<[1], [0], [0], [1], [0, 0, 1, 1], [], []>} : vector<32x32xf32>, vector<32x96xf32>, vector<32x96xf32> -> vector<32x96xf32>
    %c0_60 = arith.constant 0 : index
    %c0_61 = arith.constant 0 : index
    %c0_62 = arith.constant 0 : index
    %98 = vector.load %arg1[%c0_60, %c0_61, %c0_62] : memref<3x32x32xf32, #tpu.memory_space<vmem>>, vector<1x32x32xf32>
    %99 = vector.shape_cast %98 : vector<1x32x32xf32> to vector<32x32xf32>
    %100 = vector.extract_strided_slice %97 {offsets = [0, 0], sizes = [32, 32], strides = [1, 1]} : vector<32x96xf32> to vector<32x32xf32>
    %cst_63 = arith.constant dense<0.000000e+00> : vector<32x32xf32>
    %101 = tpu.matmul %99, %100, %cst_63 {dimension_numbers = #tpu.dot_dimension_numbers<[1], [0], [0], [1], [0, 0, 1, 1], [], []>} : vector<32x32xf32>, vector<32x32xf32>, vector<32x32xf32> -> vector<32x32xf32>
    %c1_64 = arith.constant 1 : index
    %c0_65 = arith.constant 0 : index
    %c0_66 = arith.constant 0 : index
    %102 = vector.load %arg1[%c1_64, %c0_65, %c0_66] : memref<3x32x32xf32, #tpu.memory_space<vmem>>, vector<1x32x32xf32>
    %103 = vector.shape_cast %102 : vector<1x32x32xf32> to vector<32x32xf32>
    %104 = vector.extract_strided_slice %97 {offsets = [0, 32], sizes = [32, 32], strides = [1, 1]} : vector<32x96xf32> to vector<32x32xf32>
    %cst_67 = arith.constant dense<0.000000e+00> : vector<32x32xf32>
    %105 = tpu.matmul %103, %104, %cst_67 {dimension_numbers = #tpu.dot_dimension_numbers<[1], [0], [0], [1], [0, 0, 1, 1], [], []>} : vector<32x32xf32>, vector<32x32xf32>, vector<32x32xf32> -> vector<32x32xf32>
    %106 = arith.addf %101, %105 : vector<32x32xf32>
    %c2_68 = arith.constant 2 : index
    %c0_69 = arith.constant 0 : index
    %c0_70 = arith.constant 0 : index
    %107 = vector.load %arg1[%c2_68, %c0_69, %c0_70] : memref<3x32x32xf32, #tpu.memory_space<vmem>>, vector<1x32x32xf32>
    %108 = vector.shape_cast %107 : vector<1x32x32xf32> to vector<32x32xf32>
    %109 = vector.extract_strided_slice %97 {offsets = [0, 64], sizes = [32, 32], strides = [1, 1]} : vector<32x96xf32> to vector<32x32xf32>
    %cst_71 = arith.constant dense<0.000000e+00> : vector<32x32xf32>
    %110 = tpu.matmul %108, %109, %cst_71 {dimension_numbers = #tpu.dot_dimension_numbers<[1], [0], [0], [1], [0, 0, 1, 1], [], []>} : vector<32x32xf32>, vector<32x32xf32>, vector<32x32xf32> -> vector<32x32xf32>
    %111 = arith.addf %106, %110 : vector<32x32xf32>
    %cst_72 = arith.constant dense<0.000000e+00> : vector<32xf32>
    %112 = vector.multi_reduction <add>, %111, %cst_72 [0] : vector<32x32xf32> to vector<32xf32>
    %113 = vector.shape_cast %112 : vector<32xf32> to vector<1x32xf32>
    %cst_73 = arith.constant 3.200000e+01 : f32
    %114 = vector.broadcast %cst_73 : f32 to vector<1x32xf32>
    %115 = arith.divf %113, %114 : vector<1x32xf32>
    %116 = vector.broadcast %115 : vector<1x32xf32> to vector<32x32xf32>
    %117 = arith.subf %111, %116 : vector<32x32xf32>
    %118 = arith.mulf %117, %117 : vector<32x32xf32>
    %cst_74 = arith.constant dense<0.000000e+00> : vector<32xf32>
    %119 = vector.multi_reduction <add>, %118, %cst_74 [0] : vector<32x32xf32> to vector<32xf32>
    %120 = vector.shape_cast %119 : vector<32xf32> to vector<1x32xf32>
    %cst_75 = arith.constant 3.200000e+01 : f32
    %121 = vector.broadcast %cst_75 : f32 to vector<1x32xf32>
    %122 = arith.divf %120, %121 : vector<1x32xf32>
    %c2_76 = arith.constant 2 : index
    %c0_77 = arith.constant 0 : index
    %c0_78 = arith.constant 0 : index
    %123 = vector.load %arg3[%c2_76, %c0_77, %c0_78] : memref<29x1x32xf32, #tpu.memory_space<vmem>>, vector<1x1x32xf32>
    %124 = vector.shape_cast %123 : vector<1x1x32xf32> to vector<1x32xf32>
    %cst_79 = arith.constant 9.99999974E-6 : f32
    %125 = vector.broadcast %cst_79 : f32 to vector<1x32xf32>
    %126 = arith.addf %122, %125 : vector<1x32xf32>
    %127 = math.rsqrt %126 : vector<1x32xf32>
    %128 = arith.mulf %124, %127 : vector<1x32xf32>
    %c2_80 = arith.constant 2 : index
    %c0_81 = arith.constant 0 : index
    %c0_82 = arith.constant 0 : index
    %129 = vector.load %arg4[%c2_80, %c0_81, %c0_82] : memref<29x1x32xf32, #tpu.memory_space<vmem>>, vector<1x1x32xf32>
    %130 = vector.shape_cast %129 : vector<1x1x32xf32> to vector<1x32xf32>
    %131 = arith.mulf %115, %128 : vector<1x32xf32>
    %132 = arith.subf %130, %131 : vector<1x32xf32>
    %133 = vector.broadcast %128 : vector<1x32xf32> to vector<32x32xf32>
    %134 = arith.mulf %111, %133 : vector<32x32xf32>
    %135 = vector.broadcast %132 : vector<1x32xf32> to vector<32x32xf32>
    %136 = arith.addf %134, %135 : vector<32x32xf32>
    %cst_83 = arith.constant 0.000000e+00 : f32
    %137 = vector.broadcast %cst_83 : f32 to vector<32x32xf32>
    %138 = arith.cmpf oge, %136, %137 : vector<32x32xf32>
    %cst_84 = arith.constant 2.000000e-01 : f32
    %139 = vector.broadcast %cst_84 : f32 to vector<32x32xf32>
    %140 = arith.mulf %139, %136 : vector<32x32xf32>
    %141 = arith.select %138, %136, %140 : vector<32x32xi1>, vector<32x32xf32>
    %c3 = arith.constant 3 : index
    %c0_85 = arith.constant 0 : index
    %c0_86 = arith.constant 0 : index
    %142 = vector.load %arg2[%c3, %c0_85, %c0_86] : memref<29x32x96xf32, #tpu.memory_space<vmem>>, vector<1x32x96xf32>
    %143 = vector.shape_cast %142 : vector<1x32x96xf32> to vector<32x96xf32>
    %cst_87 = arith.constant dense<0.000000e+00> : vector<32x96xf32>
    %144 = tpu.matmul %141, %143, %cst_87 {dimension_numbers = #tpu.dot_dimension_numbers<[1], [0], [0], [1], [0, 0, 1, 1], [], []>} : vector<32x32xf32>, vector<32x96xf32>, vector<32x96xf32> -> vector<32x96xf32>
    %c0_88 = arith.constant 0 : index
    %c0_89 = arith.constant 0 : index
    %c0_90 = arith.constant 0 : index
    %145 = vector.load %arg1[%c0_88, %c0_89, %c0_90] : memref<3x32x32xf32, #tpu.memory_space<vmem>>, vector<1x32x32xf32>
    %146 = vector.shape_cast %145 : vector<1x32x32xf32> to vector<32x32xf32>
    %147 = vector.extract_strided_slice %144 {offsets = [0, 0], sizes = [32, 32], strides = [1, 1]} : vector<32x96xf32> to vector<32x32xf32>
    %cst_91 = arith.constant dense<0.000000e+00> : vector<32x32xf32>
    %148 = tpu.matmul %146, %147, %cst_91 {dimension_numbers = #tpu.dot_dimension_numbers<[1], [0], [0], [1], [0, 0, 1, 1], [], []>} : vector<32x32xf32>, vector<32x32xf32>, vector<32x32xf32> -> vector<32x32xf32>
    %c1_92 = arith.constant 1 : index
    %c0_93 = arith.constant 0 : index
    %c0_94 = arith.constant 0 : index
    %149 = vector.load %arg1[%c1_92, %c0_93, %c0_94] : memref<3x32x32xf32, #tpu.memory_space<vmem>>, vector<1x32x32xf32>
    %150 = vector.shape_cast %149 : vector<1x32x32xf32> to vector<32x32xf32>
    %151 = vector.extract_strided_slice %144 {offsets = [0, 32], sizes = [32, 32], strides = [1, 1]} : vector<32x96xf32> to vector<32x32xf32>
    %cst_95 = arith.constant dense<0.000000e+00> : vector<32x32xf32>
    %152 = tpu.matmul %150, %151, %cst_95 {dimension_numbers = #tpu.dot_dimension_numbers<[1], [0], [0], [1], [0, 0, 1, 1], [], []>} : vector<32x32xf32>, vector<32x32xf32>, vector<32x32xf32> -> vector<32x32xf32>
    %153 = arith.addf %148, %152 : vector<32x32xf32>
    %c2_96 = arith.constant 2 : index
    %c0_97 = arith.constant 0 : index
    %c0_98 = arith.constant 0 : index
    %154 = vector.load %arg1[%c2_96, %c0_97, %c0_98] : memref<3x32x32xf32, #tpu.memory_space<vmem>>, vector<1x32x32xf32>
    %155 = vector.shape_cast %154 : vector<1x32x32xf32> to vector<32x32xf32>
    %156 = vector.extract_strided_slice %144 {offsets = [0, 64], sizes = [32, 32], strides = [1, 1]} : vector<32x96xf32> to vector<32x32xf32>
    %cst_99 = arith.constant dense<0.000000e+00> : vector<32x32xf32>
    %157 = tpu.matmul %155, %156, %cst_99 {dimension_numbers = #tpu.dot_dimension_numbers<[1], [0], [0], [1], [0, 0, 1, 1], [], []>} : vector<32x32xf32>, vector<32x32xf32>, vector<32x32xf32> -> vector<32x32xf32>
    %158 = arith.addf %153, %157 : vector<32x32xf32>
    %cst_100 = arith.constant dense<0.000000e+00> : vector<32xf32>
    %159 = vector.multi_reduction <add>, %158, %cst_100 [0] : vector<32x32xf32> to vector<32xf32>
    %160 = vector.shape_cast %159 : vector<32xf32> to vector<1x32xf32>
    %cst_101 = arith.constant 3.200000e+01 : f32
    %161 = vector.broadcast %cst_101 : f32 to vector<1x32xf32>
    %162 = arith.divf %160, %161 : vector<1x32xf32>
    %163 = vector.broadcast %162 : vector<1x32xf32> to vector<32x32xf32>
    %164 = arith.subf %158, %163 : vector<32x32xf32>
    %165 = arith.mulf %164, %164 : vector<32x32xf32>
    %cst_102 = arith.constant dense<0.000000e+00> : vector<32xf32>
    %166 = vector.multi_reduction <add>, %165, %cst_102 [0] : vector<32x32xf32> to vector<32xf32>
    %167 = vector.shape_cast %166 : vector<32xf32> to vector<1x32xf32>
    %cst_103 = arith.constant 3.200000e+01 : f32
    %168 = vector.broadcast %cst_103 : f32 to vector<1x32xf32>
    %169 = arith.divf %167, %168 : vector<1x32xf32>
    %c3_104 = arith.constant 3 : index
    %c0_105 = arith.constant 0 : index
    %c0_106 = arith.constant 0 : index
    %170 = vector.load %arg3[%c3_104, %c0_105, %c0_106] : memref<29x1x32xf32, #tpu.memory_space<vmem>>, vector<1x1x32xf32>
    %171 = vector.shape_cast %170 : vector<1x1x32xf32> to vector<1x32xf32>
    %cst_107 = arith.constant 9.99999974E-6 : f32
    %172 = vector.broadcast %cst_107 : f32 to vector<1x32xf32>
    %173 = arith.addf %169, %172 : vector<1x32xf32>
    %174 = math.rsqrt %173 : vector<1x32xf32>
    %175 = arith.mulf %171, %174 : vector<1x32xf32>
    %c3_108 = arith.constant 3 : index
    %c0_109 = arith.constant 0 : index
    %c0_110 = arith.constant 0 : index
    %176 = vector.load %arg4[%c3_108, %c0_109, %c0_110] : memref<29x1x32xf32, #tpu.memory_space<vmem>>, vector<1x1x32xf32>
    %177 = vector.shape_cast %176 : vector<1x1x32xf32> to vector<1x32xf32>
    %178 = arith.mulf %162, %175 : vector<1x32xf32>
    %179 = arith.subf %177, %178 : vector<1x32xf32>
    %180 = vector.broadcast %175 : vector<1x32xf32> to vector<32x32xf32>
    %181 = arith.mulf %158, %180 : vector<32x32xf32>
    %182 = vector.broadcast %179 : vector<1x32xf32> to vector<32x32xf32>
    %183 = arith.addf %181, %182 : vector<32x32xf32>
    %cst_111 = arith.constant 0.000000e+00 : f32
    %184 = vector.broadcast %cst_111 : f32 to vector<32x32xf32>
    %185 = arith.cmpf oge, %183, %184 : vector<32x32xf32>
    %cst_112 = arith.constant 2.000000e-01 : f32
    %186 = vector.broadcast %cst_112 : f32 to vector<32x32xf32>
    %187 = arith.mulf %186, %183 : vector<32x32xf32>
    %188 = arith.select %185, %183, %187 : vector<32x32xi1>, vector<32x32xf32>
    %c4 = arith.constant 4 : index
    %c0_113 = arith.constant 0 : index
    %c0_114 = arith.constant 0 : index
    %189 = vector.load %arg2[%c4, %c0_113, %c0_114] : memref<29x32x96xf32, #tpu.memory_space<vmem>>, vector<1x32x96xf32>
    %190 = vector.shape_cast %189 : vector<1x32x96xf32> to vector<32x96xf32>
    %cst_115 = arith.constant dense<0.000000e+00> : vector<32x96xf32>
    %191 = tpu.matmul %188, %190, %cst_115 {dimension_numbers = #tpu.dot_dimension_numbers<[1], [0], [0], [1], [0, 0, 1, 1], [], []>} : vector<32x32xf32>, vector<32x96xf32>, vector<32x96xf32> -> vector<32x96xf32>
    %c0_116 = arith.constant 0 : index
    %c0_117 = arith.constant 0 : index
    %c0_118 = arith.constant 0 : index
    %192 = vector.load %arg1[%c0_116, %c0_117, %c0_118] : memref<3x32x32xf32, #tpu.memory_space<vmem>>, vector<1x32x32xf32>
    %193 = vector.shape_cast %192 : vector<1x32x32xf32> to vector<32x32xf32>
    %194 = vector.extract_strided_slice %191 {offsets = [0, 0], sizes = [32, 32], strides = [1, 1]} : vector<32x96xf32> to vector<32x32xf32>
    %cst_119 = arith.constant dense<0.000000e+00> : vector<32x32xf32>
    %195 = tpu.matmul %193, %194, %cst_119 {dimension_numbers = #tpu.dot_dimension_numbers<[1], [0], [0], [1], [0, 0, 1, 1], [], []>} : vector<32x32xf32>, vector<32x32xf32>, vector<32x32xf32> -> vector<32x32xf32>
    %c1_120 = arith.constant 1 : index
    %c0_121 = arith.constant 0 : index
    %c0_122 = arith.constant 0 : index
    %196 = vector.load %arg1[%c1_120, %c0_121, %c0_122] : memref<3x32x32xf32, #tpu.memory_space<vmem>>, vector<1x32x32xf32>
    %197 = vector.shape_cast %196 : vector<1x32x32xf32> to vector<32x32xf32>
    %198 = vector.extract_strided_slice %191 {offsets = [0, 32], sizes = [32, 32], strides = [1, 1]} : vector<32x96xf32> to vector<32x32xf32>
    %cst_123 = arith.constant dense<0.000000e+00> : vector<32x32xf32>
    %199 = tpu.matmul %197, %198, %cst_123 {dimension_numbers = #tpu.dot_dimension_numbers<[1], [0], [0], [1], [0, 0, 1, 1], [], []>} : vector<32x32xf32>, vector<32x32xf32>, vector<32x32xf32> -> vector<32x32xf32>
    %200 = arith.addf %195, %199 : vector<32x32xf32>
    %c2_124 = arith.constant 2 : index
    %c0_125 = arith.constant 0 : index
    %c0_126 = arith.constant 0 : index
    %201 = vector.load %arg1[%c2_124, %c0_125, %c0_126] : memref<3x32x32xf32, #tpu.memory_space<vmem>>, vector<1x32x32xf32>
    %202 = vector.shape_cast %201 : vector<1x32x32xf32> to vector<32x32xf32>
    %203 = vector.extract_strided_slice %191 {offsets = [0, 64], sizes = [32, 32], strides = [1, 1]} : vector<32x96xf32> to vector<32x32xf32>
    %cst_127 = arith.constant dense<0.000000e+00> : vector<32x32xf32>
    %204 = tpu.matmul %202, %203, %cst_127 {dimension_numbers = #tpu.dot_dimension_numbers<[1], [0], [0], [1], [0, 0, 1, 1], [], []>} : vector<32x32xf32>, vector<32x32xf32>, vector<32x32xf32> -> vector<32x32xf32>
    %205 = arith.addf %200, %204 : vector<32x32xf32>
    %cst_128 = arith.constant dense<0.000000e+00> : vector<32xf32>
    %206 = vector.multi_reduction <add>, %205, %cst_128 [0] : vector<32x32xf32> to vector<32xf32>
    %207 = vector.shape_cast %206 : vector<32xf32> to vector<1x32xf32>
    %cst_129 = arith.constant 3.200000e+01 : f32
    %208 = vector.broadcast %cst_129 : f32 to vector<1x32xf32>
    %209 = arith.divf %207, %208 : vector<1x32xf32>
    %210 = vector.broadcast %209 : vector<1x32xf32> to vector<32x32xf32>
    %211 = arith.subf %205, %210 : vector<32x32xf32>
    %212 = arith.mulf %211, %211 : vector<32x32xf32>
    %cst_130 = arith.constant dense<0.000000e+00> : vector<32xf32>
    %213 = vector.multi_reduction <add>, %212, %cst_130 [0] : vector<32x32xf32> to vector<32xf32>
    %214 = vector.shape_cast %213 : vector<32xf32> to vector<1x32xf32>
    %cst_131 = arith.constant 3.200000e+01 : f32
    %215 = vector.broadcast %cst_131 : f32 to vector<1x32xf32>
    %216 = arith.divf %214, %215 : vector<1x32xf32>
    %c4_132 = arith.constant 4 : index
    %c0_133 = arith.constant 0 : index
    %c0_134 = arith.constant 0 : index
    %217 = vector.load %arg3[%c4_132, %c0_133, %c0_134] : memref<29x1x32xf32, #tpu.memory_space<vmem>>, vector<1x1x32xf32>
    %218 = vector.shape_cast %217 : vector<1x1x32xf32> to vector<1x32xf32>
    %cst_135 = arith.constant 9.99999974E-6 : f32
    %219 = vector.broadcast %cst_135 : f32 to vector<1x32xf32>
    %220 = arith.addf %216, %219 : vector<1x32xf32>
    %221 = math.rsqrt %220 : vector<1x32xf32>
    %222 = arith.mulf %218, %221 : vector<1x32xf32>
    %c4_136 = arith.constant 4 : index
    %c0_137 = arith.constant 0 : index
    %c0_138 = arith.constant 0 : index
    %223 = vector.load %arg4[%c4_136, %c0_137, %c0_138] : memref<29x1x32xf32, #tpu.memory_space<vmem>>, vector<1x1x32xf32>
    %224 = vector.shape_cast %223 : vector<1x1x32xf32> to vector<1x32xf32>
    %225 = arith.mulf %209, %222 : vector<1x32xf32>
    %226 = arith.subf %224, %225 : vector<1x32xf32>
    %227 = vector.broadcast %222 : vector<1x32xf32> to vector<32x32xf32>
    %228 = arith.mulf %205, %227 : vector<32x32xf32>
    %229 = vector.broadcast %226 : vector<1x32xf32> to vector<32x32xf32>
    %230 = arith.addf %228, %229 : vector<32x32xf32>
    %cst_139 = arith.constant 0.000000e+00 : f32
    %231 = vector.broadcast %cst_139 : f32 to vector<32x32xf32>
    %232 = arith.cmpf oge, %230, %231 : vector<32x32xf32>
    %cst_140 = arith.constant 2.000000e-01 : f32
    %233 = vector.broadcast %cst_140 : f32 to vector<32x32xf32>
    %234 = arith.mulf %233, %230 : vector<32x32xf32>
    %235 = arith.select %232, %230, %234 : vector<32x32xi1>, vector<32x32xf32>
    %c5 = arith.constant 5 : index
    %c0_141 = arith.constant 0 : index
    %c0_142 = arith.constant 0 : index
    %236 = vector.load %arg2[%c5, %c0_141, %c0_142] : memref<29x32x96xf32, #tpu.memory_space<vmem>>, vector<1x32x96xf32>
    %237 = vector.shape_cast %236 : vector<1x32x96xf32> to vector<32x96xf32>
    %cst_143 = arith.constant dense<0.000000e+00> : vector<32x96xf32>
    %238 = tpu.matmul %235, %237, %cst_143 {dimension_numbers = #tpu.dot_dimension_numbers<[1], [0], [0], [1], [0, 0, 1, 1], [], []>} : vector<32x32xf32>, vector<32x96xf32>, vector<32x96xf32> -> vector<32x96xf32>
    %c0_144 = arith.constant 0 : index
    %c0_145 = arith.constant 0 : index
    %c0_146 = arith.constant 0 : index
    %239 = vector.load %arg1[%c0_144, %c0_145, %c0_146] : memref<3x32x32xf32, #tpu.memory_space<vmem>>, vector<1x32x32xf32>
    %240 = vector.shape_cast %239 : vector<1x32x32xf32> to vector<32x32xf32>
    %241 = vector.extract_strided_slice %238 {offsets = [0, 0], sizes = [32, 32], strides = [1, 1]} : vector<32x96xf32> to vector<32x32xf32>
    %cst_147 = arith.constant dense<0.000000e+00> : vector<32x32xf32>
    %242 = tpu.matmul %240, %241, %cst_147 {dimension_numbers = #tpu.dot_dimension_numbers<[1], [0], [0], [1], [0, 0, 1, 1], [], []>} : vector<32x32xf32>, vector<32x32xf32>, vector<32x32xf32> -> vector<32x32xf32>
    %c1_148 = arith.constant 1 : index
    %c0_149 = arith.constant 0 : index
    %c0_150 = arith.constant 0 : index
    %243 = vector.load %arg1[%c1_148, %c0_149, %c0_150] : memref<3x32x32xf32, #tpu.memory_space<vmem>>, vector<1x32x32xf32>
    %244 = vector.shape_cast %243 : vector<1x32x32xf32> to vector<32x32xf32>
    %245 = vector.extract_strided_slice %238 {offsets = [0, 32], sizes = [32, 32], strides = [1, 1]} : vector<32x96xf32> to vector<32x32xf32>
    %cst_151 = arith.constant dense<0.000000e+00> : vector<32x32xf32>
    %246 = tpu.matmul %244, %245, %cst_151 {dimension_numbers = #tpu.dot_dimension_numbers<[1], [0], [0], [1], [0, 0, 1, 1], [], []>} : vector<32x32xf32>, vector<32x32xf32>, vector<32x32xf32> -> vector<32x32xf32>
    %247 = arith.addf %242, %246 : vector<32x32xf32>
    %c2_152 = arith.constant 2 : index
    %c0_153 = arith.constant 0 : index
    %c0_154 = arith.constant 0 : index
    %248 = vector.load %arg1[%c2_152, %c0_153, %c0_154] : memref<3x32x32xf32, #tpu.memory_space<vmem>>, vector<1x32x32xf32>
    %249 = vector.shape_cast %248 : vector<1x32x32xf32> to vector<32x32xf32>
    %250 = vector.extract_strided_slice %238 {offsets = [0, 64], sizes = [32, 32], strides = [1, 1]} : vector<32x96xf32> to vector<32x32xf32>
    %cst_155 = arith.constant dense<0.000000e+00> : vector<32x32xf32>
    %251 = tpu.matmul %249, %250, %cst_155 {dimension_numbers = #tpu.dot_dimension_numbers<[1], [0], [0], [1], [0, 0, 1, 1], [], []>} : vector<32x32xf32>, vector<32x32xf32>, vector<32x32xf32> -> vector<32x32xf32>
    %252 = arith.addf %247, %251 : vector<32x32xf32>
    %cst_156 = arith.constant dense<0.000000e+00> : vector<32xf32>
    %253 = vector.multi_reduction <add>, %252, %cst_156 [0] : vector<32x32xf32> to vector<32xf32>
    %254 = vector.shape_cast %253 : vector<32xf32> to vector<1x32xf32>
    %cst_157 = arith.constant 3.200000e+01 : f32
    %255 = vector.broadcast %cst_157 : f32 to vector<1x32xf32>
    %256 = arith.divf %254, %255 : vector<1x32xf32>
    %257 = vector.broadcast %256 : vector<1x32xf32> to vector<32x32xf32>
    %258 = arith.subf %252, %257 : vector<32x32xf32>
    %259 = arith.mulf %258, %258 : vector<32x32xf32>
    %cst_158 = arith.constant dense<0.000000e+00> : vector<32xf32>
    %260 = vector.multi_reduction <add>, %259, %cst_158 [0] : vector<32x32xf32> to vector<32xf32>
    %261 = vector.shape_cast %260 : vector<32xf32> to vector<1x32xf32>
    %cst_159 = arith.constant 3.200000e+01 : f32
    %262 = vector.broadcast %cst_159 : f32 to vector<1x32xf32>
    %263 = arith.divf %261, %262 : vector<1x32xf32>
    %c5_160 = arith.constant 5 : index
    %c0_161 = arith.constant 0 : index
    %c0_162 = arith.constant 0 : index
    %264 = vector.load %arg3[%c5_160, %c0_161, %c0_162] : memref<29x1x32xf32, #tpu.memory_space<vmem>>, vector<1x1x32xf32>
    %265 = vector.shape_cast %264 : vector<1x1x32xf32> to vector<1x32xf32>
    %cst_163 = arith.constant 9.99999974E-6 : f32
    %266 = vector.broadcast %cst_163 : f32 to vector<1x32xf32>
    %267 = arith.addf %263, %266 : vector<1x32xf32>
    %268 = math.rsqrt %267 : vector<1x32xf32>
    %269 = arith.mulf %265, %268 : vector<1x32xf32>
    %c5_164 = arith.constant 5 : index
    %c0_165 = arith.constant 0 : index
    %c0_166 = arith.constant 0 : index
    %270 = vector.load %arg4[%c5_164, %c0_165, %c0_166] : memref<29x1x32xf32, #tpu.memory_space<vmem>>, vector<1x1x32xf32>
    %271 = vector.shape_cast %270 : vector<1x1x32xf32> to vector<1x32xf32>
    %272 = arith.mulf %256, %269 : vector<1x32xf32>
    %273 = arith.subf %271, %272 : vector<1x32xf32>
    %274 = vector.broadcast %269 : vector<1x32xf32> to vector<32x32xf32>
    %275 = arith.mulf %252, %274 : vector<32x32xf32>
    %276 = vector.broadcast %273 : vector<1x32xf32> to vector<32x32xf32>
    %277 = arith.addf %275, %276 : vector<32x32xf32>
    %cst_167 = arith.constant 0.000000e+00 : f32
    %278 = vector.broadcast %cst_167 : f32 to vector<32x32xf32>
    %279 = arith.cmpf oge, %277, %278 : vector<32x32xf32>
    %cst_168 = arith.constant 2.000000e-01 : f32
    %280 = vector.broadcast %cst_168 : f32 to vector<32x32xf32>
    %281 = arith.mulf %280, %277 : vector<32x32xf32>
    %282 = arith.select %279, %277, %281 : vector<32x32xi1>, vector<32x32xf32>
    %c6 = arith.constant 6 : index
    %c0_169 = arith.constant 0 : index
    %c0_170 = arith.constant 0 : index
    %283 = vector.load %arg2[%c6, %c0_169, %c0_170] : memref<29x32x96xf32, #tpu.memory_space<vmem>>, vector<1x32x96xf32>
    %284 = vector.shape_cast %283 : vector<1x32x96xf32> to vector<32x96xf32>
    %cst_171 = arith.constant dense<0.000000e+00> : vector<32x96xf32>
    %285 = tpu.matmul %282, %284, %cst_171 {dimension_numbers = #tpu.dot_dimension_numbers<[1], [0], [0], [1], [0, 0, 1, 1], [], []>} : vector<32x32xf32>, vector<32x96xf32>, vector<32x96xf32> -> vector<32x96xf32>
    %c0_172 = arith.constant 0 : index
    %c0_173 = arith.constant 0 : index
    %c0_174 = arith.constant 0 : index
    %286 = vector.load %arg1[%c0_172, %c0_173, %c0_174] : memref<3x32x32xf32, #tpu.memory_space<vmem>>, vector<1x32x32xf32>
    %287 = vector.shape_cast %286 : vector<1x32x32xf32> to vector<32x32xf32>
    %288 = vector.extract_strided_slice %285 {offsets = [0, 0], sizes = [32, 32], strides = [1, 1]} : vector<32x96xf32> to vector<32x32xf32>
    %cst_175 = arith.constant dense<0.000000e+00> : vector<32x32xf32>
    %289 = tpu.matmul %287, %288, %cst_175 {dimension_numbers = #tpu.dot_dimension_numbers<[1], [0], [0], [1], [0, 0, 1, 1], [], []>} : vector<32x32xf32>, vector<32x32xf32>, vector<32x32xf32> -> vector<32x32xf32>
    %c1_176 = arith.constant 1 : index
    %c0_177 = arith.constant 0 : index
    %c0_178 = arith.constant 0 : index
    %290 = vector.load %arg1[%c1_176, %c0_177, %c0_178] : memref<3x32x32xf32, #tpu.memory_space<vmem>>, vector<1x32x32xf32>
    %291 = vector.shape_cast %290 : vector<1x32x32xf32> to vector<32x32xf32>
    %292 = vector.extract_strided_slice %285 {offsets = [0, 32], sizes = [32, 32], strides = [1, 1]} : vector<32x96xf32> to vector<32x32xf32>
    %cst_179 = arith.constant dense<0.000000e+00> : vector<32x32xf32>
    %293 = tpu.matmul %291, %292, %cst_179 {dimension_numbers = #tpu.dot_dimension_numbers<[1], [0], [0], [1], [0, 0, 1, 1], [], []>} : vector<32x32xf32>, vector<32x32xf32>, vector<32x32xf32> -> vector<32x32xf32>
    %294 = arith.addf %289, %293 : vector<32x32xf32>
    %c2_180 = arith.constant 2 : index
    %c0_181 = arith.constant 0 : index
    %c0_182 = arith.constant 0 : index
    %295 = vector.load %arg1[%c2_180, %c0_181, %c0_182] : memref<3x32x32xf32, #tpu.memory_space<vmem>>, vector<1x32x32xf32>
    %296 = vector.shape_cast %295 : vector<1x32x32xf32> to vector<32x32xf32>
    %297 = vector.extract_strided_slice %285 {offsets = [0, 64], sizes = [32, 32], strides = [1, 1]} : vector<32x96xf32> to vector<32x32xf32>
    %cst_183 = arith.constant dense<0.000000e+00> : vector<32x32xf32>
    %298 = tpu.matmul %296, %297, %cst_183 {dimension_numbers = #tpu.dot_dimension_numbers<[1], [0], [0], [1], [0, 0, 1, 1], [], []>} : vector<32x32xf32>, vector<32x32xf32>, vector<32x32xf32> -> vector<32x32xf32>
    %299 = arith.addf %294, %298 : vector<32x32xf32>
    %cst_184 = arith.constant dense<0.000000e+00> : vector<32xf32>
    %300 = vector.multi_reduction <add>, %299, %cst_184 [0] : vector<32x32xf32> to vector<32xf32>
    %301 = vector.shape_cast %300 : vector<32xf32> to vector<1x32xf32>
    %cst_185 = arith.constant 3.200000e+01 : f32
    %302 = vector.broadcast %cst_185 : f32 to vector<1x32xf32>
    %303 = arith.divf %301, %302 : vector<1x32xf32>
    %304 = vector.broadcast %303 : vector<1x32xf32> to vector<32x32xf32>
    %305 = arith.subf %299, %304 : vector<32x32xf32>
    %306 = arith.mulf %305, %305 : vector<32x32xf32>
    %cst_186 = arith.constant dense<0.000000e+00> : vector<32xf32>
    %307 = vector.multi_reduction <add>, %306, %cst_186 [0] : vector<32x32xf32> to vector<32xf32>
    %308 = vector.shape_cast %307 : vector<32xf32> to vector<1x32xf32>
    %cst_187 = arith.constant 3.200000e+01 : f32
    %309 = vector.broadcast %cst_187 : f32 to vector<1x32xf32>
    %310 = arith.divf %308, %309 : vector<1x32xf32>
    %c6_188 = arith.constant 6 : index
    %c0_189 = arith.constant 0 : index
    %c0_190 = arith.constant 0 : index
    %311 = vector.load %arg3[%c6_188, %c0_189, %c0_190] : memref<29x1x32xf32, #tpu.memory_space<vmem>>, vector<1x1x32xf32>
    %312 = vector.shape_cast %311 : vector<1x1x32xf32> to vector<1x32xf32>
    %cst_191 = arith.constant 9.99999974E-6 : f32
    %313 = vector.broadcast %cst_191 : f32 to vector<1x32xf32>
    %314 = arith.addf %310, %313 : vector<1x32xf32>
    %315 = math.rsqrt %314 : vector<1x32xf32>
    %316 = arith.mulf %312, %315 : vector<1x32xf32>
    %c6_192 = arith.constant 6 : index
    %c0_193 = arith.constant 0 : index
    %c0_194 = arith.constant 0 : index
    %317 = vector.load %arg4[%c6_192, %c0_193, %c0_194] : memref<29x1x32xf32, #tpu.memory_space<vmem>>, vector<1x1x32xf32>
    %318 = vector.shape_cast %317 : vector<1x1x32xf32> to vector<1x32xf32>
    %319 = arith.mulf %303, %316 : vector<1x32xf32>
    %320 = arith.subf %318, %319 : vector<1x32xf32>
    %321 = vector.broadcast %316 : vector<1x32xf32> to vector<32x32xf32>
    %322 = arith.mulf %299, %321 : vector<32x32xf32>
    %323 = vector.broadcast %320 : vector<1x32xf32> to vector<32x32xf32>
    %324 = arith.addf %322, %323 : vector<32x32xf32>
    %cst_195 = arith.constant 0.000000e+00 : f32
    %325 = vector.broadcast %cst_195 : f32 to vector<32x32xf32>
    %326 = arith.cmpf oge, %324, %325 : vector<32x32xf32>
    %cst_196 = arith.constant 2.000000e-01 : f32
    %327 = vector.broadcast %cst_196 : f32 to vector<32x32xf32>
    %328 = arith.mulf %327, %324 : vector<32x32xf32>
    %329 = arith.select %326, %324, %328 : vector<32x32xi1>, vector<32x32xf32>
    %c7 = arith.constant 7 : index
    %c0_197 = arith.constant 0 : index
    %c0_198 = arith.constant 0 : index
    %330 = vector.load %arg2[%c7, %c0_197, %c0_198] : memref<29x32x96xf32, #tpu.memory_space<vmem>>, vector<1x32x96xf32>
    %331 = vector.shape_cast %330 : vector<1x32x96xf32> to vector<32x96xf32>
    %cst_199 = arith.constant dense<0.000000e+00> : vector<32x96xf32>
    %332 = tpu.matmul %329, %331, %cst_199 {dimension_numbers = #tpu.dot_dimension_numbers<[1], [0], [0], [1], [0, 0, 1, 1], [], []>} : vector<32x32xf32>, vector<32x96xf32>, vector<32x96xf32> -> vector<32x96xf32>
    %c0_200 = arith.constant 0 : index
    %c0_201 = arith.constant 0 : index
    %c0_202 = arith.constant 0 : index
    %333 = vector.load %arg1[%c0_200, %c0_201, %c0_202] : memref<3x32x32xf32, #tpu.memory_space<vmem>>, vector<1x32x32xf32>
    %334 = vector.shape_cast %333 : vector<1x32x32xf32> to vector<32x32xf32>
    %335 = vector.extract_strided_slice %332 {offsets = [0, 0], sizes = [32, 32], strides = [1, 1]} : vector<32x96xf32> to vector<32x32xf32>
    %cst_203 = arith.constant dense<0.000000e+00> : vector<32x32xf32>
    %336 = tpu.matmul %334, %335, %cst_203 {dimension_numbers = #tpu.dot_dimension_numbers<[1], [0], [0], [1], [0, 0, 1, 1], [], []>} : vector<32x32xf32>, vector<32x32xf32>, vector<32x32xf32> -> vector<32x32xf32>
    %c1_204 = arith.constant 1 : index
    %c0_205 = arith.constant 0 : index
    %c0_206 = arith.constant 0 : index
    %337 = vector.load %arg1[%c1_204, %c0_205, %c0_206] : memref<3x32x32xf32, #tpu.memory_space<vmem>>, vector<1x32x32xf32>
    %338 = vector.shape_cast %337 : vector<1x32x32xf32> to vector<32x32xf32>
    %339 = vector.extract_strided_slice %332 {offsets = [0, 32], sizes = [32, 32], strides = [1, 1]} : vector<32x96xf32> to vector<32x32xf32>
    %cst_207 = arith.constant dense<0.000000e+00> : vector<32x32xf32>
    %340 = tpu.matmul %338, %339, %cst_207 {dimension_numbers = #tpu.dot_dimension_numbers<[1], [0], [0], [1], [0, 0, 1, 1], [], []>} : vector<32x32xf32>, vector<32x32xf32>, vector<32x32xf32> -> vector<32x32xf32>
    %341 = arith.addf %336, %340 : vector<32x32xf32>
    %c2_208 = arith.constant 2 : index
    %c0_209 = arith.constant 0 : index
    %c0_210 = arith.constant 0 : index
    %342 = vector.load %arg1[%c2_208, %c0_209, %c0_210] : memref<3x32x32xf32, #tpu.memory_space<vmem>>, vector<1x32x32xf32>
    %343 = vector.shape_cast %342 : vector<1x32x32xf32> to vector<32x32xf32>
    %344 = vector.extract_strided_slice %332 {offsets = [0, 64], sizes = [32, 32], strides = [1, 1]} : vector<32x96xf32> to vector<32x32xf32>
    %cst_211 = arith.constant dense<0.000000e+00> : vector<32x32xf32>
    %345 = tpu.matmul %343, %344, %cst_211 {dimension_numbers = #tpu.dot_dimension_numbers<[1], [0], [0], [1], [0, 0, 1, 1], [], []>} : vector<32x32xf32>, vector<32x32xf32>, vector<32x32xf32> -> vector<32x32xf32>
    %346 = arith.addf %341, %345 : vector<32x32xf32>
    %cst_212 = arith.constant dense<0.000000e+00> : vector<32xf32>
    %347 = vector.multi_reduction <add>, %346, %cst_212 [0] : vector<32x32xf32> to vector<32xf32>
    %348 = vector.shape_cast %347 : vector<32xf32> to vector<1x32xf32>
    %cst_213 = arith.constant 3.200000e+01 : f32
    %349 = vector.broadcast %cst_213 : f32 to vector<1x32xf32>
    %350 = arith.divf %348, %349 : vector<1x32xf32>
    %351 = vector.broadcast %350 : vector<1x32xf32> to vector<32x32xf32>
    %352 = arith.subf %346, %351 : vector<32x32xf32>
    %353 = arith.mulf %352, %352 : vector<32x32xf32>
    %cst_214 = arith.constant dense<0.000000e+00> : vector<32xf32>
    %354 = vector.multi_reduction <add>, %353, %cst_214 [0] : vector<32x32xf32> to vector<32xf32>
    %355 = vector.shape_cast %354 : vector<32xf32> to vector<1x32xf32>
    %cst_215 = arith.constant 3.200000e+01 : f32
    %356 = vector.broadcast %cst_215 : f32 to vector<1x32xf32>
    %357 = arith.divf %355, %356 : vector<1x32xf32>
    %c7_216 = arith.constant 7 : index
    %c0_217 = arith.constant 0 : index
    %c0_218 = arith.constant 0 : index
    %358 = vector.load %arg3[%c7_216, %c0_217, %c0_218] : memref<29x1x32xf32, #tpu.memory_space<vmem>>, vector<1x1x32xf32>
    %359 = vector.shape_cast %358 : vector<1x1x32xf32> to vector<1x32xf32>
    %cst_219 = arith.constant 9.99999974E-6 : f32
    %360 = vector.broadcast %cst_219 : f32 to vector<1x32xf32>
    %361 = arith.addf %357, %360 : vector<1x32xf32>
    %362 = math.rsqrt %361 : vector<1x32xf32>
    %363 = arith.mulf %359, %362 : vector<1x32xf32>
    %c7_220 = arith.constant 7 : index
    %c0_221 = arith.constant 0 : index
    %c0_222 = arith.constant 0 : index
    %364 = vector.load %arg4[%c7_220, %c0_221, %c0_222] : memref<29x1x32xf32, #tpu.memory_space<vmem>>, vector<1x1x32xf32>
    %365 = vector.shape_cast %364 : vector<1x1x32xf32> to vector<1x32xf32>
    %366 = arith.mulf %350, %363 : vector<1x32xf32>
    %367 = arith.subf %365, %366 : vector<1x32xf32>
    %368 = vector.broadcast %363 : vector<1x32xf32> to vector<32x32xf32>
    %369 = arith.mulf %346, %368 : vector<32x32xf32>
    %370 = vector.broadcast %367 : vector<1x32xf32> to vector<32x32xf32>
    %371 = arith.addf %369, %370 : vector<32x32xf32>
    %cst_223 = arith.constant 0.000000e+00 : f32
    %372 = vector.broadcast %cst_223 : f32 to vector<32x32xf32>
    %373 = arith.cmpf oge, %371, %372 : vector<32x32xf32>
    %cst_224 = arith.constant 2.000000e-01 : f32
    %374 = vector.broadcast %cst_224 : f32 to vector<32x32xf32>
    %375 = arith.mulf %374, %371 : vector<32x32xf32>
    %376 = arith.select %373, %371, %375 : vector<32x32xi1>, vector<32x32xf32>
    %c8 = arith.constant 8 : index
    %c0_225 = arith.constant 0 : index
    %c0_226 = arith.constant 0 : index
    %377 = vector.load %arg2[%c8, %c0_225, %c0_226] : memref<29x32x96xf32, #tpu.memory_space<vmem>>, vector<1x32x96xf32>
    %378 = vector.shape_cast %377 : vector<1x32x96xf32> to vector<32x96xf32>
    %cst_227 = arith.constant dense<0.000000e+00> : vector<32x96xf32>
    %379 = tpu.matmul %376, %378, %cst_227 {dimension_numbers = #tpu.dot_dimension_numbers<[1], [0], [0], [1], [0, 0, 1, 1], [], []>} : vector<32x32xf32>, vector<32x96xf32>, vector<32x96xf32> -> vector<32x96xf32>
    %c0_228 = arith.constant 0 : index
    %c0_229 = arith.constant 0 : index
    %c0_230 = arith.constant 0 : index
    %380 = vector.load %arg1[%c0_228, %c0_229, %c0_230] : memref<3x32x32xf32, #tpu.memory_space<vmem>>, vector<1x32x32xf32>
    %381 = vector.shape_cast %380 : vector<1x32x32xf32> to vector<32x32xf32>
    %382 = vector.extract_strided_slice %379 {offsets = [0, 0], sizes = [32, 32], strides = [1, 1]} : vector<32x96xf32> to vector<32x32xf32>
    %cst_231 = arith.constant dense<0.000000e+00> : vector<32x32xf32>
    %383 = tpu.matmul %381, %382, %cst_231 {dimension_numbers = #tpu.dot_dimension_numbers<[1], [0], [0], [1], [0, 0, 1, 1], [], []>} : vector<32x32xf32>, vector<32x32xf32>, vector<32x32xf32> -> vector<32x32xf32>
    %c1_232 = arith.constant 1 : index
    %c0_233 = arith.constant 0 : index
    %c0_234 = arith.constant 0 : index
    %384 = vector.load %arg1[%c1_232, %c0_233, %c0_234] : memref<3x32x32xf32, #tpu.memory_space<vmem>>, vector<1x32x32xf32>
    %385 = vector.shape_cast %384 : vector<1x32x32xf32> to vector<32x32xf32>
    %386 = vector.extract_strided_slice %379 {offsets = [0, 32], sizes = [32, 32], strides = [1, 1]} : vector<32x96xf32> to vector<32x32xf32>
    %cst_235 = arith.constant dense<0.000000e+00> : vector<32x32xf32>
    %387 = tpu.matmul %385, %386, %cst_235 {dimension_numbers = #tpu.dot_dimension_numbers<[1], [0], [0], [1], [0, 0, 1, 1], [], []>} : vector<32x32xf32>, vector<32x32xf32>, vector<32x32xf32> -> vector<32x32xf32>
    %388 = arith.addf %383, %387 : vector<32x32xf32>
    %c2_236 = arith.constant 2 : index
    %c0_237 = arith.constant 0 : index
    %c0_238 = arith.constant 0 : index
    %389 = vector.load %arg1[%c2_236, %c0_237, %c0_238] : memref<3x32x32xf32, #tpu.memory_space<vmem>>, vector<1x32x32xf32>
    %390 = vector.shape_cast %389 : vector<1x32x32xf32> to vector<32x32xf32>
    %391 = vector.extract_strided_slice %379 {offsets = [0, 64], sizes = [32, 32], strides = [1, 1]} : vector<32x96xf32> to vector<32x32xf32>
    %cst_239 = arith.constant dense<0.000000e+00> : vector<32x32xf32>
    %392 = tpu.matmul %390, %391, %cst_239 {dimension_numbers = #tpu.dot_dimension_numbers<[1], [0], [0], [1], [0, 0, 1, 1], [], []>} : vector<32x32xf32>, vector<32x32xf32>, vector<32x32xf32> -> vector<32x32xf32>
    %393 = arith.addf %388, %392 : vector<32x32xf32>
    %cst_240 = arith.constant dense<0.000000e+00> : vector<32xf32>
    %394 = vector.multi_reduction <add>, %393, %cst_240 [0] : vector<32x32xf32> to vector<32xf32>
    %395 = vector.shape_cast %394 : vector<32xf32> to vector<1x32xf32>
    %cst_241 = arith.constant 3.200000e+01 : f32
    %396 = vector.broadcast %cst_241 : f32 to vector<1x32xf32>
    %397 = arith.divf %395, %396 : vector<1x32xf32>
    %398 = vector.broadcast %397 : vector<1x32xf32> to vector<32x32xf32>
    %399 = arith.subf %393, %398 : vector<32x32xf32>
    %400 = arith.mulf %399, %399 : vector<32x32xf32>
    %cst_242 = arith.constant dense<0.000000e+00> : vector<32xf32>
    %401 = vector.multi_reduction <add>, %400, %cst_242 [0] : vector<32x32xf32> to vector<32xf32>
    %402 = vector.shape_cast %401 : vector<32xf32> to vector<1x32xf32>
    %cst_243 = arith.constant 3.200000e+01 : f32
    %403 = vector.broadcast %cst_243 : f32 to vector<1x32xf32>
    %404 = arith.divf %402, %403 : vector<1x32xf32>
    %c8_244 = arith.constant 8 : index
    %c0_245 = arith.constant 0 : index
    %c0_246 = arith.constant 0 : index
    %405 = vector.load %arg3[%c8_244, %c0_245, %c0_246] : memref<29x1x32xf32, #tpu.memory_space<vmem>>, vector<1x1x32xf32>
    %406 = vector.shape_cast %405 : vector<1x1x32xf32> to vector<1x32xf32>
    %cst_247 = arith.constant 9.99999974E-6 : f32
    %407 = vector.broadcast %cst_247 : f32 to vector<1x32xf32>
    %408 = arith.addf %404, %407 : vector<1x32xf32>
    %409 = math.rsqrt %408 : vector<1x32xf32>
    %410 = arith.mulf %406, %409 : vector<1x32xf32>
    %c8_248 = arith.constant 8 : index
    %c0_249 = arith.constant 0 : index
    %c0_250 = arith.constant 0 : index
    %411 = vector.load %arg4[%c8_248, %c0_249, %c0_250] : memref<29x1x32xf32, #tpu.memory_space<vmem>>, vector<1x1x32xf32>
    %412 = vector.shape_cast %411 : vector<1x1x32xf32> to vector<1x32xf32>
    %413 = arith.mulf %397, %410 : vector<1x32xf32>
    %414 = arith.subf %412, %413 : vector<1x32xf32>
    %415 = vector.broadcast %410 : vector<1x32xf32> to vector<32x32xf32>
    %416 = arith.mulf %393, %415 : vector<32x32xf32>
    %417 = vector.broadcast %414 : vector<1x32xf32> to vector<32x32xf32>
    %418 = arith.addf %416, %417 : vector<32x32xf32>
    %cst_251 = arith.constant 0.000000e+00 : f32
    %419 = vector.broadcast %cst_251 : f32 to vector<32x32xf32>
    %420 = arith.cmpf oge, %418, %419 : vector<32x32xf32>
    %cst_252 = arith.constant 2.000000e-01 : f32
    %421 = vector.broadcast %cst_252 : f32 to vector<32x32xf32>
    %422 = arith.mulf %421, %418 : vector<32x32xf32>
    %423 = arith.select %420, %418, %422 : vector<32x32xi1>, vector<32x32xf32>
    %c9 = arith.constant 9 : index
    %c0_253 = arith.constant 0 : index
    %c0_254 = arith.constant 0 : index
    %424 = vector.load %arg2[%c9, %c0_253, %c0_254] : memref<29x32x96xf32, #tpu.memory_space<vmem>>, vector<1x32x96xf32>
    %425 = vector.shape_cast %424 : vector<1x32x96xf32> to vector<32x96xf32>
    %cst_255 = arith.constant dense<0.000000e+00> : vector<32x96xf32>
    %426 = tpu.matmul %423, %425, %cst_255 {dimension_numbers = #tpu.dot_dimension_numbers<[1], [0], [0], [1], [0, 0, 1, 1], [], []>} : vector<32x32xf32>, vector<32x96xf32>, vector<32x96xf32> -> vector<32x96xf32>
    %c0_256 = arith.constant 0 : index
    %c0_257 = arith.constant 0 : index
    %c0_258 = arith.constant 0 : index
    %427 = vector.load %arg1[%c0_256, %c0_257, %c0_258] : memref<3x32x32xf32, #tpu.memory_space<vmem>>, vector<1x32x32xf32>
    %428 = vector.shape_cast %427 : vector<1x32x32xf32> to vector<32x32xf32>
    %429 = vector.extract_strided_slice %426 {offsets = [0, 0], sizes = [32, 32], strides = [1, 1]} : vector<32x96xf32> to vector<32x32xf32>
    %cst_259 = arith.constant dense<0.000000e+00> : vector<32x32xf32>
    %430 = tpu.matmul %428, %429, %cst_259 {dimension_numbers = #tpu.dot_dimension_numbers<[1], [0], [0], [1], [0, 0, 1, 1], [], []>} : vector<32x32xf32>, vector<32x32xf32>, vector<32x32xf32> -> vector<32x32xf32>
    %c1_260 = arith.constant 1 : index
    %c0_261 = arith.constant 0 : index
    %c0_262 = arith.constant 0 : index
    %431 = vector.load %arg1[%c1_260, %c0_261, %c0_262] : memref<3x32x32xf32, #tpu.memory_space<vmem>>, vector<1x32x32xf32>
    %432 = vector.shape_cast %431 : vector<1x32x32xf32> to vector<32x32xf32>
    %433 = vector.extract_strided_slice %426 {offsets = [0, 32], sizes = [32, 32], strides = [1, 1]} : vector<32x96xf32> to vector<32x32xf32>
    %cst_263 = arith.constant dense<0.000000e+00> : vector<32x32xf32>
    %434 = tpu.matmul %432, %433, %cst_263 {dimension_numbers = #tpu.dot_dimension_numbers<[1], [0], [0], [1], [0, 0, 1, 1], [], []>} : vector<32x32xf32>, vector<32x32xf32>, vector<32x32xf32> -> vector<32x32xf32>
    %435 = arith.addf %430, %434 : vector<32x32xf32>
    %c2_264 = arith.constant 2 : index
    %c0_265 = arith.constant 0 : index
    %c0_266 = arith.constant 0 : index
    %436 = vector.load %arg1[%c2_264, %c0_265, %c0_266] : memref<3x32x32xf32, #tpu.memory_space<vmem>>, vector<1x32x32xf32>
    %437 = vector.shape_cast %436 : vector<1x32x32xf32> to vector<32x32xf32>
    %438 = vector.extract_strided_slice %426 {offsets = [0, 64], sizes = [32, 32], strides = [1, 1]} : vector<32x96xf32> to vector<32x32xf32>
    %cst_267 = arith.constant dense<0.000000e+00> : vector<32x32xf32>
    %439 = tpu.matmul %437, %438, %cst_267 {dimension_numbers = #tpu.dot_dimension_numbers<[1], [0], [0], [1], [0, 0, 1, 1], [], []>} : vector<32x32xf32>, vector<32x32xf32>, vector<32x32xf32> -> vector<32x32xf32>
    %440 = arith.addf %435, %439 : vector<32x32xf32>
    %cst_268 = arith.constant dense<0.000000e+00> : vector<32xf32>
    %441 = vector.multi_reduction <add>, %440, %cst_268 [0] : vector<32x32xf32> to vector<32xf32>
    %442 = vector.shape_cast %441 : vector<32xf32> to vector<1x32xf32>
    %cst_269 = arith.constant 3.200000e+01 : f32
    %443 = vector.broadcast %cst_269 : f32 to vector<1x32xf32>
    %444 = arith.divf %442, %443 : vector<1x32xf32>
    %445 = vector.broadcast %444 : vector<1x32xf32> to vector<32x32xf32>
    %446 = arith.subf %440, %445 : vector<32x32xf32>
    %447 = arith.mulf %446, %446 : vector<32x32xf32>
    %cst_270 = arith.constant dense<0.000000e+00> : vector<32xf32>
    %448 = vector.multi_reduction <add>, %447, %cst_270 [0] : vector<32x32xf32> to vector<32xf32>
    %449 = vector.shape_cast %448 : vector<32xf32> to vector<1x32xf32>
    %cst_271 = arith.constant 3.200000e+01 : f32
    %450 = vector.broadcast %cst_271 : f32 to vector<1x32xf32>
    %451 = arith.divf %449, %450 : vector<1x32xf32>
    %c9_272 = arith.constant 9 : index
    %c0_273 = arith.constant 0 : index
    %c0_274 = arith.constant 0 : index
    %452 = vector.load %arg3[%c9_272, %c0_273, %c0_274] : memref<29x1x32xf32, #tpu.memory_space<vmem>>, vector<1x1x32xf32>
    %453 = vector.shape_cast %452 : vector<1x1x32xf32> to vector<1x32xf32>
    %cst_275 = arith.constant 9.99999974E-6 : f32
    %454 = vector.broadcast %cst_275 : f32 to vector<1x32xf32>
    %455 = arith.addf %451, %454 : vector<1x32xf32>
    %456 = math.rsqrt %455 : vector<1x32xf32>
    %457 = arith.mulf %453, %456 : vector<1x32xf32>
    %c9_276 = arith.constant 9 : index
    %c0_277 = arith.constant 0 : index
    %c0_278 = arith.constant 0 : index
    %458 = vector.load %arg4[%c9_276, %c0_277, %c0_278] : memref<29x1x32xf32, #tpu.memory_space<vmem>>, vector<1x1x32xf32>
    %459 = vector.shape_cast %458 : vector<1x1x32xf32> to vector<1x32xf32>
    %460 = arith.mulf %444, %457 : vector<1x32xf32>
    %461 = arith.subf %459, %460 : vector<1x32xf32>
    %462 = vector.broadcast %457 : vector<1x32xf32> to vector<32x32xf32>
    %463 = arith.mulf %440, %462 : vector<32x32xf32>
    %464 = vector.broadcast %461 : vector<1x32xf32> to vector<32x32xf32>
    %465 = arith.addf %463, %464 : vector<32x32xf32>
    %cst_279 = arith.constant 0.000000e+00 : f32
    %466 = vector.broadcast %cst_279 : f32 to vector<32x32xf32>
    %467 = arith.cmpf oge, %465, %466 : vector<32x32xf32>
    %cst_280 = arith.constant 2.000000e-01 : f32
    %468 = vector.broadcast %cst_280 : f32 to vector<32x32xf32>
    %469 = arith.mulf %468, %465 : vector<32x32xf32>
    %470 = arith.select %467, %465, %469 : vector<32x32xi1>, vector<32x32xf32>
    %c10 = arith.constant 10 : index
    %c0_281 = arith.constant 0 : index
    %c0_282 = arith.constant 0 : index
    %471 = vector.load %arg2[%c10, %c0_281, %c0_282] : memref<29x32x96xf32, #tpu.memory_space<vmem>>, vector<1x32x96xf32>
    %472 = vector.shape_cast %471 : vector<1x32x96xf32> to vector<32x96xf32>
    %cst_283 = arith.constant dense<0.000000e+00> : vector<32x96xf32>
    %473 = tpu.matmul %470, %472, %cst_283 {dimension_numbers = #tpu.dot_dimension_numbers<[1], [0], [0], [1], [0, 0, 1, 1], [], []>} : vector<32x32xf32>, vector<32x96xf32>, vector<32x96xf32> -> vector<32x96xf32>
    %c0_284 = arith.constant 0 : index
    %c0_285 = arith.constant 0 : index
    %c0_286 = arith.constant 0 : index
    %474 = vector.load %arg1[%c0_284, %c0_285, %c0_286] : memref<3x32x32xf32, #tpu.memory_space<vmem>>, vector<1x32x32xf32>
    %475 = vector.shape_cast %474 : vector<1x32x32xf32> to vector<32x32xf32>
    %476 = vector.extract_strided_slice %473 {offsets = [0, 0], sizes = [32, 32], strides = [1, 1]} : vector<32x96xf32> to vector<32x32xf32>
    %cst_287 = arith.constant dense<0.000000e+00> : vector<32x32xf32>
    %477 = tpu.matmul %475, %476, %cst_287 {dimension_numbers = #tpu.dot_dimension_numbers<[1], [0], [0], [1], [0, 0, 1, 1], [], []>} : vector<32x32xf32>, vector<32x32xf32>, vector<32x32xf32> -> vector<32x32xf32>
    %c1_288 = arith.constant 1 : index
    %c0_289 = arith.constant 0 : index
    %c0_290 = arith.constant 0 : index
    %478 = vector.load %arg1[%c1_288, %c0_289, %c0_290] : memref<3x32x32xf32, #tpu.memory_space<vmem>>, vector<1x32x32xf32>
    %479 = vector.shape_cast %478 : vector<1x32x32xf32> to vector<32x32xf32>
    %480 = vector.extract_strided_slice %473 {offsets = [0, 32], sizes = [32, 32], strides = [1, 1]} : vector<32x96xf32> to vector<32x32xf32>
    %cst_291 = arith.constant dense<0.000000e+00> : vector<32x32xf32>
    %481 = tpu.matmul %479, %480, %cst_291 {dimension_numbers = #tpu.dot_dimension_numbers<[1], [0], [0], [1], [0, 0, 1, 1], [], []>} : vector<32x32xf32>, vector<32x32xf32>, vector<32x32xf32> -> vector<32x32xf32>
    %482 = arith.addf %477, %481 : vector<32x32xf32>
    %c2_292 = arith.constant 2 : index
    %c0_293 = arith.constant 0 : index
    %c0_294 = arith.constant 0 : index
    %483 = vector.load %arg1[%c2_292, %c0_293, %c0_294] : memref<3x32x32xf32, #tpu.memory_space<vmem>>, vector<1x32x32xf32>
    %484 = vector.shape_cast %483 : vector<1x32x32xf32> to vector<32x32xf32>
    %485 = vector.extract_strided_slice %473 {offsets = [0, 64], sizes = [32, 32], strides = [1, 1]} : vector<32x96xf32> to vector<32x32xf32>
    %cst_295 = arith.constant dense<0.000000e+00> : vector<32x32xf32>
    %486 = tpu.matmul %484, %485, %cst_295 {dimension_numbers = #tpu.dot_dimension_numbers<[1], [0], [0], [1], [0, 0, 1, 1], [], []>} : vector<32x32xf32>, vector<32x32xf32>, vector<32x32xf32> -> vector<32x32xf32>
    %487 = arith.addf %482, %486 : vector<32x32xf32>
    %cst_296 = arith.constant dense<0.000000e+00> : vector<32xf32>
    %488 = vector.multi_reduction <add>, %487, %cst_296 [0] : vector<32x32xf32> to vector<32xf32>
    %489 = vector.shape_cast %488 : vector<32xf32> to vector<1x32xf32>
    %cst_297 = arith.constant 3.200000e+01 : f32
    %490 = vector.broadcast %cst_297 : f32 to vector<1x32xf32>
    %491 = arith.divf %489, %490 : vector<1x32xf32>
    %492 = vector.broadcast %491 : vector<1x32xf32> to vector<32x32xf32>
    %493 = arith.subf %487, %492 : vector<32x32xf32>
    %494 = arith.mulf %493, %493 : vector<32x32xf32>
    %cst_298 = arith.constant dense<0.000000e+00> : vector<32xf32>
    %495 = vector.multi_reduction <add>, %494, %cst_298 [0] : vector<32x32xf32> to vector<32xf32>
    %496 = vector.shape_cast %495 : vector<32xf32> to vector<1x32xf32>
    %cst_299 = arith.constant 3.200000e+01 : f32
    %497 = vector.broadcast %cst_299 : f32 to vector<1x32xf32>
    %498 = arith.divf %496, %497 : vector<1x32xf32>
    %c10_300 = arith.constant 10 : index
    %c0_301 = arith.constant 0 : index
    %c0_302 = arith.constant 0 : index
    %499 = vector.load %arg3[%c10_300, %c0_301, %c0_302] : memref<29x1x32xf32, #tpu.memory_space<vmem>>, vector<1x1x32xf32>
    %500 = vector.shape_cast %499 : vector<1x1x32xf32> to vector<1x32xf32>
    %cst_303 = arith.constant 9.99999974E-6 : f32
    %501 = vector.broadcast %cst_303 : f32 to vector<1x32xf32>
    %502 = arith.addf %498, %501 : vector<1x32xf32>
    %503 = math.rsqrt %502 : vector<1x32xf32>
    %504 = arith.mulf %500, %503 : vector<1x32xf32>
    %c10_304 = arith.constant 10 : index
    %c0_305 = arith.constant 0 : index
    %c0_306 = arith.constant 0 : index
    %505 = vector.load %arg4[%c10_304, %c0_305, %c0_306] : memref<29x1x32xf32, #tpu.memory_space<vmem>>, vector<1x1x32xf32>
    %506 = vector.shape_cast %505 : vector<1x1x32xf32> to vector<1x32xf32>
    %507 = arith.mulf %491, %504 : vector<1x32xf32>
    %508 = arith.subf %506, %507 : vector<1x32xf32>
    %509 = vector.broadcast %504 : vector<1x32xf32> to vector<32x32xf32>
    %510 = arith.mulf %487, %509 : vector<32x32xf32>
    %511 = vector.broadcast %508 : vector<1x32xf32> to vector<32x32xf32>
    %512 = arith.addf %510, %511 : vector<32x32xf32>
    %cst_307 = arith.constant 0.000000e+00 : f32
    %513 = vector.broadcast %cst_307 : f32 to vector<32x32xf32>
    %514 = arith.cmpf oge, %512, %513 : vector<32x32xf32>
    %cst_308 = arith.constant 2.000000e-01 : f32
    %515 = vector.broadcast %cst_308 : f32 to vector<32x32xf32>
    %516 = arith.mulf %515, %512 : vector<32x32xf32>
    %517 = arith.select %514, %512, %516 : vector<32x32xi1>, vector<32x32xf32>
    %c11 = arith.constant 11 : index
    %c0_309 = arith.constant 0 : index
    %c0_310 = arith.constant 0 : index
    %518 = vector.load %arg2[%c11, %c0_309, %c0_310] : memref<29x32x96xf32, #tpu.memory_space<vmem>>, vector<1x32x96xf32>
    %519 = vector.shape_cast %518 : vector<1x32x96xf32> to vector<32x96xf32>
    %cst_311 = arith.constant dense<0.000000e+00> : vector<32x96xf32>
    %520 = tpu.matmul %517, %519, %cst_311 {dimension_numbers = #tpu.dot_dimension_numbers<[1], [0], [0], [1], [0, 0, 1, 1], [], []>} : vector<32x32xf32>, vector<32x96xf32>, vector<32x96xf32> -> vector<32x96xf32>
    %c0_312 = arith.constant 0 : index
    %c0_313 = arith.constant 0 : index
    %c0_314 = arith.constant 0 : index
    %521 = vector.load %arg1[%c0_312, %c0_313, %c0_314] : memref<3x32x32xf32, #tpu.memory_space<vmem>>, vector<1x32x32xf32>
    %522 = vector.shape_cast %521 : vector<1x32x32xf32> to vector<32x32xf32>
    %523 = vector.extract_strided_slice %520 {offsets = [0, 0], sizes = [32, 32], strides = [1, 1]} : vector<32x96xf32> to vector<32x32xf32>
    %cst_315 = arith.constant dense<0.000000e+00> : vector<32x32xf32>
    %524 = tpu.matmul %522, %523, %cst_315 {dimension_numbers = #tpu.dot_dimension_numbers<[1], [0], [0], [1], [0, 0, 1, 1], [], []>} : vector<32x32xf32>, vector<32x32xf32>, vector<32x32xf32> -> vector<32x32xf32>
    %c1_316 = arith.constant 1 : index
    %c0_317 = arith.constant 0 : index
    %c0_318 = arith.constant 0 : index
    %525 = vector.load %arg1[%c1_316, %c0_317, %c0_318] : memref<3x32x32xf32, #tpu.memory_space<vmem>>, vector<1x32x32xf32>
    %526 = vector.shape_cast %525 : vector<1x32x32xf32> to vector<32x32xf32>
    %527 = vector.extract_strided_slice %520 {offsets = [0, 32], sizes = [32, 32], strides = [1, 1]} : vector<32x96xf32> to vector<32x32xf32>
    %cst_319 = arith.constant dense<0.000000e+00> : vector<32x32xf32>
    %528 = tpu.matmul %526, %527, %cst_319 {dimension_numbers = #tpu.dot_dimension_numbers<[1], [0], [0], [1], [0, 0, 1, 1], [], []>} : vector<32x32xf32>, vector<32x32xf32>, vector<32x32xf32> -> vector<32x32xf32>
    %529 = arith.addf %524, %528 : vector<32x32xf32>
    %c2_320 = arith.constant 2 : index
    %c0_321 = arith.constant 0 : index
    %c0_322 = arith.constant 0 : index
    %530 = vector.load %arg1[%c2_320, %c0_321, %c0_322] : memref<3x32x32xf32, #tpu.memory_space<vmem>>, vector<1x32x32xf32>
    %531 = vector.shape_cast %530 : vector<1x32x32xf32> to vector<32x32xf32>
    %532 = vector.extract_strided_slice %520 {offsets = [0, 64], sizes = [32, 32], strides = [1, 1]} : vector<32x96xf32> to vector<32x32xf32>
    %cst_323 = arith.constant dense<0.000000e+00> : vector<32x32xf32>
    %533 = tpu.matmul %531, %532, %cst_323 {dimension_numbers = #tpu.dot_dimension_numbers<[1], [0], [0], [1], [0, 0, 1, 1], [], []>} : vector<32x32xf32>, vector<32x32xf32>, vector<32x32xf32> -> vector<32x32xf32>
    %534 = arith.addf %529, %533 : vector<32x32xf32>
    %cst_324 = arith.constant dense<0.000000e+00> : vector<32xf32>
    %535 = vector.multi_reduction <add>, %534, %cst_324 [0] : vector<32x32xf32> to vector<32xf32>
    %536 = vector.shape_cast %535 : vector<32xf32> to vector<1x32xf32>
    %cst_325 = arith.constant 3.200000e+01 : f32
    %537 = vector.broadcast %cst_325 : f32 to vector<1x32xf32>
    %538 = arith.divf %536, %537 : vector<1x32xf32>
    %539 = vector.broadcast %538 : vector<1x32xf32> to vector<32x32xf32>
    %540 = arith.subf %534, %539 : vector<32x32xf32>
    %541 = arith.mulf %540, %540 : vector<32x32xf32>
    %cst_326 = arith.constant dense<0.000000e+00> : vector<32xf32>
    %542 = vector.multi_reduction <add>, %541, %cst_326 [0] : vector<32x32xf32> to vector<32xf32>
    %543 = vector.shape_cast %542 : vector<32xf32> to vector<1x32xf32>
    %cst_327 = arith.constant 3.200000e+01 : f32
    %544 = vector.broadcast %cst_327 : f32 to vector<1x32xf32>
    %545 = arith.divf %543, %544 : vector<1x32xf32>
    %c11_328 = arith.constant 11 : index
    %c0_329 = arith.constant 0 : index
    %c0_330 = arith.constant 0 : index
    %546 = vector.load %arg3[%c11_328, %c0_329, %c0_330] : memref<29x1x32xf32, #tpu.memory_space<vmem>>, vector<1x1x32xf32>
    %547 = vector.shape_cast %546 : vector<1x1x32xf32> to vector<1x32xf32>
    %cst_331 = arith.constant 9.99999974E-6 : f32
    %548 = vector.broadcast %cst_331 : f32 to vector<1x32xf32>
    %549 = arith.addf %545, %548 : vector<1x32xf32>
    %550 = math.rsqrt %549 : vector<1x32xf32>
    %551 = arith.mulf %547, %550 : vector<1x32xf32>
    %c11_332 = arith.constant 11 : index
    %c0_333 = arith.constant 0 : index
    %c0_334 = arith.constant 0 : index
    %552 = vector.load %arg4[%c11_332, %c0_333, %c0_334] : memref<29x1x32xf32, #tpu.memory_space<vmem>>, vector<1x1x32xf32>
    %553 = vector.shape_cast %552 : vector<1x1x32xf32> to vector<1x32xf32>
    %554 = arith.mulf %538, %551 : vector<1x32xf32>
    %555 = arith.subf %553, %554 : vector<1x32xf32>
    %556 = vector.broadcast %551 : vector<1x32xf32> to vector<32x32xf32>
    %557 = arith.mulf %534, %556 : vector<32x32xf32>
    %558 = vector.broadcast %555 : vector<1x32xf32> to vector<32x32xf32>
    %559 = arith.addf %557, %558 : vector<32x32xf32>
    %cst_335 = arith.constant 0.000000e+00 : f32
    %560 = vector.broadcast %cst_335 : f32 to vector<32x32xf32>
    %561 = arith.cmpf oge, %559, %560 : vector<32x32xf32>
    %cst_336 = arith.constant 2.000000e-01 : f32
    %562 = vector.broadcast %cst_336 : f32 to vector<32x32xf32>
    %563 = arith.mulf %562, %559 : vector<32x32xf32>
    %564 = arith.select %561, %559, %563 : vector<32x32xi1>, vector<32x32xf32>
    %c12 = arith.constant 12 : index
    %c0_337 = arith.constant 0 : index
    %c0_338 = arith.constant 0 : index
    %565 = vector.load %arg2[%c12, %c0_337, %c0_338] : memref<29x32x96xf32, #tpu.memory_space<vmem>>, vector<1x32x96xf32>
    %566 = vector.shape_cast %565 : vector<1x32x96xf32> to vector<32x96xf32>
    %cst_339 = arith.constant dense<0.000000e+00> : vector<32x96xf32>
    %567 = tpu.matmul %564, %566, %cst_339 {dimension_numbers = #tpu.dot_dimension_numbers<[1], [0], [0], [1], [0, 0, 1, 1], [], []>} : vector<32x32xf32>, vector<32x96xf32>, vector<32x96xf32> -> vector<32x96xf32>
    %c0_340 = arith.constant 0 : index
    %c0_341 = arith.constant 0 : index
    %c0_342 = arith.constant 0 : index
    %568 = vector.load %arg1[%c0_340, %c0_341, %c0_342] : memref<3x32x32xf32, #tpu.memory_space<vmem>>, vector<1x32x32xf32>
    %569 = vector.shape_cast %568 : vector<1x32x32xf32> to vector<32x32xf32>
    %570 = vector.extract_strided_slice %567 {offsets = [0, 0], sizes = [32, 32], strides = [1, 1]} : vector<32x96xf32> to vector<32x32xf32>
    %cst_343 = arith.constant dense<0.000000e+00> : vector<32x32xf32>
    %571 = tpu.matmul %569, %570, %cst_343 {dimension_numbers = #tpu.dot_dimension_numbers<[1], [0], [0], [1], [0, 0, 1, 1], [], []>} : vector<32x32xf32>, vector<32x32xf32>, vector<32x32xf32> -> vector<32x32xf32>
    %c1_344 = arith.constant 1 : index
    %c0_345 = arith.constant 0 : index
    %c0_346 = arith.constant 0 : index
    %572 = vector.load %arg1[%c1_344, %c0_345, %c0_346] : memref<3x32x32xf32, #tpu.memory_space<vmem>>, vector<1x32x32xf32>
    %573 = vector.shape_cast %572 : vector<1x32x32xf32> to vector<32x32xf32>
    %574 = vector.extract_strided_slice %567 {offsets = [0, 32], sizes = [32, 32], strides = [1, 1]} : vector<32x96xf32> to vector<32x32xf32>
    %cst_347 = arith.constant dense<0.000000e+00> : vector<32x32xf32>
    %575 = tpu.matmul %573, %574, %cst_347 {dimension_numbers = #tpu.dot_dimension_numbers<[1], [0], [0], [1], [0, 0, 1, 1], [], []>} : vector<32x32xf32>, vector<32x32xf32>, vector<32x32xf32> -> vector<32x32xf32>
    %576 = arith.addf %571, %575 : vector<32x32xf32>
    %c2_348 = arith.constant 2 : index
    %c0_349 = arith.constant 0 : index
    %c0_350 = arith.constant 0 : index
    %577 = vector.load %arg1[%c2_348, %c0_349, %c0_350] : memref<3x32x32xf32, #tpu.memory_space<vmem>>, vector<1x32x32xf32>
    %578 = vector.shape_cast %577 : vector<1x32x32xf32> to vector<32x32xf32>
    %579 = vector.extract_strided_slice %567 {offsets = [0, 64], sizes = [32, 32], strides = [1, 1]} : vector<32x96xf32> to vector<32x32xf32>
    %cst_351 = arith.constant dense<0.000000e+00> : vector<32x32xf32>
    %580 = tpu.matmul %578, %579, %cst_351 {dimension_numbers = #tpu.dot_dimension_numbers<[1], [0], [0], [1], [0, 0, 1, 1], [], []>} : vector<32x32xf32>, vector<32x32xf32>, vector<32x32xf32> -> vector<32x32xf32>
    %581 = arith.addf %576, %580 : vector<32x32xf32>
    %cst_352 = arith.constant dense<0.000000e+00> : vector<32xf32>
    %582 = vector.multi_reduction <add>, %581, %cst_352 [0] : vector<32x32xf32> to vector<32xf32>
    %583 = vector.shape_cast %582 : vector<32xf32> to vector<1x32xf32>
    %cst_353 = arith.constant 3.200000e+01 : f32
    %584 = vector.broadcast %cst_353 : f32 to vector<1x32xf32>
    %585 = arith.divf %583, %584 : vector<1x32xf32>
    %586 = vector.broadcast %585 : vector<1x32xf32> to vector<32x32xf32>
    %587 = arith.subf %581, %586 : vector<32x32xf32>
    %588 = arith.mulf %587, %587 : vector<32x32xf32>
    %cst_354 = arith.constant dense<0.000000e+00> : vector<32xf32>
    %589 = vector.multi_reduction <add>, %588, %cst_354 [0] : vector<32x32xf32> to vector<32xf32>
    %590 = vector.shape_cast %589 : vector<32xf32> to vector<1x32xf32>
    %cst_355 = arith.constant 3.200000e+01 : f32
    %591 = vector.broadcast %cst_355 : f32 to vector<1x32xf32>
    %592 = arith.divf %590, %591 : vector<1x32xf32>
    %c12_356 = arith.constant 12 : index
    %c0_357 = arith.constant 0 : index
    %c0_358 = arith.constant 0 : index
    %593 = vector.load %arg3[%c12_356, %c0_357, %c0_358] : memref<29x1x32xf32, #tpu.memory_space<vmem>>, vector<1x1x32xf32>
    %594 = vector.shape_cast %593 : vector<1x1x32xf32> to vector<1x32xf32>
    %cst_359 = arith.constant 9.99999974E-6 : f32
    %595 = vector.broadcast %cst_359 : f32 to vector<1x32xf32>
    %596 = arith.addf %592, %595 : vector<1x32xf32>
    %597 = math.rsqrt %596 : vector<1x32xf32>
    %598 = arith.mulf %594, %597 : vector<1x32xf32>
    %c12_360 = arith.constant 12 : index
    %c0_361 = arith.constant 0 : index
    %c0_362 = arith.constant 0 : index
    %599 = vector.load %arg4[%c12_360, %c0_361, %c0_362] : memref<29x1x32xf32, #tpu.memory_space<vmem>>, vector<1x1x32xf32>
    %600 = vector.shape_cast %599 : vector<1x1x32xf32> to vector<1x32xf32>
    %601 = arith.mulf %585, %598 : vector<1x32xf32>
    %602 = arith.subf %600, %601 : vector<1x32xf32>
    %603 = vector.broadcast %598 : vector<1x32xf32> to vector<32x32xf32>
    %604 = arith.mulf %581, %603 : vector<32x32xf32>
    %605 = vector.broadcast %602 : vector<1x32xf32> to vector<32x32xf32>
    %606 = arith.addf %604, %605 : vector<32x32xf32>
    %cst_363 = arith.constant 0.000000e+00 : f32
    %607 = vector.broadcast %cst_363 : f32 to vector<32x32xf32>
    %608 = arith.cmpf oge, %606, %607 : vector<32x32xf32>
    %cst_364 = arith.constant 2.000000e-01 : f32
    %609 = vector.broadcast %cst_364 : f32 to vector<32x32xf32>
    %610 = arith.mulf %609, %606 : vector<32x32xf32>
    %611 = arith.select %608, %606, %610 : vector<32x32xi1>, vector<32x32xf32>
    %c13 = arith.constant 13 : index
    %c0_365 = arith.constant 0 : index
    %c0_366 = arith.constant 0 : index
    %612 = vector.load %arg2[%c13, %c0_365, %c0_366] : memref<29x32x96xf32, #tpu.memory_space<vmem>>, vector<1x32x96xf32>
    %613 = vector.shape_cast %612 : vector<1x32x96xf32> to vector<32x96xf32>
    %cst_367 = arith.constant dense<0.000000e+00> : vector<32x96xf32>
    %614 = tpu.matmul %611, %613, %cst_367 {dimension_numbers = #tpu.dot_dimension_numbers<[1], [0], [0], [1], [0, 0, 1, 1], [], []>} : vector<32x32xf32>, vector<32x96xf32>, vector<32x96xf32> -> vector<32x96xf32>
    %c0_368 = arith.constant 0 : index
    %c0_369 = arith.constant 0 : index
    %c0_370 = arith.constant 0 : index
    %615 = vector.load %arg1[%c0_368, %c0_369, %c0_370] : memref<3x32x32xf32, #tpu.memory_space<vmem>>, vector<1x32x32xf32>
    %616 = vector.shape_cast %615 : vector<1x32x32xf32> to vector<32x32xf32>
    %617 = vector.extract_strided_slice %614 {offsets = [0, 0], sizes = [32, 32], strides = [1, 1]} : vector<32x96xf32> to vector<32x32xf32>
    %cst_371 = arith.constant dense<0.000000e+00> : vector<32x32xf32>
    %618 = tpu.matmul %616, %617, %cst_371 {dimension_numbers = #tpu.dot_dimension_numbers<[1], [0], [0], [1], [0, 0, 1, 1], [], []>} : vector<32x32xf32>, vector<32x32xf32>, vector<32x32xf32> -> vector<32x32xf32>
    %c1_372 = arith.constant 1 : index
    %c0_373 = arith.constant 0 : index
    %c0_374 = arith.constant 0 : index
    %619 = vector.load %arg1[%c1_372, %c0_373, %c0_374] : memref<3x32x32xf32, #tpu.memory_space<vmem>>, vector<1x32x32xf32>
    %620 = vector.shape_cast %619 : vector<1x32x32xf32> to vector<32x32xf32>
    %621 = vector.extract_strided_slice %614 {offsets = [0, 32], sizes = [32, 32], strides = [1, 1]} : vector<32x96xf32> to vector<32x32xf32>
    %cst_375 = arith.constant dense<0.000000e+00> : vector<32x32xf32>
    %622 = tpu.matmul %620, %621, %cst_375 {dimension_numbers = #tpu.dot_dimension_numbers<[1], [0], [0], [1], [0, 0, 1, 1], [], []>} : vector<32x32xf32>, vector<32x32xf32>, vector<32x32xf32> -> vector<32x32xf32>
    %623 = arith.addf %618, %622 : vector<32x32xf32>
    %c2_376 = arith.constant 2 : index
    %c0_377 = arith.constant 0 : index
    %c0_378 = arith.constant 0 : index
    %624 = vector.load %arg1[%c2_376, %c0_377, %c0_378] : memref<3x32x32xf32, #tpu.memory_space<vmem>>, vector<1x32x32xf32>
    %625 = vector.shape_cast %624 : vector<1x32x32xf32> to vector<32x32xf32>
    %626 = vector.extract_strided_slice %614 {offsets = [0, 64], sizes = [32, 32], strides = [1, 1]} : vector<32x96xf32> to vector<32x32xf32>
    %cst_379 = arith.constant dense<0.000000e+00> : vector<32x32xf32>
    %627 = tpu.matmul %625, %626, %cst_379 {dimension_numbers = #tpu.dot_dimension_numbers<[1], [0], [0], [1], [0, 0, 1, 1], [], []>} : vector<32x32xf32>, vector<32x32xf32>, vector<32x32xf32> -> vector<32x32xf32>
    %628 = arith.addf %623, %627 : vector<32x32xf32>
    %cst_380 = arith.constant dense<0.000000e+00> : vector<32xf32>
    %629 = vector.multi_reduction <add>, %628, %cst_380 [0] : vector<32x32xf32> to vector<32xf32>
    %630 = vector.shape_cast %629 : vector<32xf32> to vector<1x32xf32>
    %cst_381 = arith.constant 3.200000e+01 : f32
    %631 = vector.broadcast %cst_381 : f32 to vector<1x32xf32>
    %632 = arith.divf %630, %631 : vector<1x32xf32>
    %633 = vector.broadcast %632 : vector<1x32xf32> to vector<32x32xf32>
    %634 = arith.subf %628, %633 : vector<32x32xf32>
    %635 = arith.mulf %634, %634 : vector<32x32xf32>
    %cst_382 = arith.constant dense<0.000000e+00> : vector<32xf32>
    %636 = vector.multi_reduction <add>, %635, %cst_382 [0] : vector<32x32xf32> to vector<32xf32>
    %637 = vector.shape_cast %636 : vector<32xf32> to vector<1x32xf32>
    %cst_383 = arith.constant 3.200000e+01 : f32
    %638 = vector.broadcast %cst_383 : f32 to vector<1x32xf32>
    %639 = arith.divf %637, %638 : vector<1x32xf32>
    %c13_384 = arith.constant 13 : index
    %c0_385 = arith.constant 0 : index
    %c0_386 = arith.constant 0 : index
    %640 = vector.load %arg3[%c13_384, %c0_385, %c0_386] : memref<29x1x32xf32, #tpu.memory_space<vmem>>, vector<1x1x32xf32>
    %641 = vector.shape_cast %640 : vector<1x1x32xf32> to vector<1x32xf32>
    %cst_387 = arith.constant 9.99999974E-6 : f32
    %642 = vector.broadcast %cst_387 : f32 to vector<1x32xf32>
    %643 = arith.addf %639, %642 : vector<1x32xf32>
    %644 = math.rsqrt %643 : vector<1x32xf32>
    %645 = arith.mulf %641, %644 : vector<1x32xf32>
    %c13_388 = arith.constant 13 : index
    %c0_389 = arith.constant 0 : index
    %c0_390 = arith.constant 0 : index
    %646 = vector.load %arg4[%c13_388, %c0_389, %c0_390] : memref<29x1x32xf32, #tpu.memory_space<vmem>>, vector<1x1x32xf32>
    %647 = vector.shape_cast %646 : vector<1x1x32xf32> to vector<1x32xf32>
    %648 = arith.mulf %632, %645 : vector<1x32xf32>
    %649 = arith.subf %647, %648 : vector<1x32xf32>
    %650 = vector.broadcast %645 : vector<1x32xf32> to vector<32x32xf32>
    %651 = arith.mulf %628, %650 : vector<32x32xf32>
    %652 = vector.broadcast %649 : vector<1x32xf32> to vector<32x32xf32>
    %653 = arith.addf %651, %652 : vector<32x32xf32>
    %cst_391 = arith.constant 0.000000e+00 : f32
    %654 = vector.broadcast %cst_391 : f32 to vector<32x32xf32>
    %655 = arith.cmpf oge, %653, %654 : vector<32x32xf32>
    %cst_392 = arith.constant 2.000000e-01 : f32
    %656 = vector.broadcast %cst_392 : f32 to vector<32x32xf32>
    %657 = arith.mulf %656, %653 : vector<32x32xf32>
    %658 = arith.select %655, %653, %657 : vector<32x32xi1>, vector<32x32xf32>
    %c14 = arith.constant 14 : index
    %c0_393 = arith.constant 0 : index
    %c0_394 = arith.constant 0 : index
    %659 = vector.load %arg2[%c14, %c0_393, %c0_394] : memref<29x32x96xf32, #tpu.memory_space<vmem>>, vector<1x32x96xf32>
    %660 = vector.shape_cast %659 : vector<1x32x96xf32> to vector<32x96xf32>
    %cst_395 = arith.constant dense<0.000000e+00> : vector<32x96xf32>
    %661 = tpu.matmul %658, %660, %cst_395 {dimension_numbers = #tpu.dot_dimension_numbers<[1], [0], [0], [1], [0, 0, 1, 1], [], []>} : vector<32x32xf32>, vector<32x96xf32>, vector<32x96xf32> -> vector<32x96xf32>
    %c0_396 = arith.constant 0 : index
    %c0_397 = arith.constant 0 : index
    %c0_398 = arith.constant 0 : index
    %662 = vector.load %arg1[%c0_396, %c0_397, %c0_398] : memref<3x32x32xf32, #tpu.memory_space<vmem>>, vector<1x32x32xf32>
    %663 = vector.shape_cast %662 : vector<1x32x32xf32> to vector<32x32xf32>
    %664 = vector.extract_strided_slice %661 {offsets = [0, 0], sizes = [32, 32], strides = [1, 1]} : vector<32x96xf32> to vector<32x32xf32>
    %cst_399 = arith.constant dense<0.000000e+00> : vector<32x32xf32>
    %665 = tpu.matmul %663, %664, %cst_399 {dimension_numbers = #tpu.dot_dimension_numbers<[1], [0], [0], [1], [0, 0, 1, 1], [], []>} : vector<32x32xf32>, vector<32x32xf32>, vector<32x32xf32> -> vector<32x32xf32>
    %c1_400 = arith.constant 1 : index
    %c0_401 = arith.constant 0 : index
    %c0_402 = arith.constant 0 : index
    %666 = vector.load %arg1[%c1_400, %c0_401, %c0_402] : memref<3x32x32xf32, #tpu.memory_space<vmem>>, vector<1x32x32xf32>
    %667 = vector.shape_cast %666 : vector<1x32x32xf32> to vector<32x32xf32>
    %668 = vector.extract_strided_slice %661 {offsets = [0, 32], sizes = [32, 32], strides = [1, 1]} : vector<32x96xf32> to vector<32x32xf32>
    %cst_403 = arith.constant dense<0.000000e+00> : vector<32x32xf32>
    %669 = tpu.matmul %667, %668, %cst_403 {dimension_numbers = #tpu.dot_dimension_numbers<[1], [0], [0], [1], [0, 0, 1, 1], [], []>} : vector<32x32xf32>, vector<32x32xf32>, vector<32x32xf32> -> vector<32x32xf32>
    %670 = arith.addf %665, %669 : vector<32x32xf32>
    %c2_404 = arith.constant 2 : index
    %c0_405 = arith.constant 0 : index
    %c0_406 = arith.constant 0 : index
    %671 = vector.load %arg1[%c2_404, %c0_405, %c0_406] : memref<3x32x32xf32, #tpu.memory_space<vmem>>, vector<1x32x32xf32>
    %672 = vector.shape_cast %671 : vector<1x32x32xf32> to vector<32x32xf32>
    %673 = vector.extract_strided_slice %661 {offsets = [0, 64], sizes = [32, 32], strides = [1, 1]} : vector<32x96xf32> to vector<32x32xf32>
    %cst_407 = arith.constant dense<0.000000e+00> : vector<32x32xf32>
    %674 = tpu.matmul %672, %673, %cst_407 {dimension_numbers = #tpu.dot_dimension_numbers<[1], [0], [0], [1], [0, 0, 1, 1], [], []>} : vector<32x32xf32>, vector<32x32xf32>, vector<32x32xf32> -> vector<32x32xf32>
    %675 = arith.addf %670, %674 : vector<32x32xf32>
    %cst_408 = arith.constant dense<0.000000e+00> : vector<32xf32>
    %676 = vector.multi_reduction <add>, %675, %cst_408 [0] : vector<32x32xf32> to vector<32xf32>
    %677 = vector.shape_cast %676 : vector<32xf32> to vector<1x32xf32>
    %cst_409 = arith.constant 3.200000e+01 : f32
    %678 = vector.broadcast %cst_409 : f32 to vector<1x32xf32>
    %679 = arith.divf %677, %678 : vector<1x32xf32>
    %680 = vector.broadcast %679 : vector<1x32xf32> to vector<32x32xf32>
    %681 = arith.subf %675, %680 : vector<32x32xf32>
    %682 = arith.mulf %681, %681 : vector<32x32xf32>
    %cst_410 = arith.constant dense<0.000000e+00> : vector<32xf32>
    %683 = vector.multi_reduction <add>, %682, %cst_410 [0] : vector<32x32xf32> to vector<32xf32>
    %684 = vector.shape_cast %683 : vector<32xf32> to vector<1x32xf32>
    %cst_411 = arith.constant 3.200000e+01 : f32
    %685 = vector.broadcast %cst_411 : f32 to vector<1x32xf32>
    %686 = arith.divf %684, %685 : vector<1x32xf32>
    %c14_412 = arith.constant 14 : index
    %c0_413 = arith.constant 0 : index
    %c0_414 = arith.constant 0 : index
    %687 = vector.load %arg3[%c14_412, %c0_413, %c0_414] : memref<29x1x32xf32, #tpu.memory_space<vmem>>, vector<1x1x32xf32>
    %688 = vector.shape_cast %687 : vector<1x1x32xf32> to vector<1x32xf32>
    %cst_415 = arith.constant 9.99999974E-6 : f32
    %689 = vector.broadcast %cst_415 : f32 to vector<1x32xf32>
    %690 = arith.addf %686, %689 : vector<1x32xf32>
    %691 = math.rsqrt %690 : vector<1x32xf32>
    %692 = arith.mulf %688, %691 : vector<1x32xf32>
    %c14_416 = arith.constant 14 : index
    %c0_417 = arith.constant 0 : index
    %c0_418 = arith.constant 0 : index
    %693 = vector.load %arg4[%c14_416, %c0_417, %c0_418] : memref<29x1x32xf32, #tpu.memory_space<vmem>>, vector<1x1x32xf32>
    %694 = vector.shape_cast %693 : vector<1x1x32xf32> to vector<1x32xf32>
    %695 = arith.mulf %679, %692 : vector<1x32xf32>
    %696 = arith.subf %694, %695 : vector<1x32xf32>
    %697 = vector.broadcast %692 : vector<1x32xf32> to vector<32x32xf32>
    %698 = arith.mulf %675, %697 : vector<32x32xf32>
    %699 = vector.broadcast %696 : vector<1x32xf32> to vector<32x32xf32>
    %700 = arith.addf %698, %699 : vector<32x32xf32>
    %cst_419 = arith.constant 0.000000e+00 : f32
    %701 = vector.broadcast %cst_419 : f32 to vector<32x32xf32>
    %702 = arith.cmpf oge, %700, %701 : vector<32x32xf32>
    %cst_420 = arith.constant 2.000000e-01 : f32
    %703 = vector.broadcast %cst_420 : f32 to vector<32x32xf32>
    %704 = arith.mulf %703, %700 : vector<32x32xf32>
    %705 = arith.select %702, %700, %704 : vector<32x32xi1>, vector<32x32xf32>
    %c15 = arith.constant 15 : index
    %c0_421 = arith.constant 0 : index
    %c0_422 = arith.constant 0 : index
    %706 = vector.load %arg2[%c15, %c0_421, %c0_422] : memref<29x32x96xf32, #tpu.memory_space<vmem>>, vector<1x32x96xf32>
    %707 = vector.shape_cast %706 : vector<1x32x96xf32> to vector<32x96xf32>
    %cst_423 = arith.constant dense<0.000000e+00> : vector<32x96xf32>
    %708 = tpu.matmul %705, %707, %cst_423 {dimension_numbers = #tpu.dot_dimension_numbers<[1], [0], [0], [1], [0, 0, 1, 1], [], []>} : vector<32x32xf32>, vector<32x96xf32>, vector<32x96xf32> -> vector<32x96xf32>
    %c0_424 = arith.constant 0 : index
    %c0_425 = arith.constant 0 : index
    %c0_426 = arith.constant 0 : index
    %709 = vector.load %arg1[%c0_424, %c0_425, %c0_426] : memref<3x32x32xf32, #tpu.memory_space<vmem>>, vector<1x32x32xf32>
    %710 = vector.shape_cast %709 : vector<1x32x32xf32> to vector<32x32xf32>
    %711 = vector.extract_strided_slice %708 {offsets = [0, 0], sizes = [32, 32], strides = [1, 1]} : vector<32x96xf32> to vector<32x32xf32>
    %cst_427 = arith.constant dense<0.000000e+00> : vector<32x32xf32>
    %712 = tpu.matmul %710, %711, %cst_427 {dimension_numbers = #tpu.dot_dimension_numbers<[1], [0], [0], [1], [0, 0, 1, 1], [], []>} : vector<32x32xf32>, vector<32x32xf32>, vector<32x32xf32> -> vector<32x32xf32>
    %c1_428 = arith.constant 1 : index
    %c0_429 = arith.constant 0 : index
    %c0_430 = arith.constant 0 : index
    %713 = vector.load %arg1[%c1_428, %c0_429, %c0_430] : memref<3x32x32xf32, #tpu.memory_space<vmem>>, vector<1x32x32xf32>
    %714 = vector.shape_cast %713 : vector<1x32x32xf32> to vector<32x32xf32>
    %715 = vector.extract_strided_slice %708 {offsets = [0, 32], sizes = [32, 32], strides = [1, 1]} : vector<32x96xf32> to vector<32x32xf32>
    %cst_431 = arith.constant dense<0.000000e+00> : vector<32x32xf32>
    %716 = tpu.matmul %714, %715, %cst_431 {dimension_numbers = #tpu.dot_dimension_numbers<[1], [0], [0], [1], [0, 0, 1, 1], [], []>} : vector<32x32xf32>, vector<32x32xf32>, vector<32x32xf32> -> vector<32x32xf32>
    %717 = arith.addf %712, %716 : vector<32x32xf32>
    %c2_432 = arith.constant 2 : index
    %c0_433 = arith.constant 0 : index
    %c0_434 = arith.constant 0 : index
    %718 = vector.load %arg1[%c2_432, %c0_433, %c0_434] : memref<3x32x32xf32, #tpu.memory_space<vmem>>, vector<1x32x32xf32>
    %719 = vector.shape_cast %718 : vector<1x32x32xf32> to vector<32x32xf32>
    %720 = vector.extract_strided_slice %708 {offsets = [0, 64], sizes = [32, 32], strides = [1, 1]} : vector<32x96xf32> to vector<32x32xf32>
    %cst_435 = arith.constant dense<0.000000e+00> : vector<32x32xf32>
    %721 = tpu.matmul %719, %720, %cst_435 {dimension_numbers = #tpu.dot_dimension_numbers<[1], [0], [0], [1], [0, 0, 1, 1], [], []>} : vector<32x32xf32>, vector<32x32xf32>, vector<32x32xf32> -> vector<32x32xf32>
    %722 = arith.addf %717, %721 : vector<32x32xf32>
    %cst_436 = arith.constant dense<0.000000e+00> : vector<32xf32>
    %723 = vector.multi_reduction <add>, %722, %cst_436 [0] : vector<32x32xf32> to vector<32xf32>
    %724 = vector.shape_cast %723 : vector<32xf32> to vector<1x32xf32>
    %cst_437 = arith.constant 3.200000e+01 : f32
    %725 = vector.broadcast %cst_437 : f32 to vector<1x32xf32>
    %726 = arith.divf %724, %725 : vector<1x32xf32>
    %727 = vector.broadcast %726 : vector<1x32xf32> to vector<32x32xf32>
    %728 = arith.subf %722, %727 : vector<32x32xf32>
    %729 = arith.mulf %728, %728 : vector<32x32xf32>
    %cst_438 = arith.constant dense<0.000000e+00> : vector<32xf32>
    %730 = vector.multi_reduction <add>, %729, %cst_438 [0] : vector<32x32xf32> to vector<32xf32>
    %731 = vector.shape_cast %730 : vector<32xf32> to vector<1x32xf32>
    %cst_439 = arith.constant 3.200000e+01 : f32
    %732 = vector.broadcast %cst_439 : f32 to vector<1x32xf32>
    %733 = arith.divf %731, %732 : vector<1x32xf32>
    %c15_440 = arith.constant 15 : index
    %c0_441 = arith.constant 0 : index
    %c0_442 = arith.constant 0 : index
    %734 = vector.load %arg3[%c15_440, %c0_441, %c0_442] : memref<29x1x32xf32, #tpu.memory_space<vmem>>, vector<1x1x32xf32>
    %735 = vector.shape_cast %734 : vector<1x1x32xf32> to vector<1x32xf32>
    %cst_443 = arith.constant 9.99999974E-6 : f32
    %736 = vector.broadcast %cst_443 : f32 to vector<1x32xf32>
    %737 = arith.addf %733, %736 : vector<1x32xf32>
    %738 = math.rsqrt %737 : vector<1x32xf32>
    %739 = arith.mulf %735, %738 : vector<1x32xf32>
    %c15_444 = arith.constant 15 : index
    %c0_445 = arith.constant 0 : index
    %c0_446 = arith.constant 0 : index
    %740 = vector.load %arg4[%c15_444, %c0_445, %c0_446] : memref<29x1x32xf32, #tpu.memory_space<vmem>>, vector<1x1x32xf32>
    %741 = vector.shape_cast %740 : vector<1x1x32xf32> to vector<1x32xf32>
    %742 = arith.mulf %726, %739 : vector<1x32xf32>
    %743 = arith.subf %741, %742 : vector<1x32xf32>
    %744 = vector.broadcast %739 : vector<1x32xf32> to vector<32x32xf32>
    %745 = arith.mulf %722, %744 : vector<32x32xf32>
    %746 = vector.broadcast %743 : vector<1x32xf32> to vector<32x32xf32>
    %747 = arith.addf %745, %746 : vector<32x32xf32>
    %cst_447 = arith.constant 0.000000e+00 : f32
    %748 = vector.broadcast %cst_447 : f32 to vector<32x32xf32>
    %749 = arith.cmpf oge, %747, %748 : vector<32x32xf32>
    %cst_448 = arith.constant 2.000000e-01 : f32
    %750 = vector.broadcast %cst_448 : f32 to vector<32x32xf32>
    %751 = arith.mulf %750, %747 : vector<32x32xf32>
    %752 = arith.select %749, %747, %751 : vector<32x32xi1>, vector<32x32xf32>
    %c16 = arith.constant 16 : index
    %c0_449 = arith.constant 0 : index
    %c0_450 = arith.constant 0 : index
    %753 = vector.load %arg2[%c16, %c0_449, %c0_450] : memref<29x32x96xf32, #tpu.memory_space<vmem>>, vector<1x32x96xf32>
    %754 = vector.shape_cast %753 : vector<1x32x96xf32> to vector<32x96xf32>
    %cst_451 = arith.constant dense<0.000000e+00> : vector<32x96xf32>
    %755 = tpu.matmul %752, %754, %cst_451 {dimension_numbers = #tpu.dot_dimension_numbers<[1], [0], [0], [1], [0, 0, 1, 1], [], []>} : vector<32x32xf32>, vector<32x96xf32>, vector<32x96xf32> -> vector<32x96xf32>
    %c0_452 = arith.constant 0 : index
    %c0_453 = arith.constant 0 : index
    %c0_454 = arith.constant 0 : index
    %756 = vector.load %arg1[%c0_452, %c0_453, %c0_454] : memref<3x32x32xf32, #tpu.memory_space<vmem>>, vector<1x32x32xf32>
    %757 = vector.shape_cast %756 : vector<1x32x32xf32> to vector<32x32xf32>
    %758 = vector.extract_strided_slice %755 {offsets = [0, 0], sizes = [32, 32], strides = [1, 1]} : vector<32x96xf32> to vector<32x32xf32>
    %cst_455 = arith.constant dense<0.000000e+00> : vector<32x32xf32>
    %759 = tpu.matmul %757, %758, %cst_455 {dimension_numbers = #tpu.dot_dimension_numbers<[1], [0], [0], [1], [0, 0, 1, 1], [], []>} : vector<32x32xf32>, vector<32x32xf32>, vector<32x32xf32> -> vector<32x32xf32>
    %c1_456 = arith.constant 1 : index
    %c0_457 = arith.constant 0 : index
    %c0_458 = arith.constant 0 : index
    %760 = vector.load %arg1[%c1_456, %c0_457, %c0_458] : memref<3x32x32xf32, #tpu.memory_space<vmem>>, vector<1x32x32xf32>
    %761 = vector.shape_cast %760 : vector<1x32x32xf32> to vector<32x32xf32>
    %762 = vector.extract_strided_slice %755 {offsets = [0, 32], sizes = [32, 32], strides = [1, 1]} : vector<32x96xf32> to vector<32x32xf32>
    %cst_459 = arith.constant dense<0.000000e+00> : vector<32x32xf32>
    %763 = tpu.matmul %761, %762, %cst_459 {dimension_numbers = #tpu.dot_dimension_numbers<[1], [0], [0], [1], [0, 0, 1, 1], [], []>} : vector<32x32xf32>, vector<32x32xf32>, vector<32x32xf32> -> vector<32x32xf32>
    %764 = arith.addf %759, %763 : vector<32x32xf32>
    %c2_460 = arith.constant 2 : index
    %c0_461 = arith.constant 0 : index
    %c0_462 = arith.constant 0 : index
    %765 = vector.load %arg1[%c2_460, %c0_461, %c0_462] : memref<3x32x32xf32, #tpu.memory_space<vmem>>, vector<1x32x32xf32>
    %766 = vector.shape_cast %765 : vector<1x32x32xf32> to vector<32x32xf32>
    %767 = vector.extract_strided_slice %755 {offsets = [0, 64], sizes = [32, 32], strides = [1, 1]} : vector<32x96xf32> to vector<32x32xf32>
    %cst_463 = arith.constant dense<0.000000e+00> : vector<32x32xf32>
    %768 = tpu.matmul %766, %767, %cst_463 {dimension_numbers = #tpu.dot_dimension_numbers<[1], [0], [0], [1], [0, 0, 1, 1], [], []>} : vector<32x32xf32>, vector<32x32xf32>, vector<32x32xf32> -> vector<32x32xf32>
    %769 = arith.addf %764, %768 : vector<32x32xf32>
    %cst_464 = arith.constant dense<0.000000e+00> : vector<32xf32>
    %770 = vector.multi_reduction <add>, %769, %cst_464 [0] : vector<32x32xf32> to vector<32xf32>
    %771 = vector.shape_cast %770 : vector<32xf32> to vector<1x32xf32>
    %cst_465 = arith.constant 3.200000e+01 : f32
    %772 = vector.broadcast %cst_465 : f32 to vector<1x32xf32>
    %773 = arith.divf %771, %772 : vector<1x32xf32>
    %774 = vector.broadcast %773 : vector<1x32xf32> to vector<32x32xf32>
    %775 = arith.subf %769, %774 : vector<32x32xf32>
    %776 = arith.mulf %775, %775 : vector<32x32xf32>
    %cst_466 = arith.constant dense<0.000000e+00> : vector<32xf32>
    %777 = vector.multi_reduction <add>, %776, %cst_466 [0] : vector<32x32xf32> to vector<32xf32>
    %778 = vector.shape_cast %777 : vector<32xf32> to vector<1x32xf32>
    %cst_467 = arith.constant 3.200000e+01 : f32
    %779 = vector.broadcast %cst_467 : f32 to vector<1x32xf32>
    %780 = arith.divf %778, %779 : vector<1x32xf32>
    %c16_468 = arith.constant 16 : index
    %c0_469 = arith.constant 0 : index
    %c0_470 = arith.constant 0 : index
    %781 = vector.load %arg3[%c16_468, %c0_469, %c0_470] : memref<29x1x32xf32, #tpu.memory_space<vmem>>, vector<1x1x32xf32>
    %782 = vector.shape_cast %781 : vector<1x1x32xf32> to vector<1x32xf32>
    %cst_471 = arith.constant 9.99999974E-6 : f32
    %783 = vector.broadcast %cst_471 : f32 to vector<1x32xf32>
    %784 = arith.addf %780, %783 : vector<1x32xf32>
    %785 = math.rsqrt %784 : vector<1x32xf32>
    %786 = arith.mulf %782, %785 : vector<1x32xf32>
    %c16_472 = arith.constant 16 : index
    %c0_473 = arith.constant 0 : index
    %c0_474 = arith.constant 0 : index
    %787 = vector.load %arg4[%c16_472, %c0_473, %c0_474] : memref<29x1x32xf32, #tpu.memory_space<vmem>>, vector<1x1x32xf32>
    %788 = vector.shape_cast %787 : vector<1x1x32xf32> to vector<1x32xf32>
    %789 = arith.mulf %773, %786 : vector<1x32xf32>
    %790 = arith.subf %788, %789 : vector<1x32xf32>
    %791 = vector.broadcast %786 : vector<1x32xf32> to vector<32x32xf32>
    %792 = arith.mulf %769, %791 : vector<32x32xf32>
    %793 = vector.broadcast %790 : vector<1x32xf32> to vector<32x32xf32>
    %794 = arith.addf %792, %793 : vector<32x32xf32>
    %cst_475 = arith.constant 0.000000e+00 : f32
    %795 = vector.broadcast %cst_475 : f32 to vector<32x32xf32>
    %796 = arith.cmpf oge, %794, %795 : vector<32x32xf32>
    %cst_476 = arith.constant 2.000000e-01 : f32
    %797 = vector.broadcast %cst_476 : f32 to vector<32x32xf32>
    %798 = arith.mulf %797, %794 : vector<32x32xf32>
    %799 = arith.select %796, %794, %798 : vector<32x32xi1>, vector<32x32xf32>
    %c17 = arith.constant 17 : index
    %c0_477 = arith.constant 0 : index
    %c0_478 = arith.constant 0 : index
    %800 = vector.load %arg2[%c17, %c0_477, %c0_478] : memref<29x32x96xf32, #tpu.memory_space<vmem>>, vector<1x32x96xf32>
    %801 = vector.shape_cast %800 : vector<1x32x96xf32> to vector<32x96xf32>
    %cst_479 = arith.constant dense<0.000000e+00> : vector<32x96xf32>
    %802 = tpu.matmul %799, %801, %cst_479 {dimension_numbers = #tpu.dot_dimension_numbers<[1], [0], [0], [1], [0, 0, 1, 1], [], []>} : vector<32x32xf32>, vector<32x96xf32>, vector<32x96xf32> -> vector<32x96xf32>
    %c0_480 = arith.constant 0 : index
    %c0_481 = arith.constant 0 : index
    %c0_482 = arith.constant 0 : index
    %803 = vector.load %arg1[%c0_480, %c0_481, %c0_482] : memref<3x32x32xf32, #tpu.memory_space<vmem>>, vector<1x32x32xf32>
    %804 = vector.shape_cast %803 : vector<1x32x32xf32> to vector<32x32xf32>
    %805 = vector.extract_strided_slice %802 {offsets = [0, 0], sizes = [32, 32], strides = [1, 1]} : vector<32x96xf32> to vector<32x32xf32>
    %cst_483 = arith.constant dense<0.000000e+00> : vector<32x32xf32>
    %806 = tpu.matmul %804, %805, %cst_483 {dimension_numbers = #tpu.dot_dimension_numbers<[1], [0], [0], [1], [0, 0, 1, 1], [], []>} : vector<32x32xf32>, vector<32x32xf32>, vector<32x32xf32> -> vector<32x32xf32>
    %c1_484 = arith.constant 1 : index
    %c0_485 = arith.constant 0 : index
    %c0_486 = arith.constant 0 : index
    %807 = vector.load %arg1[%c1_484, %c0_485, %c0_486] : memref<3x32x32xf32, #tpu.memory_space<vmem>>, vector<1x32x32xf32>
    %808 = vector.shape_cast %807 : vector<1x32x32xf32> to vector<32x32xf32>
    %809 = vector.extract_strided_slice %802 {offsets = [0, 32], sizes = [32, 32], strides = [1, 1]} : vector<32x96xf32> to vector<32x32xf32>
    %cst_487 = arith.constant dense<0.000000e+00> : vector<32x32xf32>
    %810 = tpu.matmul %808, %809, %cst_487 {dimension_numbers = #tpu.dot_dimension_numbers<[1], [0], [0], [1], [0, 0, 1, 1], [], []>} : vector<32x32xf32>, vector<32x32xf32>, vector<32x32xf32> -> vector<32x32xf32>
    %811 = arith.addf %806, %810 : vector<32x32xf32>
    %c2_488 = arith.constant 2 : index
    %c0_489 = arith.constant 0 : index
    %c0_490 = arith.constant 0 : index
    %812 = vector.load %arg1[%c2_488, %c0_489, %c0_490] : memref<3x32x32xf32, #tpu.memory_space<vmem>>, vector<1x32x32xf32>
    %813 = vector.shape_cast %812 : vector<1x32x32xf32> to vector<32x32xf32>
    %814 = vector.extract_strided_slice %802 {offsets = [0, 64], sizes = [32, 32], strides = [1, 1]} : vector<32x96xf32> to vector<32x32xf32>
    %cst_491 = arith.constant dense<0.000000e+00> : vector<32x32xf32>
    %815 = tpu.matmul %813, %814, %cst_491 {dimension_numbers = #tpu.dot_dimension_numbers<[1], [0], [0], [1], [0, 0, 1, 1], [], []>} : vector<32x32xf32>, vector<32x32xf32>, vector<32x32xf32> -> vector<32x32xf32>
    %816 = arith.addf %811, %815 : vector<32x32xf32>
    %cst_492 = arith.constant dense<0.000000e+00> : vector<32xf32>
    %817 = vector.multi_reduction <add>, %816, %cst_492 [0] : vector<32x32xf32> to vector<32xf32>
    %818 = vector.shape_cast %817 : vector<32xf32> to vector<1x32xf32>
    %cst_493 = arith.constant 3.200000e+01 : f32
    %819 = vector.broadcast %cst_493 : f32 to vector<1x32xf32>
    %820 = arith.divf %818, %819 : vector<1x32xf32>
    %821 = vector.broadcast %820 : vector<1x32xf32> to vector<32x32xf32>
    %822 = arith.subf %816, %821 : vector<32x32xf32>
    %823 = arith.mulf %822, %822 : vector<32x32xf32>
    %cst_494 = arith.constant dense<0.000000e+00> : vector<32xf32>
    %824 = vector.multi_reduction <add>, %823, %cst_494 [0] : vector<32x32xf32> to vector<32xf32>
    %825 = vector.shape_cast %824 : vector<32xf32> to vector<1x32xf32>
    %cst_495 = arith.constant 3.200000e+01 : f32
    %826 = vector.broadcast %cst_495 : f32 to vector<1x32xf32>
    %827 = arith.divf %825, %826 : vector<1x32xf32>
    %c17_496 = arith.constant 17 : index
    %c0_497 = arith.constant 0 : index
    %c0_498 = arith.constant 0 : index
    %828 = vector.load %arg3[%c17_496, %c0_497, %c0_498] : memref<29x1x32xf32, #tpu.memory_space<vmem>>, vector<1x1x32xf32>
    %829 = vector.shape_cast %828 : vector<1x1x32xf32> to vector<1x32xf32>
    %cst_499 = arith.constant 9.99999974E-6 : f32
    %830 = vector.broadcast %cst_499 : f32 to vector<1x32xf32>
    %831 = arith.addf %827, %830 : vector<1x32xf32>
    %832 = math.rsqrt %831 : vector<1x32xf32>
    %833 = arith.mulf %829, %832 : vector<1x32xf32>
    %c17_500 = arith.constant 17 : index
    %c0_501 = arith.constant 0 : index
    %c0_502 = arith.constant 0 : index
    %834 = vector.load %arg4[%c17_500, %c0_501, %c0_502] : memref<29x1x32xf32, #tpu.memory_space<vmem>>, vector<1x1x32xf32>
    %835 = vector.shape_cast %834 : vector<1x1x32xf32> to vector<1x32xf32>
    %836 = arith.mulf %820, %833 : vector<1x32xf32>
    %837 = arith.subf %835, %836 : vector<1x32xf32>
    %838 = vector.broadcast %833 : vector<1x32xf32> to vector<32x32xf32>
    %839 = arith.mulf %816, %838 : vector<32x32xf32>
    %840 = vector.broadcast %837 : vector<1x32xf32> to vector<32x32xf32>
    %841 = arith.addf %839, %840 : vector<32x32xf32>
    %cst_503 = arith.constant 0.000000e+00 : f32
    %842 = vector.broadcast %cst_503 : f32 to vector<32x32xf32>
    %843 = arith.cmpf oge, %841, %842 : vector<32x32xf32>
    %cst_504 = arith.constant 2.000000e-01 : f32
    %844 = vector.broadcast %cst_504 : f32 to vector<32x32xf32>
    %845 = arith.mulf %844, %841 : vector<32x32xf32>
    %846 = arith.select %843, %841, %845 : vector<32x32xi1>, vector<32x32xf32>
    %c18 = arith.constant 18 : index
    %c0_505 = arith.constant 0 : index
    %c0_506 = arith.constant 0 : index
    %847 = vector.load %arg2[%c18, %c0_505, %c0_506] : memref<29x32x96xf32, #tpu.memory_space<vmem>>, vector<1x32x96xf32>
    %848 = vector.shape_cast %847 : vector<1x32x96xf32> to vector<32x96xf32>
    %cst_507 = arith.constant dense<0.000000e+00> : vector<32x96xf32>
    %849 = tpu.matmul %846, %848, %cst_507 {dimension_numbers = #tpu.dot_dimension_numbers<[1], [0], [0], [1], [0, 0, 1, 1], [], []>} : vector<32x32xf32>, vector<32x96xf32>, vector<32x96xf32> -> vector<32x96xf32>
    %c0_508 = arith.constant 0 : index
    %c0_509 = arith.constant 0 : index
    %c0_510 = arith.constant 0 : index
    %850 = vector.load %arg1[%c0_508, %c0_509, %c0_510] : memref<3x32x32xf32, #tpu.memory_space<vmem>>, vector<1x32x32xf32>
    %851 = vector.shape_cast %850 : vector<1x32x32xf32> to vector<32x32xf32>
    %852 = vector.extract_strided_slice %849 {offsets = [0, 0], sizes = [32, 32], strides = [1, 1]} : vector<32x96xf32> to vector<32x32xf32>
    %cst_511 = arith.constant dense<0.000000e+00> : vector<32x32xf32>
    %853 = tpu.matmul %851, %852, %cst_511 {dimension_numbers = #tpu.dot_dimension_numbers<[1], [0], [0], [1], [0, 0, 1, 1], [], []>} : vector<32x32xf32>, vector<32x32xf32>, vector<32x32xf32> -> vector<32x32xf32>
    %c1_512 = arith.constant 1 : index
    %c0_513 = arith.constant 0 : index
    %c0_514 = arith.constant 0 : index
    %854 = vector.load %arg1[%c1_512, %c0_513, %c0_514] : memref<3x32x32xf32, #tpu.memory_space<vmem>>, vector<1x32x32xf32>
    %855 = vector.shape_cast %854 : vector<1x32x32xf32> to vector<32x32xf32>
    %856 = vector.extract_strided_slice %849 {offsets = [0, 32], sizes = [32, 32], strides = [1, 1]} : vector<32x96xf32> to vector<32x32xf32>
    %cst_515 = arith.constant dense<0.000000e+00> : vector<32x32xf32>
    %857 = tpu.matmul %855, %856, %cst_515 {dimension_numbers = #tpu.dot_dimension_numbers<[1], [0], [0], [1], [0, 0, 1, 1], [], []>} : vector<32x32xf32>, vector<32x32xf32>, vector<32x32xf32> -> vector<32x32xf32>
    %858 = arith.addf %853, %857 : vector<32x32xf32>
    %c2_516 = arith.constant 2 : index
    %c0_517 = arith.constant 0 : index
    %c0_518 = arith.constant 0 : index
    %859 = vector.load %arg1[%c2_516, %c0_517, %c0_518] : memref<3x32x32xf32, #tpu.memory_space<vmem>>, vector<1x32x32xf32>
    %860 = vector.shape_cast %859 : vector<1x32x32xf32> to vector<32x32xf32>
    %861 = vector.extract_strided_slice %849 {offsets = [0, 64], sizes = [32, 32], strides = [1, 1]} : vector<32x96xf32> to vector<32x32xf32>
    %cst_519 = arith.constant dense<0.000000e+00> : vector<32x32xf32>
    %862 = tpu.matmul %860, %861, %cst_519 {dimension_numbers = #tpu.dot_dimension_numbers<[1], [0], [0], [1], [0, 0, 1, 1], [], []>} : vector<32x32xf32>, vector<32x32xf32>, vector<32x32xf32> -> vector<32x32xf32>
    %863 = arith.addf %858, %862 : vector<32x32xf32>
    %cst_520 = arith.constant dense<0.000000e+00> : vector<32xf32>
    %864 = vector.multi_reduction <add>, %863, %cst_520 [0] : vector<32x32xf32> to vector<32xf32>
    %865 = vector.shape_cast %864 : vector<32xf32> to vector<1x32xf32>
    %cst_521 = arith.constant 3.200000e+01 : f32
    %866 = vector.broadcast %cst_521 : f32 to vector<1x32xf32>
    %867 = arith.divf %865, %866 : vector<1x32xf32>
    %868 = vector.broadcast %867 : vector<1x32xf32> to vector<32x32xf32>
    %869 = arith.subf %863, %868 : vector<32x32xf32>
    %870 = arith.mulf %869, %869 : vector<32x32xf32>
    %cst_522 = arith.constant dense<0.000000e+00> : vector<32xf32>
    %871 = vector.multi_reduction <add>, %870, %cst_522 [0] : vector<32x32xf32> to vector<32xf32>
    %872 = vector.shape_cast %871 : vector<32xf32> to vector<1x32xf32>
    %cst_523 = arith.constant 3.200000e+01 : f32
    %873 = vector.broadcast %cst_523 : f32 to vector<1x32xf32>
    %874 = arith.divf %872, %873 : vector<1x32xf32>
    %c18_524 = arith.constant 18 : index
    %c0_525 = arith.constant 0 : index
    %c0_526 = arith.constant 0 : index
    %875 = vector.load %arg3[%c18_524, %c0_525, %c0_526] : memref<29x1x32xf32, #tpu.memory_space<vmem>>, vector<1x1x32xf32>
    %876 = vector.shape_cast %875 : vector<1x1x32xf32> to vector<1x32xf32>
    %cst_527 = arith.constant 9.99999974E-6 : f32
    %877 = vector.broadcast %cst_527 : f32 to vector<1x32xf32>
    %878 = arith.addf %874, %877 : vector<1x32xf32>
    %879 = math.rsqrt %878 : vector<1x32xf32>
    %880 = arith.mulf %876, %879 : vector<1x32xf32>
    %c18_528 = arith.constant 18 : index
    %c0_529 = arith.constant 0 : index
    %c0_530 = arith.constant 0 : index
    %881 = vector.load %arg4[%c18_528, %c0_529, %c0_530] : memref<29x1x32xf32, #tpu.memory_space<vmem>>, vector<1x1x32xf32>
    %882 = vector.shape_cast %881 : vector<1x1x32xf32> to vector<1x32xf32>
    %883 = arith.mulf %867, %880 : vector<1x32xf32>
    %884 = arith.subf %882, %883 : vector<1x32xf32>
    %885 = vector.broadcast %880 : vector<1x32xf32> to vector<32x32xf32>
    %886 = arith.mulf %863, %885 : vector<32x32xf32>
    %887 = vector.broadcast %884 : vector<1x32xf32> to vector<32x32xf32>
    %888 = arith.addf %886, %887 : vector<32x32xf32>
    %cst_531 = arith.constant 0.000000e+00 : f32
    %889 = vector.broadcast %cst_531 : f32 to vector<32x32xf32>
    %890 = arith.cmpf oge, %888, %889 : vector<32x32xf32>
    %cst_532 = arith.constant 2.000000e-01 : f32
    %891 = vector.broadcast %cst_532 : f32 to vector<32x32xf32>
    %892 = arith.mulf %891, %888 : vector<32x32xf32>
    %893 = arith.select %890, %888, %892 : vector<32x32xi1>, vector<32x32xf32>
    %c19 = arith.constant 19 : index
    %c0_533 = arith.constant 0 : index
    %c0_534 = arith.constant 0 : index
    %894 = vector.load %arg2[%c19, %c0_533, %c0_534] : memref<29x32x96xf32, #tpu.memory_space<vmem>>, vector<1x32x96xf32>
    %895 = vector.shape_cast %894 : vector<1x32x96xf32> to vector<32x96xf32>
    %cst_535 = arith.constant dense<0.000000e+00> : vector<32x96xf32>
    %896 = tpu.matmul %893, %895, %cst_535 {dimension_numbers = #tpu.dot_dimension_numbers<[1], [0], [0], [1], [0, 0, 1, 1], [], []>} : vector<32x32xf32>, vector<32x96xf32>, vector<32x96xf32> -> vector<32x96xf32>
    %c0_536 = arith.constant 0 : index
    %c0_537 = arith.constant 0 : index
    %c0_538 = arith.constant 0 : index
    %897 = vector.load %arg1[%c0_536, %c0_537, %c0_538] : memref<3x32x32xf32, #tpu.memory_space<vmem>>, vector<1x32x32xf32>
    %898 = vector.shape_cast %897 : vector<1x32x32xf32> to vector<32x32xf32>
    %899 = vector.extract_strided_slice %896 {offsets = [0, 0], sizes = [32, 32], strides = [1, 1]} : vector<32x96xf32> to vector<32x32xf32>
    %cst_539 = arith.constant dense<0.000000e+00> : vector<32x32xf32>
    %900 = tpu.matmul %898, %899, %cst_539 {dimension_numbers = #tpu.dot_dimension_numbers<[1], [0], [0], [1], [0, 0, 1, 1], [], []>} : vector<32x32xf32>, vector<32x32xf32>, vector<32x32xf32> -> vector<32x32xf32>
    %c1_540 = arith.constant 1 : index
    %c0_541 = arith.constant 0 : index
    %c0_542 = arith.constant 0 : index
    %901 = vector.load %arg1[%c1_540, %c0_541, %c0_542] : memref<3x32x32xf32, #tpu.memory_space<vmem>>, vector<1x32x32xf32>
    %902 = vector.shape_cast %901 : vector<1x32x32xf32> to vector<32x32xf32>
    %903 = vector.extract_strided_slice %896 {offsets = [0, 32], sizes = [32, 32], strides = [1, 1]} : vector<32x96xf32> to vector<32x32xf32>
    %cst_543 = arith.constant dense<0.000000e+00> : vector<32x32xf32>
    %904 = tpu.matmul %902, %903, %cst_543 {dimension_numbers = #tpu.dot_dimension_numbers<[1], [0], [0], [1], [0, 0, 1, 1], [], []>} : vector<32x32xf32>, vector<32x32xf32>, vector<32x32xf32> -> vector<32x32xf32>
    %905 = arith.addf %900, %904 : vector<32x32xf32>
    %c2_544 = arith.constant 2 : index
    %c0_545 = arith.constant 0 : index
    %c0_546 = arith.constant 0 : index
    %906 = vector.load %arg1[%c2_544, %c0_545, %c0_546] : memref<3x32x32xf32, #tpu.memory_space<vmem>>, vector<1x32x32xf32>
    %907 = vector.shape_cast %906 : vector<1x32x32xf32> to vector<32x32xf32>
    %908 = vector.extract_strided_slice %896 {offsets = [0, 64], sizes = [32, 32], strides = [1, 1]} : vector<32x96xf32> to vector<32x32xf32>
    %cst_547 = arith.constant dense<0.000000e+00> : vector<32x32xf32>
    %909 = tpu.matmul %907, %908, %cst_547 {dimension_numbers = #tpu.dot_dimension_numbers<[1], [0], [0], [1], [0, 0, 1, 1], [], []>} : vector<32x32xf32>, vector<32x32xf32>, vector<32x32xf32> -> vector<32x32xf32>
    %910 = arith.addf %905, %909 : vector<32x32xf32>
    %cst_548 = arith.constant dense<0.000000e+00> : vector<32xf32>
    %911 = vector.multi_reduction <add>, %910, %cst_548 [0] : vector<32x32xf32> to vector<32xf32>
    %912 = vector.shape_cast %911 : vector<32xf32> to vector<1x32xf32>
    %cst_549 = arith.constant 3.200000e+01 : f32
    %913 = vector.broadcast %cst_549 : f32 to vector<1x32xf32>
    %914 = arith.divf %912, %913 : vector<1x32xf32>
    %915 = vector.broadcast %914 : vector<1x32xf32> to vector<32x32xf32>
    %916 = arith.subf %910, %915 : vector<32x32xf32>
    %917 = arith.mulf %916, %916 : vector<32x32xf32>
    %cst_550 = arith.constant dense<0.000000e+00> : vector<32xf32>
    %918 = vector.multi_reduction <add>, %917, %cst_550 [0] : vector<32x32xf32> to vector<32xf32>
    %919 = vector.shape_cast %918 : vector<32xf32> to vector<1x32xf32>
    %cst_551 = arith.constant 3.200000e+01 : f32
    %920 = vector.broadcast %cst_551 : f32 to vector<1x32xf32>
    %921 = arith.divf %919, %920 : vector<1x32xf32>
    %c19_552 = arith.constant 19 : index
    %c0_553 = arith.constant 0 : index
    %c0_554 = arith.constant 0 : index
    %922 = vector.load %arg3[%c19_552, %c0_553, %c0_554] : memref<29x1x32xf32, #tpu.memory_space<vmem>>, vector<1x1x32xf32>
    %923 = vector.shape_cast %922 : vector<1x1x32xf32> to vector<1x32xf32>
    %cst_555 = arith.constant 9.99999974E-6 : f32
    %924 = vector.broadcast %cst_555 : f32 to vector<1x32xf32>
    %925 = arith.addf %921, %924 : vector<1x32xf32>
    %926 = math.rsqrt %925 : vector<1x32xf32>
    %927 = arith.mulf %923, %926 : vector<1x32xf32>
    %c19_556 = arith.constant 19 : index
    %c0_557 = arith.constant 0 : index
    %c0_558 = arith.constant 0 : index
    %928 = vector.load %arg4[%c19_556, %c0_557, %c0_558] : memref<29x1x32xf32, #tpu.memory_space<vmem>>, vector<1x1x32xf32>
    %929 = vector.shape_cast %928 : vector<1x1x32xf32> to vector<1x32xf32>
    %930 = arith.mulf %914, %927 : vector<1x32xf32>
    %931 = arith.subf %929, %930 : vector<1x32xf32>
    %932 = vector.broadcast %927 : vector<1x32xf32> to vector<32x32xf32>
    %933 = arith.mulf %910, %932 : vector<32x32xf32>
    %934 = vector.broadcast %931 : vector<1x32xf32> to vector<32x32xf32>
    %935 = arith.addf %933, %934 : vector<32x32xf32>
    %cst_559 = arith.constant 0.000000e+00 : f32
    %936 = vector.broadcast %cst_559 : f32 to vector<32x32xf32>
    %937 = arith.cmpf oge, %935, %936 : vector<32x32xf32>
    %cst_560 = arith.constant 2.000000e-01 : f32
    %938 = vector.broadcast %cst_560 : f32 to vector<32x32xf32>
    %939 = arith.mulf %938, %935 : vector<32x32xf32>
    %940 = arith.select %937, %935, %939 : vector<32x32xi1>, vector<32x32xf32>
    %c20 = arith.constant 20 : index
    %c0_561 = arith.constant 0 : index
    %c0_562 = arith.constant 0 : index
    %941 = vector.load %arg2[%c20, %c0_561, %c0_562] : memref<29x32x96xf32, #tpu.memory_space<vmem>>, vector<1x32x96xf32>
    %942 = vector.shape_cast %941 : vector<1x32x96xf32> to vector<32x96xf32>
    %cst_563 = arith.constant dense<0.000000e+00> : vector<32x96xf32>
    %943 = tpu.matmul %940, %942, %cst_563 {dimension_numbers = #tpu.dot_dimension_numbers<[1], [0], [0], [1], [0, 0, 1, 1], [], []>} : vector<32x32xf32>, vector<32x96xf32>, vector<32x96xf32> -> vector<32x96xf32>
    %c0_564 = arith.constant 0 : index
    %c0_565 = arith.constant 0 : index
    %c0_566 = arith.constant 0 : index
    %944 = vector.load %arg1[%c0_564, %c0_565, %c0_566] : memref<3x32x32xf32, #tpu.memory_space<vmem>>, vector<1x32x32xf32>
    %945 = vector.shape_cast %944 : vector<1x32x32xf32> to vector<32x32xf32>
    %946 = vector.extract_strided_slice %943 {offsets = [0, 0], sizes = [32, 32], strides = [1, 1]} : vector<32x96xf32> to vector<32x32xf32>
    %cst_567 = arith.constant dense<0.000000e+00> : vector<32x32xf32>
    %947 = tpu.matmul %945, %946, %cst_567 {dimension_numbers = #tpu.dot_dimension_numbers<[1], [0], [0], [1], [0, 0, 1, 1], [], []>} : vector<32x32xf32>, vector<32x32xf32>, vector<32x32xf32> -> vector<32x32xf32>
    %c1_568 = arith.constant 1 : index
    %c0_569 = arith.constant 0 : index
    %c0_570 = arith.constant 0 : index
    %948 = vector.load %arg1[%c1_568, %c0_569, %c0_570] : memref<3x32x32xf32, #tpu.memory_space<vmem>>, vector<1x32x32xf32>
    %949 = vector.shape_cast %948 : vector<1x32x32xf32> to vector<32x32xf32>
    %950 = vector.extract_strided_slice %943 {offsets = [0, 32], sizes = [32, 32], strides = [1, 1]} : vector<32x96xf32> to vector<32x32xf32>
    %cst_571 = arith.constant dense<0.000000e+00> : vector<32x32xf32>
    %951 = tpu.matmul %949, %950, %cst_571 {dimension_numbers = #tpu.dot_dimension_numbers<[1], [0], [0], [1], [0, 0, 1, 1], [], []>} : vector<32x32xf32>, vector<32x32xf32>, vector<32x32xf32> -> vector<32x32xf32>
    %952 = arith.addf %947, %951 : vector<32x32xf32>
    %c2_572 = arith.constant 2 : index
    %c0_573 = arith.constant 0 : index
    %c0_574 = arith.constant 0 : index
    %953 = vector.load %arg1[%c2_572, %c0_573, %c0_574] : memref<3x32x32xf32, #tpu.memory_space<vmem>>, vector<1x32x32xf32>
    %954 = vector.shape_cast %953 : vector<1x32x32xf32> to vector<32x32xf32>
    %955 = vector.extract_strided_slice %943 {offsets = [0, 64], sizes = [32, 32], strides = [1, 1]} : vector<32x96xf32> to vector<32x32xf32>
    %cst_575 = arith.constant dense<0.000000e+00> : vector<32x32xf32>
    %956 = tpu.matmul %954, %955, %cst_575 {dimension_numbers = #tpu.dot_dimension_numbers<[1], [0], [0], [1], [0, 0, 1, 1], [], []>} : vector<32x32xf32>, vector<32x32xf32>, vector<32x32xf32> -> vector<32x32xf32>
    %957 = arith.addf %952, %956 : vector<32x32xf32>
    %cst_576 = arith.constant dense<0.000000e+00> : vector<32xf32>
    %958 = vector.multi_reduction <add>, %957, %cst_576 [0] : vector<32x32xf32> to vector<32xf32>
    %959 = vector.shape_cast %958 : vector<32xf32> to vector<1x32xf32>
    %cst_577 = arith.constant 3.200000e+01 : f32
    %960 = vector.broadcast %cst_577 : f32 to vector<1x32xf32>
    %961 = arith.divf %959, %960 : vector<1x32xf32>
    %962 = vector.broadcast %961 : vector<1x32xf32> to vector<32x32xf32>
    %963 = arith.subf %957, %962 : vector<32x32xf32>
    %964 = arith.mulf %963, %963 : vector<32x32xf32>
    %cst_578 = arith.constant dense<0.000000e+00> : vector<32xf32>
    %965 = vector.multi_reduction <add>, %964, %cst_578 [0] : vector<32x32xf32> to vector<32xf32>
    %966 = vector.shape_cast %965 : vector<32xf32> to vector<1x32xf32>
    %cst_579 = arith.constant 3.200000e+01 : f32
    %967 = vector.broadcast %cst_579 : f32 to vector<1x32xf32>
    %968 = arith.divf %966, %967 : vector<1x32xf32>
    %c20_580 = arith.constant 20 : index
    %c0_581 = arith.constant 0 : index
    %c0_582 = arith.constant 0 : index
    %969 = vector.load %arg3[%c20_580, %c0_581, %c0_582] : memref<29x1x32xf32, #tpu.memory_space<vmem>>, vector<1x1x32xf32>
    %970 = vector.shape_cast %969 : vector<1x1x32xf32> to vector<1x32xf32>
    %cst_583 = arith.constant 9.99999974E-6 : f32
    %971 = vector.broadcast %cst_583 : f32 to vector<1x32xf32>
    %972 = arith.addf %968, %971 : vector<1x32xf32>
    %973 = math.rsqrt %972 : vector<1x32xf32>
    %974 = arith.mulf %970, %973 : vector<1x32xf32>
    %c20_584 = arith.constant 20 : index
    %c0_585 = arith.constant 0 : index
    %c0_586 = arith.constant 0 : index
    %975 = vector.load %arg4[%c20_584, %c0_585, %c0_586] : memref<29x1x32xf32, #tpu.memory_space<vmem>>, vector<1x1x32xf32>
    %976 = vector.shape_cast %975 : vector<1x1x32xf32> to vector<1x32xf32>
    %977 = arith.mulf %961, %974 : vector<1x32xf32>
    %978 = arith.subf %976, %977 : vector<1x32xf32>
    %979 = vector.broadcast %974 : vector<1x32xf32> to vector<32x32xf32>
    %980 = arith.mulf %957, %979 : vector<32x32xf32>
    %981 = vector.broadcast %978 : vector<1x32xf32> to vector<32x32xf32>
    %982 = arith.addf %980, %981 : vector<32x32xf32>
    %cst_587 = arith.constant 0.000000e+00 : f32
    %983 = vector.broadcast %cst_587 : f32 to vector<32x32xf32>
    %984 = arith.cmpf oge, %982, %983 : vector<32x32xf32>
    %cst_588 = arith.constant 2.000000e-01 : f32
    %985 = vector.broadcast %cst_588 : f32 to vector<32x32xf32>
    %986 = arith.mulf %985, %982 : vector<32x32xf32>
    %987 = arith.select %984, %982, %986 : vector<32x32xi1>, vector<32x32xf32>
    %c21 = arith.constant 21 : index
    %c0_589 = arith.constant 0 : index
    %c0_590 = arith.constant 0 : index
    %988 = vector.load %arg2[%c21, %c0_589, %c0_590] : memref<29x32x96xf32, #tpu.memory_space<vmem>>, vector<1x32x96xf32>
    %989 = vector.shape_cast %988 : vector<1x32x96xf32> to vector<32x96xf32>
    %cst_591 = arith.constant dense<0.000000e+00> : vector<32x96xf32>
    %990 = tpu.matmul %987, %989, %cst_591 {dimension_numbers = #tpu.dot_dimension_numbers<[1], [0], [0], [1], [0, 0, 1, 1], [], []>} : vector<32x32xf32>, vector<32x96xf32>, vector<32x96xf32> -> vector<32x96xf32>
    %c0_592 = arith.constant 0 : index
    %c0_593 = arith.constant 0 : index
    %c0_594 = arith.constant 0 : index
    %991 = vector.load %arg1[%c0_592, %c0_593, %c0_594] : memref<3x32x32xf32, #tpu.memory_space<vmem>>, vector<1x32x32xf32>
    %992 = vector.shape_cast %991 : vector<1x32x32xf32> to vector<32x32xf32>
    %993 = vector.extract_strided_slice %990 {offsets = [0, 0], sizes = [32, 32], strides = [1, 1]} : vector<32x96xf32> to vector<32x32xf32>
    %cst_595 = arith.constant dense<0.000000e+00> : vector<32x32xf32>
    %994 = tpu.matmul %992, %993, %cst_595 {dimension_numbers = #tpu.dot_dimension_numbers<[1], [0], [0], [1], [0, 0, 1, 1], [], []>} : vector<32x32xf32>, vector<32x32xf32>, vector<32x32xf32> -> vector<32x32xf32>
    %c1_596 = arith.constant 1 : index
    %c0_597 = arith.constant 0 : index
    %c0_598 = arith.constant 0 : index
    %995 = vector.load %arg1[%c1_596, %c0_597, %c0_598] : memref<3x32x32xf32, #tpu.memory_space<vmem>>, vector<1x32x32xf32>
    %996 = vector.shape_cast %995 : vector<1x32x32xf32> to vector<32x32xf32>
    %997 = vector.extract_strided_slice %990 {offsets = [0, 32], sizes = [32, 32], strides = [1, 1]} : vector<32x96xf32> to vector<32x32xf32>
    %cst_599 = arith.constant dense<0.000000e+00> : vector<32x32xf32>
    %998 = tpu.matmul %996, %997, %cst_599 {dimension_numbers = #tpu.dot_dimension_numbers<[1], [0], [0], [1], [0, 0, 1, 1], [], []>} : vector<32x32xf32>, vector<32x32xf32>, vector<32x32xf32> -> vector<32x32xf32>
    %999 = arith.addf %994, %998 : vector<32x32xf32>
    %c2_600 = arith.constant 2 : index
    %c0_601 = arith.constant 0 : index
    %c0_602 = arith.constant 0 : index
    %1000 = vector.load %arg1[%c2_600, %c0_601, %c0_602] : memref<3x32x32xf32, #tpu.memory_space<vmem>>, vector<1x32x32xf32>
    %1001 = vector.shape_cast %1000 : vector<1x32x32xf32> to vector<32x32xf32>
    %1002 = vector.extract_strided_slice %990 {offsets = [0, 64], sizes = [32, 32], strides = [1, 1]} : vector<32x96xf32> to vector<32x32xf32>
    %cst_603 = arith.constant dense<0.000000e+00> : vector<32x32xf32>
    %1003 = tpu.matmul %1001, %1002, %cst_603 {dimension_numbers = #tpu.dot_dimension_numbers<[1], [0], [0], [1], [0, 0, 1, 1], [], []>} : vector<32x32xf32>, vector<32x32xf32>, vector<32x32xf32> -> vector<32x32xf32>
    %1004 = arith.addf %999, %1003 : vector<32x32xf32>
    %cst_604 = arith.constant dense<0.000000e+00> : vector<32xf32>
    %1005 = vector.multi_reduction <add>, %1004, %cst_604 [0] : vector<32x32xf32> to vector<32xf32>
    %1006 = vector.shape_cast %1005 : vector<32xf32> to vector<1x32xf32>
    %cst_605 = arith.constant 3.200000e+01 : f32
    %1007 = vector.broadcast %cst_605 : f32 to vector<1x32xf32>
    %1008 = arith.divf %1006, %1007 : vector<1x32xf32>
    %1009 = vector.broadcast %1008 : vector<1x32xf32> to vector<32x32xf32>
    %1010 = arith.subf %1004, %1009 : vector<32x32xf32>
    %1011 = arith.mulf %1010, %1010 : vector<32x32xf32>
    %cst_606 = arith.constant dense<0.000000e+00> : vector<32xf32>
    %1012 = vector.multi_reduction <add>, %1011, %cst_606 [0] : vector<32x32xf32> to vector<32xf32>
    %1013 = vector.shape_cast %1012 : vector<32xf32> to vector<1x32xf32>
    %cst_607 = arith.constant 3.200000e+01 : f32
    %1014 = vector.broadcast %cst_607 : f32 to vector<1x32xf32>
    %1015 = arith.divf %1013, %1014 : vector<1x32xf32>
    %c21_608 = arith.constant 21 : index
    %c0_609 = arith.constant 0 : index
    %c0_610 = arith.constant 0 : index
    %1016 = vector.load %arg3[%c21_608, %c0_609, %c0_610] : memref<29x1x32xf32, #tpu.memory_space<vmem>>, vector<1x1x32xf32>
    %1017 = vector.shape_cast %1016 : vector<1x1x32xf32> to vector<1x32xf32>
    %cst_611 = arith.constant 9.99999974E-6 : f32
    %1018 = vector.broadcast %cst_611 : f32 to vector<1x32xf32>
    %1019 = arith.addf %1015, %1018 : vector<1x32xf32>
    %1020 = math.rsqrt %1019 : vector<1x32xf32>
    %1021 = arith.mulf %1017, %1020 : vector<1x32xf32>
    %c21_612 = arith.constant 21 : index
    %c0_613 = arith.constant 0 : index
    %c0_614 = arith.constant 0 : index
    %1022 = vector.load %arg4[%c21_612, %c0_613, %c0_614] : memref<29x1x32xf32, #tpu.memory_space<vmem>>, vector<1x1x32xf32>
    %1023 = vector.shape_cast %1022 : vector<1x1x32xf32> to vector<1x32xf32>
    %1024 = arith.mulf %1008, %1021 : vector<1x32xf32>
    %1025 = arith.subf %1023, %1024 : vector<1x32xf32>
    %1026 = vector.broadcast %1021 : vector<1x32xf32> to vector<32x32xf32>
    %1027 = arith.mulf %1004, %1026 : vector<32x32xf32>
    %1028 = vector.broadcast %1025 : vector<1x32xf32> to vector<32x32xf32>
    %1029 = arith.addf %1027, %1028 : vector<32x32xf32>
    %cst_615 = arith.constant 0.000000e+00 : f32
    %1030 = vector.broadcast %cst_615 : f32 to vector<32x32xf32>
    %1031 = arith.cmpf oge, %1029, %1030 : vector<32x32xf32>
    %cst_616 = arith.constant 2.000000e-01 : f32
    %1032 = vector.broadcast %cst_616 : f32 to vector<32x32xf32>
    %1033 = arith.mulf %1032, %1029 : vector<32x32xf32>
    %1034 = arith.select %1031, %1029, %1033 : vector<32x32xi1>, vector<32x32xf32>
    %c22 = arith.constant 22 : index
    %c0_617 = arith.constant 0 : index
    %c0_618 = arith.constant 0 : index
    %1035 = vector.load %arg2[%c22, %c0_617, %c0_618] : memref<29x32x96xf32, #tpu.memory_space<vmem>>, vector<1x32x96xf32>
    %1036 = vector.shape_cast %1035 : vector<1x32x96xf32> to vector<32x96xf32>
    %cst_619 = arith.constant dense<0.000000e+00> : vector<32x96xf32>
    %1037 = tpu.matmul %1034, %1036, %cst_619 {dimension_numbers = #tpu.dot_dimension_numbers<[1], [0], [0], [1], [0, 0, 1, 1], [], []>} : vector<32x32xf32>, vector<32x96xf32>, vector<32x96xf32> -> vector<32x96xf32>
    %c0_620 = arith.constant 0 : index
    %c0_621 = arith.constant 0 : index
    %c0_622 = arith.constant 0 : index
    %1038 = vector.load %arg1[%c0_620, %c0_621, %c0_622] : memref<3x32x32xf32, #tpu.memory_space<vmem>>, vector<1x32x32xf32>
    %1039 = vector.shape_cast %1038 : vector<1x32x32xf32> to vector<32x32xf32>
    %1040 = vector.extract_strided_slice %1037 {offsets = [0, 0], sizes = [32, 32], strides = [1, 1]} : vector<32x96xf32> to vector<32x32xf32>
    %cst_623 = arith.constant dense<0.000000e+00> : vector<32x32xf32>
    %1041 = tpu.matmul %1039, %1040, %cst_623 {dimension_numbers = #tpu.dot_dimension_numbers<[1], [0], [0], [1], [0, 0, 1, 1], [], []>} : vector<32x32xf32>, vector<32x32xf32>, vector<32x32xf32> -> vector<32x32xf32>
    %c1_624 = arith.constant 1 : index
    %c0_625 = arith.constant 0 : index
    %c0_626 = arith.constant 0 : index
    %1042 = vector.load %arg1[%c1_624, %c0_625, %c0_626] : memref<3x32x32xf32, #tpu.memory_space<vmem>>, vector<1x32x32xf32>
    %1043 = vector.shape_cast %1042 : vector<1x32x32xf32> to vector<32x32xf32>
    %1044 = vector.extract_strided_slice %1037 {offsets = [0, 32], sizes = [32, 32], strides = [1, 1]} : vector<32x96xf32> to vector<32x32xf32>
    %cst_627 = arith.constant dense<0.000000e+00> : vector<32x32xf32>
    %1045 = tpu.matmul %1043, %1044, %cst_627 {dimension_numbers = #tpu.dot_dimension_numbers<[1], [0], [0], [1], [0, 0, 1, 1], [], []>} : vector<32x32xf32>, vector<32x32xf32>, vector<32x32xf32> -> vector<32x32xf32>
    %1046 = arith.addf %1041, %1045 : vector<32x32xf32>
    %c2_628 = arith.constant 2 : index
    %c0_629 = arith.constant 0 : index
    %c0_630 = arith.constant 0 : index
    %1047 = vector.load %arg1[%c2_628, %c0_629, %c0_630] : memref<3x32x32xf32, #tpu.memory_space<vmem>>, vector<1x32x32xf32>
    %1048 = vector.shape_cast %1047 : vector<1x32x32xf32> to vector<32x32xf32>
    %1049 = vector.extract_strided_slice %1037 {offsets = [0, 64], sizes = [32, 32], strides = [1, 1]} : vector<32x96xf32> to vector<32x32xf32>
    %cst_631 = arith.constant dense<0.000000e+00> : vector<32x32xf32>
    %1050 = tpu.matmul %1048, %1049, %cst_631 {dimension_numbers = #tpu.dot_dimension_numbers<[1], [0], [0], [1], [0, 0, 1, 1], [], []>} : vector<32x32xf32>, vector<32x32xf32>, vector<32x32xf32> -> vector<32x32xf32>
    %1051 = arith.addf %1046, %1050 : vector<32x32xf32>
    %cst_632 = arith.constant dense<0.000000e+00> : vector<32xf32>
    %1052 = vector.multi_reduction <add>, %1051, %cst_632 [0] : vector<32x32xf32> to vector<32xf32>
    %1053 = vector.shape_cast %1052 : vector<32xf32> to vector<1x32xf32>
    %cst_633 = arith.constant 3.200000e+01 : f32
    %1054 = vector.broadcast %cst_633 : f32 to vector<1x32xf32>
    %1055 = arith.divf %1053, %1054 : vector<1x32xf32>
    %1056 = vector.broadcast %1055 : vector<1x32xf32> to vector<32x32xf32>
    %1057 = arith.subf %1051, %1056 : vector<32x32xf32>
    %1058 = arith.mulf %1057, %1057 : vector<32x32xf32>
    %cst_634 = arith.constant dense<0.000000e+00> : vector<32xf32>
    %1059 = vector.multi_reduction <add>, %1058, %cst_634 [0] : vector<32x32xf32> to vector<32xf32>
    %1060 = vector.shape_cast %1059 : vector<32xf32> to vector<1x32xf32>
    %cst_635 = arith.constant 3.200000e+01 : f32
    %1061 = vector.broadcast %cst_635 : f32 to vector<1x32xf32>
    %1062 = arith.divf %1060, %1061 : vector<1x32xf32>
    %c22_636 = arith.constant 22 : index
    %c0_637 = arith.constant 0 : index
    %c0_638 = arith.constant 0 : index
    %1063 = vector.load %arg3[%c22_636, %c0_637, %c0_638] : memref<29x1x32xf32, #tpu.memory_space<vmem>>, vector<1x1x32xf32>
    %1064 = vector.shape_cast %1063 : vector<1x1x32xf32> to vector<1x32xf32>
    %cst_639 = arith.constant 9.99999974E-6 : f32
    %1065 = vector.broadcast %cst_639 : f32 to vector<1x32xf32>
    %1066 = arith.addf %1062, %1065 : vector<1x32xf32>
    %1067 = math.rsqrt %1066 : vector<1x32xf32>
    %1068 = arith.mulf %1064, %1067 : vector<1x32xf32>
    %c22_640 = arith.constant 22 : index
    %c0_641 = arith.constant 0 : index
    %c0_642 = arith.constant 0 : index
    %1069 = vector.load %arg4[%c22_640, %c0_641, %c0_642] : memref<29x1x32xf32, #tpu.memory_space<vmem>>, vector<1x1x32xf32>
    %1070 = vector.shape_cast %1069 : vector<1x1x32xf32> to vector<1x32xf32>
    %1071 = arith.mulf %1055, %1068 : vector<1x32xf32>
    %1072 = arith.subf %1070, %1071 : vector<1x32xf32>
    %1073 = vector.broadcast %1068 : vector<1x32xf32> to vector<32x32xf32>
    %1074 = arith.mulf %1051, %1073 : vector<32x32xf32>
    %1075 = vector.broadcast %1072 : vector<1x32xf32> to vector<32x32xf32>
    %1076 = arith.addf %1074, %1075 : vector<32x32xf32>
    %cst_643 = arith.constant 0.000000e+00 : f32
    %1077 = vector.broadcast %cst_643 : f32 to vector<32x32xf32>
    %1078 = arith.cmpf oge, %1076, %1077 : vector<32x32xf32>
    %cst_644 = arith.constant 2.000000e-01 : f32
    %1079 = vector.broadcast %cst_644 : f32 to vector<32x32xf32>
    %1080 = arith.mulf %1079, %1076 : vector<32x32xf32>
    %1081 = arith.select %1078, %1076, %1080 : vector<32x32xi1>, vector<32x32xf32>
    %c23 = arith.constant 23 : index
    %c0_645 = arith.constant 0 : index
    %c0_646 = arith.constant 0 : index
    %1082 = vector.load %arg2[%c23, %c0_645, %c0_646] : memref<29x32x96xf32, #tpu.memory_space<vmem>>, vector<1x32x96xf32>
    %1083 = vector.shape_cast %1082 : vector<1x32x96xf32> to vector<32x96xf32>
    %cst_647 = arith.constant dense<0.000000e+00> : vector<32x96xf32>
    %1084 = tpu.matmul %1081, %1083, %cst_647 {dimension_numbers = #tpu.dot_dimension_numbers<[1], [0], [0], [1], [0, 0, 1, 1], [], []>} : vector<32x32xf32>, vector<32x96xf32>, vector<32x96xf32> -> vector<32x96xf32>
    %c0_648 = arith.constant 0 : index
    %c0_649 = arith.constant 0 : index
    %c0_650 = arith.constant 0 : index
    %1085 = vector.load %arg1[%c0_648, %c0_649, %c0_650] : memref<3x32x32xf32, #tpu.memory_space<vmem>>, vector<1x32x32xf32>
    %1086 = vector.shape_cast %1085 : vector<1x32x32xf32> to vector<32x32xf32>
    %1087 = vector.extract_strided_slice %1084 {offsets = [0, 0], sizes = [32, 32], strides = [1, 1]} : vector<32x96xf32> to vector<32x32xf32>
    %cst_651 = arith.constant dense<0.000000e+00> : vector<32x32xf32>
    %1088 = tpu.matmul %1086, %1087, %cst_651 {dimension_numbers = #tpu.dot_dimension_numbers<[1], [0], [0], [1], [0, 0, 1, 1], [], []>} : vector<32x32xf32>, vector<32x32xf32>, vector<32x32xf32> -> vector<32x32xf32>
    %c1_652 = arith.constant 1 : index
    %c0_653 = arith.constant 0 : index
    %c0_654 = arith.constant 0 : index
    %1089 = vector.load %arg1[%c1_652, %c0_653, %c0_654] : memref<3x32x32xf32, #tpu.memory_space<vmem>>, vector<1x32x32xf32>
    %1090 = vector.shape_cast %1089 : vector<1x32x32xf32> to vector<32x32xf32>
    %1091 = vector.extract_strided_slice %1084 {offsets = [0, 32], sizes = [32, 32], strides = [1, 1]} : vector<32x96xf32> to vector<32x32xf32>
    %cst_655 = arith.constant dense<0.000000e+00> : vector<32x32xf32>
    %1092 = tpu.matmul %1090, %1091, %cst_655 {dimension_numbers = #tpu.dot_dimension_numbers<[1], [0], [0], [1], [0, 0, 1, 1], [], []>} : vector<32x32xf32>, vector<32x32xf32>, vector<32x32xf32> -> vector<32x32xf32>
    %1093 = arith.addf %1088, %1092 : vector<32x32xf32>
    %c2_656 = arith.constant 2 : index
    %c0_657 = arith.constant 0 : index
    %c0_658 = arith.constant 0 : index
    %1094 = vector.load %arg1[%c2_656, %c0_657, %c0_658] : memref<3x32x32xf32, #tpu.memory_space<vmem>>, vector<1x32x32xf32>
    %1095 = vector.shape_cast %1094 : vector<1x32x32xf32> to vector<32x32xf32>
    %1096 = vector.extract_strided_slice %1084 {offsets = [0, 64], sizes = [32, 32], strides = [1, 1]} : vector<32x96xf32> to vector<32x32xf32>
    %cst_659 = arith.constant dense<0.000000e+00> : vector<32x32xf32>
    %1097 = tpu.matmul %1095, %1096, %cst_659 {dimension_numbers = #tpu.dot_dimension_numbers<[1], [0], [0], [1], [0, 0, 1, 1], [], []>} : vector<32x32xf32>, vector<32x32xf32>, vector<32x32xf32> -> vector<32x32xf32>
    %1098 = arith.addf %1093, %1097 : vector<32x32xf32>
    %cst_660 = arith.constant dense<0.000000e+00> : vector<32xf32>
    %1099 = vector.multi_reduction <add>, %1098, %cst_660 [0] : vector<32x32xf32> to vector<32xf32>
    %1100 = vector.shape_cast %1099 : vector<32xf32> to vector<1x32xf32>
    %cst_661 = arith.constant 3.200000e+01 : f32
    %1101 = vector.broadcast %cst_661 : f32 to vector<1x32xf32>
    %1102 = arith.divf %1100, %1101 : vector<1x32xf32>
    %1103 = vector.broadcast %1102 : vector<1x32xf32> to vector<32x32xf32>
    %1104 = arith.subf %1098, %1103 : vector<32x32xf32>
    %1105 = arith.mulf %1104, %1104 : vector<32x32xf32>
    %cst_662 = arith.constant dense<0.000000e+00> : vector<32xf32>
    %1106 = vector.multi_reduction <add>, %1105, %cst_662 [0] : vector<32x32xf32> to vector<32xf32>
    %1107 = vector.shape_cast %1106 : vector<32xf32> to vector<1x32xf32>
    %cst_663 = arith.constant 3.200000e+01 : f32
    %1108 = vector.broadcast %cst_663 : f32 to vector<1x32xf32>
    %1109 = arith.divf %1107, %1108 : vector<1x32xf32>
    %c23_664 = arith.constant 23 : index
    %c0_665 = arith.constant 0 : index
    %c0_666 = arith.constant 0 : index
    %1110 = vector.load %arg3[%c23_664, %c0_665, %c0_666] : memref<29x1x32xf32, #tpu.memory_space<vmem>>, vector<1x1x32xf32>
    %1111 = vector.shape_cast %1110 : vector<1x1x32xf32> to vector<1x32xf32>
    %cst_667 = arith.constant 9.99999974E-6 : f32
    %1112 = vector.broadcast %cst_667 : f32 to vector<1x32xf32>
    %1113 = arith.addf %1109, %1112 : vector<1x32xf32>
    %1114 = math.rsqrt %1113 : vector<1x32xf32>
    %1115 = arith.mulf %1111, %1114 : vector<1x32xf32>
    %c23_668 = arith.constant 23 : index
    %c0_669 = arith.constant 0 : index
    %c0_670 = arith.constant 0 : index
    %1116 = vector.load %arg4[%c23_668, %c0_669, %c0_670] : memref<29x1x32xf32, #tpu.memory_space<vmem>>, vector<1x1x32xf32>
    %1117 = vector.shape_cast %1116 : vector<1x1x32xf32> to vector<1x32xf32>
    %1118 = arith.mulf %1102, %1115 : vector<1x32xf32>
    %1119 = arith.subf %1117, %1118 : vector<1x32xf32>
    %1120 = vector.broadcast %1115 : vector<1x32xf32> to vector<32x32xf32>
    %1121 = arith.mulf %1098, %1120 : vector<32x32xf32>
    %1122 = vector.broadcast %1119 : vector<1x32xf32> to vector<32x32xf32>
    %1123 = arith.addf %1121, %1122 : vector<32x32xf32>
    %cst_671 = arith.constant 0.000000e+00 : f32
    %1124 = vector.broadcast %cst_671 : f32 to vector<32x32xf32>
    %1125 = arith.cmpf oge, %1123, %1124 : vector<32x32xf32>
    %cst_672 = arith.constant 2.000000e-01 : f32
    %1126 = vector.broadcast %cst_672 : f32 to vector<32x32xf32>
    %1127 = arith.mulf %1126, %1123 : vector<32x32xf32>
    %1128 = arith.select %1125, %1123, %1127 : vector<32x32xi1>, vector<32x32xf32>
    %c24 = arith.constant 24 : index
    %c0_673 = arith.constant 0 : index
    %c0_674 = arith.constant 0 : index
    %1129 = vector.load %arg2[%c24, %c0_673, %c0_674] : memref<29x32x96xf32, #tpu.memory_space<vmem>>, vector<1x32x96xf32>
    %1130 = vector.shape_cast %1129 : vector<1x32x96xf32> to vector<32x96xf32>
    %cst_675 = arith.constant dense<0.000000e+00> : vector<32x96xf32>
    %1131 = tpu.matmul %1128, %1130, %cst_675 {dimension_numbers = #tpu.dot_dimension_numbers<[1], [0], [0], [1], [0, 0, 1, 1], [], []>} : vector<32x32xf32>, vector<32x96xf32>, vector<32x96xf32> -> vector<32x96xf32>
    %c0_676 = arith.constant 0 : index
    %c0_677 = arith.constant 0 : index
    %c0_678 = arith.constant 0 : index
    %1132 = vector.load %arg1[%c0_676, %c0_677, %c0_678] : memref<3x32x32xf32, #tpu.memory_space<vmem>>, vector<1x32x32xf32>
    %1133 = vector.shape_cast %1132 : vector<1x32x32xf32> to vector<32x32xf32>
    %1134 = vector.extract_strided_slice %1131 {offsets = [0, 0], sizes = [32, 32], strides = [1, 1]} : vector<32x96xf32> to vector<32x32xf32>
    %cst_679 = arith.constant dense<0.000000e+00> : vector<32x32xf32>
    %1135 = tpu.matmul %1133, %1134, %cst_679 {dimension_numbers = #tpu.dot_dimension_numbers<[1], [0], [0], [1], [0, 0, 1, 1], [], []>} : vector<32x32xf32>, vector<32x32xf32>, vector<32x32xf32> -> vector<32x32xf32>
    %c1_680 = arith.constant 1 : index
    %c0_681 = arith.constant 0 : index
    %c0_682 = arith.constant 0 : index
    %1136 = vector.load %arg1[%c1_680, %c0_681, %c0_682] : memref<3x32x32xf32, #tpu.memory_space<vmem>>, vector<1x32x32xf32>
    %1137 = vector.shape_cast %1136 : vector<1x32x32xf32> to vector<32x32xf32>
    %1138 = vector.extract_strided_slice %1131 {offsets = [0, 32], sizes = [32, 32], strides = [1, 1]} : vector<32x96xf32> to vector<32x32xf32>
    %cst_683 = arith.constant dense<0.000000e+00> : vector<32x32xf32>
    %1139 = tpu.matmul %1137, %1138, %cst_683 {dimension_numbers = #tpu.dot_dimension_numbers<[1], [0], [0], [1], [0, 0, 1, 1], [], []>} : vector<32x32xf32>, vector<32x32xf32>, vector<32x32xf32> -> vector<32x32xf32>
    %1140 = arith.addf %1135, %1139 : vector<32x32xf32>
    %c2_684 = arith.constant 2 : index
    %c0_685 = arith.constant 0 : index
    %c0_686 = arith.constant 0 : index
    %1141 = vector.load %arg1[%c2_684, %c0_685, %c0_686] : memref<3x32x32xf32, #tpu.memory_space<vmem>>, vector<1x32x32xf32>
    %1142 = vector.shape_cast %1141 : vector<1x32x32xf32> to vector<32x32xf32>
    %1143 = vector.extract_strided_slice %1131 {offsets = [0, 64], sizes = [32, 32], strides = [1, 1]} : vector<32x96xf32> to vector<32x32xf32>
    %cst_687 = arith.constant dense<0.000000e+00> : vector<32x32xf32>
    %1144 = tpu.matmul %1142, %1143, %cst_687 {dimension_numbers = #tpu.dot_dimension_numbers<[1], [0], [0], [1], [0, 0, 1, 1], [], []>} : vector<32x32xf32>, vector<32x32xf32>, vector<32x32xf32> -> vector<32x32xf32>
    %1145 = arith.addf %1140, %1144 : vector<32x32xf32>
    %cst_688 = arith.constant dense<0.000000e+00> : vector<32xf32>
    %1146 = vector.multi_reduction <add>, %1145, %cst_688 [0] : vector<32x32xf32> to vector<32xf32>
    %1147 = vector.shape_cast %1146 : vector<32xf32> to vector<1x32xf32>
    %cst_689 = arith.constant 3.200000e+01 : f32
    %1148 = vector.broadcast %cst_689 : f32 to vector<1x32xf32>
    %1149 = arith.divf %1147, %1148 : vector<1x32xf32>
    %1150 = vector.broadcast %1149 : vector<1x32xf32> to vector<32x32xf32>
    %1151 = arith.subf %1145, %1150 : vector<32x32xf32>
    %1152 = arith.mulf %1151, %1151 : vector<32x32xf32>
    %cst_690 = arith.constant dense<0.000000e+00> : vector<32xf32>
    %1153 = vector.multi_reduction <add>, %1152, %cst_690 [0] : vector<32x32xf32> to vector<32xf32>
    %1154 = vector.shape_cast %1153 : vector<32xf32> to vector<1x32xf32>
    %cst_691 = arith.constant 3.200000e+01 : f32
    %1155 = vector.broadcast %cst_691 : f32 to vector<1x32xf32>
    %1156 = arith.divf %1154, %1155 : vector<1x32xf32>
    %c24_692 = arith.constant 24 : index
    %c0_693 = arith.constant 0 : index
    %c0_694 = arith.constant 0 : index
    %1157 = vector.load %arg3[%c24_692, %c0_693, %c0_694] : memref<29x1x32xf32, #tpu.memory_space<vmem>>, vector<1x1x32xf32>
    %1158 = vector.shape_cast %1157 : vector<1x1x32xf32> to vector<1x32xf32>
    %cst_695 = arith.constant 9.99999974E-6 : f32
    %1159 = vector.broadcast %cst_695 : f32 to vector<1x32xf32>
    %1160 = arith.addf %1156, %1159 : vector<1x32xf32>
    %1161 = math.rsqrt %1160 : vector<1x32xf32>
    %1162 = arith.mulf %1158, %1161 : vector<1x32xf32>
    %c24_696 = arith.constant 24 : index
    %c0_697 = arith.constant 0 : index
    %c0_698 = arith.constant 0 : index
    %1163 = vector.load %arg4[%c24_696, %c0_697, %c0_698] : memref<29x1x32xf32, #tpu.memory_space<vmem>>, vector<1x1x32xf32>
    %1164 = vector.shape_cast %1163 : vector<1x1x32xf32> to vector<1x32xf32>
    %1165 = arith.mulf %1149, %1162 : vector<1x32xf32>
    %1166 = arith.subf %1164, %1165 : vector<1x32xf32>
    %1167 = vector.broadcast %1162 : vector<1x32xf32> to vector<32x32xf32>
    %1168 = arith.mulf %1145, %1167 : vector<32x32xf32>
    %1169 = vector.broadcast %1166 : vector<1x32xf32> to vector<32x32xf32>
    %1170 = arith.addf %1168, %1169 : vector<32x32xf32>
    %cst_699 = arith.constant 0.000000e+00 : f32
    %1171 = vector.broadcast %cst_699 : f32 to vector<32x32xf32>
    %1172 = arith.cmpf oge, %1170, %1171 : vector<32x32xf32>
    %cst_700 = arith.constant 2.000000e-01 : f32
    %1173 = vector.broadcast %cst_700 : f32 to vector<32x32xf32>
    %1174 = arith.mulf %1173, %1170 : vector<32x32xf32>
    %1175 = arith.select %1172, %1170, %1174 : vector<32x32xi1>, vector<32x32xf32>
    %c25 = arith.constant 25 : index
    %c0_701 = arith.constant 0 : index
    %c0_702 = arith.constant 0 : index
    %1176 = vector.load %arg2[%c25, %c0_701, %c0_702] : memref<29x32x96xf32, #tpu.memory_space<vmem>>, vector<1x32x96xf32>
    %1177 = vector.shape_cast %1176 : vector<1x32x96xf32> to vector<32x96xf32>
    %cst_703 = arith.constant dense<0.000000e+00> : vector<32x96xf32>
    %1178 = tpu.matmul %1175, %1177, %cst_703 {dimension_numbers = #tpu.dot_dimension_numbers<[1], [0], [0], [1], [0, 0, 1, 1], [], []>} : vector<32x32xf32>, vector<32x96xf32>, vector<32x96xf32> -> vector<32x96xf32>
    %c0_704 = arith.constant 0 : index
    %c0_705 = arith.constant 0 : index
    %c0_706 = arith.constant 0 : index
    %1179 = vector.load %arg1[%c0_704, %c0_705, %c0_706] : memref<3x32x32xf32, #tpu.memory_space<vmem>>, vector<1x32x32xf32>
    %1180 = vector.shape_cast %1179 : vector<1x32x32xf32> to vector<32x32xf32>
    %1181 = vector.extract_strided_slice %1178 {offsets = [0, 0], sizes = [32, 32], strides = [1, 1]} : vector<32x96xf32> to vector<32x32xf32>
    %cst_707 = arith.constant dense<0.000000e+00> : vector<32x32xf32>
    %1182 = tpu.matmul %1180, %1181, %cst_707 {dimension_numbers = #tpu.dot_dimension_numbers<[1], [0], [0], [1], [0, 0, 1, 1], [], []>} : vector<32x32xf32>, vector<32x32xf32>, vector<32x32xf32> -> vector<32x32xf32>
    %c1_708 = arith.constant 1 : index
    %c0_709 = arith.constant 0 : index
    %c0_710 = arith.constant 0 : index
    %1183 = vector.load %arg1[%c1_708, %c0_709, %c0_710] : memref<3x32x32xf32, #tpu.memory_space<vmem>>, vector<1x32x32xf32>
    %1184 = vector.shape_cast %1183 : vector<1x32x32xf32> to vector<32x32xf32>
    %1185 = vector.extract_strided_slice %1178 {offsets = [0, 32], sizes = [32, 32], strides = [1, 1]} : vector<32x96xf32> to vector<32x32xf32>
    %cst_711 = arith.constant dense<0.000000e+00> : vector<32x32xf32>
    %1186 = tpu.matmul %1184, %1185, %cst_711 {dimension_numbers = #tpu.dot_dimension_numbers<[1], [0], [0], [1], [0, 0, 1, 1], [], []>} : vector<32x32xf32>, vector<32x32xf32>, vector<32x32xf32> -> vector<32x32xf32>
    %1187 = arith.addf %1182, %1186 : vector<32x32xf32>
    %c2_712 = arith.constant 2 : index
    %c0_713 = arith.constant 0 : index
    %c0_714 = arith.constant 0 : index
    %1188 = vector.load %arg1[%c2_712, %c0_713, %c0_714] : memref<3x32x32xf32, #tpu.memory_space<vmem>>, vector<1x32x32xf32>
    %1189 = vector.shape_cast %1188 : vector<1x32x32xf32> to vector<32x32xf32>
    %1190 = vector.extract_strided_slice %1178 {offsets = [0, 64], sizes = [32, 32], strides = [1, 1]} : vector<32x96xf32> to vector<32x32xf32>
    %cst_715 = arith.constant dense<0.000000e+00> : vector<32x32xf32>
    %1191 = tpu.matmul %1189, %1190, %cst_715 {dimension_numbers = #tpu.dot_dimension_numbers<[1], [0], [0], [1], [0, 0, 1, 1], [], []>} : vector<32x32xf32>, vector<32x32xf32>, vector<32x32xf32> -> vector<32x32xf32>
    %1192 = arith.addf %1187, %1191 : vector<32x32xf32>
    %cst_716 = arith.constant dense<0.000000e+00> : vector<32xf32>
    %1193 = vector.multi_reduction <add>, %1192, %cst_716 [0] : vector<32x32xf32> to vector<32xf32>
    %1194 = vector.shape_cast %1193 : vector<32xf32> to vector<1x32xf32>
    %cst_717 = arith.constant 3.200000e+01 : f32
    %1195 = vector.broadcast %cst_717 : f32 to vector<1x32xf32>
    %1196 = arith.divf %1194, %1195 : vector<1x32xf32>
    %1197 = vector.broadcast %1196 : vector<1x32xf32> to vector<32x32xf32>
    %1198 = arith.subf %1192, %1197 : vector<32x32xf32>
    %1199 = arith.mulf %1198, %1198 : vector<32x32xf32>
    %cst_718 = arith.constant dense<0.000000e+00> : vector<32xf32>
    %1200 = vector.multi_reduction <add>, %1199, %cst_718 [0] : vector<32x32xf32> to vector<32xf32>
    %1201 = vector.shape_cast %1200 : vector<32xf32> to vector<1x32xf32>
    %cst_719 = arith.constant 3.200000e+01 : f32
    %1202 = vector.broadcast %cst_719 : f32 to vector<1x32xf32>
    %1203 = arith.divf %1201, %1202 : vector<1x32xf32>
    %c25_720 = arith.constant 25 : index
    %c0_721 = arith.constant 0 : index
    %c0_722 = arith.constant 0 : index
    %1204 = vector.load %arg3[%c25_720, %c0_721, %c0_722] : memref<29x1x32xf32, #tpu.memory_space<vmem>>, vector<1x1x32xf32>
    %1205 = vector.shape_cast %1204 : vector<1x1x32xf32> to vector<1x32xf32>
    %cst_723 = arith.constant 9.99999974E-6 : f32
    %1206 = vector.broadcast %cst_723 : f32 to vector<1x32xf32>
    %1207 = arith.addf %1203, %1206 : vector<1x32xf32>
    %1208 = math.rsqrt %1207 : vector<1x32xf32>
    %1209 = arith.mulf %1205, %1208 : vector<1x32xf32>
    %c25_724 = arith.constant 25 : index
    %c0_725 = arith.constant 0 : index
    %c0_726 = arith.constant 0 : index
    %1210 = vector.load %arg4[%c25_724, %c0_725, %c0_726] : memref<29x1x32xf32, #tpu.memory_space<vmem>>, vector<1x1x32xf32>
    %1211 = vector.shape_cast %1210 : vector<1x1x32xf32> to vector<1x32xf32>
    %1212 = arith.mulf %1196, %1209 : vector<1x32xf32>
    %1213 = arith.subf %1211, %1212 : vector<1x32xf32>
    %1214 = vector.broadcast %1209 : vector<1x32xf32> to vector<32x32xf32>
    %1215 = arith.mulf %1192, %1214 : vector<32x32xf32>
    %1216 = vector.broadcast %1213 : vector<1x32xf32> to vector<32x32xf32>
    %1217 = arith.addf %1215, %1216 : vector<32x32xf32>
    %cst_727 = arith.constant 0.000000e+00 : f32
    %1218 = vector.broadcast %cst_727 : f32 to vector<32x32xf32>
    %1219 = arith.cmpf oge, %1217, %1218 : vector<32x32xf32>
    %cst_728 = arith.constant 2.000000e-01 : f32
    %1220 = vector.broadcast %cst_728 : f32 to vector<32x32xf32>
    %1221 = arith.mulf %1220, %1217 : vector<32x32xf32>
    %1222 = arith.select %1219, %1217, %1221 : vector<32x32xi1>, vector<32x32xf32>
    %c26 = arith.constant 26 : index
    %c0_729 = arith.constant 0 : index
    %c0_730 = arith.constant 0 : index
    %1223 = vector.load %arg2[%c26, %c0_729, %c0_730] : memref<29x32x96xf32, #tpu.memory_space<vmem>>, vector<1x32x96xf32>
    %1224 = vector.shape_cast %1223 : vector<1x32x96xf32> to vector<32x96xf32>
    %cst_731 = arith.constant dense<0.000000e+00> : vector<32x96xf32>
    %1225 = tpu.matmul %1222, %1224, %cst_731 {dimension_numbers = #tpu.dot_dimension_numbers<[1], [0], [0], [1], [0, 0, 1, 1], [], []>} : vector<32x32xf32>, vector<32x96xf32>, vector<32x96xf32> -> vector<32x96xf32>
    %c0_732 = arith.constant 0 : index
    %c0_733 = arith.constant 0 : index
    %c0_734 = arith.constant 0 : index
    %1226 = vector.load %arg1[%c0_732, %c0_733, %c0_734] : memref<3x32x32xf32, #tpu.memory_space<vmem>>, vector<1x32x32xf32>
    %1227 = vector.shape_cast %1226 : vector<1x32x32xf32> to vector<32x32xf32>
    %1228 = vector.extract_strided_slice %1225 {offsets = [0, 0], sizes = [32, 32], strides = [1, 1]} : vector<32x96xf32> to vector<32x32xf32>
    %cst_735 = arith.constant dense<0.000000e+00> : vector<32x32xf32>
    %1229 = tpu.matmul %1227, %1228, %cst_735 {dimension_numbers = #tpu.dot_dimension_numbers<[1], [0], [0], [1], [0, 0, 1, 1], [], []>} : vector<32x32xf32>, vector<32x32xf32>, vector<32x32xf32> -> vector<32x32xf32>
    %c1_736 = arith.constant 1 : index
    %c0_737 = arith.constant 0 : index
    %c0_738 = arith.constant 0 : index
    %1230 = vector.load %arg1[%c1_736, %c0_737, %c0_738] : memref<3x32x32xf32, #tpu.memory_space<vmem>>, vector<1x32x32xf32>
    %1231 = vector.shape_cast %1230 : vector<1x32x32xf32> to vector<32x32xf32>
    %1232 = vector.extract_strided_slice %1225 {offsets = [0, 32], sizes = [32, 32], strides = [1, 1]} : vector<32x96xf32> to vector<32x32xf32>
    %cst_739 = arith.constant dense<0.000000e+00> : vector<32x32xf32>
    %1233 = tpu.matmul %1231, %1232, %cst_739 {dimension_numbers = #tpu.dot_dimension_numbers<[1], [0], [0], [1], [0, 0, 1, 1], [], []>} : vector<32x32xf32>, vector<32x32xf32>, vector<32x32xf32> -> vector<32x32xf32>
    %1234 = arith.addf %1229, %1233 : vector<32x32xf32>
    %c2_740 = arith.constant 2 : index
    %c0_741 = arith.constant 0 : index
    %c0_742 = arith.constant 0 : index
    %1235 = vector.load %arg1[%c2_740, %c0_741, %c0_742] : memref<3x32x32xf32, #tpu.memory_space<vmem>>, vector<1x32x32xf32>
    %1236 = vector.shape_cast %1235 : vector<1x32x32xf32> to vector<32x32xf32>
    %1237 = vector.extract_strided_slice %1225 {offsets = [0, 64], sizes = [32, 32], strides = [1, 1]} : vector<32x96xf32> to vector<32x32xf32>
    %cst_743 = arith.constant dense<0.000000e+00> : vector<32x32xf32>
    %1238 = tpu.matmul %1236, %1237, %cst_743 {dimension_numbers = #tpu.dot_dimension_numbers<[1], [0], [0], [1], [0, 0, 1, 1], [], []>} : vector<32x32xf32>, vector<32x32xf32>, vector<32x32xf32> -> vector<32x32xf32>
    %1239 = arith.addf %1234, %1238 : vector<32x32xf32>
    %cst_744 = arith.constant dense<0.000000e+00> : vector<32xf32>
    %1240 = vector.multi_reduction <add>, %1239, %cst_744 [0] : vector<32x32xf32> to vector<32xf32>
    %1241 = vector.shape_cast %1240 : vector<32xf32> to vector<1x32xf32>
    %cst_745 = arith.constant 3.200000e+01 : f32
    %1242 = vector.broadcast %cst_745 : f32 to vector<1x32xf32>
    %1243 = arith.divf %1241, %1242 : vector<1x32xf32>
    %1244 = vector.broadcast %1243 : vector<1x32xf32> to vector<32x32xf32>
    %1245 = arith.subf %1239, %1244 : vector<32x32xf32>
    %1246 = arith.mulf %1245, %1245 : vector<32x32xf32>
    %cst_746 = arith.constant dense<0.000000e+00> : vector<32xf32>
    %1247 = vector.multi_reduction <add>, %1246, %cst_746 [0] : vector<32x32xf32> to vector<32xf32>
    %1248 = vector.shape_cast %1247 : vector<32xf32> to vector<1x32xf32>
    %cst_747 = arith.constant 3.200000e+01 : f32
    %1249 = vector.broadcast %cst_747 : f32 to vector<1x32xf32>
    %1250 = arith.divf %1248, %1249 : vector<1x32xf32>
    %c26_748 = arith.constant 26 : index
    %c0_749 = arith.constant 0 : index
    %c0_750 = arith.constant 0 : index
    %1251 = vector.load %arg3[%c26_748, %c0_749, %c0_750] : memref<29x1x32xf32, #tpu.memory_space<vmem>>, vector<1x1x32xf32>
    %1252 = vector.shape_cast %1251 : vector<1x1x32xf32> to vector<1x32xf32>
    %cst_751 = arith.constant 9.99999974E-6 : f32
    %1253 = vector.broadcast %cst_751 : f32 to vector<1x32xf32>
    %1254 = arith.addf %1250, %1253 : vector<1x32xf32>
    %1255 = math.rsqrt %1254 : vector<1x32xf32>
    %1256 = arith.mulf %1252, %1255 : vector<1x32xf32>
    %c26_752 = arith.constant 26 : index
    %c0_753 = arith.constant 0 : index
    %c0_754 = arith.constant 0 : index
    %1257 = vector.load %arg4[%c26_752, %c0_753, %c0_754] : memref<29x1x32xf32, #tpu.memory_space<vmem>>, vector<1x1x32xf32>
    %1258 = vector.shape_cast %1257 : vector<1x1x32xf32> to vector<1x32xf32>
    %1259 = arith.mulf %1243, %1256 : vector<1x32xf32>
    %1260 = arith.subf %1258, %1259 : vector<1x32xf32>
    %1261 = vector.broadcast %1256 : vector<1x32xf32> to vector<32x32xf32>
    %1262 = arith.mulf %1239, %1261 : vector<32x32xf32>
    %1263 = vector.broadcast %1260 : vector<1x32xf32> to vector<32x32xf32>
    %1264 = arith.addf %1262, %1263 : vector<32x32xf32>
    %cst_755 = arith.constant 0.000000e+00 : f32
    %1265 = vector.broadcast %cst_755 : f32 to vector<32x32xf32>
    %1266 = arith.cmpf oge, %1264, %1265 : vector<32x32xf32>
    %cst_756 = arith.constant 2.000000e-01 : f32
    %1267 = vector.broadcast %cst_756 : f32 to vector<32x32xf32>
    %1268 = arith.mulf %1267, %1264 : vector<32x32xf32>
    %1269 = arith.select %1266, %1264, %1268 : vector<32x32xi1>, vector<32x32xf32>
    %c27 = arith.constant 27 : index
    %c0_757 = arith.constant 0 : index
    %c0_758 = arith.constant 0 : index
    %1270 = vector.load %arg2[%c27, %c0_757, %c0_758] : memref<29x32x96xf32, #tpu.memory_space<vmem>>, vector<1x32x96xf32>
    %1271 = vector.shape_cast %1270 : vector<1x32x96xf32> to vector<32x96xf32>
    %cst_759 = arith.constant dense<0.000000e+00> : vector<32x96xf32>
    %1272 = tpu.matmul %1269, %1271, %cst_759 {dimension_numbers = #tpu.dot_dimension_numbers<[1], [0], [0], [1], [0, 0, 1, 1], [], []>} : vector<32x32xf32>, vector<32x96xf32>, vector<32x96xf32> -> vector<32x96xf32>
    %c0_760 = arith.constant 0 : index
    %c0_761 = arith.constant 0 : index
    %c0_762 = arith.constant 0 : index
    %1273 = vector.load %arg1[%c0_760, %c0_761, %c0_762] : memref<3x32x32xf32, #tpu.memory_space<vmem>>, vector<1x32x32xf32>
    %1274 = vector.shape_cast %1273 : vector<1x32x32xf32> to vector<32x32xf32>
    %1275 = vector.extract_strided_slice %1272 {offsets = [0, 0], sizes = [32, 32], strides = [1, 1]} : vector<32x96xf32> to vector<32x32xf32>
    %cst_763 = arith.constant dense<0.000000e+00> : vector<32x32xf32>
    %1276 = tpu.matmul %1274, %1275, %cst_763 {dimension_numbers = #tpu.dot_dimension_numbers<[1], [0], [0], [1], [0, 0, 1, 1], [], []>} : vector<32x32xf32>, vector<32x32xf32>, vector<32x32xf32> -> vector<32x32xf32>
    %c1_764 = arith.constant 1 : index
    %c0_765 = arith.constant 0 : index
    %c0_766 = arith.constant 0 : index
    %1277 = vector.load %arg1[%c1_764, %c0_765, %c0_766] : memref<3x32x32xf32, #tpu.memory_space<vmem>>, vector<1x32x32xf32>
    %1278 = vector.shape_cast %1277 : vector<1x32x32xf32> to vector<32x32xf32>
    %1279 = vector.extract_strided_slice %1272 {offsets = [0, 32], sizes = [32, 32], strides = [1, 1]} : vector<32x96xf32> to vector<32x32xf32>
    %cst_767 = arith.constant dense<0.000000e+00> : vector<32x32xf32>
    %1280 = tpu.matmul %1278, %1279, %cst_767 {dimension_numbers = #tpu.dot_dimension_numbers<[1], [0], [0], [1], [0, 0, 1, 1], [], []>} : vector<32x32xf32>, vector<32x32xf32>, vector<32x32xf32> -> vector<32x32xf32>
    %1281 = arith.addf %1276, %1280 : vector<32x32xf32>
    %c2_768 = arith.constant 2 : index
    %c0_769 = arith.constant 0 : index
    %c0_770 = arith.constant 0 : index
    %1282 = vector.load %arg1[%c2_768, %c0_769, %c0_770] : memref<3x32x32xf32, #tpu.memory_space<vmem>>, vector<1x32x32xf32>
    %1283 = vector.shape_cast %1282 : vector<1x32x32xf32> to vector<32x32xf32>
    %1284 = vector.extract_strided_slice %1272 {offsets = [0, 64], sizes = [32, 32], strides = [1, 1]} : vector<32x96xf32> to vector<32x32xf32>
    %cst_771 = arith.constant dense<0.000000e+00> : vector<32x32xf32>
    %1285 = tpu.matmul %1283, %1284, %cst_771 {dimension_numbers = #tpu.dot_dimension_numbers<[1], [0], [0], [1], [0, 0, 1, 1], [], []>} : vector<32x32xf32>, vector<32x32xf32>, vector<32x32xf32> -> vector<32x32xf32>
    %1286 = arith.addf %1281, %1285 : vector<32x32xf32>
    %cst_772 = arith.constant dense<0.000000e+00> : vector<32xf32>
    %1287 = vector.multi_reduction <add>, %1286, %cst_772 [0] : vector<32x32xf32> to vector<32xf32>
    %1288 = vector.shape_cast %1287 : vector<32xf32> to vector<1x32xf32>
    %cst_773 = arith.constant 3.200000e+01 : f32
    %1289 = vector.broadcast %cst_773 : f32 to vector<1x32xf32>
    %1290 = arith.divf %1288, %1289 : vector<1x32xf32>
    %1291 = vector.broadcast %1290 : vector<1x32xf32> to vector<32x32xf32>
    %1292 = arith.subf %1286, %1291 : vector<32x32xf32>
    %1293 = arith.mulf %1292, %1292 : vector<32x32xf32>
    %cst_774 = arith.constant dense<0.000000e+00> : vector<32xf32>
    %1294 = vector.multi_reduction <add>, %1293, %cst_774 [0] : vector<32x32xf32> to vector<32xf32>
    %1295 = vector.shape_cast %1294 : vector<32xf32> to vector<1x32xf32>
    %cst_775 = arith.constant 3.200000e+01 : f32
    %1296 = vector.broadcast %cst_775 : f32 to vector<1x32xf32>
    %1297 = arith.divf %1295, %1296 : vector<1x32xf32>
    %c27_776 = arith.constant 27 : index
    %c0_777 = arith.constant 0 : index
    %c0_778 = arith.constant 0 : index
    %1298 = vector.load %arg3[%c27_776, %c0_777, %c0_778] : memref<29x1x32xf32, #tpu.memory_space<vmem>>, vector<1x1x32xf32>
    %1299 = vector.shape_cast %1298 : vector<1x1x32xf32> to vector<1x32xf32>
    %cst_779 = arith.constant 9.99999974E-6 : f32
    %1300 = vector.broadcast %cst_779 : f32 to vector<1x32xf32>
    %1301 = arith.addf %1297, %1300 : vector<1x32xf32>
    %1302 = math.rsqrt %1301 : vector<1x32xf32>
    %1303 = arith.mulf %1299, %1302 : vector<1x32xf32>
    %c27_780 = arith.constant 27 : index
    %c0_781 = arith.constant 0 : index
    %c0_782 = arith.constant 0 : index
    %1304 = vector.load %arg4[%c27_780, %c0_781, %c0_782] : memref<29x1x32xf32, #tpu.memory_space<vmem>>, vector<1x1x32xf32>
    %1305 = vector.shape_cast %1304 : vector<1x1x32xf32> to vector<1x32xf32>
    %1306 = arith.mulf %1290, %1303 : vector<1x32xf32>
    %1307 = arith.subf %1305, %1306 : vector<1x32xf32>
    %1308 = vector.broadcast %1303 : vector<1x32xf32> to vector<32x32xf32>
    %1309 = arith.mulf %1286, %1308 : vector<32x32xf32>
    %1310 = vector.broadcast %1307 : vector<1x32xf32> to vector<32x32xf32>
    %1311 = arith.addf %1309, %1310 : vector<32x32xf32>
    %cst_783 = arith.constant 0.000000e+00 : f32
    %1312 = vector.broadcast %cst_783 : f32 to vector<32x32xf32>
    %1313 = arith.cmpf oge, %1311, %1312 : vector<32x32xf32>
    %cst_784 = arith.constant 2.000000e-01 : f32
    %1314 = vector.broadcast %cst_784 : f32 to vector<32x32xf32>
    %1315 = arith.mulf %1314, %1311 : vector<32x32xf32>
    %1316 = arith.select %1313, %1311, %1315 : vector<32x32xi1>, vector<32x32xf32>
    %c28 = arith.constant 28 : index
    %c0_785 = arith.constant 0 : index
    %c0_786 = arith.constant 0 : index
    %1317 = vector.load %arg2[%c28, %c0_785, %c0_786] : memref<29x32x96xf32, #tpu.memory_space<vmem>>, vector<1x32x96xf32>
    %1318 = vector.shape_cast %1317 : vector<1x32x96xf32> to vector<32x96xf32>
    %cst_787 = arith.constant dense<0.000000e+00> : vector<32x96xf32>
    %1319 = tpu.matmul %1316, %1318, %cst_787 {dimension_numbers = #tpu.dot_dimension_numbers<[1], [0], [0], [1], [0, 0, 1, 1], [], []>} : vector<32x32xf32>, vector<32x96xf32>, vector<32x96xf32> -> vector<32x96xf32>
    %c0_788 = arith.constant 0 : index
    %c0_789 = arith.constant 0 : index
    %c0_790 = arith.constant 0 : index
    %1320 = vector.load %arg1[%c0_788, %c0_789, %c0_790] : memref<3x32x32xf32, #tpu.memory_space<vmem>>, vector<1x32x32xf32>
    %1321 = vector.shape_cast %1320 : vector<1x32x32xf32> to vector<32x32xf32>
    %1322 = vector.extract_strided_slice %1319 {offsets = [0, 0], sizes = [32, 32], strides = [1, 1]} : vector<32x96xf32> to vector<32x32xf32>
    %cst_791 = arith.constant dense<0.000000e+00> : vector<32x32xf32>
    %1323 = tpu.matmul %1321, %1322, %cst_791 {dimension_numbers = #tpu.dot_dimension_numbers<[1], [0], [0], [1], [0, 0, 1, 1], [], []>} : vector<32x32xf32>, vector<32x32xf32>, vector<32x32xf32> -> vector<32x32xf32>
    %c1_792 = arith.constant 1 : index
    %c0_793 = arith.constant 0 : index
    %c0_794 = arith.constant 0 : index
    %1324 = vector.load %arg1[%c1_792, %c0_793, %c0_794] : memref<3x32x32xf32, #tpu.memory_space<vmem>>, vector<1x32x32xf32>
    %1325 = vector.shape_cast %1324 : vector<1x32x32xf32> to vector<32x32xf32>
    %1326 = vector.extract_strided_slice %1319 {offsets = [0, 32], sizes = [32, 32], strides = [1, 1]} : vector<32x96xf32> to vector<32x32xf32>
    %cst_795 = arith.constant dense<0.000000e+00> : vector<32x32xf32>
    %1327 = tpu.matmul %1325, %1326, %cst_795 {dimension_numbers = #tpu.dot_dimension_numbers<[1], [0], [0], [1], [0, 0, 1, 1], [], []>} : vector<32x32xf32>, vector<32x32xf32>, vector<32x32xf32> -> vector<32x32xf32>
    %1328 = arith.addf %1323, %1327 : vector<32x32xf32>
    %c2_796 = arith.constant 2 : index
    %c0_797 = arith.constant 0 : index
    %c0_798 = arith.constant 0 : index
    %1329 = vector.load %arg1[%c2_796, %c0_797, %c0_798] : memref<3x32x32xf32, #tpu.memory_space<vmem>>, vector<1x32x32xf32>
    %1330 = vector.shape_cast %1329 : vector<1x32x32xf32> to vector<32x32xf32>
    %1331 = vector.extract_strided_slice %1319 {offsets = [0, 64], sizes = [32, 32], strides = [1, 1]} : vector<32x96xf32> to vector<32x32xf32>
    %cst_799 = arith.constant dense<0.000000e+00> : vector<32x32xf32>
    %1332 = tpu.matmul %1330, %1331, %cst_799 {dimension_numbers = #tpu.dot_dimension_numbers<[1], [0], [0], [1], [0, 0, 1, 1], [], []>} : vector<32x32xf32>, vector<32x32xf32>, vector<32x32xf32> -> vector<32x32xf32>
    %1333 = arith.addf %1328, %1332 : vector<32x32xf32>
    %cst_800 = arith.constant dense<0.000000e+00> : vector<32xf32>
    %1334 = vector.multi_reduction <add>, %1333, %cst_800 [0] : vector<32x32xf32> to vector<32xf32>
    %1335 = vector.shape_cast %1334 : vector<32xf32> to vector<1x32xf32>
    %cst_801 = arith.constant 3.200000e+01 : f32
    %1336 = vector.broadcast %cst_801 : f32 to vector<1x32xf32>
    %1337 = arith.divf %1335, %1336 : vector<1x32xf32>
    %1338 = vector.broadcast %1337 : vector<1x32xf32> to vector<32x32xf32>
    %1339 = arith.subf %1333, %1338 : vector<32x32xf32>
    %1340 = arith.mulf %1339, %1339 : vector<32x32xf32>
    %cst_802 = arith.constant dense<0.000000e+00> : vector<32xf32>
    %1341 = vector.multi_reduction <add>, %1340, %cst_802 [0] : vector<32x32xf32> to vector<32xf32>
    %1342 = vector.shape_cast %1341 : vector<32xf32> to vector<1x32xf32>
    %cst_803 = arith.constant 3.200000e+01 : f32
    %1343 = vector.broadcast %cst_803 : f32 to vector<1x32xf32>
    %1344 = arith.divf %1342, %1343 : vector<1x32xf32>
    %c28_804 = arith.constant 28 : index
    %c0_805 = arith.constant 0 : index
    %c0_806 = arith.constant 0 : index
    %1345 = vector.load %arg3[%c28_804, %c0_805, %c0_806] : memref<29x1x32xf32, #tpu.memory_space<vmem>>, vector<1x1x32xf32>
    %1346 = vector.shape_cast %1345 : vector<1x1x32xf32> to vector<1x32xf32>
    %cst_807 = arith.constant 9.99999974E-6 : f32
    %1347 = vector.broadcast %cst_807 : f32 to vector<1x32xf32>
    %1348 = arith.addf %1344, %1347 : vector<1x32xf32>
    %1349 = math.rsqrt %1348 : vector<1x32xf32>
    %1350 = arith.mulf %1346, %1349 : vector<1x32xf32>
    %c28_808 = arith.constant 28 : index
    %c0_809 = arith.constant 0 : index
    %c0_810 = arith.constant 0 : index
    %1351 = vector.load %arg4[%c28_808, %c0_809, %c0_810] : memref<29x1x32xf32, #tpu.memory_space<vmem>>, vector<1x1x32xf32>
    %1352 = vector.shape_cast %1351 : vector<1x1x32xf32> to vector<1x32xf32>
    %1353 = arith.mulf %1337, %1350 : vector<1x32xf32>
    %1354 = arith.subf %1352, %1353 : vector<1x32xf32>
    %1355 = vector.broadcast %1350 : vector<1x32xf32> to vector<32x32xf32>
    %1356 = arith.mulf %1333, %1355 : vector<32x32xf32>
    %1357 = vector.broadcast %1354 : vector<1x32xf32> to vector<32x32xf32>
    %1358 = arith.addf %1356, %1357 : vector<32x32xf32>
    %cst_811 = arith.constant 0.000000e+00 : f32
    %1359 = vector.broadcast %cst_811 : f32 to vector<32x32xf32>
    %1360 = arith.cmpf oge, %1358, %1359 : vector<32x32xf32>
    %cst_812 = arith.constant 2.000000e-01 : f32
    %1361 = vector.broadcast %cst_812 : f32 to vector<32x32xf32>
    %1362 = arith.mulf %1361, %1358 : vector<32x32xf32>
    %1363 = arith.select %1360, %1358, %1362 : vector<32x32xi1>, vector<32x32xf32>
    %c0_813 = arith.constant 0 : index
    %c0_814 = arith.constant 0 : index
    %1364 = vector.load %arg5[%c0_813, %c0_814] : memref<32x32xf32, #tpu.memory_space<vmem>>, vector<32x32xf32>
    tpu.vector_store %arg5[%c0_813, %c0_814], %1363 {strides = array<i32>} : memref<32x32xf32, #tpu.memory_space<vmem>>, vector<32x32xf32>,
    return
  }
}

</mosaic_0001>

<bundles_post_ra>
// kernel: custom_gcn_sequential_forward.1
= control target key start
LH: loop header
LB: loop body
LE: loop exit
PB: predicated region body
PF: predicated region fallthrough
CT: control target
= control target key end

     0   :  { %10 = vsyncpa [#allocation3], 0  ;;  %s20559_s0 = inlined_call_operand.vmem [shape: f32[32,32], index: 0, kind: input, shape index: {}]   ;;  %s20560_s1 = inlined_call_operand.vmem [shape: f32[3,32,32], index: 1, kind: input, shape index: {}]   ;;  %s20561_s2 = inlined_call_operand.hbm [shape: f32[29,32,96], index: 2, kind: input, shape index: {}]   ;;  %s20562_s3 = inlined_call_operand.vmem [shape: f32[29,1,32], index: 3, kind: input, shape index: {}]   ;;  %s20563_s4 = inlined_call_operand.vmem [shape: f32[29,1,32], index: 4, kind: input, shape index: {}]   ;;  %s20564_s5 = inlined_call_operand.hbm [shape: f32[32,32], index: 5, kind: output, shape index: {}]  }
   0x1   :  { %11 = vsyncpa [#allocation4], 0  ;;  %s18639_s18 = smov [#allocation2]   ;;  %s18591_s22 = scalar_lea.hbm %s20561_s2, 14848 }
   0x2   :  { %s21_s19 = sshll.u32 %s18639_s18, 4  ;;  %p18592_p0 = scmp.ne.s32.totalorder %s20561_s2, %s18591_s22  ;;  %s22_s19 = int_to_ptr.vmem [resolvable:$true] %s21_s19 }
   0x3   :  { %p18595_p1 = scmp.lt.u32.totalorder %s18591_s22, %s20561_s2 }
   0x5   :  { %p18597_p2 = pnand %p18595_p1, %p18592_p0 }
   0x7   :  { %18600 = shalt.err (!%p18597_p2)
}
   0x8   :  { %s18601_s27 = scalar_lea.vmem %s22_s19, 14848  ;;  %p18606_p4 = scmp.lt.s32.totalorder %s22_s19, %s22_s19 }
   0x9   :  { %p18602_p3 = scmp.ne.s32.totalorder %s22_s19, %s18601_s27  ;;  %p18607_p5 = scmp.lt.s32.totalorder %s18601_s27, %s18601_s27 }
   0xb   :  { %p18608_p6 = por %p18607_p5, %p18606_p4 }
   0xd   :  { %p18609_p7 = pnand %p18608_p6, %p18602_p3 }
   0xf   :  { %18612 = shalt.err (!%p18609_p7)
}
  0x10   :  { %s18640_s28 = smov 128   ;;  %s18641_s29 = smov 8  }
  0x11   :  { %27 = dma.hbm_to_vmem [thread:$0]  %s20561_s2, 14848, %s22_s19, [#allocation3], %s18640_s28, %s18640_s28, %s18641_s29  }
  0x12   :  { %18635 = dma.done.wait [#allocation3], 14848  }
  0x13   :  { %18636 = vsyncadd [#allocation3], 4294952448  ;;  %vm43_vm0 = vcmask 261120   ;;  %v39_v0 = vld [vmem:[#allocation2] sm:$0xff]  ;;  %v40_v1 = vld [vmem:[#allocation2 + $0x8] sm:$0xff]  ;;  %s18642_s16 = smov 96  }
  0x14   :  { %v41_v2 = vld [vmem:[#allocation2 + $0x10] sm:$0xff]  ;;  %v16703_v3 = vpack.c.bf16 %v40_v1, %v39_v0  ;;  %v42_v4 = vld [vmem:[#allocation2 + $0x18] sm:$0xff]  ;;  %v35_v5 = vld [vmem:[%s20559_s0] sm:$0xff]  ;;  %s18643_s18 = smov 64  }
  0x15   :  { %v16707_v6 = vpack.c.bf16 %v42_v4, %v41_v2  ;;  %15087 = vmatprep.mubr.msk.f32.mxu0 %vm43_vm0, %v35_v5  ;;  %v36_v7 = vld [vmem:[%s20559_s0 + $0x8] sm:$0xff]  ;;  %v37_v8 = vld [vmem:[%s20559_s0 + $0x10] sm:$0xff]  ;;  %v38_v9 = vld [vmem:[%s20559_s0 + $0x18] sm:$0xff] }
  0x16   :  { %16704 = vmatprep.subr.bf16.mxu0 %v16703_v3  ;;  %v18709_v10 = vld [vmem:[%s20560_s1] sm:$0xff]  ;;  %v18726_v20 = vld [vmem:[%s20560_s1 + $0x8] sm:$0xff]  ;;  %v18731_v21 = vld [vmem:[%s20560_s1 + $0x10] sm:$0xff] }
  0x17   :  { %16706 = vmatpush3.bf16.msra.mxu0 %v16703_v3  ;;  %15115 = vmatprep.mubr.msk.f32.mxu1 %vm43_vm0, %v18709_v10  ;;  %v18717_v16 = vld [vmem:[%s20560_s1 + $0x20] sm:$0xff]  ;;  %v18741_v22 = vld [vmem:[%s20560_s1 + $0x18] sm:$0xff]  ;;  %v18755_v39 = vld [vmem:[%s20560_s1 + $0x28] sm:$0xff] }
  0x18   :  { %16708 = vmatprep.subr.bf16.mxu0 %v16707_v6  ;;  %v18746_v23 = vld [vmem:[%s20560_s1 + $0x40] sm:$0xff]  ;;  %v18760_v41 = vld [vmem:[%s20560_s1 + $0x30] sm:$0xff]  ;;  %v18767_v42 = vld [vmem:[%s20560_s1 + $0x48] sm:$0xff] }
  0x19   :  { %v18774_v43 = vld [vmem:[%s20560_s1 + $0x38] sm:$0xff]  ;;  %v18779_v44 = vld [vmem:[%s20560_s1 + $0x50] sm:$0xff]  ;;  %v555_v46 = vld [vmem:[#allocation2 + $0x20] sm:$0xff] }
  0x1a   :  { %v18790_v45 = vld [vmem:[%s20560_s1 + $0x58] sm:$0xff]  ;;  %v556_v47 = vld [vmem:[#allocation2 + $0x28] sm:$0xff]  ;;  %v557_v49 = vld [vmem:[#allocation2 + $0x30] sm:$0xff] }
  0x1b   :  { %16710 = vmatpush3.bf16.msra.mxu0 %v16707_v6  ;;  %v16735_v48 = vpack.c.bf16 %v556_v47, %v555_v46  ;;  %v558_v50 = vld [vmem:[#allocation2 + $0x38] sm:$0xff] }
  0x1c   :  { %v16739_v51 = vpack.c.bf16 %v558_v50, %v557_v49  ;;  %v523_v49 = vlaneseq }
  0x1e   :  { %15088 = vmatmul.mubr.msk.f32.vlgmr.msra.gmra.mrb[0].mxu0 %vm43_vm0, %v36_v7  ;;  %v524_v50 = vshrl.u32 %v523_v49, 7  ;;  %v1022_v49 = vld [vmem:[#allocation2 + $0x48] sm:$0xff] }
  0x1f   :  { %15090 = vmatprep.mubr.msk.f32.mxu0 %vm43_vm0, %v37_v8 }
  0x22   :  { %15091 = vmatmul.mubr.msk.f32.gmra.mrb[2].mxu0 %vm43_vm0, %v38_v9 }
  0x23   :  { %15101 = vmatprep.mubr.msk.f32.mxu0 %vm43_vm0, %v18717_v16 }
  0xf1   :  { %v15089_v11 = vpop.f32.mrb[0].mxu0 }
  0xf2   :  { %v122_v12 = vpop.f32.mrb[1].mxu0 }
  0xf3   :  { %v17874_v13 = vpack.i.bf16 %v15089_v11, %v122_v12  ;;  %v16719_v14 = vpack.c.bf16 %v15089_v11, %v122_v12 }
  0xf5   :  { %17870 = vrot.lane.b32.xlu0 %v17874_v13, %s18642_s16  ;;  %v15092_v15 = vpop.f32.mrb[2].mxu0  ;;  %16720 = vmatprep.subr.bf16.mxu1 %v16719_v14 }
  0xf6   :  { %v132_v17 = vpop.f32.mrb[3].mxu0  ;;  %16722 = vmatpush3.bf16.msra.mxu1 %v16719_v14 }
  0xf7   :  { %v17884_v18 = vpack.i.bf16 %v15092_v15, %v132_v17  ;;  %v16723_v19 = vpack.c.bf16 %v15092_v15, %v132_v17 }
  0xf9   :  { %17875 = vrot.lane.b32.xlu0 %v17874_v13, %s18643_s18  ;;  %17880 = vrot.lane.b32.xlu1 %v17884_v18, %s18642_s16 }
  0xfa   :  { %16724 = vmatprep.subr.bf16.mxu1 %v16723_v19 }
  0xfb   :  { %16726 = vmatpush3.bf16.msra.mxu1 %v16723_v19 }
  0xfd   :  { %17885 = vrot.lane.b32.xlu1 %v17884_v18, %s18643_s18 }
  0xfe   :  { %15116 = vmatmul.mubr.msk.f32.vlgmr.msra.gmra.mrb[0].mxu1 %vm43_vm0, %v18726_v20 }
  0xff   :  { %15118 = vmatprep.mubr.msk.f32.mxu1 %vm43_vm0, %v18731_v21 }
 0x102   :  { %15119 = vmatmul.mubr.msk.f32.gmra.mrb[2].mxu1 %vm43_vm0, %v18741_v22 }
 0x103   :  { %15129 = vmatprep.mubr.msk.f32.mxu1 %vm43_vm0, %v18746_v23 }
 0x167   :  { %v17871_v24 = vpop.permute.xlu0 %17870 }
 0x168   :  { %v17873_v25 = vunpack.i.h.bf16 %v17871_v24  ;;  %v17872_v26 = vunpack.i.l.bf16 %v17871_v24 }
 0x16a   :  { %v16711_v27 = vpack.c.bf16 %v17873_v25, %v17872_v26 }
 0x16b   :  { %v17876_v28 = vpop.permute.xlu0 %17875  ;;  %v17881_v29 = vpop.permute.xlu1 %17880 }
 0x16c   :  { %v17878_v30 = vunpack.i.h.bf16 %v17876_v28  ;;  %v17877_v31 = vunpack.i.l.bf16 %v17876_v28  ;;  %v17883_v32 = vunpack.i.h.bf16 %v17881_v29  ;;  %v17882_v33 = vunpack.i.l.bf16 %v17881_v29  ;;  %16712 = vmatprep.subr.bf16.mxu0 %v16711_v27 }
 0x16d   :  { %16714 = vmatpush3.bf16.msra.mxu0 %v16711_v27 }
 0x16e   :  { %v16715_v34 = vpack.c.bf16 %v17883_v32, %v17882_v33  ;;  %v16727_v35 = vpack.c.bf16 %v17878_v30, %v17877_v31 }
 0x16f   :  { %v17886_v36 = vpop.permute.xlu1 %17885 }
 0x170   :  { %v17888_v37 = vunpack.i.h.bf16 %v17886_v36  ;;  %v17887_v38 = vunpack.i.l.bf16 %v17886_v36  ;;  %16716 = vmatprep.subr.bf16.mxu0 %v16715_v34  ;;  %16728 = vmatprep.subr.bf16.mxu1 %v16727_v35 }
 0x171   :  { %16718 = vmatpush3.bf16.msra.mxu0 %v16715_v34  ;;  %16730 = vmatpush3.bf16.msra.mxu1 %v16727_v35 }
 0x172   :  { %v16731_v40 = vpack.c.bf16 %v17888_v37, %v17887_v38  ;;  %16736 = vmatprep.subr.bf16.mxu0 %v16735_v48 }
 0x174   :  { %16732 = vmatprep.subr.bf16.mxu1 %v16731_v40  ;;  %15102 = vmatmul.mubr.msk.f32.vlgmr.msra.gmra.mrb[4].mxu0 %vm43_vm0, %v18755_v39 }
 0x175   :  { %16734 = vmatpush3.bf16.msra.mxu1 %v16731_v40  ;;  %15104 = vmatprep.mubr.msk.f32.mxu0 %vm43_vm0, %v18760_v41 }
 0x176   :  { %16738 = vmatpush3.bf16.msra.mxu0 %v16735_v48 }
 0x177   :  { %16740 = vmatprep.subr.bf16.mxu0 %v16739_v51 }
 0x178   :  { %15130 = vmatmul.mubr.msk.f32.vlgmr.msra.gmra.mrb[0].mxu1 %vm43_vm0, %v18767_v42  ;;  %15105 = vmatmul.mubr.msk.f32.gmra.mrb[6].mxu0 %vm43_vm0, %v18774_v43 }
 0x179   :  { %15132 = vmatprep.mubr.msk.f32.mxu1 %vm43_vm0, %v18779_v44 }
 0x17a   :  { %16742 = vmatpush3.bf16.msra.mxu0 %v16739_v51  ;;  %v515_v51 = vld [vmem:[%s20562_s3] sm:$0x1] }
 0x17c   :  { %15133 = vmatmul.mubr.msk.f32.gmra.mrb[2].mxu1 %vm43_vm0, %v18790_v45 }
 0x247   :  { %v15103_v52 = vpop.f32.mrb[4].mxu0 }
 0x248   :  { %v244_v53 = vpop.f32.mrb[5].mxu0 }
 0x24b   :  { %v15131_v54 = vpop.f32.mrb[0].mxu1  ;;  %v15106_v55 = vpop.f32.mrb[6].mxu0 }
 0x24c   :  { %v17631_v56 = vadd.f32 %v15131_v54, %v15103_v52  ;;  %v455_v57 = vpop.f32.mrb[1].mxu1  ;;  %v254_v58 = vpop.f32.mrb[7].mxu0  ;;  %v18805_v52 = vsub.s32 0, %v524_v50 }
 0x24d   :  { %v17632_v59 = vadd.f32 %v455_v57, %v244_v53 }
 0x24e   :  { %v479_v60 = vsel %vm43_vm0, %v17631_v56, 0.0 }
 0x24f   :  { %v478_v61 = vsel %vm43_vm0, %v17632_v59, 0.0  ;;  %v15134_v62 = vpop.f32.mrb[2].mxu1 }
 0x250   :  { %v17633_v63 = vadd.f32 %v15134_v62, %v15106_v55  ;;  %v465_v0 = vpop.f32.mrb[3].mxu1  ;;  %v480_v2 = vadd.f32 %v479_v60, %v478_v61  ;;  %v519_v55 = vld [vmem:[%s20563_s4] sm:$0x1] }
 0x251   :  { %v17634_v1 = vadd.f32 %v465_v0, %v254_v58 }
 0x252   :  { %v483_v5 = vsel %vm43_vm0, %v17633_v63, 0.0 }
 0x253   :  { %v481_v3 = vsel %vm43_vm0, %v17634_v1, 0.0 }
 0x254   :  { %v482_v4 = vadd.f32 %v481_v3, %v480_v2 }
 0x256   :  { %v484_v6 = vadd.f32 %v483_v5, %v482_v4 }
 0x258   :  { %v485_v7 = vrot.slane %v484_v6, 4 }
 0x25a   :  { %v486_v8 = vadd.f32 %v485_v7, %v484_v6 }
 0x25c   :  { %v487_v9 = vrot.slane %v486_v8, 2 }
 0x25e   :  { %v488_v11 = vadd.f32 %v487_v9, %v486_v8 }
 0x260   :  { %v489_v12 = vrot.slane %v488_v11, 1 }
 0x262   :  { %v490_v13 = vadd.f32 %v489_v12, %v488_v11 }
 0x264   :  { %v492_v14 = vmul.f32 0.03125, %v490_v13 }
 0x266   :  { %v493_v15 = vsub.f32 %v17632_v59, %v492_v14  ;;  %v494_v17 = vsub.f32 %v17631_v56, %v492_v14  ;;  %v495_v18 = vsub.f32 %v17634_v1, %v492_v14  ;;  %v496_v19 = vsub.f32 %v17633_v63, %v492_v14 }
 0x268   :  { %v497_v24 = vmul.f32 %v493_v15, %v493_v15  ;;  %v498_v25 = vmul.f32 %v494_v17, %v494_v17  ;;  %v499_v26 = vmul.f32 %v495_v18, %v495_v18  ;;  %v500_v27 = vmul.f32 %v496_v19, %v496_v19 }
 0x26a   :  { %v501_v28 = vsel %vm43_vm0, %v497_v24, 0.0  ;;  %v502_v29 = vsel %vm43_vm0, %v498_v25, 0.0  ;;  %v504_v31 = vsel %vm43_vm0, %v499_v26, 0.0  ;;  %v506_v33 = vsel %vm43_vm0, %v500_v27, 0.0 }
 0x26b   :  { %v503_v30 = vadd.f32 %v502_v29, %v501_v28 }
 0x26d   :  { %v505_v32 = vadd.f32 %v504_v31, %v503_v30 }
 0x26f   :  { %v507_v34 = vadd.f32 %v506_v33, %v505_v32 }
 0x271   :  { %v508_v35 = vrot.slane %v507_v34, 4 }
 0x273   :  { %v509_v36 = vadd.f32 %v508_v35, %v507_v34 }
 0x275   :  { %v510_v37 = vrot.slane %v509_v36, 2 }
 0x277   :  { %v511_v38 = vadd.f32 %v510_v37, %v509_v36 }
 0x279   :  { %v512_v40 = vrot.slane %v511_v38, 1 }
 0x27b   :  { %v513_v46 = vadd.f32 %v512_v40, %v511_v38 }
 0x27d   :  { %v514_v47 = vmul.f32 0.03125, %v513_v46 }
 0x27f   :  { %v516_v48 = vadd.f32 1e-05, %v514_v47 }
 0x281   :  { %18449 = vrsqrt.f32 %v516_v48  ;;  %v1021_v48 = vld [vmem:[#allocation2 + $0x40] sm:$0xff] }
 0x282   :  { %v16767_v50 = vpack.c.bf16 %v1022_v49, %v1021_v48 }
 0x284   :  { %16768 = vmatprep.subr.bf16.mxu1 %v16767_v50 }
 0x285   :  { %16770 = vmatpush3.bf16.msra.mxu1 %v16767_v50 }
 0x28b   :  { %v18450_v53 = vpop.eup %18449 }
 0x28c   :  { %v518_v54 = vmul.f32 %v18450_v53, %v515_v51  ;;  %v1023_v51 = vld [vmem:[#allocation2 + $0x50] sm:$0xff]  ;;  %v1024_v53 = vld [vmem:[#allocation2 + $0x58] sm:$0xff] }
 0x28e   :  { %v520_v57 = vmul.f32 %v518_v54, %v492_v14  ;;  %v526_v58 = vrot.slane %v518_v54, %v18805_v52  ;;  %v16771_v54 = vpack.c.bf16 %v1024_v53, %v1023_v51 }
 0x290   :  { %v521_v60 = vsub.f32 %v519_v55, %v520_v57  ;;  %v530_v61 = vmul.f32 %v17634_v1, %v526_v58  ;;  %v531_v62 = vmul.f32 %v17633_v63, %v526_v58  ;;  %v528_v2 = vmul.f32 %v17632_v59, %v526_v58  ;;  %16772 = vmatprep.subr.bf16.mxu1 %v16771_v54 }
 0x291   :  { %v529_v3 = vmul.f32 %v17631_v56, %v526_v58  ;;  %16774 = vmatpush3.bf16.msra.mxu1 %v16771_v54 }
 0x292   :  { %v536_v0 = vrot.slane %v521_v60, %v18805_v52 }
 0x294   :  { %v540_v4 = vadd.f32 %v536_v0, %v530_v61  ;;  %v538_v5 = vadd.f32 %v536_v0, %v528_v2  ;;  %v539_v6 = vadd.f32 %v536_v0, %v529_v3  ;;  %v541_v7 = vadd.f32 %v536_v0, %v531_v62 }
 0x296   :  { %vm542_vm1 = vcmp.ge.f32.partialorder %v538_v5, 0.0  ;;  %v546_v8 = vmul.f32 0.2, %v538_v5  ;;  %vm543_vm2 = vcmp.ge.f32.partialorder %v539_v6, 0.0  ;;  %v547_v9 = vmul.f32 0.2, %v539_v6 }
 0x297   :  { %vm544_vm3 = vcmp.ge.f32.partialorder %v540_v4, 0.0  ;;  %v548_v11 = vmul.f32 0.2, %v540_v4  ;;  %v549_v1 = vmul.f32 0.2, %v541_v7  ;;  %vm545_vm4 = vcmp.ge.f32.partialorder %v541_v7, 0.0 }
 0x298   :  { %v550_v12 = vsel %vm542_vm1, %v538_v5, %v546_v8  ;;  %v551_v13 = vsel %vm543_vm2, %v539_v6, %v547_v9 }
 0x299   :  { %15143 = vmatprep.mubr.msk.f32.mxu0 %vm43_vm0, %v550_v12  ;;  %v552_v63 = vsel %vm544_vm3, %v540_v4, %v548_v11  ;;  %v553_v56 = vsel %vm545_vm4, %v541_v7, %v549_v1 }
 0x29a   :  { %15144 = vmatmul.mubr.msk.f32.vlgmr.msra.gmra.mrb[8].mxu0 %vm43_vm0, %v551_v13 }
 0x29b   :  { %15146 = vmatprep.mubr.msk.f32.mxu0 %vm43_vm0, %v552_v63 }
 0x29e   :  { %15147 = vmatmul.mubr.msk.f32.gmra.mrb[10].mxu0 %vm43_vm0, %v553_v56 }
 0x29f   :  { %15157 = vmatprep.mubr.msk.f32.mxu0 %vm43_vm0, %v18717_v16 }
 0x36d   :  { %v15145_v59 = vpop.f32.mrb[8].mxu0 }
 0x36e   :  { %v637_v14 = vpop.f32.mrb[9].mxu0 }
 0x36f   :  { %v17899_v15 = vpack.i.bf16 %v15145_v59, %v637_v14  ;;  %v16751_v17 = vpack.c.bf16 %v15145_v59, %v637_v14 }
 0x371   :  { %17890 = vrot.lane.b32.xlu0 %v17899_v15, %s18642_s16  ;;  %v15148_v18 = vpop.f32.mrb[10].mxu0 }
 0x372   :  { %v647_v19 = vpop.f32.mrb[11].mxu0 }
 0x373   :  { %v17904_v24 = vpack.i.bf16 %v15148_v18, %v647_v19  ;;  %v16755_v25 = vpack.c.bf16 %v15148_v18, %v647_v19 }
 0x375   :  { %17900 = vrot.lane.b32.xlu0 %v17899_v15, %s18643_s18  ;;  %17895 = vrot.lane.b32.xlu1 %v17904_v24, %s18642_s16 }
 0x379   :  { %17905 = vrot.lane.b32.xlu1 %v17904_v24, %s18643_s18 }
 0x3e3   :  { %v17891_v26 = vpop.permute.xlu0 %17890 }
 0x3e4   :  { %v17893_v27 = vunpack.i.h.bf16 %v17891_v26  ;;  %v17892_v28 = vunpack.i.l.bf16 %v17891_v26 }
 0x3e6   :  { %v16743_v29 = vpack.c.bf16 %v17893_v27, %v17892_v28 }
 0x3e7   :  { %v17896_v30 = vpop.permute.xlu1 %17895  ;;  %v17901_v34 = vpop.permute.xlu0 %17900 }
 0x3e8   :  { %v17898_v31 = vunpack.i.h.bf16 %v17896_v30  ;;  %v17897_v32 = vunpack.i.l.bf16 %v17896_v30  ;;  %16744 = vmatprep.subr.bf16.mxu0 %v16743_v29  ;;  %v17903_v35 = vunpack.i.h.bf16 %v17901_v34  ;;  %v17902_v36 = vunpack.i.l.bf16 %v17901_v34 }
 0x3e9   :  { %16746 = vmatpush3.bf16.msra.mxu0 %v16743_v29 }
 0x3ea   :  { %v16747_v33 = vpack.c.bf16 %v17898_v31, %v17897_v32  ;;  %v16759_v46 = vpack.c.bf16 %v17903_v35, %v17902_v36 }
 0x3eb   :  { %v17906_v37 = vpop.permute.xlu1 %17905 }
 0x3ec   :  { %16748 = vmatprep.subr.bf16.mxu0 %v16747_v33  ;;  %v17908_v38 = vunpack.i.h.bf16 %v17906_v37  ;;  %v17907_v40 = vunpack.i.l.bf16 %v17906_v37 }
 0x3ed   :  { %16750 = vmatpush3.bf16.msra.mxu0 %v16747_v33 }
 0x3ee   :  { %16752 = vmatprep.subr.bf16.mxu0 %v16751_v17  ;;  %v16763_v47 = vpack.c.bf16 %v17908_v38, %v17907_v40  ;;  %v13663_v38 = vld [vmem:[%s20562_s3 + $0x1] sm:$0x1] }
 0x3f0   :  { %15158 = vmatmul.mubr.msk.f32.vlgmr.msra.gmra.mrb[12].mxu0 %vm43_vm0, %v18755_v39 }
 0x3f1   :  { %16754 = vmatpush3.bf16.msra.mxu0 %v16751_v17  ;;  %15160 = vmatprep.mubr.msk.f32.mxu0 %vm43_vm0, %v18760_v41 }
 0x3f2   :  { %16756 = vmatprep.subr.bf16.mxu0 %v16755_v25 }
 0x3f4   :  { %15161 = vmatmul.mubr.msk.f32.gmra.mrb[14].mxu0 %vm43_vm0, %v18774_v43 }
 0x3f5   :  { %16758 = vmatpush3.bf16.msra.mxu0 %v16755_v25  ;;  %15171 = vmatprep.mubr.msk.f32.mxu0 %vm43_vm0, %v18709_v10 }
 0x3f6   :  { %16760 = vmatprep.subr.bf16.mxu0 %v16759_v46 }
 0x3f8   :  { %15172 = vmatmul.mubr.msk.f32.vlgmr.msra.gmra.mrb[12].mxu0 %vm43_vm0, %v18726_v20 }
 0x3f9   :  { %16762 = vmatpush3.bf16.msra.mxu0 %v16759_v46  ;;  %15174 = vmatprep.mubr.msk.f32.mxu0 %vm43_vm0, %v18731_v21 }
 0x3fa   :  { %16764 = vmatprep.subr.bf16.mxu0 %v16763_v47 }
 0x3fc   :  { %15175 = vmatmul.mubr.msk.f32.gmra.mrb[14].mxu0 %vm43_vm0, %v18741_v22 }
 0x3fd   :  { %16766 = vmatpush3.bf16.msra.mxu0 %v16763_v47  ;;  %15185 = vmatprep.mubr.msk.f32.mxu0 %vm43_vm0, %v18746_v23  ;;  %v13664_v47 = vld [vmem:[%s20563_s4 + $0x1] sm:$0x1] }
 0x400   :  { %15186 = vmatmul.mubr.msk.f32.vlgmr.msra.gmra.mrb[12].mxu0 %vm43_vm0, %v18767_v42 }
 0x401   :  { %15188 = vmatprep.mubr.msk.f32.mxu0 %vm43_vm0, %v18779_v44 }
 0x404   :  { %15189 = vmatmul.mubr.msk.f32.gmra.mrb[14].mxu0 %vm43_vm0, %v18790_v45 }
 0x4d3   :  { %v15187_v55 = vpop.f32.mrb[12].mxu0 }
 0x4d4   :  { %v944_v57 = vsel %vm43_vm0, %v15187_v55, 0.0  ;;  %v920_v58 = vpop.f32.mrb[13].mxu0 }
 0x4d5   :  { %v943_v60 = vsel %vm43_vm0, %v920_v58, 0.0 }
 0x4d6   :  { %v945_v61 = vadd.f32 %v944_v57, %v943_v60 }
 0x4d7   :  { %v15190_v62 = vpop.f32.mrb[14].mxu0 }
 0x4d8   :  { %v930_v0 = vpop.f32.mrb[15].mxu0  ;;  %v948_v4 = vsel %vm43_vm0, %v15190_v62, 0.0 }
 0x4d9   :  { %v946_v2 = vsel %vm43_vm0, %v930_v0, 0.0 }
 0x4da   :  { %v947_v3 = vadd.f32 %v946_v2, %v945_v61 }
 0x4dc   :  { %v949_v5 = vadd.f32 %v948_v4, %v947_v3 }
 0x4de   :  { %v950_v6 = vrot.slane %v949_v5, 4 }
 0x4e0   :  { %v951_v7 = vadd.f32 %v950_v6, %v949_v5 }
 0x4e2   :  { %v952_v8 = vrot.slane %v951_v7, 2 }
 0x4e4   :  { %v953_v9 = vadd.f32 %v952_v8, %v951_v7 }
 0x4e6   :  { %v954_v11 = vrot.slane %v953_v9, 1 }
 0x4e8   :  { %v955_v12 = vadd.f32 %v954_v11, %v953_v9 }
 0x4ea   :  { %v956_v13 = vmul.f32 0.03125, %v955_v12 }
 0x4ec   :  { %v957_v1 = vsub.f32 %v920_v58, %v956_v13  ;;  %v958_v63 = vsub.f32 %v15187_v55, %v956_v13  ;;  %v959_v56 = vsub.f32 %v930_v0, %v956_v13  ;;  %v960_v59 = vsub.f32 %v15190_v62, %v956_v13 }
 0x4ee   :  { %v961_v14 = vmul.f32 %v957_v1, %v957_v1  ;;  %v962_v15 = vmul.f32 %v958_v63, %v958_v63  ;;  %v963_v17 = vmul.f32 %v959_v56, %v959_v56  ;;  %v964_v18 = vmul.f32 %v960_v59, %v960_v59 }
 0x4f0   :  { %v965_v19 = vsel %vm43_vm0, %v961_v14, 0.0  ;;  %v966_v24 = vsel %vm43_vm0, %v962_v15, 0.0  ;;  %v968_v26 = vsel %vm43_vm0, %v963_v17, 0.0  ;;  %v970_v28 = vsel %vm43_vm0, %v964_v18, 0.0 }
 0x4f1   :  { %v967_v25 = vadd.f32 %v966_v24, %v965_v19 }
 0x4f3   :  { %v969_v27 = vadd.f32 %v968_v26, %v967_v25 }
 0x4f5   :  { %v971_v29 = vadd.f32 %v970_v28, %v969_v27 }
 0x4f7   :  { %v972_v30 = vrot.slane %v971_v29, 4 }
 0x4f9   :  { %v973_v31 = vadd.f32 %v972_v30, %v971_v29 }
 0x4fb   :  { %v974_v32 = vrot.slane %v973_v31, 2 }
 0x4fd   :  { %v975_v33 = vadd.f32 %v974_v32, %v973_v31 }
 0x4ff   :  { %v976_v34 = vrot.slane %v975_v33, 1 }
 0x501   :  { %v977_v35 = vadd.f32 %v976_v34, %v975_v33 }
 0x503   :  { %v978_v36 = vmul.f32 0.03125, %v977_v35  ;;  %v1487_v35 = vld [vmem:[#allocation2 + $0x60] sm:$0xff] }
 0x505   :  { %v981_v37 = vadd.f32 1e-05, %v978_v36  ;;  %v1488_v36 = vld [vmem:[#allocation2 + $0x68] sm:$0xff] }
 0x507   :  { %18451 = vrsqrt.f32 %v981_v37  ;;  %v16799_v37 = vpack.c.bf16 %v1488_v36, %v1487_v35 }
 0x509   :  { %16800 = vmatprep.subr.bf16.mxu0 %v16799_v37 }
 0x50a   :  { %16802 = vmatpush3.bf16.msra.mxu0 %v16799_v37 }
 0x511   :  { %v18452_v40 = vpop.eup %18451 }
 0x512   :  { %v983_v46 = vmul.f32 %v18452_v40, %v13663_v38  ;;  %v1489_v38 = vld [vmem:[#allocation2 + $0x70] sm:$0xff]  ;;  %v1490_v40 = vld [vmem:[#allocation2 + $0x78] sm:$0xff] }
 0x514   :  { %v986_v48 = vmul.f32 %v983_v46, %v956_v13  ;;  %v992_v49 = vrot.slane %v983_v46, %v18805_v52  ;;  %v16803_v46 = vpack.c.bf16 %v1490_v40, %v1489_v38 }
 0x516   :  { %v987_v50 = vsub.f32 %v13664_v47, %v986_v48  ;;  %v996_v51 = vmul.f32 %v992_v49, %v930_v0  ;;  %v994_v53 = vmul.f32 %v992_v49, %v920_v58  ;;  %v995_v54 = vmul.f32 %v15187_v55, %v992_v49  ;;  %16804 = vmatprep.subr.bf16.mxu0 %v16803_v46 }
 0x517   :  { %v997_v57 = vmul.f32 %v15190_v62, %v992_v49  ;;  %16806 = vmatpush3.bf16.msra.mxu0 %v16803_v46 }
 0x518   :  { %v1002_v60 = vrot.slane %v987_v50, %v18805_v52 }
 0x51a   :  { %v1006_v61 = vadd.f32 %v1002_v60, %v996_v51  ;;  %v1004_v2 = vadd.f32 %v1002_v60, %v994_v53  ;;  %v1005_v3 = vadd.f32 %v1002_v60, %v995_v54  ;;  %v1007_v4 = vadd.f32 %v1002_v60, %v997_v57 }
 0x51c   :  { %vm1008_vm5 = vcmp.ge.f32.partialorder %v1004_v2, 0.0  ;;  %v1012_v5 = vmul.f32 0.2, %v1004_v2  ;;  %vm1009_vm6 = vcmp.ge.f32.partialorder %v1005_v3, 0.0  ;;  %v1013_v6 = vmul.f32 0.2, %v1005_v3 }
 0x51d   :  { %vm1010_vm7 = vcmp.ge.f32.partialorder %v1006_v61, 0.0  ;;  %v1014_v7 = vmul.f32 0.2, %v1006_v61  ;;  %v1015_v0 = vmul.f32 0.2, %v1007_v4  ;;  %vm1011_vm8 = vcmp.ge.f32.partialorder %v1007_v4, 0.0 }
 0x51e   :  { %v1016_v8 = vsel %vm1008_vm5, %v1004_v2, %v1012_v5  ;;  %v1017_v9 = vsel %vm1009_vm6, %v1005_v3, %v1013_v6 }
 0x51f   :  { %15199 = vmatprep.mubr.msk.f32.mxu1 %vm43_vm0, %v1016_v8  ;;  %v1018_v55 = vsel %vm1010_vm7, %v1006_v61, %v1014_v7  ;;  %v1019_v58 = vsel %vm1011_vm8, %v1007_v4, %v1015_v0 }
 0x520   :  { %15200 = vmatmul.mubr.msk.f32.vlgmr.msra.gmra.mrb[4].mxu1 %vm43_vm0, %v1017_v9 }
 0x521   :  { %15202 = vmatprep.mubr.msk.f32.mxu1 %vm43_vm0, %v1018_v55 }
 0x524   :  { %15203 = vmatmul.mubr.msk.f32.gmra.mrb[6].mxu1 %vm43_vm0, %v1019_v58 }
 0x525   :  { %15213 = vmatprep.mubr.msk.f32.mxu1 %vm43_vm0, %v18717_v16 }
 0x5f3   :  { %v15201_v62 = vpop.f32.mrb[4].mxu1 }
 0x5f4   :  { %v1103_v11 = vpop.f32.mrb[5].mxu1 }
 0x5f5   :  { %v17919_v12 = vpack.i.bf16 %v15201_v62, %v1103_v11  ;;  %v16783_v13 = vpack.c.bf16 %v15201_v62, %v1103_v11 }
 0x5f7   :  { %17910 = vrot.lane.b32.xlu0 %v17919_v12, %s18642_s16  ;;  %v15204_v1 = vpop.f32.mrb[6].mxu1 }
 0x5f8   :  { %v1113_v63 = vpop.f32.mrb[7].mxu1 }
 0x5f9   :  { %v17924_v56 = vpack.i.bf16 %v15204_v1, %v1113_v63  ;;  %v16787_v59 = vpack.c.bf16 %v15204_v1, %v1113_v63 }
 0x5fb   :  { %17920 = vrot.lane.b32.xlu0 %v17919_v12, %s18643_s18  ;;  %17915 = vrot.lane.b32.xlu1 %v17924_v56, %s18642_s16 }
 0x5ff   :  { %17925 = vrot.lane.b32.xlu1 %v17924_v56, %s18643_s18 }
 0x669   :  { %v17911_v14 = vpop.permute.xlu0 %17910 }
 0x66a   :  { %v17913_v15 = vunpack.i.h.bf16 %v17911_v14  ;;  %v17912_v17 = vunpack.i.l.bf16 %v17911_v14 }
 0x66c   :  { %v16775_v18 = vpack.c.bf16 %v17913_v15, %v17912_v17 }
 0x66d   :  { %v17916_v19 = vpop.permute.xlu1 %17915  ;;  %v17921_v27 = vpop.permute.xlu0 %17920 }
 0x66e   :  { %v17918_v24 = vunpack.i.h.bf16 %v17916_v19  ;;  %v17917_v25 = vunpack.i.l.bf16 %v17916_v19  ;;  %16776 = vmatprep.subr.bf16.mxu1 %v16775_v18  ;;  %v17923_v28 = vunpack.i.h.bf16 %v17921_v27  ;;  %v17922_v29 = vunpack.i.l.bf16 %v17921_v27 }
 0x66f   :  { %16778 = vmatpush3.bf16.msra.mxu1 %v16775_v18 }
 0x670   :  { %v16779_v26 = vpack.c.bf16 %v17918_v24, %v17917_v25  ;;  %v16791_v33 = vpack.c.bf16 %v17923_v28, %v17922_v29 }
 0x671   :  { %v17926_v30 = vpop.permute.xlu1 %17925 }
 0x672   :  { %16780 = vmatprep.subr.bf16.mxu1 %v16779_v26  ;;  %v17928_v31 = vunpack.i.h.bf16 %v17926_v30  ;;  %v17927_v32 = vunpack.i.l.bf16 %v17926_v30 }
 0x673   :  { %16782 = vmatpush3.bf16.msra.mxu1 %v16779_v26 }
 0x674   :  { %16784 = vmatprep.subr.bf16.mxu1 %v16783_v13  ;;  %v16795_v34 = vpack.c.bf16 %v17928_v31, %v17927_v32  ;;  %v13681_v31 = vld [vmem:[%s20562_s3 + $0x2] sm:$0x1] }
 0x676   :  { %15214 = vmatmul.mubr.msk.f32.vlgmr.msra.gmra.mrb[8].mxu1 %vm43_vm0, %v18755_v39 }
 0x677   :  { %16786 = vmatpush3.bf16.msra.mxu1 %v16783_v13  ;;  %15216 = vmatprep.mubr.msk.f32.mxu1 %vm43_vm0, %v18760_v41 }
 0x678   :  { %16788 = vmatprep.subr.bf16.mxu1 %v16787_v59 }
 0x67a   :  { %15217 = vmatmul.mubr.msk.f32.gmra.mrb[10].mxu1 %vm43_vm0, %v18774_v43 }
 0x67b   :  { %16790 = vmatpush3.bf16.msra.mxu1 %v16787_v59  ;;  %15227 = vmatprep.mubr.msk.f32.mxu1 %vm43_vm0, %v18709_v10 }
 0x67c   :  { %16792 = vmatprep.subr.bf16.mxu1 %v16791_v33 }
 0x67e   :  { %15228 = vmatmul.mubr.msk.f32.vlgmr.msra.gmra.mrb[8].mxu1 %vm43_vm0, %v18726_v20 }
 0x67f   :  { %16794 = vmatpush3.bf16.msra.mxu1 %v16791_v33  ;;  %15230 = vmatprep.mubr.msk.f32.mxu1 %vm43_vm0, %v18731_v21 }
 0x680   :  { %16796 = vmatprep.subr.bf16.mxu1 %v16795_v34 }
 0x682   :  { %15231 = vmatmul.mubr.msk.f32.gmra.mrb[10].mxu1 %vm43_vm0, %v18741_v22 }
 0x683   :  { %16798 = vmatpush3.bf16.msra.mxu1 %v16795_v34  ;;  %15241 = vmatprep.mubr.msk.f32.mxu1 %vm43_vm0, %v18746_v23  ;;  %v13682_v34 = vld [vmem:[%s20563_s4 + $0x2] sm:$0x1] }
 0x686   :  { %15242 = vmatmul.mubr.msk.f32.vlgmr.msra.gmra.mrb[8].mxu1 %vm43_vm0, %v18767_v42 }
 0x687   :  { %15244 = vmatprep.mubr.msk.f32.mxu1 %vm43_vm0, %v18779_v44 }
 0x68a   :  { %15245 = vmatmul.mubr.msk.f32.gmra.mrb[10].mxu1 %vm43_vm0, %v18790_v45 }
 0x759   :  { %v15243_v47 = vpop.f32.mrb[8].mxu1 }
 0x75a   :  { %v1410_v48 = vsel %vm43_vm0, %v15243_v47, 0.0  ;;  %v1386_v49 = vpop.f32.mrb[9].mxu1 }
 0x75b   :  { %v1409_v50 = vsel %vm43_vm0, %v1386_v49, 0.0 }
 0x75c   :  { %v1411_v51 = vadd.f32 %v1410_v48, %v1409_v50 }
 0x75d   :  { %v15246_v53 = vpop.f32.mrb[10].mxu1 }
 0x75e   :  { %v1396_v54 = vpop.f32.mrb[11].mxu1  ;;  %v1414_v61 = vsel %vm43_vm0, %v15246_v53, 0.0 }
 0x75f   :  { %v1412_v57 = vsel %vm43_vm0, %v1396_v54, 0.0 }
 0x760   :  { %v1413_v60 = vadd.f32 %v1412_v57, %v1411_v51 }
 0x762   :  { %v1415_v2 = vadd.f32 %v1414_v61, %v1413_v60 }
 0x764   :  { %v1416_v3 = vrot.slane %v1415_v2, 4 }
 0x766   :  { %v1417_v4 = vadd.f32 %v1416_v3, %v1415_v2 }
 0x768   :  { %v1418_v5 = vrot.slane %v1417_v4, 2 }
 0x76a   :  { %v1419_v6 = vadd.f32 %v1418_v5, %v1417_v4 }
 0x76c   :  { %v1420_v7 = vrot.slane %v1419_v6, 1 }
 0x76e   :  { %v1421_v8 = vadd.f32 %v1420_v7, %v1419_v6 }
 0x770   :  { %v1422_v9 = vmul.f32 0.03125, %v1421_v8 }
 0x772   :  { %v1423_v0 = vsub.f32 %v1386_v49, %v1422_v9  ;;  %v1424_v55 = vsub.f32 %v15243_v47, %v1422_v9  ;;  %v1425_v58 = vsub.f32 %v1396_v54, %v1422_v9  ;;  %v1426_v62 = vsub.f32 %v15246_v53, %v1422_v9 }
 0x774   :  { %v1427_v11 = vmul.f32 %v1423_v0, %v1423_v0  ;;  %v1428_v12 = vmul.f32 %v1424_v55, %v1424_v55  ;;  %v1429_v13 = vmul.f32 %v1425_v58, %v1425_v58  ;;  %v1430_v1 = vmul.f32 %v1426_v62, %v1426_v62 }
 0x776   :  { %v1431_v63 = vsel %vm43_vm0, %v1427_v11, 0.0  ;;  %v1432_v56 = vsel %vm43_vm0, %v1428_v12, 0.0  ;;  %v1434_v14 = vsel %vm43_vm0, %v1429_v13, 0.0  ;;  %v1436_v17 = vsel %vm43_vm0, %v1430_v1, 0.0 }
 0x777   :  { %v1433_v59 = vadd.f32 %v1432_v56, %v1431_v63 }
 0x779   :  { %v1435_v15 = vadd.f32 %v1434_v14, %v1433_v59 }
 0x77b   :  { %v1437_v18 = vadd.f32 %v1436_v17, %v1435_v15 }
 0x77d   :  { %v1438_v19 = vrot.slane %v1437_v18, 4 }
 0x77f   :  { %v1439_v24 = vadd.f32 %v1438_v19, %v1437_v18 }
 0x781   :  { %v1440_v25 = vrot.slane %v1439_v24, 2 }
 0x783   :  { %v1441_v26 = vadd.f32 %v1440_v25, %v1439_v24 }
 0x785   :  { %v1442_v27 = vrot.slane %v1441_v26, 1 }
 0x787   :  { %v1443_v28 = vadd.f32 %v1442_v27, %v1441_v26 }
 0x789   :  { %v1444_v29 = vmul.f32 0.03125, %v1443_v28 }
 0x78b   :  { %v1447_v30 = vadd.f32 1e-05, %v1444_v29 }
 0x78d   :  { %18453 = vrsqrt.f32 %v1447_v30 }
 0x797   :  { %v18454_v32 = vpop.eup %18453 }
 0x798   :  { %v1449_v33 = vmul.f32 %v18454_v32, %v13681_v31 }
 0x79a   :  { %v1452_v35 = vmul.f32 %v1449_v33, %v1422_v9  ;;  %v1458_v36 = vrot.slane %v1449_v33, %v18805_v52 }
 0x79c   :  { %v1453_v37 = vsub.f32 %v13682_v34, %v1452_v35  ;;  %v1462_v38 = vmul.f32 %v1458_v36, %v1396_v54  ;;  %v1460_v40 = vmul.f32 %v1458_v36, %v1386_v49  ;;  %v1461_v46 = vmul.f32 %v15243_v47, %v1458_v36 }
 0x79d   :  { %v1463_v48 = vmul.f32 %v15246_v53, %v1458_v36 }
 0x79e   :  { %v1468_v50 = vrot.slane %v1453_v37, %v18805_v52 }
 0x7a0   :  { %v1472_v51 = vadd.f32 %v1468_v50, %v1462_v38  ;;  %v1470_v57 = vadd.f32 %v1468_v50, %v1460_v40  ;;  %v1471_v60 = vadd.f32 %v1468_v50, %v1461_v46  ;;  %v1473_v61 = vadd.f32 %v1468_v50, %v1463_v48 }
 0x7a2   :  { %vm1474_vm9 = vcmp.ge.f32.partialorder %v1470_v57, 0.0  ;;  %v1478_v2 = vmul.f32 0.2, %v1470_v57  ;;  %vm1475_vm10 = vcmp.ge.f32.partialorder %v1471_v60, 0.0  ;;  %v1479_v3 = vmul.f32 0.2, %v1471_v60 }
 0x7a3   :  { %vm1476_vm11 = vcmp.ge.f32.partialorder %v1472_v51, 0.0  ;;  %v1480_v4 = vmul.f32 0.2, %v1472_v51  ;;  %v1481_v54 = vmul.f32 0.2, %v1473_v61  ;;  %vm1477_vm12 = vcmp.ge.f32.partialorder %v1473_v61, 0.0 }
 0x7a4   :  { %v1482_v5 = vsel %vm1474_vm9, %v1470_v57, %v1478_v2  ;;  %v1483_v6 = vsel %vm1475_vm10, %v1471_v60, %v1479_v3 }
 0x7a5   :  { %15255 = vmatprep.mubr.msk.f32.mxu0 %vm43_vm0, %v1482_v5  ;;  %v1484_v47 = vsel %vm1476_vm11, %v1472_v51, %v1480_v4  ;;  %v1485_v49 = vsel %vm1477_vm12, %v1473_v61, %v1481_v54 }
 0x7a6   :  { %15256 = vmatmul.mubr.msk.f32.vlgmr.msra.gmra.mrb[16].mxu0 %vm43_vm0, %v1483_v6 }
 0x7a7   :  { %15258 = vmatprep.mubr.msk.f32.mxu0 %vm43_vm0, %v1484_v47 }
 0x7aa   :  { %15259 = vmatmul.mubr.msk.f32.gmra.mrb[18].mxu0 %vm43_vm0, %v1485_v49 }
 0x7ab   :  { %15269 = vmatprep.mubr.msk.f32.mxu0 %vm43_vm0, %v18717_v16 }
 0x879   :  { %v15257_v53 = vpop.f32.mrb[16].mxu0 }
 0x87a   :  { %v1569_v7 = vpop.f32.mrb[17].mxu0 }
 0x87b   :  { %v17939_v8 = vpack.i.bf16 %v15257_v53, %v1569_v7  ;;  %v16815_v9 = vpack.c.bf16 %v15257_v53, %v1569_v7 }
 0x87d   :  { %17930 = vrot.lane.b32.xlu0 %v17939_v8, %s18642_s16  ;;  %v15260_v0 = vpop.f32.mrb[18].mxu0 }
 0x87e   :  { %v1579_v55 = vpop.f32.mrb[19].mxu0 }
 0x87f   :  { %v17944_v58 = vpack.i.bf16 %v15260_v0, %v1579_v55  ;;  %v16819_v62 = vpack.c.bf16 %v15260_v0, %v1579_v55 }
 0x881   :  { %17940 = vrot.lane.b32.xlu0 %v17939_v8, %s18643_s18  ;;  %17935 = vrot.lane.b32.xlu1 %v17944_v58, %s18642_s16 }
 0x885   :  { %17945 = vrot.lane.b32.xlu1 %v17944_v58, %s18643_s18 }
 0x8ef   :  { %v17931_v11 = vpop.permute.xlu0 %17930 }
 0x8f0   :  { %v17933_v12 = vunpack.i.h.bf16 %v17931_v11  ;;  %v17932_v13 = vunpack.i.l.bf16 %v17931_v11  ;;  %v13699_v11 = vld [vmem:[%s20562_s3 + $0x3] sm:$0x1] }
 0x8f2   :  { %v16807_v16 = vpack.c.bf16 %v17933_v12, %v17932_v13 }
 0x8f3   :  { %v17936_v1 = vpop.permute.xlu1 %17935  ;;  %v17941_v14 = vpop.permute.xlu0 %17940 }
 0x8f4   :  { %v17938_v63 = vunpack.i.h.bf16 %v17936_v1  ;;  %v17937_v56 = vunpack.i.l.bf16 %v17936_v1  ;;  %16808 = vmatprep.subr.bf16.mxu0 %v16807_v16  ;;  %v17943_v15 = vunpack.i.h.bf16 %v17941_v14  ;;  %v17942_v17 = vunpack.i.l.bf16 %v17941_v14 }
 0x8f5   :  { %16810 = vmatpush3.bf16.msra.mxu0 %v16807_v16  ;;  %v13700_v16 = vld [vmem:[%s20563_s4 + $0x3] sm:$0x1] }
 0x8f6   :  { %v16811_v59 = vpack.c.bf16 %v17938_v63, %v17937_v56  ;;  %v16823_v25 = vpack.c.bf16 %v17943_v15, %v17942_v17 }
 0x8f7   :  { %v17946_v18 = vpop.permute.xlu1 %17945 }
 0x8f8   :  { %16812 = vmatprep.subr.bf16.mxu0 %v16811_v59  ;;  %v17948_v19 = vunpack.i.h.bf16 %v17946_v18  ;;  %v17947_v24 = vunpack.i.l.bf16 %v17946_v18 }
 0x8f9   :  { %16814 = vmatpush3.bf16.msra.mxu0 %v16811_v59 }
 0x8fa   :  { %16816 = vmatprep.subr.bf16.mxu0 %v16815_v9 }
 0x8fc   :  { %15270 = vmatmul.mubr.msk.f32.vlgmr.msra.gmra.mrb[20].mxu0 %vm43_vm0, %v18755_v39  ;;  %v16827_v39 = vpack.c.bf16 %v17948_v19, %v17947_v24 }
 0x8fd   :  { %16818 = vmatpush3.bf16.msra.mxu0 %v16815_v9  ;;  %15272 = vmatprep.mubr.msk.f32.mxu0 %vm43_vm0, %v18760_v41  ;;  %v1955_v41 = vld [vmem:[#allocation2 + $0x90] sm:$0xff] }
 0x8fe   :  { %16820 = vmatprep.subr.bf16.mxu0 %v16819_v62 }
 0x900   :  { %15273 = vmatmul.mubr.msk.f32.gmra.mrb[22].mxu0 %vm43_vm0, %v18774_v43 }
 0x901   :  { %16822 = vmatpush3.bf16.msra.mxu0 %v16819_v62  ;;  %15283 = vmatprep.mubr.msk.f32.mxu0 %vm43_vm0, %v18709_v10  ;;  %v1953_v10 = vld [vmem:[#allocation2 + $0x80] sm:$0xff] }
 0x902   :  { %16824 = vmatprep.subr.bf16.mxu0 %v16823_v25 }
 0x904   :  { %15284 = vmatmul.mubr.msk.f32.vlgmr.msra.gmra.mrb[20].mxu0 %vm43_vm0, %v18726_v20  ;;  %v1954_v20 = vld [vmem:[#allocation2 + $0x88] sm:$0xff] }
 0x905   :  { %16826 = vmatpush3.bf16.msra.mxu0 %v16823_v25  ;;  %15286 = vmatprep.mubr.msk.f32.mxu0 %vm43_vm0, %v18731_v21  ;;  %v16831_v21 = vpack.c.bf16 %v1954_v20, %v1953_v10 }
 0x906   :  { %16828 = vmatprep.subr.bf16.mxu0 %v16827_v39 }
 0x907   :  { %16832 = vmatprep.subr.bf16.mxu1 %v16831_v21 }
 0x908   :  { %15287 = vmatmul.mubr.msk.f32.gmra.mrb[22].mxu0 %vm43_vm0, %v18741_v22  ;;  %16834 = vmatpush3.bf16.msra.mxu1 %v16831_v21  ;;  %v1956_v22 = vld [vmem:[#allocation2 + $0x98] sm:$0xff] }
 0x909   :  { %16830 = vmatpush3.bf16.msra.mxu0 %v16827_v39  ;;  %15297 = vmatprep.mubr.msk.f32.mxu0 %vm43_vm0, %v18746_v23  ;;  %v16835_v43 = vpack.c.bf16 %v1956_v22, %v1955_v41 }
 0x90b   :  { %16836 = vmatprep.subr.bf16.mxu1 %v16835_v43 }
 0x90c   :  { %15298 = vmatmul.mubr.msk.f32.vlgmr.msra.gmra.mrb[20].mxu0 %vm43_vm0, %v18767_v42  ;;  %16838 = vmatpush3.bf16.msra.mxu1 %v16835_v43 }
 0x90d   :  { %15300 = vmatprep.mubr.msk.f32.mxu0 %vm43_vm0, %v18779_v44 }
 0x910   :  { %15301 = vmatmul.mubr.msk.f32.gmra.mrb[22].mxu0 %vm43_vm0, %v18790_v45 }
 0x9df   :  { %v15299_v23 = vpop.f32.mrb[20].mxu0 }
 0x9e0   :  { %v1876_v26 = vsel %vm43_vm0, %v15299_v23, 0.0  ;;  %v1852_v42 = vpop.f32.mrb[21].mxu0 }
 0x9e1   :  { %v1875_v27 = vsel %vm43_vm0, %v1852_v42, 0.0 }
 0x9e2   :  { %v1877_v44 = vadd.f32 %v1876_v26, %v1875_v27 }
 0x9e3   :  { %v15302_v28 = vpop.f32.mrb[22].mxu0 }
 0x9e4   :  { %v1862_v29 = vpop.f32.mrb[23].mxu0  ;;  %v1880_v31 = vsel %vm43_vm0, %v15302_v28, 0.0 }
 0x9e5   :  { %v1878_v45 = vsel %vm43_vm0, %v1862_v29, 0.0 }
 0x9e6   :  { %v1879_v30 = vadd.f32 %v1878_v45, %v1877_v44 }
 0x9e8   :  { %v1881_v32 = vadd.f32 %v1880_v31, %v1879_v30 }
 0x9ea   :  { %v1882_v33 = vrot.slane %v1881_v32, 4 }
 0x9ec   :  { %v1883_v34 = vadd.f32 %v1882_v33, %v1881_v32 }
 0x9ee   :  { %v1884_v35 = vrot.slane %v1883_v34, 2 }
 0x9f0   :  { %v1885_v36 = vadd.f32 %v1884_v35, %v1883_v34 }
 0x9f2   :  { %v1886_v37 = vrot.slane %v1885_v36, 1 }
 0x9f4   :  { %v1887_v38 = vadd.f32 %v1886_v37, %v1885_v36 }
 0x9f6   :  { %v1888_v40 = vmul.f32 0.03125, %v1887_v38 }
 0x9f8   :  { %v1889_v46 = vsub.f32 %v1852_v42, %v1888_v40  ;;  %v1890_v48 = vsub.f32 %v15299_v23, %v1888_v40  ;;  %v1891_v50 = vsub.f32 %v1862_v29, %v1888_v40  ;;  %v1892_v51 = vsub.f32 %v15302_v28, %v1888_v40 }
 0x9fa   :  { %v1893_v57 = vmul.f32 %v1889_v46, %v1889_v46  ;;  %v1894_v60 = vmul.f32 %v1890_v48, %v1890_v48  ;;  %v1895_v61 = vmul.f32 %v1891_v50, %v1891_v50  ;;  %v1896_v2 = vmul.f32 %v1892_v51, %v1892_v51 }
 0x9fc   :  { %v1897_v3 = vsel %vm43_vm0, %v1893_v57, 0.0  ;;  %v1898_v4 = vsel %vm43_vm0, %v1894_v60, 0.0  ;;  %v1900_v6 = vsel %vm43_vm0, %v1895_v61, 0.0  ;;  %v1902_v47 = vsel %vm43_vm0, %v1896_v2, 0.0  ;;  %v18974_v57 = vld [vmem:[%s20560_s1 + $0x28] sm:$0xff]  ;;  %v18981_v61 = vld [vmem:[%s20560_s1 + $0x30] sm:$0xff] }
 0x9fd   :  { %v1899_v5 = vadd.f32 %v1898_v4, %v1897_v3 }
 0x9ff   :  { %v1901_v54 = vadd.f32 %v1900_v6, %v1899_v5  ;;  %v18988_v5 = vld [vmem:[%s20560_s1 + $0x38] sm:$0xff]  ;;  %v18995_v6 = vld [vmem:[%s20560_s1] sm:$0xff] }
 0xa01   :  { %v1903_v49 = vadd.f32 %v1902_v47, %v1901_v54  ;;  %v19002_v47 = vld [vmem:[%s20560_s1 + $0x8] sm:$0xff] }
 0xa03   :  { %v1904_v53 = vrot.slane %v1903_v49, 4 }
 0xa05   :  { %v1905_v7 = vadd.f32 %v1904_v53, %v1903_v49  ;;  %v19009_v49 = vld [vmem:[%s20560_s1 + $0x10] sm:$0xff]  ;;  %v19016_v53 = vld [vmem:[%s20560_s1 + $0x18] sm:$0xff] }
 0xa07   :  { %v1906_v8 = vrot.slane %v1905_v7, 2 }
 0xa09   :  { %v1907_v9 = vadd.f32 %v1906_v8, %v1905_v7  ;;  %v19023_v7 = vld [vmem:[%s20560_s1 + $0x40] sm:$0xff]  ;;  %v19030_v8 = vld [vmem:[%s20560_s1 + $0x48] sm:$0xff] }
 0xa0b   :  { %v1908_v0 = vrot.slane %v1907_v9, 1 }
 0xa0d   :  { %v1909_v55 = vadd.f32 %v1908_v0, %v1907_v9  ;;  %v19037_v9 = vld [vmem:[%s20560_s1 + $0x50] sm:$0xff]  ;;  %v19044_v0 = vld [vmem:[%s20560_s1 + $0x58] sm:$0xff] }
 0xa0f   :  { %v1910_v58 = vmul.f32 0.03125, %v1909_v55  ;;  %v2419_v55 = vld [vmem:[#allocation2 + $0xa0] sm:$0xff] }
 0xa11   :  { %v1913_v62 = vadd.f32 1e-05, %v1910_v58  ;;  %v2420_v58 = vld [vmem:[#allocation2 + $0xa8] sm:$0xff] }
 0xa13   :  { %18455 = vrsqrt.f32 %v1913_v62  ;;  %v16863_v62 = vpack.c.bf16 %v2420_v58, %v2419_v55 }
 0xa15   :  { %16864 = vmatprep.subr.bf16.mxu0 %v16863_v62 }
 0xa16   :  { %16866 = vmatpush3.bf16.msra.mxu0 %v16863_v62 }
 0xa1d   :  { %v18456_v12 = vpop.eup %18455 }
 0xa1e   :  { %v1915_v13 = vmul.f32 %v18456_v12, %v13699_v11  ;;  %v2421_v11 = vld [vmem:[#allocation2 + $0xb0] sm:$0xff]  ;;  %v2422_v12 = vld [vmem:[#allocation2 + $0xb8] sm:$0xff] }
 0xa20   :  { %v1918_v1 = vmul.f32 %v1915_v13, %v1888_v40  ;;  %v1924_v63 = vrot.slane %v1915_v13, %v18805_v52  ;;  %v16867_v13 = vpack.c.bf16 %v2422_v12, %v2421_v11 }
 0xa22   :  { %v1919_v56 = vsub.f32 %v13700_v16, %v1918_v1  ;;  %v1928_v59 = vmul.f32 %v1924_v63, %v1862_v29  ;;  %v1926_v14 = vmul.f32 %v1924_v63, %v1852_v42  ;;  %v1927_v15 = vmul.f32 %v15299_v23, %v1924_v63  ;;  %v18963_v42 = vld [vmem:[%s20560_s1 + $0x20] sm:$0xff]  ;;  %16868 = vmatprep.subr.bf16.mxu0 %v16867_v13 }
 0xa23   :  { %v1929_v17 = vmul.f32 %v15302_v28, %v1924_v63  ;;  %16870 = vmatpush3.bf16.msra.mxu0 %v16867_v13 }
 0xa24   :  { %v1934_v18 = vrot.slane %v1919_v56, %v18805_v52 }
 0xa26   :  { %v1938_v19 = vadd.f32 %v1934_v18, %v1928_v59  ;;  %v1936_v24 = vadd.f32 %v1934_v18, %v1926_v14  ;;  %v1937_v25 = vadd.f32 %v1934_v18, %v1927_v15  ;;  %v1939_v39 = vadd.f32 %v1934_v18, %v1929_v17 }
 0xa28   :  { %vm1940_vm13 = vcmp.ge.f32.partialorder %v1936_v24, 0.0  ;;  %v1944_v10 = vmul.f32 0.2, %v1936_v24  ;;  %vm1941_vm14 = vcmp.ge.f32.partialorder %v1937_v25, 0.0  ;;  %v1945_v20 = vmul.f32 0.2, %v1937_v25 }
 0xa29   :  { %vm1942_vm15 = vcmp.ge.f32.partialorder %v1938_v19, 0.0  ;;  %v1946_v21 = vmul.f32 0.2, %v1938_v19  ;;  %v1947_v43 = vmul.f32 0.2, %v1939_v39  ;;  %vm1943_vm1 = vcmp.ge.f32.partialorder %v1939_v39, 0.0 }
 0xa2a   :  { %v1948_v41 = vsel %vm1940_vm13, %v1936_v24, %v1944_v10  ;;  %v1949_v22 = vsel %vm1941_vm14, %v1937_v25, %v1945_v20 }
 0xa2b   :  { %15311 = vmatprep.mubr.msk.f32.mxu1 %vm43_vm0, %v1948_v41  ;;  %v1950_v23 = vsel %vm1942_vm15, %v1938_v19, %v1946_v21  ;;  %v1951_v26 = vsel %vm1943_vm1, %v1939_v39, %v1947_v43 }
 0xa2c   :  { %15312 = vmatmul.mubr.msk.f32.vlgmr.msra.gmra.mrb[12].mxu1 %vm43_vm0, %v1949_v22 }
 0xa2d   :  { %15314 = vmatprep.mubr.msk.f32.mxu1 %vm43_vm0, %v1950_v23 }
 0xa30   :  { %15315 = vmatmul.mubr.msk.f32.gmra.mrb[14].mxu1 %vm43_vm0, %v1951_v26 }
 0xa31   :  { %15325 = vmatprep.mubr.msk.f32.mxu1 %vm43_vm0, %v18963_v42 }
 0xaff   :  { %v15313_v27 = vpop.f32.mrb[12].mxu1 }
 0xb00   :  { %v2035_v44 = vpop.f32.mrb[13].mxu1 }
 0xb01   :  { %v17959_v28 = vpack.i.bf16 %v15313_v27, %v2035_v44  ;;  %v16847_v29 = vpack.c.bf16 %v15313_v27, %v2035_v44 }
 0xb03   :  { %17950 = vrot.lane.b32.xlu0 %v17959_v28, %s18642_s16  ;;  %v15316_v45 = vpop.f32.mrb[14].mxu1 }
 0xb04   :  { %v2045_v30 = vpop.f32.mrb[15].mxu1 }
 0xb05   :  { %v17964_v31 = vpack.i.bf16 %v15316_v45, %v2045_v30  ;;  %v16851_v32 = vpack.c.bf16 %v15316_v45, %v2045_v30 }
 0xb07   :  { %17960 = vrot.lane.b32.xlu0 %v17959_v28, %s18643_s18  ;;  %17955 = vrot.lane.b32.xlu1 %v17964_v31, %s18642_s16 }
 0xb0b   :  { %17965 = vrot.lane.b32.xlu1 %v17964_v31, %s18643_s18 }
 0xb75   :  { %v17951_v33 = vpop.permute.xlu0 %17950 }
 0xb76   :  { %v17953_v34 = vunpack.i.h.bf16 %v17951_v33  ;;  %v17952_v35 = vunpack.i.l.bf16 %v17951_v33 }
 0xb78   :  { %v16839_v36 = vpack.c.bf16 %v17953_v34, %v17952_v35 }
 0xb79   :  { %v17956_v37 = vpop.permute.xlu1 %17955  ;;  %v17961_v48 = vpop.permute.xlu0 %17960 }
 0xb7a   :  { %v17958_v38 = vunpack.i.h.bf16 %v17956_v37  ;;  %v17957_v40 = vunpack.i.l.bf16 %v17956_v37  ;;  %16840 = vmatprep.subr.bf16.mxu1 %v16839_v36  ;;  %v17963_v50 = vunpack.i.h.bf16 %v17961_v48  ;;  %v17962_v51 = vunpack.i.l.bf16 %v17961_v48 }
 0xb7b   :  { %16842 = vmatpush3.bf16.msra.mxu1 %v16839_v36 }
 0xb7c   :  { %v16843_v46 = vpack.c.bf16 %v17958_v38, %v17957_v40  ;;  %v16855_v2 = vpack.c.bf16 %v17963_v50, %v17962_v51 }
 0xb7d   :  { %v17966_v60 = vpop.permute.xlu1 %17965 }
 0xb7e   :  { %16844 = vmatprep.subr.bf16.mxu1 %v16843_v46  ;;  %v17968_v3 = vunpack.i.h.bf16 %v17966_v60  ;;  %v17967_v4 = vunpack.i.l.bf16 %v17966_v60 }
 0xb7f   :  { %16846 = vmatpush3.bf16.msra.mxu1 %v16843_v46 }
 0xb80   :  { %16848 = vmatprep.subr.bf16.mxu1 %v16847_v29  ;;  %v16859_v54 = vpack.c.bf16 %v17968_v3, %v17967_v4 }
 0xb82   :  { %15326 = vmatmul.mubr.msk.f32.vlgmr.msra.gmra.mrb[16].mxu1 %vm43_vm0, %v18974_v57 }
 0xb83   :  { %16850 = vmatpush3.bf16.msra.mxu1 %v16847_v29  ;;  %15328 = vmatprep.mubr.msk.f32.mxu1 %vm43_vm0, %v18981_v61 }
 0xb84   :  { %16852 = vmatprep.subr.bf16.mxu1 %v16851_v32 }
 0xb86   :  { %15329 = vmatmul.mubr.msk.f32.gmra.mrb[18].mxu1 %vm43_vm0, %v18988_v5 }
 0xb87   :  { %16854 = vmatpush3.bf16.msra.mxu1 %v16851_v32  ;;  %15339 = vmatprep.mubr.msk.f32.mxu1 %vm43_vm0, %v18995_v6 }
 0xb88   :  { %16856 = vmatprep.subr.bf16.mxu1 %v16855_v2 }
 0xb8a   :  { %15340 = vmatmul.mubr.msk.f32.vlgmr.msra.gmra.mrb[16].mxu1 %vm43_vm0, %v19002_v47 }
 0xb8b   :  { %16858 = vmatpush3.bf16.msra.mxu1 %v16855_v2  ;;  %15342 = vmatprep.mubr.msk.f32.mxu1 %vm43_vm0, %v19009_v49  ;;  %v13717_v2 = vld [vmem:[%s20562_s3 + $0x4] sm:$0x1] }
 0xb8c   :  { %16860 = vmatprep.subr.bf16.mxu1 %v16859_v54 }
 0xb8e   :  { %15343 = vmatmul.mubr.msk.f32.gmra.mrb[18].mxu1 %vm43_vm0, %v19016_v53 }
 0xb8f   :  { %16862 = vmatpush3.bf16.msra.mxu1 %v16859_v54  ;;  %15353 = vmatprep.mubr.msk.f32.mxu1 %vm43_vm0, %v19023_v7  ;;  %v13718_v54 = vld [vmem:[%s20563_s4 + $0x4] sm:$0x1] }
 0xb92   :  { %15354 = vmatmul.mubr.msk.f32.vlgmr.msra.gmra.mrb[16].mxu1 %vm43_vm0, %v19030_v8 }
 0xb93   :  { %15356 = vmatprep.mubr.msk.f32.mxu1 %vm43_vm0, %v19037_v9 }
 0xb96   :  { %15357 = vmatmul.mubr.msk.f32.gmra.mrb[18].mxu1 %vm43_vm0, %v19044_v0 }
 0xc65   :  { %v15355_v16 = vpop.f32.mrb[16].mxu1 }
 0xc66   :  { %v2342_v1 = vsel %vm43_vm0, %v15355_v16, 0.0  ;;  %v2318_v63 = vpop.f32.mrb[17].mxu1 }
 0xc67   :  { %v2341_v56 = vsel %vm43_vm0, %v2318_v63, 0.0 }
 0xc68   :  { %v2343_v59 = vadd.f32 %v2342_v1, %v2341_v56 }
 0xc69   :  { %v15358_v14 = vpop.f32.mrb[18].mxu1 }
 0xc6a   :  { %v2328_v15 = vpop.f32.mrb[19].mxu1  ;;  %v2346_v19 = vsel %vm43_vm0, %v15358_v14, 0.0 }
 0xc6b   :  { %v2344_v17 = vsel %vm43_vm0, %v2328_v15, 0.0 }
 0xc6c   :  { %v2345_v18 = vadd.f32 %v2344_v17, %v2343_v59 }
 0xc6e   :  { %v2347_v24 = vadd.f32 %v2346_v19, %v2345_v18 }
 0xc70   :  { %v2348_v25 = vrot.slane %v2347_v24, 4 }
 0xc72   :  { %v2349_v39 = vadd.f32 %v2348_v25, %v2347_v24 }
 0xc74   :  { %v2350_v10 = vrot.slane %v2349_v39, 2 }
 0xc76   :  { %v2351_v20 = vadd.f32 %v2350_v10, %v2349_v39 }
 0xc78   :  { %v2352_v21 = vrot.slane %v2351_v20, 1 }
 0xc7a   :  { %v2353_v41 = vadd.f32 %v2352_v21, %v2351_v20 }
 0xc7c   :  { %v2354_v22 = vmul.f32 0.03125, %v2353_v41 }
 0xc7e   :  { %v2355_v43 = vsub.f32 %v2318_v63, %v2354_v22  ;;  %v2356_v23 = vsub.f32 %v15355_v16, %v2354_v22  ;;  %v2357_v26 = vsub.f32 %v2328_v15, %v2354_v22  ;;  %v2358_v27 = vsub.f32 %v15358_v14, %v2354_v22 }
 0xc80   :  { %v2359_v44 = vmul.f32 %v2355_v43, %v2355_v43  ;;  %v2360_v28 = vmul.f32 %v2356_v23, %v2356_v23  ;;  %v2361_v29 = vmul.f32 %v2357_v26, %v2357_v26  ;;  %v2362_v45 = vmul.f32 %v2358_v27, %v2358_v27 }
 0xc82   :  { %v2363_v30 = vsel %vm43_vm0, %v2359_v44, 0.0  ;;  %v2364_v31 = vsel %vm43_vm0, %v2360_v28, 0.0  ;;  %v2366_v33 = vsel %vm43_vm0, %v2361_v29, 0.0  ;;  %v2368_v35 = vsel %vm43_vm0, %v2362_v45, 0.0 }
 0xc83   :  { %v2365_v32 = vadd.f32 %v2364_v31, %v2363_v30 }
 0xc85   :  { %v2367_v34 = vadd.f32 %v2366_v33, %v2365_v32 }
 0xc87   :  { %v2369_v36 = vadd.f32 %v2368_v35, %v2367_v34 }
 0xc89   :  { %v2370_v37 = vrot.slane %v2369_v36, 4 }
 0xc8b   :  { %v2371_v38 = vadd.f32 %v2370_v37, %v2369_v36 }
 0xc8d   :  { %v2372_v40 = vrot.slane %v2371_v38, 2 }
 0xc8f   :  { %v2373_v46 = vadd.f32 %v2372_v40, %v2371_v38 }
 0xc91   :  { %v2374_v48 = vrot.slane %v2373_v46, 1 }
 0xc93   :  { %v2375_v50 = vadd.f32 %v2374_v48, %v2373_v46 }
 0xc95   :  { %v2376_v51 = vmul.f32 0.03125, %v2375_v50  ;;  %v2885_v50 = vld [vmem:[#allocation2 + $0xc0] sm:$0xff] }
 0xc97   :  { %v2379_v60 = vadd.f32 1e-05, %v2376_v51  ;;  %v2886_v51 = vld [vmem:[#allocation2 + $0xc8] sm:$0xff] }
 0xc99   :  { %18457 = vrsqrt.f32 %v2379_v60  ;;  %v16895_v60 = vpack.c.bf16 %v2886_v51, %v2885_v50 }
 0xc9b   :  { %16896 = vmatprep.subr.bf16.mxu1 %v16895_v60 }
 0xc9c   :  { %16898 = vmatpush3.bf16.msra.mxu1 %v16895_v60 }
 0xca3   :  { %v18458_v3 = vpop.eup %18457 }
 0xca4   :  { %v2381_v4 = vmul.f32 %v18458_v3, %v13717_v2  ;;  %v2887_v2 = vld [vmem:[#allocation2 + $0xd0] sm:$0xff]  ;;  %v2888_v3 = vld [vmem:[#allocation2 + $0xd8] sm:$0xff] }
 0xca6   :  { %v2384_v55 = vmul.f32 %v2381_v4, %v2354_v22  ;;  %v2390_v58 = vrot.slane %v2381_v4, %v18805_v52  ;;  %v16899_v4 = vpack.c.bf16 %v2888_v3, %v2887_v2 }
 0xca8   :  { %v2385_v62 = vsub.f32 %v13718_v54, %v2384_v55  ;;  %v2394_v11 = vmul.f32 %v2390_v58, %v2328_v15  ;;  %v2392_v12 = vmul.f32 %v2390_v58, %v2318_v63  ;;  %v2393_v13 = vmul.f32 %v15355_v16, %v2390_v58  ;;  %16900 = vmatprep.subr.bf16.mxu1 %v16899_v4 }
 0xca9   :  { %v2395_v1 = vmul.f32 %v15358_v14, %v2390_v58  ;;  %16902 = vmatpush3.bf16.msra.mxu1 %v16899_v4 }
 0xcaa   :  { %v2400_v56 = vrot.slane %v2385_v62, %v18805_v52 }
 0xcac   :  { %v2404_v59 = vadd.f32 %v2400_v56, %v2394_v11  ;;  %v2402_v17 = vadd.f32 %v2400_v56, %v2392_v12  ;;  %v2403_v18 = vadd.f32 %v2400_v56, %v2393_v13  ;;  %v2405_v19 = vadd.f32 %v2400_v56, %v2395_v1 }
 0xcae   :  { %vm2406_vm2 = vcmp.ge.f32.partialorder %v2402_v17, 0.0  ;;  %v2410_v24 = vmul.f32 0.2, %v2402_v17  ;;  %vm2407_vm3 = vcmp.ge.f32.partialorder %v2403_v18, 0.0  ;;  %v2411_v25 = vmul.f32 0.2, %v2403_v18 }
 0xcaf   :  { %vm2408_vm4 = vcmp.ge.f32.partialorder %v2404_v59, 0.0  ;;  %v2412_v39 = vmul.f32 0.2, %v2404_v59  ;;  %v2413_v15 = vmul.f32 0.2, %v2405_v19  ;;  %vm2409_vm5 = vcmp.ge.f32.partialorder %v2405_v19, 0.0 }
 0xcb0   :  { %v2414_v10 = vsel %vm2406_vm2, %v2402_v17, %v2410_v24  ;;  %v2415_v20 = vsel %vm2407_vm3, %v2403_v18, %v2411_v25 }
 0xcb1   :  { %15367 = vmatprep.mubr.msk.f32.mxu0 %vm43_vm0, %v2414_v10  ;;  %v2416_v16 = vsel %vm2408_vm4, %v2404_v59, %v2412_v39  ;;  %v2417_v63 = vsel %vm2409_vm5, %v2405_v19, %v2413_v15 }
 0xcb2   :  { %15368 = vmatmul.mubr.msk.f32.vlgmr.msra.gmra.mrb[24].mxu0 %vm43_vm0, %v2415_v20 }
 0xcb3   :  { %15370 = vmatprep.mubr.msk.f32.mxu0 %vm43_vm0, %v2416_v16 }
 0xcb6   :  { %15371 = vmatmul.mubr.msk.f32.gmra.mrb[26].mxu0 %vm43_vm0, %v2417_v63 }
 0xcb7   :  { %15381 = vmatprep.mubr.msk.f32.mxu0 %vm43_vm0, %v18963_v42 }
 0xd85   :  { %v15369_v14 = vpop.f32.mrb[24].mxu0 }
 0xd86   :  { %v2501_v21 = vpop.f32.mrb[25].mxu0 }
 0xd87   :  { %v17979_v41 = vpack.i.bf16 %v15369_v14, %v2501_v21  ;;  %v16879_v22 = vpack.c.bf16 %v15369_v14, %v2501_v21 }
 0xd89   :  { %17970 = vrot.lane.b32.xlu0 %v17979_v41, %s18642_s16  ;;  %v15372_v43 = vpop.f32.mrb[26].mxu0 }
 0xd8a   :  { %v2511_v23 = vpop.f32.mrb[27].mxu0 }
 0xd8b   :  { %v17984_v26 = vpack.i.bf16 %v15372_v43, %v2511_v23  ;;  %v16883_v27 = vpack.c.bf16 %v15372_v43, %v2511_v23 }
 0xd8d   :  { %17980 = vrot.lane.b32.xlu0 %v17979_v41, %s18643_s18  ;;  %17975 = vrot.lane.b32.xlu1 %v17984_v26, %s18642_s16 }
 0xd91   :  { %17985 = vrot.lane.b32.xlu1 %v17984_v26, %s18643_s18 }
 0xdfb   :  { %v17971_v44 = vpop.permute.xlu0 %17970 }
 0xdfc   :  { %v17973_v28 = vunpack.i.h.bf16 %v17971_v44  ;;  %v17972_v29 = vunpack.i.l.bf16 %v17971_v44 }
 0xdfe   :  { %v16871_v45 = vpack.c.bf16 %v17973_v28, %v17972_v29 }
 0xdff   :  { %v17976_v30 = vpop.permute.xlu1 %17975  ;;  %v17981_v34 = vpop.permute.xlu0 %17980 }
 0xe00   :  { %v17978_v31 = vunpack.i.h.bf16 %v17976_v30  ;;  %v17977_v32 = vunpack.i.l.bf16 %v17976_v30  ;;  %16872 = vmatprep.subr.bf16.mxu0 %v16871_v45  ;;  %v17983_v35 = vunpack.i.h.bf16 %v17981_v34  ;;  %v17982_v36 = vunpack.i.l.bf16 %v17981_v34 }
 0xe01   :  { %16874 = vmatpush3.bf16.msra.mxu0 %v16871_v45 }
 0xe02   :  { %v16875_v33 = vpack.c.bf16 %v17978_v31, %v17977_v32  ;;  %v16887_v38 = vpack.c.bf16 %v17983_v35, %v17982_v36 }
 0xe03   :  { %v17986_v37 = vpop.permute.xlu1 %17985 }
 0xe04   :  { %16876 = vmatprep.subr.bf16.mxu0 %v16875_v33  ;;  %v17988_v40 = vunpack.i.h.bf16 %v17986_v37  ;;  %v17987_v46 = vunpack.i.l.bf16 %v17986_v37 }
 0xe05   :  { %16878 = vmatpush3.bf16.msra.mxu0 %v16875_v33 }
 0xe06   :  { %16880 = vmatprep.subr.bf16.mxu0 %v16879_v22  ;;  %v16891_v48 = vpack.c.bf16 %v17988_v40, %v17987_v46 }
 0xe08   :  { %15382 = vmatmul.mubr.msk.f32.vlgmr.msra.gmra.mrb[28].mxu0 %vm43_vm0, %v18974_v57 }
 0xe09   :  { %16882 = vmatpush3.bf16.msra.mxu0 %v16879_v22  ;;  %15384 = vmatprep.mubr.msk.f32.mxu0 %vm43_vm0, %v18981_v61 }
 0xe0a   :  { %16884 = vmatprep.subr.bf16.mxu0 %v16883_v27 }
 0xe0c   :  { %15385 = vmatmul.mubr.msk.f32.gmra.mrb[30].mxu0 %vm43_vm0, %v18988_v5 }
 0xe0d   :  { %16886 = vmatpush3.bf16.msra.mxu0 %v16883_v27  ;;  %15395 = vmatprep.mubr.msk.f32.mxu0 %vm43_vm0, %v18995_v6 }
 0xe0e   :  { %16888 = vmatprep.subr.bf16.mxu0 %v16887_v38 }
 0xe10   :  { %15396 = vmatmul.mubr.msk.f32.vlgmr.msra.gmra.mrb[28].mxu0 %vm43_vm0, %v19002_v47 }
 0xe11   :  { %16890 = vmatpush3.bf16.msra.mxu0 %v16887_v38  ;;  %15398 = vmatprep.mubr.msk.f32.mxu0 %vm43_vm0, %v19009_v49  ;;  %v13735_v38 = vld [vmem:[%s20562_s3 + $0x5] sm:$0x1] }
 0xe12   :  { %16892 = vmatprep.subr.bf16.mxu0 %v16891_v48 }
 0xe14   :  { %15399 = vmatmul.mubr.msk.f32.gmra.mrb[30].mxu0 %vm43_vm0, %v19016_v53 }
 0xe15   :  { %16894 = vmatpush3.bf16.msra.mxu0 %v16891_v48  ;;  %15409 = vmatprep.mubr.msk.f32.mxu0 %vm43_vm0, %v19023_v7  ;;  %v13736_v48 = vld [vmem:[%s20563_s4 + $0x5] sm:$0x1] }
 0xe18   :  { %15410 = vmatmul.mubr.msk.f32.vlgmr.msra.gmra.mrb[28].mxu0 %vm43_vm0, %v19030_v8 }
 0xe19   :  { %15412 = vmatprep.mubr.msk.f32.mxu0 %vm43_vm0, %v19037_v9 }
 0xe1c   :  { %15413 = vmatmul.mubr.msk.f32.gmra.mrb[30].mxu0 %vm43_vm0, %v19044_v0 }
 0xeeb   :  { %v15411_v54 = vpop.f32.mrb[28].mxu0 }
 0xeec   :  { %v2808_v55 = vsel %vm43_vm0, %v15411_v54, 0.0  ;;  %v2784_v58 = vpop.f32.mrb[29].mxu0 }
 0xeed   :  { %v2807_v62 = vsel %vm43_vm0, %v2784_v58, 0.0 }
 0xeee   :  { %v2809_v11 = vadd.f32 %v2808_v55, %v2807_v62 }
 0xeef   :  { %v15414_v12 = vpop.f32.mrb[30].mxu0 }
 0xef0   :  { %v2794_v13 = vpop.f32.mrb[31].mxu0  ;;  %v2812_v59 = vsel %vm43_vm0, %v15414_v12, 0.0 }
 0xef1   :  { %v2810_v1 = vsel %vm43_vm0, %v2794_v13, 0.0 }
 0xef2   :  { %v2811_v56 = vadd.f32 %v2810_v1, %v2809_v11 }
 0xef4   :  { %v2813_v17 = vadd.f32 %v2812_v59, %v2811_v56 }
 0xef6   :  { %v2814_v18 = vrot.slane %v2813_v17, 4 }
 0xef8   :  { %v2815_v19 = vadd.f32 %v2814_v18, %v2813_v17 }
 0xefa   :  { %v2816_v24 = vrot.slane %v2815_v19, 2 }
 0xefc   :  { %v2817_v25 = vadd.f32 %v2816_v24, %v2815_v19 }
 0xefe   :  { %v2818_v39 = vrot.slane %v2817_v25, 1 }
 0xf00   :  { %v2819_v10 = vadd.f32 %v2818_v39, %v2817_v25 }
 0xf02   :  { %v2820_v20 = vmul.f32 0.03125, %v2819_v10 }
 0xf04   :  { %v2821_v15 = vsub.f32 %v2784_v58, %v2820_v20  ;;  %v2822_v16 = vsub.f32 %v15411_v54, %v2820_v20  ;;  %v2823_v63 = vsub.f32 %v2794_v13, %v2820_v20  ;;  %v2824_v14 = vsub.f32 %v15414_v12, %v2820_v20 }
 0xf06   :  { %v2825_v21 = vmul.f32 %v2821_v15, %v2821_v15  ;;  %v2826_v41 = vmul.f32 %v2822_v16, %v2822_v16  ;;  %v2827_v22 = vmul.f32 %v2823_v63, %v2823_v63  ;;  %v2828_v43 = vmul.f32 %v2824_v14, %v2824_v14 }
 0xf08   :  { %v2829_v23 = vsel %vm43_vm0, %v2825_v21, 0.0  ;;  %v2830_v26 = vsel %vm43_vm0, %v2826_v41, 0.0  ;;  %v2832_v44 = vsel %vm43_vm0, %v2827_v22, 0.0  ;;  %v2834_v29 = vsel %vm43_vm0, %v2828_v43, 0.0 }
 0xf09   :  { %v2831_v27 = vadd.f32 %v2830_v26, %v2829_v23 }
 0xf0b   :  { %v2833_v28 = vadd.f32 %v2832_v44, %v2831_v27 }
 0xf0d   :  { %v2835_v45 = vadd.f32 %v2834_v29, %v2833_v28 }
 0xf0f   :  { %v2836_v30 = vrot.slane %v2835_v45, 4 }
 0xf11   :  { %v2837_v31 = vadd.f32 %v2836_v30, %v2835_v45 }
 0xf13   :  { %v2838_v32 = vrot.slane %v2837_v31, 2 }
 0xf15   :  { %v2839_v33 = vadd.f32 %v2838_v32, %v2837_v31 }
 0xf17   :  { %v2840_v34 = vrot.slane %v2839_v33, 1 }
 0xf19   :  { %v2841_v35 = vadd.f32 %v2840_v34, %v2839_v33 }
 0xf1b   :  { %v2842_v36 = vmul.f32 0.03125, %v2841_v35  ;;  %v3351_v35 = vld [vmem:[#allocation2 + $0xe0] sm:$0xff] }
 0xf1d   :  { %v2845_v37 = vadd.f32 1e-05, %v2842_v36  ;;  %v3352_v36 = vld [vmem:[#allocation2 + $0xe8] sm:$0xff] }
 0xf1f   :  { %18459 = vrsqrt.f32 %v2845_v37  ;;  %v16927_v37 = vpack.c.bf16 %v3352_v36, %v3351_v35 }
 0xf21   :  { %16928 = vmatprep.subr.bf16.mxu0 %v16927_v37 }
 0xf22   :  { %16930 = vmatpush3.bf16.msra.mxu0 %v16927_v37 }
 0xf29   :  { %v18460_v40 = vpop.eup %18459 }
 0xf2a   :  { %v2847_v46 = vmul.f32 %v18460_v40, %v13735_v38  ;;  %v3353_v38 = vld [vmem:[#allocation2 + $0xf0] sm:$0xff]  ;;  %v3354_v40 = vld [vmem:[#allocation2 + $0xf8] sm:$0xff] }
 0xf2c   :  { %v2850_v50 = vmul.f32 %v2847_v46, %v2820_v20  ;;  %v2856_v51 = vrot.slane %v2847_v46, %v18805_v52  ;;  %v16931_v46 = vpack.c.bf16 %v3354_v40, %v3353_v38 }
 0xf2e   :  { %v2851_v60 = vsub.f32 %v13736_v48, %v2850_v50  ;;  %v2860_v2 = vmul.f32 %v2856_v51, %v2794_v13  ;;  %v2858_v3 = vmul.f32 %v2856_v51, %v2784_v58  ;;  %v2859_v4 = vmul.f32 %v15411_v54, %v2856_v51  ;;  %16932 = vmatprep.subr.bf16.mxu0 %v16931_v46 }
 0xf2f   :  { %v2861_v55 = vmul.f32 %v15414_v12, %v2856_v51  ;;  %16934 = vmatpush3.bf16.msra.mxu0 %v16931_v46 }
 0xf30   :  { %v2866_v62 = vrot.slane %v2851_v60, %v18805_v52 }
 0xf32   :  { %v2870_v11 = vadd.f32 %v2866_v62, %v2860_v2  ;;  %v2868_v1 = vadd.f32 %v2866_v62, %v2858_v3  ;;  %v2869_v56 = vadd.f32 %v2866_v62, %v2859_v4  ;;  %v2871_v59 = vadd.f32 %v2866_v62, %v2861_v55 }
 0xf34   :  { %vm2872_vm6 = vcmp.ge.f32.partialorder %v2868_v1, 0.0  ;;  %v2876_v17 = vmul.f32 0.2, %v2868_v1  ;;  %vm2873_vm7 = vcmp.ge.f32.partialorder %v2869_v56, 0.0  ;;  %v2877_v18 = vmul.f32 0.2, %v2869_v56 }
 0xf35   :  { %vm2874_vm8 = vcmp.ge.f32.partialorder %v2870_v11, 0.0  ;;  %v2878_v19 = vmul.f32 0.2, %v2870_v11  ;;  %v2879_v13 = vmul.f32 0.2, %v2871_v59  ;;  %vm2875_vm9 = vcmp.ge.f32.partialorder %v2871_v59, 0.0 }
 0xf36   :  { %v2880_v24 = vsel %vm2872_vm6, %v2868_v1, %v2876_v17  ;;  %v2881_v25 = vsel %vm2873_vm7, %v2869_v56, %v2877_v18 }
 0xf37   :  { %15423 = vmatprep.mubr.msk.f32.mxu1 %vm43_vm0, %v2880_v24  ;;  %v2882_v54 = vsel %vm2874_vm8, %v2870_v11, %v2878_v19  ;;  %v2883_v58 = vsel %vm2875_vm9, %v2871_v59, %v2879_v13 }
 0xf38   :  { %15424 = vmatmul.mubr.msk.f32.vlgmr.msra.gmra.mrb[20].mxu1 %vm43_vm0, %v2881_v25 }
 0xf39   :  { %15426 = vmatprep.mubr.msk.f32.mxu1 %vm43_vm0, %v2882_v54 }
 0xf3c   :  { %15427 = vmatmul.mubr.msk.f32.gmra.mrb[22].mxu1 %vm43_vm0, %v2883_v58 }
 0xf3d   :  { %15437 = vmatprep.mubr.msk.f32.mxu1 %vm43_vm0, %v18963_v42 }
0x100b   :  { %v15425_v12 = vpop.f32.mrb[20].mxu1 }
0x100c   :  { %v2967_v39 = vpop.f32.mrb[21].mxu1 }
0x100d   :  { %v17999_v10 = vpack.i.bf16 %v15425_v12, %v2967_v39  ;;  %v16911_v20 = vpack.c.bf16 %v15425_v12, %v2967_v39 }
0x100f   :  { %17990 = vrot.lane.b32.xlu0 %v17999_v10, %s18642_s16  ;;  %v15428_v15 = vpop.f32.mrb[22].mxu1 }
0x1010   :  { %v2977_v16 = vpop.f32.mrb[23].mxu1 }
0x1011   :  { %v18004_v63 = vpack.i.bf16 %v15428_v15, %v2977_v16  ;;  %v16915_v14 = vpack.c.bf16 %v15428_v15, %v2977_v16 }
0x1013   :  { %18000 = vrot.lane.b32.xlu0 %v17999_v10, %s18643_s18  ;;  %17995 = vrot.lane.b32.xlu1 %v18004_v63, %s18642_s16 }
0x1017   :  { %18005 = vrot.lane.b32.xlu1 %v18004_v63, %s18643_s18 }
0x1081   :  { %v17991_v21 = vpop.permute.xlu0 %17990 }
0x1082   :  { %v17993_v41 = vunpack.i.h.bf16 %v17991_v21  ;;  %v17992_v22 = vunpack.i.l.bf16 %v17991_v21 }
0x1084   :  { %v16903_v43 = vpack.c.bf16 %v17993_v41, %v17992_v22 }
0x1085   :  { %v17996_v23 = vpop.permute.xlu1 %17995  ;;  %v18001_v28 = vpop.permute.xlu0 %18000 }
0x1086   :  { %v17998_v26 = vunpack.i.h.bf16 %v17996_v23  ;;  %v17997_v27 = vunpack.i.l.bf16 %v17996_v23  ;;  %16904 = vmatprep.subr.bf16.mxu1 %v16903_v43  ;;  %v18003_v29 = vunpack.i.h.bf16 %v18001_v28  ;;  %v18002_v45 = vunpack.i.l.bf16 %v18001_v28 }
0x1087   :  { %16906 = vmatpush3.bf16.msra.mxu1 %v16903_v43 }
0x1088   :  { %v16907_v44 = vpack.c.bf16 %v17998_v26, %v17997_v27  ;;  %v16919_v31 = vpack.c.bf16 %v18003_v29, %v18002_v45 }
0x1089   :  { %v18006_v30 = vpop.permute.xlu1 %18005 }
0x108a   :  { %16908 = vmatprep.subr.bf16.mxu1 %v16907_v44  ;;  %v18008_v32 = vunpack.i.h.bf16 %v18006_v30  ;;  %v18007_v33 = vunpack.i.l.bf16 %v18006_v30 }
0x108b   :  { %16910 = vmatpush3.bf16.msra.mxu1 %v16907_v44 }
0x108c   :  { %16912 = vmatprep.subr.bf16.mxu1 %v16911_v20  ;;  %v16923_v34 = vpack.c.bf16 %v18008_v32, %v18007_v33 }
0x108e   :  { %15438 = vmatmul.mubr.msk.f32.vlgmr.msra.gmra.mrb[24].mxu1 %vm43_vm0, %v18974_v57 }
0x108f   :  { %16914 = vmatpush3.bf16.msra.mxu1 %v16911_v20  ;;  %15440 = vmatprep.mubr.msk.f32.mxu1 %vm43_vm0, %v18981_v61 }
0x1090   :  { %16916 = vmatprep.subr.bf16.mxu1 %v16915_v14 }
0x1092   :  { %15441 = vmatmul.mubr.msk.f32.gmra.mrb[26].mxu1 %vm43_vm0, %v18988_v5 }
0x1093   :  { %16918 = vmatpush3.bf16.msra.mxu1 %v16915_v14  ;;  %15451 = vmatprep.mubr.msk.f32.mxu1 %vm43_vm0, %v18995_v6 }
0x1094   :  { %16920 = vmatprep.subr.bf16.mxu1 %v16919_v31 }
0x1096   :  { %15452 = vmatmul.mubr.msk.f32.vlgmr.msra.gmra.mrb[24].mxu1 %vm43_vm0, %v19002_v47 }
0x1097   :  { %16922 = vmatpush3.bf16.msra.mxu1 %v16919_v31  ;;  %15454 = vmatprep.mubr.msk.f32.mxu1 %vm43_vm0, %v19009_v49  ;;  %v13753_v31 = vld [vmem:[%s20562_s3 + $0x6] sm:$0x1] }
0x1098   :  { %16924 = vmatprep.subr.bf16.mxu1 %v16923_v34 }
0x109a   :  { %15455 = vmatmul.mubr.msk.f32.gmra.mrb[26].mxu1 %vm43_vm0, %v19016_v53 }
0x109b   :  { %16926 = vmatpush3.bf16.msra.mxu1 %v16923_v34  ;;  %15465 = vmatprep.mubr.msk.f32.mxu1 %vm43_vm0, %v19023_v7  ;;  %v13754_v34 = vld [vmem:[%s20563_s4 + $0x6] sm:$0x1] }
0x109e   :  { %15466 = vmatmul.mubr.msk.f32.vlgmr.msra.gmra.mrb[24].mxu1 %vm43_vm0, %v19030_v8 }
0x109f   :  { %15468 = vmatprep.mubr.msk.f32.mxu1 %vm43_vm0, %v19037_v9 }
0x10a2   :  { %15469 = vmatmul.mubr.msk.f32.gmra.mrb[26].mxu1 %vm43_vm0, %v19044_v0 }
0x1171   :  { %v15467_v48 = vpop.f32.mrb[24].mxu1 }
0x1172   :  { %v3274_v50 = vsel %vm43_vm0, %v15467_v48, 0.0  ;;  %v3250_v51 = vpop.f32.mrb[25].mxu1 }
0x1173   :  { %v3273_v60 = vsel %vm43_vm0, %v3250_v51, 0.0 }
0x1174   :  { %v3275_v2 = vadd.f32 %v3274_v50, %v3273_v60 }
0x1175   :  { %v15470_v3 = vpop.f32.mrb[26].mxu1 }
0x1176   :  { %v3260_v4 = vpop.f32.mrb[27].mxu1  ;;  %v3278_v11 = vsel %vm43_vm0, %v15470_v3, 0.0 }
0x1177   :  { %v3276_v55 = vsel %vm43_vm0, %v3260_v4, 0.0 }
0x1178   :  { %v3277_v62 = vadd.f32 %v3276_v55, %v3275_v2 }
0x117a   :  { %v3279_v1 = vadd.f32 %v3278_v11, %v3277_v62 }
0x117c   :  { %v3280_v56 = vrot.slane %v3279_v1, 4 }
0x117e   :  { %v3281_v59 = vadd.f32 %v3280_v56, %v3279_v1 }
0x1180   :  { %v3282_v17 = vrot.slane %v3281_v59, 2 }
0x1182   :  { %v3283_v18 = vadd.f32 %v3282_v17, %v3281_v59 }
0x1184   :  { %v3284_v19 = vrot.slane %v3283_v18, 1 }
0x1186   :  { %v3285_v24 = vadd.f32 %v3284_v19, %v3283_v18 }
0x1188   :  { %v3286_v25 = vmul.f32 0.03125, %v3285_v24 }
0x118a   :  { %v3287_v13 = vsub.f32 %v3250_v51, %v3286_v25  ;;  %v3288_v54 = vsub.f32 %v15467_v48, %v3286_v25  ;;  %v3289_v58 = vsub.f32 %v3260_v4, %v3286_v25  ;;  %v3290_v12 = vsub.f32 %v15470_v3, %v3286_v25 }
0x118c   :  { %v3291_v39 = vmul.f32 %v3287_v13, %v3287_v13  ;;  %v3292_v10 = vmul.f32 %v3288_v54, %v3288_v54  ;;  %v3293_v20 = vmul.f32 %v3289_v58, %v3289_v58  ;;  %v3294_v15 = vmul.f32 %v3290_v12, %v3290_v12 }
0x118e   :  { %v3295_v16 = vsel %vm43_vm0, %v3291_v39, 0.0  ;;  %v3296_v63 = vsel %vm43_vm0, %v3292_v10, 0.0  ;;  %v3298_v21 = vsel %vm43_vm0, %v3293_v20, 0.0  ;;  %v3300_v22 = vsel %vm43_vm0, %v3294_v15, 0.0 }
0x118f   :  { %v3297_v14 = vadd.f32 %v3296_v63, %v3295_v16 }
0x1191   :  { %v3299_v41 = vadd.f32 %v3298_v21, %v3297_v14 }
0x1193   :  { %v3301_v43 = vadd.f32 %v3300_v22, %v3299_v41 }
0x1195   :  { %v3302_v23 = vrot.slane %v3301_v43, 4 }
0x1197   :  { %v3303_v26 = vadd.f32 %v3302_v23, %v3301_v43 }
0x1199   :  { %v3304_v27 = vrot.slane %v3303_v26, 2 }
0x119b   :  { %v3305_v44 = vadd.f32 %v3304_v27, %v3303_v26 }
0x119d   :  { %v3306_v28 = vrot.slane %v3305_v44, 1 }
0x119f   :  { %v3307_v29 = vadd.f32 %v3306_v28, %v3305_v44 }
0x11a1   :  { %v3308_v45 = vmul.f32 0.03125, %v3307_v29 }
0x11a3   :  { %v3311_v30 = vadd.f32 1e-05, %v3308_v45 }
0x11a5   :  { %18461 = vrsqrt.f32 %v3311_v30 }
0x11af   :  { %v18462_v32 = vpop.eup %18461 }
0x11b0   :  { %v3313_v33 = vmul.f32 %v18462_v32, %v13753_v31 }
0x11b2   :  { %v3316_v35 = vmul.f32 %v3313_v33, %v3286_v25  ;;  %v3322_v36 = vrot.slane %v3313_v33, %v18805_v52 }
0x11b4   :  { %v3317_v37 = vsub.f32 %v13754_v34, %v3316_v35  ;;  %v3326_v38 = vmul.f32 %v3322_v36, %v3260_v4  ;;  %v3324_v40 = vmul.f32 %v3322_v36, %v3250_v51  ;;  %v3325_v46 = vmul.f32 %v15467_v48, %v3322_v36 }
0x11b5   :  { %v3327_v50 = vmul.f32 %v15470_v3, %v3322_v36 }
0x11b6   :  { %v3332_v60 = vrot.slane %v3317_v37, %v18805_v52 }
0x11b8   :  { %v3336_v2 = vadd.f32 %v3332_v60, %v3326_v38  ;;  %v3334_v55 = vadd.f32 %v3332_v60, %v3324_v40  ;;  %v3335_v62 = vadd.f32 %v3332_v60, %v3325_v46  ;;  %v3337_v11 = vadd.f32 %v3332_v60, %v3327_v50 }
0x11ba   :  { %vm3338_vm10 = vcmp.ge.f32.partialorder %v3334_v55, 0.0  ;;  %v3342_v1 = vmul.f32 0.2, %v3334_v55  ;;  %vm3339_vm11 = vcmp.ge.f32.partialorder %v3335_v62, 0.0  ;;  %v3343_v56 = vmul.f32 0.2, %v3335_v62 }
0x11bb   :  { %vm3340_vm12 = vcmp.ge.f32.partialorder %v3336_v2, 0.0  ;;  %v3344_v59 = vmul.f32 0.2, %v3336_v2  ;;  %v3345_v4 = vmul.f32 0.2, %v3337_v11  ;;  %vm3341_vm13 = vcmp.ge.f32.partialorder %v3337_v11, 0.0 }
0x11bc   :  { %v3346_v17 = vsel %vm3338_vm10, %v3334_v55, %v3342_v1  ;;  %v3347_v18 = vsel %vm3339_vm11, %v3335_v62, %v3343_v56 }
0x11bd   :  { %15479 = vmatprep.mubr.msk.f32.mxu0 %vm43_vm0, %v3346_v17  ;;  %v3348_v48 = vsel %vm3340_vm12, %v3336_v2, %v3344_v59  ;;  %v3349_v51 = vsel %vm3341_vm13, %v3337_v11, %v3345_v4 }
0x11be   :  { %15480 = vmatmul.mubr.msk.f32.vlgmr.msra.gmra.mrb[32].mxu0 %vm43_vm0, %v3347_v18 }
0x11bf   :  { %15482 = vmatprep.mubr.msk.f32.mxu0 %vm43_vm0, %v3348_v48 }
0x11c2   :  { %15483 = vmatmul.mubr.msk.f32.gmra.mrb[34].mxu0 %vm43_vm0, %v3349_v51 }
0x11c3   :  { %15493 = vmatprep.mubr.msk.f32.mxu0 %vm43_vm0, %v18963_v42 }
0x1291   :  { %v15481_v3 = vpop.f32.mrb[32].mxu0 }
0x1292   :  { %v3433_v19 = vpop.f32.mrb[33].mxu0 }
0x1293   :  { %v18019_v24 = vpack.i.bf16 %v15481_v3, %v3433_v19  ;;  %v16943_v25 = vpack.c.bf16 %v15481_v3, %v3433_v19 }
0x1295   :  { %18010 = vrot.lane.b32.xlu0 %v18019_v24, %s18642_s16  ;;  %v15484_v13 = vpop.f32.mrb[34].mxu0 }
0x1296   :  { %v3443_v54 = vpop.f32.mrb[35].mxu0 }
0x1297   :  { %v18024_v58 = vpack.i.bf16 %v15484_v13, %v3443_v54  ;;  %v16947_v12 = vpack.c.bf16 %v15484_v13, %v3443_v54 }
0x1299   :  { %18020 = vrot.lane.b32.xlu0 %v18019_v24, %s18643_s18  ;;  %18015 = vrot.lane.b32.xlu1 %v18024_v58, %s18642_s16 }
0x129d   :  { %18025 = vrot.lane.b32.xlu1 %v18024_v58, %s18643_s18 }
0x1307   :  { %v18011_v39 = vpop.permute.xlu0 %18010 }
0x1308   :  { %v18013_v10 = vunpack.i.h.bf16 %v18011_v39  ;;  %v18012_v20 = vunpack.i.l.bf16 %v18011_v39  ;;  %v13771_v39 = vld [vmem:[%s20562_s3 + $0x7] sm:$0x1] }
0x130a   :  { %v16935_v42 = vpack.c.bf16 %v18013_v10, %v18012_v20 }
0x130b   :  { %v18016_v15 = vpop.permute.xlu1 %18015  ;;  %v18021_v21 = vpop.permute.xlu0 %18020 }
0x130c   :  { %v18018_v16 = vunpack.i.h.bf16 %v18016_v15  ;;  %v18017_v63 = vunpack.i.l.bf16 %v18016_v15  ;;  %16936 = vmatprep.subr.bf16.mxu0 %v16935_v42  ;;  %v18023_v41 = vunpack.i.h.bf16 %v18021_v21  ;;  %v18022_v22 = vunpack.i.l.bf16 %v18021_v21 }
0x130d   :  { %16938 = vmatpush3.bf16.msra.mxu0 %v16935_v42  ;;  %v13772_v42 = vld [vmem:[%s20563_s4 + $0x7] sm:$0x1] }
0x130e   :  { %v16939_v14 = vpack.c.bf16 %v18018_v16, %v18017_v63  ;;  %v16951_v23 = vpack.c.bf16 %v18023_v41, %v18022_v22 }
0x130f   :  { %v18026_v43 = vpop.permute.xlu1 %18025 }
0x1310   :  { %16940 = vmatprep.subr.bf16.mxu0 %v16939_v14  ;;  %v18028_v26 = vunpack.i.h.bf16 %v18026_v43  ;;  %v18027_v27 = vunpack.i.l.bf16 %v18026_v43 }
0x1311   :  { %16942 = vmatpush3.bf16.msra.mxu0 %v16939_v14 }
0x1312   :  { %16944 = vmatprep.subr.bf16.mxu0 %v16943_v25  ;;  %v16955_v44 = vpack.c.bf16 %v18028_v26, %v18027_v27 }
0x1314   :  { %15494 = vmatmul.mubr.msk.f32.vlgmr.msra.gmra.mrb[36].mxu0 %vm43_vm0, %v18974_v57  ;;  %v3817_v57 = vld [vmem:[#allocation2 + $0x100] sm:$0xff] }
0x1315   :  { %16946 = vmatpush3.bf16.msra.mxu0 %v16943_v25  ;;  %15496 = vmatprep.mubr.msk.f32.mxu0 %vm43_vm0, %v18981_v61  ;;  %v3818_v61 = vld [vmem:[#allocation2 + $0x108] sm:$0xff] }
0x1316   :  { %16948 = vmatprep.subr.bf16.mxu0 %v16947_v12 }
0x1318   :  { %15497 = vmatmul.mubr.msk.f32.gmra.mrb[38].mxu0 %vm43_vm0, %v18988_v5  ;;  %v16959_v5 = vpack.c.bf16 %v3818_v61, %v3817_v57 }
0x1319   :  { %16950 = vmatpush3.bf16.msra.mxu0 %v16947_v12  ;;  %15507 = vmatprep.mubr.msk.f32.mxu0 %vm43_vm0, %v18995_v6  ;;  %v3819_v6 = vld [vmem:[#allocation2 + $0x110] sm:$0xff] }
0x131a   :  { %16952 = vmatprep.subr.bf16.mxu0 %v16951_v23  ;;  %16960 = vmatprep.subr.bf16.mxu1 %v16959_v5 }
0x131b   :  { %16962 = vmatpush3.bf16.msra.mxu1 %v16959_v5 }
0x131c   :  { %15508 = vmatmul.mubr.msk.f32.vlgmr.msra.gmra.mrb[36].mxu0 %vm43_vm0, %v19002_v47  ;;  %v3820_v47 = vld [vmem:[#allocation2 + $0x118] sm:$0xff] }
0x131d   :  { %16954 = vmatpush3.bf16.msra.mxu0 %v16951_v23  ;;  %15510 = vmatprep.mubr.msk.f32.mxu0 %vm43_vm0, %v19009_v49  ;;  %v16963_v49 = vpack.c.bf16 %v3820_v47, %v3819_v6 }
0x131e   :  { %16956 = vmatprep.subr.bf16.mxu0 %v16955_v44 }
0x131f   :  { %16964 = vmatprep.subr.bf16.mxu1 %v16963_v49 }
0x1320   :  { %15511 = vmatmul.mubr.msk.f32.gmra.mrb[38].mxu0 %vm43_vm0, %v19016_v53  ;;  %16966 = vmatpush3.bf16.msra.mxu1 %v16963_v49 }
0x1321   :  { %16958 = vmatpush3.bf16.msra.mxu0 %v16955_v44  ;;  %15521 = vmatprep.mubr.msk.f32.mxu0 %vm43_vm0, %v19023_v7 }
0x1324   :  { %15522 = vmatmul.mubr.msk.f32.vlgmr.msra.gmra.mrb[36].mxu0 %vm43_vm0, %v19030_v8 }
0x1325   :  { %15524 = vmatprep.mubr.msk.f32.mxu0 %vm43_vm0, %v19037_v9 }
0x1328   :  { %15525 = vmatmul.mubr.msk.f32.gmra.mrb[38].mxu0 %vm43_vm0, %v19044_v0 }
0x13f7   :  { %v15523_v53 = vpop.f32.mrb[36].mxu0 }
0x13f8   :  { %v3740_v7 = vsel %vm43_vm0, %v15523_v53, 0.0  ;;  %v3716_v8 = vpop.f32.mrb[37].mxu0 }
0x13f9   :  { %v3739_v28 = vsel %vm43_vm0, %v3716_v8, 0.0 }
0x13fa   :  { %v3741_v9 = vadd.f32 %v3740_v7, %v3739_v28 }
0x13fb   :  { %v15526_v29 = vpop.f32.mrb[38].mxu0 }
0x13fc   :  { %v3726_v45 = vpop.f32.mrb[39].mxu0  ;;  %v3744_v31 = vsel %vm43_vm0, %v15526_v29, 0.0 }
0x13fd   :  { %v3742_v0 = vsel %vm43_vm0, %v3726_v45, 0.0 }
0x13fe   :  { %v3743_v30 = vadd.f32 %v3742_v0, %v3741_v9 }
0x1400   :  { %v3745_v32 = vadd.f32 %v3744_v31, %v3743_v30 }
0x1402   :  { %v3746_v33 = vrot.slane %v3745_v32, 4 }
0x1404   :  { %v3747_v34 = vadd.f32 %v3746_v33, %v3745_v32 }
0x1406   :  { %v3748_v35 = vrot.slane %v3747_v34, 2 }
0x1408   :  { %v3749_v36 = vadd.f32 %v3748_v35, %v3747_v34 }
0x140a   :  { %v3750_v37 = vrot.slane %v3749_v36, 1 }
0x140c   :  { %v3751_v38 = vadd.f32 %v3750_v37, %v3749_v36 }
0x140e   :  { %v3752_v40 = vmul.f32 0.03125, %v3751_v38 }
0x1410   :  { %v3753_v46 = vsub.f32 %v3716_v8, %v3752_v40  ;;  %v3754_v50 = vsub.f32 %v15523_v53, %v3752_v40  ;;  %v3755_v60 = vsub.f32 %v3726_v45, %v3752_v40  ;;  %v3756_v2 = vsub.f32 %v15526_v29, %v3752_v40 }
0x1412   :  { %v3757_v55 = vmul.f32 %v3753_v46, %v3753_v46  ;;  %v3758_v62 = vmul.f32 %v3754_v50, %v3754_v50  ;;  %v3759_v11 = vmul.f32 %v3755_v60, %v3755_v60  ;;  %v3760_v1 = vmul.f32 %v3756_v2, %v3756_v2 }
0x1414   :  { %v3761_v56 = vsel %vm43_vm0, %v3757_v55, 0.0  ;;  %v3762_v59 = vsel %vm43_vm0, %v3758_v62, 0.0  ;;  %v3764_v18 = vsel %vm43_vm0, %v3759_v11, 0.0  ;;  %v3766_v48 = vsel %vm43_vm0, %v3760_v1, 0.0  ;;  %v19226_v55 = vld [vmem:[%s20560_s1 + $0x28] sm:$0xff]  ;;  %v19233_v11 = vld [vmem:[%s20560_s1 + $0x30] sm:$0xff] }
0x1415   :  { %v3763_v17 = vadd.f32 %v3762_v59, %v3761_v56 }
0x1417   :  { %v3765_v4 = vadd.f32 %v3764_v18, %v3763_v17  ;;  %v19240_v17 = vld [vmem:[%s20560_s1 + $0x38] sm:$0xff]  ;;  %v19247_v18 = vld [vmem:[%s20560_s1] sm:$0xff] }
0x1419   :  { %v3767_v51 = vadd.f32 %v3766_v48, %v3765_v4  ;;  %v19254_v48 = vld [vmem:[%s20560_s1 + $0x8] sm:$0xff] }
0x141b   :  { %v3768_v3 = vrot.slane %v3767_v51, 4 }
0x141d   :  { %v3769_v19 = vadd.f32 %v3768_v3, %v3767_v51  ;;  %v19261_v51 = vld [vmem:[%s20560_s1 + $0x10] sm:$0xff]  ;;  %v19268_v3 = vld [vmem:[%s20560_s1 + $0x18] sm:$0xff] }
0x141f   :  { %v3770_v24 = vrot.slane %v3769_v19, 2 }
0x1421   :  { %v3771_v25 = vadd.f32 %v3770_v24, %v3769_v19  ;;  %v19275_v19 = vld [vmem:[%s20560_s1 + $0x40] sm:$0xff]  ;;  %v19282_v24 = vld [vmem:[%s20560_s1 + $0x48] sm:$0xff] }
0x1423   :  { %v3772_v13 = vrot.slane %v3771_v25, 1 }
0x1425   :  { %v3773_v54 = vadd.f32 %v3772_v13, %v3771_v25  ;;  %v19289_v25 = vld [vmem:[%s20560_s1 + $0x50] sm:$0xff]  ;;  %v19296_v13 = vld [vmem:[%s20560_s1 + $0x58] sm:$0xff] }
0x1427   :  { %v3774_v58 = vmul.f32 0.03125, %v3773_v54  ;;  %v4283_v54 = vld [vmem:[#allocation2 + $0x120] sm:$0xff] }
0x1429   :  { %v3777_v12 = vadd.f32 1e-05, %v3774_v58  ;;  %v4284_v58 = vld [vmem:[#allocation2 + $0x128] sm:$0xff] }
0x142b   :  { %18463 = vrsqrt.f32 %v3777_v12  ;;  %v16991_v12 = vpack.c.bf16 %v4284_v58, %v4283_v54 }
0x142d   :  { %16992 = vmatprep.subr.bf16.mxu0 %v16991_v12 }
0x142e   :  { %16994 = vmatpush3.bf16.msra.mxu0 %v16991_v12 }
0x1435   :  { %v18464_v10 = vpop.eup %18463 }
0x1436   :  { %v3779_v20 = vmul.f32 %v18464_v10, %v13771_v39  ;;  %v4285_v39 = vld [vmem:[#allocation2 + $0x130] sm:$0xff]  ;;  %v4286_v10 = vld [vmem:[#allocation2 + $0x138] sm:$0xff] }
0x1438   :  { %v3782_v15 = vmul.f32 %v3779_v20, %v3752_v40  ;;  %v3788_v16 = vrot.slane %v3779_v20, %v18805_v52  ;;  %v16995_v20 = vpack.c.bf16 %v4286_v10, %v4285_v39 }
0x143a   :  { %v3783_v63 = vsub.f32 %v13772_v42, %v3782_v15  ;;  %v3792_v14 = vmul.f32 %v3788_v16, %v3726_v45  ;;  %v3790_v21 = vmul.f32 %v3788_v16, %v3716_v8  ;;  %v3791_v41 = vmul.f32 %v15523_v53, %v3788_v16  ;;  %v19215_v8 = vld [vmem:[%s20560_s1 + $0x20] sm:$0xff]  ;;  %16996 = vmatprep.subr.bf16.mxu0 %v16995_v20 }
0x143b   :  { %v3793_v22 = vmul.f32 %v15526_v29, %v3788_v16  ;;  %16998 = vmatpush3.bf16.msra.mxu0 %v16995_v20 }
0x143c   :  { %v3798_v43 = vrot.slane %v3783_v63, %v18805_v52 }
0x143e   :  { %v3802_v23 = vadd.f32 %v3798_v43, %v3792_v14  ;;  %v3800_v26 = vadd.f32 %v3798_v43, %v3790_v21  ;;  %v3801_v27 = vadd.f32 %v3798_v43, %v3791_v41  ;;  %v3803_v44 = vadd.f32 %v3798_v43, %v3793_v22 }
0x1440   :  { %vm3804_vm14 = vcmp.ge.f32.partialorder %v3800_v26, 0.0  ;;  %v3808_v57 = vmul.f32 0.2, %v3800_v26  ;;  %vm3805_vm15 = vcmp.ge.f32.partialorder %v3801_v27, 0.0  ;;  %v3809_v61 = vmul.f32 0.2, %v3801_v27 }
0x1441   :  { %vm3806_vm1 = vcmp.ge.f32.partialorder %v3802_v23, 0.0  ;;  %v3810_v5 = vmul.f32 0.2, %v3802_v23  ;;  %v3811_v49 = vmul.f32 0.2, %v3803_v44  ;;  %vm3807_vm2 = vcmp.ge.f32.partialorder %v3803_v44, 0.0 }
0x1442   :  { %v3812_v6 = vsel %vm3804_vm14, %v3800_v26, %v3808_v57  ;;  %v3813_v47 = vsel %vm3805_vm15, %v3801_v27, %v3809_v61 }
0x1443   :  { %15535 = vmatprep.mubr.msk.f32.mxu1 %vm43_vm0, %v3812_v6  ;;  %v3814_v53 = vsel %vm3806_vm1, %v3802_v23, %v3810_v5  ;;  %v3815_v7 = vsel %vm3807_vm2, %v3803_v44, %v3811_v49 }
0x1444   :  { %15536 = vmatmul.mubr.msk.f32.vlgmr.msra.gmra.mrb[28].mxu1 %vm43_vm0, %v3813_v47 }
0x1445   :  { %15538 = vmatprep.mubr.msk.f32.mxu1 %vm43_vm0, %v3814_v53 }
0x1448   :  { %15539 = vmatmul.mubr.msk.f32.gmra.mrb[30].mxu1 %vm43_vm0, %v3815_v7 }
0x1449   :  { %15549 = vmatprep.mubr.msk.f32.mxu1 %vm43_vm0, %v19215_v8 }
0x1517   :  { %v15537_v28 = vpop.f32.mrb[28].mxu1 }
0x1518   :  { %v3899_v9 = vpop.f32.mrb[29].mxu1 }
0x1519   :  { %v18039_v29 = vpack.i.bf16 %v15537_v28, %v3899_v9  ;;  %v16975_v45 = vpack.c.bf16 %v15537_v28, %v3899_v9 }
0x151b   :  { %18030 = vrot.lane.b32.xlu0 %v18039_v29, %s18642_s16  ;;  %v15540_v0 = vpop.f32.mrb[30].mxu1 }
0x151c   :  { %v3909_v30 = vpop.f32.mrb[31].mxu1 }
0x151d   :  { %v18044_v31 = vpack.i.bf16 %v15540_v0, %v3909_v30  ;;  %v16979_v32 = vpack.c.bf16 %v15540_v0, %v3909_v30 }
0x151f   :  { %18040 = vrot.lane.b32.xlu0 %v18039_v29, %s18643_s18  ;;  %18035 = vrot.lane.b32.xlu1 %v18044_v31, %s18642_s16 }
0x1523   :  { %18045 = vrot.lane.b32.xlu1 %v18044_v31, %s18643_s18 }
0x158d   :  { %v18031_v33 = vpop.permute.xlu0 %18030 }
0x158e   :  { %v18033_v34 = vunpack.i.h.bf16 %v18031_v33  ;;  %v18032_v35 = vunpack.i.l.bf16 %v18031_v33 }
0x1590   :  { %v16967_v36 = vpack.c.bf16 %v18033_v34, %v18032_v35 }
0x1591   :  { %v18036_v37 = vpop.permute.xlu1 %18035  ;;  %v18041_v50 = vpop.permute.xlu0 %18040 }
0x1592   :  { %v18038_v38 = vunpack.i.h.bf16 %v18036_v37  ;;  %v18037_v40 = vunpack.i.l.bf16 %v18036_v37  ;;  %16968 = vmatprep.subr.bf16.mxu1 %v16967_v36  ;;  %v18043_v60 = vunpack.i.h.bf16 %v18041_v50  ;;  %v18042_v2 = vunpack.i.l.bf16 %v18041_v50 }
0x1593   :  { %16970 = vmatpush3.bf16.msra.mxu1 %v16967_v36 }
0x1594   :  { %v16971_v46 = vpack.c.bf16 %v18038_v38, %v18037_v40  ;;  %v16983_v1 = vpack.c.bf16 %v18043_v60, %v18042_v2 }
0x1595   :  { %v18046_v62 = vpop.permute.xlu1 %18045 }
0x1596   :  { %16972 = vmatprep.subr.bf16.mxu1 %v16971_v46  ;;  %v18048_v56 = vunpack.i.h.bf16 %v18046_v62  ;;  %v18047_v59 = vunpack.i.l.bf16 %v18046_v62 }
0x1597   :  { %16974 = vmatpush3.bf16.msra.mxu1 %v16971_v46 }
0x1598   :  { %16976 = vmatprep.subr.bf16.mxu1 %v16975_v45  ;;  %v16987_v4 = vpack.c.bf16 %v18048_v56, %v18047_v59 }
0x159a   :  { %15550 = vmatmul.mubr.msk.f32.vlgmr.msra.gmra.mrb[32].mxu1 %vm43_vm0, %v19226_v55 }
0x159b   :  { %16978 = vmatpush3.bf16.msra.mxu1 %v16975_v45  ;;  %15552 = vmatprep.mubr.msk.f32.mxu1 %vm43_vm0, %v19233_v11 }
0x159c   :  { %16980 = vmatprep.subr.bf16.mxu1 %v16979_v32 }
0x159e   :  { %15553 = vmatmul.mubr.msk.f32.gmra.mrb[34].mxu1 %vm43_vm0, %v19240_v17 }
0x159f   :  { %16982 = vmatpush3.bf16.msra.mxu1 %v16979_v32  ;;  %15563 = vmatprep.mubr.msk.f32.mxu1 %vm43_vm0, %v19247_v18 }
0x15a0   :  { %16984 = vmatprep.subr.bf16.mxu1 %v16983_v1 }
0x15a2   :  { %15564 = vmatmul.mubr.msk.f32.vlgmr.msra.gmra.mrb[32].mxu1 %vm43_vm0, %v19254_v48 }
0x15a3   :  { %16986 = vmatpush3.bf16.msra.mxu1 %v16983_v1  ;;  %15566 = vmatprep.mubr.msk.f32.mxu1 %vm43_vm0, %v19261_v51  ;;  %v13789_v1 = vld [vmem:[%s20562_s3 + $0x8] sm:$0x1] }
0x15a4   :  { %16988 = vmatprep.subr.bf16.mxu1 %v16987_v4 }
0x15a6   :  { %15567 = vmatmul.mubr.msk.f32.gmra.mrb[34].mxu1 %vm43_vm0, %v19268_v3 }
0x15a7   :  { %16990 = vmatpush3.bf16.msra.mxu1 %v16987_v4  ;;  %15577 = vmatprep.mubr.msk.f32.mxu1 %vm43_vm0, %v19275_v19  ;;  %v13790_v4 = vld [vmem:[%s20563_s4 + $0x8] sm:$0x1] }
0x15aa   :  { %15578 = vmatmul.mubr.msk.f32.vlgmr.msra.gmra.mrb[32].mxu1 %vm43_vm0, %v19282_v24 }
0x15ab   :  { %15580 = vmatprep.mubr.msk.f32.mxu1 %vm43_vm0, %v19289_v25 }
0x15ae   :  { %15581 = vmatmul.mubr.msk.f32.gmra.mrb[34].mxu1 %vm43_vm0, %v19296_v13 }
0x167d   :  { %v15579_v42 = vpop.f32.mrb[32].mxu1 }
0x167e   :  { %v4206_v15 = vsel %vm43_vm0, %v15579_v42, 0.0  ;;  %v4182_v16 = vpop.f32.mrb[33].mxu1 }
0x167f   :  { %v4205_v63 = vsel %vm43_vm0, %v4182_v16, 0.0 }
0x1680   :  { %v4207_v14 = vadd.f32 %v4206_v15, %v4205_v63 }
0x1681   :  { %v15582_v21 = vpop.f32.mrb[34].mxu1 }
0x1682   :  { %v4192_v41 = vpop.f32.mrb[35].mxu1  ;;  %v4210_v23 = vsel %vm43_vm0, %v15582_v21, 0.0 }
0x1683   :  { %v4208_v22 = vsel %vm43_vm0, %v4192_v41, 0.0 }
0x1684   :  { %v4209_v43 = vadd.f32 %v4208_v22, %v4207_v14 }
0x1686   :  { %v4211_v26 = vadd.f32 %v4210_v23, %v4209_v43 }
0x1688   :  { %v4212_v27 = vrot.slane %v4211_v26, 4 }
0x168a   :  { %v4213_v44 = vadd.f32 %v4212_v27, %v4211_v26 }
0x168c   :  { %v4214_v57 = vrot.slane %v4213_v44, 2 }
0x168e   :  { %v4215_v61 = vadd.f32 %v4214_v57, %v4213_v44 }
0x1690   :  { %v4216_v5 = vrot.slane %v4215_v61, 1 }
0x1692   :  { %v4217_v6 = vadd.f32 %v4216_v5, %v4215_v61 }
0x1694   :  { %v4218_v47 = vmul.f32 0.03125, %v4217_v6 }
0x1696   :  { %v4219_v49 = vsub.f32 %v4182_v16, %v4218_v47  ;;  %v4220_v53 = vsub.f32 %v15579_v42, %v4218_v47  ;;  %v4221_v7 = vsub.f32 %v4192_v41, %v4218_v47  ;;  %v4222_v28 = vsub.f32 %v15582_v21, %v4218_v47 }
0x1698   :  { %v4223_v9 = vmul.f32 %v4219_v49, %v4219_v49  ;;  %v4224_v29 = vmul.f32 %v4220_v53, %v4220_v53  ;;  %v4225_v45 = vmul.f32 %v4221_v7, %v4221_v7  ;;  %v4226_v0 = vmul.f32 %v4222_v28, %v4222_v28 }
0x169a   :  { %v4227_v30 = vsel %vm43_vm0, %v4223_v9, 0.0  ;;  %v4228_v31 = vsel %vm43_vm0, %v4224_v29, 0.0  ;;  %v4230_v33 = vsel %vm43_vm0, %v4225_v45, 0.0  ;;  %v4232_v35 = vsel %vm43_vm0, %v4226_v0, 0.0 }
0x169b   :  { %v4229_v32 = vadd.f32 %v4228_v31, %v4227_v30 }
0x169d   :  { %v4231_v34 = vadd.f32 %v4230_v33, %v4229_v32 }
0x169f   :  { %v4233_v36 = vadd.f32 %v4232_v35, %v4231_v34 }
0x16a1   :  { %v4234_v37 = vrot.slane %v4233_v36, 4 }
0x16a3   :  { %v4235_v38 = vadd.f32 %v4234_v37, %v4233_v36 }
0x16a5   :  { %v4236_v40 = vrot.slane %v4235_v38, 2 }
0x16a7   :  { %v4237_v46 = vadd.f32 %v4236_v40, %v4235_v38 }
0x16a9   :  { %v4238_v50 = vrot.slane %v4237_v46, 1 }
0x16ab   :  { %v4239_v60 = vadd.f32 %v4238_v50, %v4237_v46 }
0x16ad   :  { %v4240_v2 = vmul.f32 0.03125, %v4239_v60  ;;  %v4749_v60 = vld [vmem:[#allocation2 + $0x140] sm:$0xff] }
0x16af   :  { %v4243_v62 = vadd.f32 1e-05, %v4240_v2  ;;  %v4750_v2 = vld [vmem:[#allocation2 + $0x148] sm:$0xff] }
0x16b1   :  { %18465 = vrsqrt.f32 %v4243_v62  ;;  %v17023_v62 = vpack.c.bf16 %v4750_v2, %v4749_v60 }
0x16b3   :  { %17024 = vmatprep.subr.bf16.mxu1 %v17023_v62 }
0x16b4   :  { %17026 = vmatpush3.bf16.msra.mxu1 %v17023_v62 }
0x16bb   :  { %v18466_v56 = vpop.eup %18465 }
0x16bc   :  { %v4245_v59 = vmul.f32 %v18466_v56, %v13789_v1  ;;  %v4751_v1 = vld [vmem:[#allocation2 + $0x150] sm:$0xff]  ;;  %v4752_v56 = vld [vmem:[#allocation2 + $0x158] sm:$0xff] }
0x16be   :  { %v4248_v54 = vmul.f32 %v4245_v59, %v4218_v47  ;;  %v4254_v58 = vrot.slane %v4245_v59, %v18805_v52  ;;  %v17027_v59 = vpack.c.bf16 %v4752_v56, %v4751_v1 }
0x16c0   :  { %v4249_v12 = vsub.f32 %v13790_v4, %v4248_v54  ;;  %v4258_v39 = vmul.f32 %v4254_v58, %v4192_v41  ;;  %v4256_v10 = vmul.f32 %v4254_v58, %v4182_v16  ;;  %v4257_v20 = vmul.f32 %v15579_v42, %v4254_v58  ;;  %17028 = vmatprep.subr.bf16.mxu1 %v17027_v59 }
0x16c1   :  { %v4259_v15 = vmul.f32 %v15582_v21, %v4254_v58  ;;  %17030 = vmatpush3.bf16.msra.mxu1 %v17027_v59 }
0x16c2   :  { %v4264_v63 = vrot.slane %v4249_v12, %v18805_v52 }
0x16c4   :  { %v4268_v14 = vadd.f32 %v4264_v63, %v4258_v39  ;;  %v4266_v22 = vadd.f32 %v4264_v63, %v4256_v10  ;;  %v4267_v43 = vadd.f32 %v4264_v63, %v4257_v20  ;;  %v4269_v23 = vadd.f32 %v4264_v63, %v4259_v15 }
0x16c6   :  { %vm4270_vm3 = vcmp.ge.f32.partialorder %v4266_v22, 0.0  ;;  %v4274_v26 = vmul.f32 0.2, %v4266_v22  ;;  %vm4271_vm4 = vcmp.ge.f32.partialorder %v4267_v43, 0.0  ;;  %v4275_v27 = vmul.f32 0.2, %v4267_v43 }
0x16c7   :  { %vm4272_vm5 = vcmp.ge.f32.partialorder %v4268_v14, 0.0  ;;  %v4276_v44 = vmul.f32 0.2, %v4268_v14  ;;  %v4277_v41 = vmul.f32 0.2, %v4269_v23  ;;  %vm4273_vm6 = vcmp.ge.f32.partialorder %v4269_v23, 0.0 }
0x16c8   :  { %v4278_v57 = vsel %vm4270_vm3, %v4266_v22, %v4274_v26  ;;  %v4279_v61 = vsel %vm4271_vm4, %v4267_v43, %v4275_v27 }
0x16c9   :  { %15591 = vmatprep.mubr.msk.f32.mxu0 %vm43_vm0, %v4278_v57  ;;  %v4280_v42 = vsel %vm4272_vm5, %v4268_v14, %v4276_v44  ;;  %v4281_v16 = vsel %vm4273_vm6, %v4269_v23, %v4277_v41 }
0x16ca   :  { %15592 = vmatmul.mubr.msk.f32.vlgmr.msra.gmra.mrb[40].mxu0 %vm43_vm0, %v4279_v61 }
0x16cb   :  { %15594 = vmatprep.mubr.msk.f32.mxu0 %vm43_vm0, %v4280_v42 }
0x16ce   :  { %15595 = vmatmul.mubr.msk.f32.gmra.mrb[42].mxu0 %vm43_vm0, %v4281_v16 }
0x16cf   :  { %15605 = vmatprep.mubr.msk.f32.mxu0 %vm43_vm0, %v19215_v8 }
0x179d   :  { %v15593_v21 = vpop.f32.mrb[40].mxu0 }
0x179e   :  { %v4365_v5 = vpop.f32.mrb[41].mxu0 }
0x179f   :  { %v18059_v6 = vpack.i.bf16 %v15593_v21, %v4365_v5  ;;  %v17007_v47 = vpack.c.bf16 %v15593_v21, %v4365_v5 }
0x17a1   :  { %18050 = vrot.lane.b32.xlu0 %v18059_v6, %s18642_s16  ;;  %v15596_v49 = vpop.f32.mrb[42].mxu0 }
0x17a2   :  { %v4375_v53 = vpop.f32.mrb[43].mxu0 }
0x17a3   :  { %v18064_v7 = vpack.i.bf16 %v15596_v49, %v4375_v53  ;;  %v17011_v28 = vpack.c.bf16 %v15596_v49, %v4375_v53 }
0x17a5   :  { %18060 = vrot.lane.b32.xlu0 %v18059_v6, %s18643_s18  ;;  %18055 = vrot.lane.b32.xlu1 %v18064_v7, %s18642_s16 }
0x17a9   :  { %18065 = vrot.lane.b32.xlu1 %v18064_v7, %s18643_s18 }
0x1813   :  { %v18051_v9 = vpop.permute.xlu0 %18050 }
0x1814   :  { %v18053_v29 = vunpack.i.h.bf16 %v18051_v9  ;;  %v18052_v45 = vunpack.i.l.bf16 %v18051_v9 }
0x1816   :  { %v16999_v0 = vpack.c.bf16 %v18053_v29, %v18052_v45 }
0x1817   :  { %v18056_v30 = vpop.permute.xlu1 %18055  ;;  %v18061_v34 = vpop.permute.xlu0 %18060 }
0x1818   :  { %v18058_v31 = vunpack.i.h.bf16 %v18056_v30  ;;  %v18057_v32 = vunpack.i.l.bf16 %v18056_v30  ;;  %17000 = vmatprep.subr.bf16.mxu0 %v16999_v0  ;;  %v18063_v35 = vunpack.i.h.bf16 %v18061_v34  ;;  %v18062_v36 = vunpack.i.l.bf16 %v18061_v34 }
0x1819   :  { %17002 = vmatpush3.bf16.msra.mxu0 %v16999_v0 }
0x181a   :  { %v17003_v33 = vpack.c.bf16 %v18058_v31, %v18057_v32  ;;  %v17015_v38 = vpack.c.bf16 %v18063_v35, %v18062_v36 }
0x181b   :  { %v18066_v37 = vpop.permute.xlu1 %18065 }
0x181c   :  { %17004 = vmatprep.subr.bf16.mxu0 %v17003_v33  ;;  %v18068_v40 = vunpack.i.h.bf16 %v18066_v37  ;;  %v18067_v46 = vunpack.i.l.bf16 %v18066_v37 }
0x181d   :  { %17006 = vmatpush3.bf16.msra.mxu0 %v17003_v33 }
0x181e   :  { %17008 = vmatprep.subr.bf16.mxu0 %v17007_v47  ;;  %v17019_v50 = vpack.c.bf16 %v18068_v40, %v18067_v46 }
0x1820   :  { %15606 = vmatmul.mubr.msk.f32.vlgmr.msra.gmra.mrb[44].mxu0 %vm43_vm0, %v19226_v55 }
0x1821   :  { %17010 = vmatpush3.bf16.msra.mxu0 %v17007_v47  ;;  %15608 = vmatprep.mubr.msk.f32.mxu0 %vm43_vm0, %v19233_v11 }
0x1822   :  { %17012 = vmatprep.subr.bf16.mxu0 %v17011_v28 }
0x1824   :  { %15609 = vmatmul.mubr.msk.f32.gmra.mrb[46].mxu0 %vm43_vm0, %v19240_v17 }
0x1825   :  { %17014 = vmatpush3.bf16.msra.mxu0 %v17011_v28  ;;  %15619 = vmatprep.mubr.msk.f32.mxu0 %vm43_vm0, %v19247_v18 }
0x1826   :  { %17016 = vmatprep.subr.bf16.mxu0 %v17015_v38 }
0x1828   :  { %15620 = vmatmul.mubr.msk.f32.vlgmr.msra.gmra.mrb[44].mxu0 %vm43_vm0, %v19254_v48 }
0x1829   :  { %17018 = vmatpush3.bf16.msra.mxu0 %v17015_v38  ;;  %15622 = vmatprep.mubr.msk.f32.mxu0 %vm43_vm0, %v19261_v51  ;;  %v13807_v38 = vld [vmem:[%s20562_s3 + $0x9] sm:$0x1] }
0x182a   :  { %17020 = vmatprep.subr.bf16.mxu0 %v17019_v50 }
0x182c   :  { %15623 = vmatmul.mubr.msk.f32.gmra.mrb[46].mxu0 %vm43_vm0, %v19268_v3 }
0x182d   :  { %17022 = vmatpush3.bf16.msra.mxu0 %v17019_v50  ;;  %15633 = vmatprep.mubr.msk.f32.mxu0 %vm43_vm0, %v19275_v19  ;;  %v13808_v50 = vld [vmem:[%s20563_s4 + $0x9] sm:$0x1] }
0x1830   :  { %15634 = vmatmul.mubr.msk.f32.vlgmr.msra.gmra.mrb[44].mxu0 %vm43_vm0, %v19282_v24 }
0x1831   :  { %15636 = vmatprep.mubr.msk.f32.mxu0 %vm43_vm0, %v19289_v25 }
0x1834   :  { %15637 = vmatmul.mubr.msk.f32.gmra.mrb[46].mxu0 %vm43_vm0, %v19296_v13 }
0x1903   :  { %v15635_v4 = vpop.f32.mrb[44].mxu0 }
0x1904   :  { %v4672_v54 = vsel %vm43_vm0, %v15635_v4, 0.0  ;;  %v4648_v58 = vpop.f32.mrb[45].mxu0 }
0x1905   :  { %v4671_v12 = vsel %vm43_vm0, %v4648_v58, 0.0 }
0x1906   :  { %v4673_v39 = vadd.f32 %v4672_v54, %v4671_v12 }
0x1907   :  { %v15638_v10 = vpop.f32.mrb[46].mxu0 }
0x1908   :  { %v4658_v20 = vpop.f32.mrb[47].mxu0  ;;  %v4676_v14 = vsel %vm43_vm0, %v15638_v10, 0.0 }
0x1909   :  { %v4674_v15 = vsel %vm43_vm0, %v4658_v20, 0.0 }
0x190a   :  { %v4675_v63 = vadd.f32 %v4674_v15, %v4673_v39 }
0x190c   :  { %v4677_v22 = vadd.f32 %v4676_v14, %v4675_v63 }
0x190e   :  { %v4678_v43 = vrot.slane %v4677_v22, 4 }
0x1910   :  { %v4679_v23 = vadd.f32 %v4678_v43, %v4677_v22 }
0x1912   :  { %v4680_v26 = vrot.slane %v4679_v23, 2 }
0x1914   :  { %v4681_v27 = vadd.f32 %v4680_v26, %v4679_v23 }
0x1916   :  { %v4682_v44 = vrot.slane %v4681_v27, 1 }
0x1918   :  { %v4683_v57 = vadd.f32 %v4682_v44, %v4681_v27 }
0x191a   :  { %v4684_v61 = vmul.f32 0.03125, %v4683_v57 }
0x191c   :  { %v4685_v41 = vsub.f32 %v4648_v58, %v4684_v61  ;;  %v4686_v42 = vsub.f32 %v15635_v4, %v4684_v61  ;;  %v4687_v16 = vsub.f32 %v4658_v20, %v4684_v61  ;;  %v4688_v21 = vsub.f32 %v15638_v10, %v4684_v61 }
0x191e   :  { %v4689_v5 = vmul.f32 %v4685_v41, %v4685_v41  ;;  %v4690_v6 = vmul.f32 %v4686_v42, %v4686_v42  ;;  %v4691_v47 = vmul.f32 %v4687_v16, %v4687_v16  ;;  %v4692_v49 = vmul.f32 %v4688_v21, %v4688_v21 }
0x1920   :  { %v4693_v53 = vsel %vm43_vm0, %v4689_v5, 0.0  ;;  %v4694_v7 = vsel %vm43_vm0, %v4690_v6, 0.0  ;;  %v4696_v9 = vsel %vm43_vm0, %v4691_v47, 0.0  ;;  %v4698_v45 = vsel %vm43_vm0, %v4692_v49, 0.0 }
0x1921   :  { %v4695_v28 = vadd.f32 %v4694_v7, %v4693_v53 }
0x1923   :  { %v4697_v29 = vadd.f32 %v4696_v9, %v4695_v28 }
0x1925   :  { %v4699_v0 = vadd.f32 %v4698_v45, %v4697_v29 }
0x1927   :  { %v4700_v30 = vrot.slane %v4699_v0, 4 }
0x1929   :  { %v4701_v31 = vadd.f32 %v4700_v30, %v4699_v0 }
0x192b   :  { %v4702_v32 = vrot.slane %v4701_v31, 2 }
0x192d   :  { %v4703_v33 = vadd.f32 %v4702_v32, %v4701_v31 }
0x192f   :  { %v4704_v34 = vrot.slane %v4703_v33, 1 }
0x1931   :  { %v4705_v35 = vadd.f32 %v4704_v34, %v4703_v33 }
0x1933   :  { %v4706_v36 = vmul.f32 0.03125, %v4705_v35  ;;  %v5215_v35 = vld [vmem:[#allocation2 + $0x160] sm:$0xff] }
0x1935   :  { %v4709_v37 = vadd.f32 1e-05, %v4706_v36  ;;  %v5216_v36 = vld [vmem:[#allocation2 + $0x168] sm:$0xff] }
0x1937   :  { %18467 = vrsqrt.f32 %v4709_v37  ;;  %v17055_v37 = vpack.c.bf16 %v5216_v36, %v5215_v35 }
0x1939   :  { %17056 = vmatprep.subr.bf16.mxu0 %v17055_v37 }
0x193a   :  { %17058 = vmatpush3.bf16.msra.mxu0 %v17055_v37 }
0x1941   :  { %v18468_v40 = vpop.eup %18467 }
0x1942   :  { %v4711_v46 = vmul.f32 %v18468_v40, %v13807_v38  ;;  %v5217_v38 = vld [vmem:[#allocation2 + $0x170] sm:$0xff]  ;;  %v5218_v40 = vld [vmem:[#allocation2 + $0x178] sm:$0xff] }
0x1944   :  { %v4714_v60 = vmul.f32 %v4711_v46, %v4684_v61  ;;  %v4720_v2 = vrot.slane %v4711_v46, %v18805_v52  ;;  %v17059_v46 = vpack.c.bf16 %v5218_v40, %v5217_v38 }
0x1946   :  { %v4715_v62 = vsub.f32 %v13808_v50, %v4714_v60  ;;  %v4724_v1 = vmul.f32 %v4720_v2, %v4658_v20  ;;  %v4722_v56 = vmul.f32 %v4720_v2, %v4648_v58  ;;  %v4723_v59 = vmul.f32 %v15635_v4, %v4720_v2  ;;  %17060 = vmatprep.subr.bf16.mxu0 %v17059_v46 }
0x1947   :  { %v4725_v54 = vmul.f32 %v15638_v10, %v4720_v2  ;;  %17062 = vmatpush3.bf16.msra.mxu0 %v17059_v46 }
0x1948   :  { %v4730_v12 = vrot.slane %v4715_v62, %v18805_v52 }
0x194a   :  { %v4734_v39 = vadd.f32 %v4730_v12, %v4724_v1  ;;  %v4732_v15 = vadd.f32 %v4730_v12, %v4722_v56  ;;  %v4733_v63 = vadd.f32 %v4730_v12, %v4723_v59  ;;  %v4735_v14 = vadd.f32 %v4730_v12, %v4725_v54 }
0x194c   :  { %vm4736_vm7 = vcmp.ge.f32.partialorder %v4732_v15, 0.0  ;;  %v4740_v22 = vmul.f32 0.2, %v4732_v15  ;;  %vm4737_vm8 = vcmp.ge.f32.partialorder %v4733_v63, 0.0  ;;  %v4741_v43 = vmul.f32 0.2, %v4733_v63 }
0x194d   :  { %vm4738_vm9 = vcmp.ge.f32.partialorder %v4734_v39, 0.0  ;;  %v4742_v23 = vmul.f32 0.2, %v4734_v39  ;;  %v4743_v20 = vmul.f32 0.2, %v4735_v14  ;;  %vm4739_vm10 = vcmp.ge.f32.partialorder %v4735_v14, 0.0 }
0x194e   :  { %v4744_v26 = vsel %vm4736_vm7, %v4732_v15, %v4740_v22  ;;  %v4745_v27 = vsel %vm4737_vm8, %v4733_v63, %v4741_v43 }
0x194f   :  { %15647 = vmatprep.mubr.msk.f32.mxu1 %vm43_vm0, %v4744_v26  ;;  %v4746_v4 = vsel %vm4738_vm9, %v4734_v39, %v4742_v23  ;;  %v4747_v58 = vsel %vm4739_vm10, %v4735_v14, %v4743_v20 }
0x1950   :  { %15648 = vmatmul.mubr.msk.f32.vlgmr.msra.gmra.mrb[36].mxu1 %vm43_vm0, %v4745_v27 }
0x1951   :  { %15650 = vmatprep.mubr.msk.f32.mxu1 %vm43_vm0, %v4746_v4 }
0x1954   :  { %15651 = vmatmul.mubr.msk.f32.gmra.mrb[38].mxu1 %vm43_vm0, %v4747_v58 }
0x1955   :  { %15661 = vmatprep.mubr.msk.f32.mxu1 %vm43_vm0, %v19215_v8 }
0x1a23   :  { %v15649_v10 = vpop.f32.mrb[36].mxu1 }
0x1a24   :  { %v4831_v44 = vpop.f32.mrb[37].mxu1 }
0x1a25   :  { %v18079_v57 = vpack.i.bf16 %v15649_v10, %v4831_v44  ;;  %v17039_v61 = vpack.c.bf16 %v15649_v10, %v4831_v44 }
0x1a27   :  { %18070 = vrot.lane.b32.xlu0 %v18079_v57, %s18642_s16  ;;  %v15652_v41 = vpop.f32.mrb[38].mxu1 }
0x1a28   :  { %v4841_v42 = vpop.f32.mrb[39].mxu1 }
0x1a29   :  { %v18084_v16 = vpack.i.bf16 %v15652_v41, %v4841_v42  ;;  %v17043_v21 = vpack.c.bf16 %v15652_v41, %v4841_v42 }
0x1a2b   :  { %18080 = vrot.lane.b32.xlu0 %v18079_v57, %s18643_s18  ;;  %18075 = vrot.lane.b32.xlu1 %v18084_v16, %s18642_s16 }
0x1a2f   :  { %18085 = vrot.lane.b32.xlu1 %v18084_v16, %s18643_s18 }
0x1a99   :  { %v18071_v5 = vpop.permute.xlu0 %18070 }
0x1a9a   :  { %v18073_v6 = vunpack.i.h.bf16 %v18071_v5  ;;  %v18072_v47 = vunpack.i.l.bf16 %v18071_v5 }
0x1a9c   :  { %v17031_v49 = vpack.c.bf16 %v18073_v6, %v18072_v47 }
0x1a9d   :  { %v18076_v53 = vpop.permute.xlu1 %18075  ;;  %v18081_v29 = vpop.permute.xlu0 %18080 }
0x1a9e   :  { %v18078_v7 = vunpack.i.h.bf16 %v18076_v53  ;;  %v18077_v28 = vunpack.i.l.bf16 %v18076_v53  ;;  %17032 = vmatprep.subr.bf16.mxu1 %v17031_v49  ;;  %v18083_v45 = vunpack.i.h.bf16 %v18081_v29  ;;  %v18082_v0 = vunpack.i.l.bf16 %v18081_v29 }
0x1a9f   :  { %17034 = vmatpush3.bf16.msra.mxu1 %v17031_v49 }
0x1aa0   :  { %v17035_v9 = vpack.c.bf16 %v18078_v7, %v18077_v28  ;;  %v17047_v31 = vpack.c.bf16 %v18083_v45, %v18082_v0 }
0x1aa1   :  { %v18086_v30 = vpop.permute.xlu1 %18085 }
0x1aa2   :  { %17036 = vmatprep.subr.bf16.mxu1 %v17035_v9  ;;  %v18088_v32 = vunpack.i.h.bf16 %v18086_v30  ;;  %v18087_v33 = vunpack.i.l.bf16 %v18086_v30 }
0x1aa3   :  { %17038 = vmatpush3.bf16.msra.mxu1 %v17035_v9 }
0x1aa4   :  { %17040 = vmatprep.subr.bf16.mxu1 %v17039_v61  ;;  %v17051_v34 = vpack.c.bf16 %v18088_v32, %v18087_v33 }
0x1aa6   :  { %15662 = vmatmul.mubr.msk.f32.vlgmr.msra.gmra.mrb[40].mxu1 %vm43_vm0, %v19226_v55 }
0x1aa7   :  { %17042 = vmatpush3.bf16.msra.mxu1 %v17039_v61  ;;  %15664 = vmatprep.mubr.msk.f32.mxu1 %vm43_vm0, %v19233_v11 }
0x1aa8   :  { %17044 = vmatprep.subr.bf16.mxu1 %v17043_v21 }
0x1aaa   :  { %15665 = vmatmul.mubr.msk.f32.gmra.mrb[42].mxu1 %vm43_vm0, %v19240_v17 }
0x1aab   :  { %17046 = vmatpush3.bf16.msra.mxu1 %v17043_v21  ;;  %15675 = vmatprep.mubr.msk.f32.mxu1 %vm43_vm0, %v19247_v18 }
0x1aac   :  { %17048 = vmatprep.subr.bf16.mxu1 %v17047_v31 }
0x1aae   :  { %15676 = vmatmul.mubr.msk.f32.vlgmr.msra.gmra.mrb[40].mxu1 %vm43_vm0, %v19254_v48 }
0x1aaf   :  { %17050 = vmatpush3.bf16.msra.mxu1 %v17047_v31  ;;  %15678 = vmatprep.mubr.msk.f32.mxu1 %vm43_vm0, %v19261_v51  ;;  %v13825_v31 = vld [vmem:[%s20562_s3 + $0xa] sm:$0x1] }
0x1ab0   :  { %17052 = vmatprep.subr.bf16.mxu1 %v17051_v34 }
0x1ab2   :  { %15679 = vmatmul.mubr.msk.f32.gmra.mrb[42].mxu1 %vm43_vm0, %v19268_v3 }
0x1ab3   :  { %17054 = vmatpush3.bf16.msra.mxu1 %v17051_v34  ;;  %15689 = vmatprep.mubr.msk.f32.mxu1 %vm43_vm0, %v19275_v19  ;;  %v13826_v34 = vld [vmem:[%s20563_s4 + $0xa] sm:$0x1] }
0x1ab6   :  { %15690 = vmatmul.mubr.msk.f32.vlgmr.msra.gmra.mrb[40].mxu1 %vm43_vm0, %v19282_v24 }
0x1ab7   :  { %15692 = vmatprep.mubr.msk.f32.mxu1 %vm43_vm0, %v19289_v25 }
0x1aba   :  { %15693 = vmatmul.mubr.msk.f32.gmra.mrb[42].mxu1 %vm43_vm0, %v19296_v13 }
0x1b89   :  { %v15691_v50 = vpop.f32.mrb[40].mxu1 }
0x1b8a   :  { %v5138_v60 = vsel %vm43_vm0, %v15691_v50, 0.0  ;;  %v5114_v2 = vpop.f32.mrb[41].mxu1 }
0x1b8b   :  { %v5137_v62 = vsel %vm43_vm0, %v5114_v2, 0.0 }
0x1b8c   :  { %v5139_v1 = vadd.f32 %v5138_v60, %v5137_v62 }
0x1b8d   :  { %v15694_v56 = vpop.f32.mrb[42].mxu1 }
0x1b8e   :  { %v5124_v59 = vpop.f32.mrb[43].mxu1  ;;  %v5142_v39 = vsel %vm43_vm0, %v15694_v56, 0.0 }
0x1b8f   :  { %v5140_v54 = vsel %vm43_vm0, %v5124_v59, 0.0 }
0x1b90   :  { %v5141_v12 = vadd.f32 %v5140_v54, %v5139_v1 }
0x1b92   :  { %v5143_v15 = vadd.f32 %v5142_v39, %v5141_v12 }
0x1b94   :  { %v5144_v63 = vrot.slane %v5143_v15, 4 }
0x1b96   :  { %v5145_v14 = vadd.f32 %v5144_v63, %v5143_v15 }
0x1b98   :  { %v5146_v22 = vrot.slane %v5145_v14, 2 }
0x1b9a   :  { %v5147_v43 = vadd.f32 %v5146_v22, %v5145_v14 }
0x1b9c   :  { %v5148_v23 = vrot.slane %v5147_v43, 1 }
0x1b9e   :  { %v5149_v26 = vadd.f32 %v5148_v23, %v5147_v43 }
0x1ba0   :  { %v5150_v27 = vmul.f32 0.03125, %v5149_v26 }
0x1ba2   :  { %v5151_v20 = vsub.f32 %v5114_v2, %v5150_v27  ;;  %v5152_v4 = vsub.f32 %v15691_v50, %v5150_v27  ;;  %v5153_v58 = vsub.f32 %v5124_v59, %v5150_v27  ;;  %v5154_v10 = vsub.f32 %v15694_v56, %v5150_v27 }
0x1ba4   :  { %v5155_v44 = vmul.f32 %v5151_v20, %v5151_v20  ;;  %v5156_v57 = vmul.f32 %v5152_v4, %v5152_v4  ;;  %v5157_v61 = vmul.f32 %v5153_v58, %v5153_v58  ;;  %v5158_v41 = vmul.f32 %v5154_v10, %v5154_v10 }
0x1ba6   :  { %v5159_v42 = vsel %vm43_vm0, %v5155_v44, 0.0  ;;  %v5160_v16 = vsel %vm43_vm0, %v5156_v57, 0.0  ;;  %v5162_v5 = vsel %vm43_vm0, %v5157_v61, 0.0  ;;  %v5164_v47 = vsel %vm43_vm0, %v5158_v41, 0.0 }
0x1ba7   :  { %v5161_v21 = vadd.f32 %v5160_v16, %v5159_v42 }
0x1ba9   :  { %v5163_v6 = vadd.f32 %v5162_v5, %v5161_v21 }
0x1bab   :  { %v5165_v49 = vadd.f32 %v5164_v47, %v5163_v6 }
0x1bad   :  { %v5166_v53 = vrot.slane %v5165_v49, 4 }
0x1baf   :  { %v5167_v7 = vadd.f32 %v5166_v53, %v5165_v49 }
0x1bb1   :  { %v5168_v28 = vrot.slane %v5167_v7, 2 }
0x1bb3   :  { %v5169_v9 = vadd.f32 %v5168_v28, %v5167_v7 }
0x1bb5   :  { %v5170_v29 = vrot.slane %v5169_v9, 1 }
0x1bb7   :  { %v5171_v45 = vadd.f32 %v5170_v29, %v5169_v9 }
0x1bb9   :  { %v5172_v0 = vmul.f32 0.03125, %v5171_v45 }
0x1bbb   :  { %v5175_v30 = vadd.f32 1e-05, %v5172_v0 }
0x1bbd   :  { %18469 = vrsqrt.f32 %v5175_v30 }
0x1bc7   :  { %v18470_v32 = vpop.eup %18469 }
0x1bc8   :  { %v5177_v33 = vmul.f32 %v18470_v32, %v13825_v31 }
0x1bca   :  { %v5180_v35 = vmul.f32 %v5177_v33, %v5150_v27  ;;  %v5186_v36 = vrot.slane %v5177_v33, %v18805_v52 }
0x1bcc   :  { %v5181_v37 = vsub.f32 %v13826_v34, %v5180_v35  ;;  %v5190_v38 = vmul.f32 %v5186_v36, %v5124_v59  ;;  %v5188_v40 = vmul.f32 %v5186_v36, %v5114_v2  ;;  %v5189_v46 = vmul.f32 %v15691_v50, %v5186_v36 }
0x1bcd   :  { %v5191_v60 = vmul.f32 %v15694_v56, %v5186_v36 }
0x1bce   :  { %v5196_v62 = vrot.slane %v5181_v37, %v18805_v52 }
0x1bd0   :  { %v5200_v1 = vadd.f32 %v5196_v62, %v5190_v38  ;;  %v5198_v54 = vadd.f32 %v5196_v62, %v5188_v40  ;;  %v5199_v12 = vadd.f32 %v5196_v62, %v5189_v46  ;;  %v5201_v39 = vadd.f32 %v5196_v62, %v5191_v60 }
0x1bd2   :  { %vm5202_vm11 = vcmp.ge.f32.partialorder %v5198_v54, 0.0  ;;  %v5206_v15 = vmul.f32 0.2, %v5198_v54  ;;  %vm5203_vm12 = vcmp.ge.f32.partialorder %v5199_v12, 0.0  ;;  %v5207_v63 = vmul.f32 0.2, %v5199_v12 }
0x1bd3   :  { %vm5204_vm13 = vcmp.ge.f32.partialorder %v5200_v1, 0.0  ;;  %v5208_v14 = vmul.f32 0.2, %v5200_v1  ;;  %v5209_v59 = vmul.f32 0.2, %v5201_v39  ;;  %vm5205_vm14 = vcmp.ge.f32.partialorder %v5201_v39, 0.0 }
0x1bd4   :  { %v5210_v22 = vsel %vm5202_vm11, %v5198_v54, %v5206_v15  ;;  %v5211_v43 = vsel %vm5203_vm12, %v5199_v12, %v5207_v63 }
0x1bd5   :  { %15703 = vmatprep.mubr.msk.f32.mxu0 %vm43_vm0, %v5210_v22  ;;  %v5212_v50 = vsel %vm5204_vm13, %v5200_v1, %v5208_v14  ;;  %v5213_v2 = vsel %vm5205_vm14, %v5201_v39, %v5209_v59 }
0x1bd6   :  { %15704 = vmatmul.mubr.msk.f32.vlgmr.msra.gmra.mrb[48].mxu0 %vm43_vm0, %v5211_v43 }
0x1bd7   :  { %15706 = vmatprep.mubr.msk.f32.mxu0 %vm43_vm0, %v5212_v50 }
0x1bda   :  { %15707 = vmatmul.mubr.msk.f32.gmra.mrb[50].mxu0 %vm43_vm0, %v5213_v2 }
0x1bdb   :  { %15717 = vmatprep.mubr.msk.f32.mxu0 %vm43_vm0, %v19215_v8 }
0x1ca9   :  { %v15705_v56 = vpop.f32.mrb[48].mxu0 }
0x1caa   :  { %v5297_v23 = vpop.f32.mrb[49].mxu0 }
0x1cab   :  { %v18099_v26 = vpack.i.bf16 %v15705_v56, %v5297_v23  ;;  %v17071_v27 = vpack.c.bf16 %v15705_v56, %v5297_v23 }
0x1cad   :  { %18090 = vrot.lane.b32.xlu0 %v18099_v26, %s18642_s16  ;;  %v15708_v20 = vpop.f32.mrb[50].mxu0 }
0x1cae   :  { %v5307_v4 = vpop.f32.mrb[51].mxu0 }
0x1caf   :  { %v18104_v58 = vpack.i.bf16 %v15708_v20, %v5307_v4  ;;  %v17075_v10 = vpack.c.bf16 %v15708_v20, %v5307_v4 }
0x1cb1   :  { %18100 = vrot.lane.b32.xlu0 %v18099_v26, %s18643_s18  ;;  %18095 = vrot.lane.b32.xlu1 %v18104_v58, %s18642_s16 }
0x1cb5   :  { %18105 = vrot.lane.b32.xlu1 %v18104_v58, %s18643_s18 }
0x1d1f   :  { %v18091_v44 = vpop.permute.xlu0 %18090 }
0x1d20   :  { %v18093_v57 = vunpack.i.h.bf16 %v18091_v44  ;;  %v18092_v61 = vunpack.i.l.bf16 %v18091_v44  ;;  %v13843_v44 = vld [vmem:[%s20562_s3 + $0xb] sm:$0x1] }
0x1d22   :  { %v17063_v8 = vpack.c.bf16 %v18093_v57, %v18092_v61 }
0x1d23   :  { %v18096_v41 = vpop.permute.xlu1 %18095  ;;  %v18101_v5 = vpop.permute.xlu0 %18100 }
0x1d24   :  { %v18098_v42 = vunpack.i.h.bf16 %v18096_v41  ;;  %v18097_v16 = vunpack.i.l.bf16 %v18096_v41  ;;  %17064 = vmatprep.subr.bf16.mxu0 %v17063_v8  ;;  %v18103_v6 = vunpack.i.h.bf16 %v18101_v5  ;;  %v18102_v47 = vunpack.i.l.bf16 %v18101_v5 }
0x1d25   :  { %17066 = vmatpush3.bf16.msra.mxu0 %v17063_v8  ;;  %v13844_v8 = vld [vmem:[%s20563_s4 + $0xb] sm:$0x1] }
0x1d26   :  { %v17067_v21 = vpack.c.bf16 %v18098_v42, %v18097_v16  ;;  %v17079_v53 = vpack.c.bf16 %v18103_v6, %v18102_v47 }
0x1d27   :  { %v18106_v49 = vpop.permute.xlu1 %18105 }
0x1d28   :  { %17068 = vmatprep.subr.bf16.mxu0 %v17067_v21  ;;  %v18108_v7 = vunpack.i.h.bf16 %v18106_v49  ;;  %v18107_v28 = vunpack.i.l.bf16 %v18106_v49 }
0x1d29   :  { %17070 = vmatpush3.bf16.msra.mxu0 %v17067_v21 }
0x1d2a   :  { %17072 = vmatprep.subr.bf16.mxu0 %v17071_v27  ;;  %v17083_v9 = vpack.c.bf16 %v18108_v7, %v18107_v28 }
0x1d2c   :  { %15718 = vmatmul.mubr.msk.f32.vlgmr.msra.gmra.mrb[52].mxu0 %vm43_vm0, %v19226_v55  ;;  %v5681_v55 = vld [vmem:[#allocation2 + $0x180] sm:$0xff] }
0x1d2d   :  { %17074 = vmatpush3.bf16.msra.mxu0 %v17071_v27  ;;  %15720 = vmatprep.mubr.msk.f32.mxu0 %vm43_vm0, %v19233_v11  ;;  %v5682_v11 = vld [vmem:[#allocation2 + $0x188] sm:$0xff] }
0x1d2e   :  { %17076 = vmatprep.subr.bf16.mxu0 %v17075_v10 }
0x1d30   :  { %15721 = vmatmul.mubr.msk.f32.gmra.mrb[54].mxu0 %vm43_vm0, %v19240_v17  ;;  %v17087_v17 = vpack.c.bf16 %v5682_v11, %v5681_v55 }
0x1d31   :  { %17078 = vmatpush3.bf16.msra.mxu0 %v17075_v10  ;;  %15731 = vmatprep.mubr.msk.f32.mxu0 %vm43_vm0, %v19247_v18  ;;  %v5683_v18 = vld [vmem:[#allocation2 + $0x190] sm:$0xff] }
0x1d32   :  { %17080 = vmatprep.subr.bf16.mxu0 %v17079_v53  ;;  %17088 = vmatprep.subr.bf16.mxu1 %v17087_v17 }
0x1d33   :  { %17090 = vmatpush3.bf16.msra.mxu1 %v17087_v17 }
0x1d34   :  { %15732 = vmatmul.mubr.msk.f32.vlgmr.msra.gmra.mrb[52].mxu0 %vm43_vm0, %v19254_v48  ;;  %v5684_v48 = vld [vmem:[#allocation2 + $0x198] sm:$0xff] }
0x1d35   :  { %17082 = vmatpush3.bf16.msra.mxu0 %v17079_v53  ;;  %15734 = vmatprep.mubr.msk.f32.mxu0 %vm43_vm0, %v19261_v51  ;;  %v17091_v51 = vpack.c.bf16 %v5684_v48, %v5683_v18 }
0x1d36   :  { %17084 = vmatprep.subr.bf16.mxu0 %v17083_v9 }
0x1d37   :  { %17092 = vmatprep.subr.bf16.mxu1 %v17091_v51 }
0x1d38   :  { %15735 = vmatmul.mubr.msk.f32.gmra.mrb[54].mxu0 %vm43_vm0, %v19268_v3  ;;  %17094 = vmatpush3.bf16.msra.mxu1 %v17091_v51 }
0x1d39   :  { %17086 = vmatpush3.bf16.msra.mxu0 %v17083_v9  ;;  %15745 = vmatprep.mubr.msk.f32.mxu0 %vm43_vm0, %v19275_v19 }
0x1d3c   :  { %15746 = vmatmul.mubr.msk.f32.vlgmr.msra.gmra.mrb[52].mxu0 %vm43_vm0, %v19282_v24 }
0x1d3d   :  { %15748 = vmatprep.mubr.msk.f32.mxu0 %vm43_vm0, %v19289_v25 }
0x1d40   :  { %15749 = vmatmul.mubr.msk.f32.gmra.mrb[54].mxu0 %vm43_vm0, %v19296_v13 }
0x1e0f   :  { %v15747_v3 = vpop.f32.mrb[52].mxu0 }
0x1e10   :  { %v5604_v19 = vsel %vm43_vm0, %v15747_v3, 0.0  ;;  %v5580_v24 = vpop.f32.mrb[53].mxu0 }
0x1e11   :  { %v5603_v29 = vsel %vm43_vm0, %v5580_v24, 0.0 }
0x1e12   :  { %v5605_v25 = vadd.f32 %v5604_v19, %v5603_v29 }
0x1e13   :  { %v15750_v45 = vpop.f32.mrb[54].mxu0 }
0x1e14   :  { %v5590_v0 = vpop.f32.mrb[55].mxu0  ;;  %v5608_v31 = vsel %vm43_vm0, %v15750_v45, 0.0 }
0x1e15   :  { %v5606_v13 = vsel %vm43_vm0, %v5590_v0, 0.0 }
0x1e16   :  { %v5607_v30 = vadd.f32 %v5606_v13, %v5605_v25 }
0x1e18   :  { %v5609_v32 = vadd.f32 %v5608_v31, %v5607_v30 }
0x1e1a   :  { %v5610_v33 = vrot.slane %v5609_v32, 4 }
0x1e1c   :  { %v5611_v34 = vadd.f32 %v5610_v33, %v5609_v32 }
0x1e1e   :  { %v5612_v35 = vrot.slane %v5611_v34, 2 }
0x1e20   :  { %v5613_v36 = vadd.f32 %v5612_v35, %v5611_v34 }
0x1e22   :  { %v5614_v37 = vrot.slane %v5613_v36, 1 }
0x1e24   :  { %v5615_v38 = vadd.f32 %v5614_v37, %v5613_v36 }
0x1e26   :  { %v5616_v40 = vmul.f32 0.03125, %v5615_v38 }
0x1e28   :  { %v5617_v46 = vsub.f32 %v5580_v24, %v5616_v40  ;;  %v5618_v60 = vsub.f32 %v15747_v3, %v5616_v40  ;;  %v5619_v62 = vsub.f32 %v5590_v0, %v5616_v40  ;;  %v5620_v1 = vsub.f32 %v15750_v45, %v5616_v40 }
0x1e2a   :  { %v5621_v54 = vmul.f32 %v5617_v46, %v5617_v46  ;;  %v5622_v12 = vmul.f32 %v5618_v60, %v5618_v60  ;;  %v5623_v39 = vmul.f32 %v5619_v62, %v5619_v62  ;;  %v5624_v15 = vmul.f32 %v5620_v1, %v5620_v1 }
0x1e2c   :  { %v5625_v63 = vsel %vm43_vm0, %v5621_v54, 0.0  ;;  %v5626_v14 = vsel %vm43_vm0, %v5622_v12, 0.0  ;;  %v5628_v43 = vsel %vm43_vm0, %v5623_v39, 0.0  ;;  %v5630_v50 = vsel %vm43_vm0, %v5624_v15, 0.0  ;;  %v19478_v54 = vld [vmem:[%s20560_s1 + $0x28] sm:$0xff]  ;;  %v19485_v39 = vld [vmem:[%s20560_s1 + $0x30] sm:$0xff] }
0x1e2d   :  { %v5627_v22 = vadd.f32 %v5626_v14, %v5625_v63 }
0x1e2f   :  { %v5629_v59 = vadd.f32 %v5628_v43, %v5627_v22  ;;  %v19492_v22 = vld [vmem:[%s20560_s1 + $0x38] sm:$0xff]  ;;  %v19499_v43 = vld [vmem:[%s20560_s1] sm:$0xff] }
0x1e31   :  { %v5631_v2 = vadd.f32 %v5630_v50, %v5629_v59  ;;  %v19506_v50 = vld [vmem:[%s20560_s1 + $0x8] sm:$0xff] }
0x1e33   :  { %v5632_v56 = vrot.slane %v5631_v2, 4 }
0x1e35   :  { %v5633_v23 = vadd.f32 %v5632_v56, %v5631_v2  ;;  %v19513_v2 = vld [vmem:[%s20560_s1 + $0x10] sm:$0xff]  ;;  %v19520_v56 = vld [vmem:[%s20560_s1 + $0x18] sm:$0xff] }
0x1e37   :  { %v5634_v26 = vrot.slane %v5633_v23, 2 }
0x1e39   :  { %v5635_v27 = vadd.f32 %v5634_v26, %v5633_v23  ;;  %v19527_v23 = vld [vmem:[%s20560_s1 + $0x40] sm:$0xff]  ;;  %v19534_v26 = vld [vmem:[%s20560_s1 + $0x48] sm:$0xff] }
0x1e3b   :  { %v5636_v20 = vrot.slane %v5635_v27, 1 }
0x1e3d   :  { %v5637_v4 = vadd.f32 %v5636_v20, %v5635_v27  ;;  %v19541_v27 = vld [vmem:[%s20560_s1 + $0x50] sm:$0xff]  ;;  %v19548_v20 = vld [vmem:[%s20560_s1 + $0x58] sm:$0xff] }
0x1e3f   :  { %v5638_v58 = vmul.f32 0.03125, %v5637_v4  ;;  %v6147_v4 = vld [vmem:[#allocation2 + $0x1a0] sm:$0xff] }
0x1e41   :  { %v5641_v10 = vadd.f32 1e-05, %v5638_v58  ;;  %v6148_v58 = vld [vmem:[#allocation2 + $0x1a8] sm:$0xff] }
0x1e43   :  { %18471 = vrsqrt.f32 %v5641_v10  ;;  %v17119_v10 = vpack.c.bf16 %v6148_v58, %v6147_v4 }
0x1e45   :  { %17120 = vmatprep.subr.bf16.mxu0 %v17119_v10 }
0x1e46   :  { %17122 = vmatpush3.bf16.msra.mxu0 %v17119_v10 }
0x1e4d   :  { %v18472_v57 = vpop.eup %18471 }
0x1e4e   :  { %v5643_v61 = vmul.f32 %v18472_v57, %v13843_v44  ;;  %v6149_v44 = vld [vmem:[#allocation2 + $0x1b0] sm:$0xff]  ;;  %v6150_v57 = vld [vmem:[#allocation2 + $0x1b8] sm:$0xff] }
0x1e50   :  { %v5646_v41 = vmul.f32 %v5643_v61, %v5616_v40  ;;  %v5652_v42 = vrot.slane %v5643_v61, %v18805_v52  ;;  %v17123_v61 = vpack.c.bf16 %v6150_v57, %v6149_v44 }
0x1e52   :  { %v5647_v16 = vsub.f32 %v13844_v8, %v5646_v41  ;;  %v5656_v21 = vmul.f32 %v5652_v42, %v5590_v0  ;;  %v5654_v5 = vmul.f32 %v5652_v42, %v5580_v24  ;;  %v5655_v6 = vmul.f32 %v15747_v3, %v5652_v42  ;;  %v19467_v24 = vld [vmem:[%s20560_s1 + $0x20] sm:$0xff]  ;;  %17124 = vmatprep.subr.bf16.mxu0 %v17123_v61 }
0x1e53   :  { %v5657_v47 = vmul.f32 %v15750_v45, %v5652_v42  ;;  %17126 = vmatpush3.bf16.msra.mxu0 %v17123_v61 }
0x1e54   :  { %v5662_v49 = vrot.slane %v5647_v16, %v18805_v52 }
0x1e56   :  { %v5666_v53 = vadd.f32 %v5662_v49, %v5656_v21  ;;  %v5664_v7 = vadd.f32 %v5662_v49, %v5654_v5  ;;  %v5665_v28 = vadd.f32 %v5662_v49, %v5655_v6  ;;  %v5667_v9 = vadd.f32 %v5662_v49, %v5657_v47 }
0x1e58   :  { %vm5668_vm15 = vcmp.ge.f32.partialorder %v5664_v7, 0.0  ;;  %v5672_v55 = vmul.f32 0.2, %v5664_v7  ;;  %vm5669_vm1 = vcmp.ge.f32.partialorder %v5665_v28, 0.0  ;;  %v5673_v11 = vmul.f32 0.2, %v5665_v28 }
0x1e59   :  { %vm5670_vm2 = vcmp.ge.f32.partialorder %v5666_v53, 0.0  ;;  %v5674_v17 = vmul.f32 0.2, %v5666_v53  ;;  %v5675_v51 = vmul.f32 0.2, %v5667_v9  ;;  %vm5671_vm3 = vcmp.ge.f32.partialorder %v5667_v9, 0.0 }
0x1e5a   :  { %v5676_v18 = vsel %vm5668_vm15, %v5664_v7, %v5672_v55  ;;  %v5677_v48 = vsel %vm5669_vm1, %v5665_v28, %v5673_v11 }
0x1e5b   :  { %15759 = vmatprep.mubr.msk.f32.mxu1 %vm43_vm0, %v5676_v18  ;;  %v5678_v3 = vsel %vm5670_vm2, %v5666_v53, %v5674_v17  ;;  %v5679_v19 = vsel %vm5671_vm3, %v5667_v9, %v5675_v51 }
0x1e5c   :  { %15760 = vmatmul.mubr.msk.f32.vlgmr.msra.gmra.mrb[44].mxu1 %vm43_vm0, %v5677_v48 }
0x1e5d   :  { %15762 = vmatprep.mubr.msk.f32.mxu1 %vm43_vm0, %v5678_v3 }
0x1e60   :  { %15763 = vmatmul.mubr.msk.f32.gmra.mrb[46].mxu1 %vm43_vm0, %v5679_v19 }
0x1e61   :  { %15773 = vmatprep.mubr.msk.f32.mxu1 %vm43_vm0, %v19467_v24 }
0x1f2f   :  { %v15761_v29 = vpop.f32.mrb[44].mxu1 }
0x1f30   :  { %v5763_v25 = vpop.f32.mrb[45].mxu1 }
0x1f31   :  { %v18119_v45 = vpack.i.bf16 %v15761_v29, %v5763_v25  ;;  %v17103_v0 = vpack.c.bf16 %v15761_v29, %v5763_v25 }
0x1f33   :  { %18110 = vrot.lane.b32.xlu0 %v18119_v45, %s18642_s16  ;;  %v15764_v13 = vpop.f32.mrb[46].mxu1 }
0x1f34   :  { %v5773_v30 = vpop.f32.mrb[47].mxu1 }
0x1f35   :  { %v18124_v31 = vpack.i.bf16 %v15764_v13, %v5773_v30  ;;  %v17107_v32 = vpack.c.bf16 %v15764_v13, %v5773_v30 }
0x1f37   :  { %18120 = vrot.lane.b32.xlu0 %v18119_v45, %s18643_s18  ;;  %18115 = vrot.lane.b32.xlu1 %v18124_v31, %s18642_s16 }
0x1f3b   :  { %18125 = vrot.lane.b32.xlu1 %v18124_v31, %s18643_s18 }
0x1fa5   :  { %v18111_v33 = vpop.permute.xlu0 %18110 }
0x1fa6   :  { %v18113_v34 = vunpack.i.h.bf16 %v18111_v33  ;;  %v18112_v35 = vunpack.i.l.bf16 %v18111_v33 }
0x1fa8   :  { %v17095_v36 = vpack.c.bf16 %v18113_v34, %v18112_v35 }
0x1fa9   :  { %v18116_v37 = vpop.permute.xlu1 %18115  ;;  %v18121_v60 = vpop.permute.xlu0 %18120 }
0x1faa   :  { %v18118_v38 = vunpack.i.h.bf16 %v18116_v37  ;;  %v18117_v40 = vunpack.i.l.bf16 %v18116_v37  ;;  %17096 = vmatprep.subr.bf16.mxu1 %v17095_v36  ;;  %v18123_v62 = vunpack.i.h.bf16 %v18121_v60  ;;  %v18122_v1 = vunpack.i.l.bf16 %v18121_v60 }
0x1fab   :  { %17098 = vmatpush3.bf16.msra.mxu1 %v17095_v36 }
0x1fac   :  { %v17099_v46 = vpack.c.bf16 %v18118_v38, %v18117_v40  ;;  %v17111_v15 = vpack.c.bf16 %v18123_v62, %v18122_v1 }
0x1fad   :  { %v18126_v12 = vpop.permute.xlu1 %18125 }
0x1fae   :  { %17100 = vmatprep.subr.bf16.mxu1 %v17099_v46  ;;  %v18128_v63 = vunpack.i.h.bf16 %v18126_v12  ;;  %v18127_v14 = vunpack.i.l.bf16 %v18126_v12 }
0x1faf   :  { %17102 = vmatpush3.bf16.msra.mxu1 %v17099_v46 }
0x1fb0   :  { %17104 = vmatprep.subr.bf16.mxu1 %v17103_v0  ;;  %v17115_v59 = vpack.c.bf16 %v18128_v63, %v18127_v14 }
0x1fb2   :  { %15774 = vmatmul.mubr.msk.f32.vlgmr.msra.gmra.mrb[48].mxu1 %vm43_vm0, %v19478_v54 }
0x1fb3   :  { %17106 = vmatpush3.bf16.msra.mxu1 %v17103_v0  ;;  %15776 = vmatprep.mubr.msk.f32.mxu1 %vm43_vm0, %v19485_v39 }
0x1fb4   :  { %17108 = vmatprep.subr.bf16.mxu1 %v17107_v32 }
0x1fb6   :  { %15777 = vmatmul.mubr.msk.f32.gmra.mrb[50].mxu1 %vm43_vm0, %v19492_v22 }
0x1fb7   :  { %17110 = vmatpush3.bf16.msra.mxu1 %v17107_v32  ;;  %15787 = vmatprep.mubr.msk.f32.mxu1 %vm43_vm0, %v19499_v43 }
0x1fb8   :  { %17112 = vmatprep.subr.bf16.mxu1 %v17111_v15 }
0x1fba   :  { %15788 = vmatmul.mubr.msk.f32.vlgmr.msra.gmra.mrb[48].mxu1 %vm43_vm0, %v19506_v50 }
0x1fbb   :  { %17114 = vmatpush3.bf16.msra.mxu1 %v17111_v15  ;;  %15790 = vmatprep.mubr.msk.f32.mxu1 %vm43_vm0, %v19513_v2  ;;  %v13861_v15 = vld [vmem:[%s20562_s3 + $0xc] sm:$0x1] }
0x1fbc   :  { %17116 = vmatprep.subr.bf16.mxu1 %v17115_v59 }
0x1fbe   :  { %15791 = vmatmul.mubr.msk.f32.gmra.mrb[50].mxu1 %vm43_vm0, %v19520_v56 }
0x1fbf   :  { %17118 = vmatpush3.bf16.msra.mxu1 %v17115_v59  ;;  %15801 = vmatprep.mubr.msk.f32.mxu1 %vm43_vm0, %v19527_v23  ;;  %v13862_v59 = vld [vmem:[%s20563_s4 + $0xc] sm:$0x1] }
0x1fc2   :  { %15802 = vmatmul.mubr.msk.f32.vlgmr.msra.gmra.mrb[48].mxu1 %vm43_vm0, %v19534_v26 }
0x1fc3   :  { %15804 = vmatprep.mubr.msk.f32.mxu1 %vm43_vm0, %v19541_v27 }
0x1fc6   :  { %15805 = vmatmul.mubr.msk.f32.gmra.mrb[50].mxu1 %vm43_vm0, %v19548_v20 }
0x2095   :  { %v15803_v8 = vpop.f32.mrb[48].mxu1 }
0x2096   :  { %v6070_v41 = vsel %vm43_vm0, %v15803_v8, 0.0  ;;  %v6046_v42 = vpop.f32.mrb[49].mxu1 }
0x2097   :  { %v6069_v16 = vsel %vm43_vm0, %v6046_v42, 0.0 }
0x2098   :  { %v6071_v21 = vadd.f32 %v6070_v41, %v6069_v16 }
0x2099   :  { %v15806_v5 = vpop.f32.mrb[50].mxu1 }
0x209a   :  { %v6056_v6 = vpop.f32.mrb[51].mxu1  ;;  %v6074_v53 = vsel %vm43_vm0, %v15806_v5, 0.0 }
0x209b   :  { %v6072_v47 = vsel %vm43_vm0, %v6056_v6, 0.0 }
0x209c   :  { %v6073_v49 = vadd.f32 %v6072_v47, %v6071_v21 }
0x209e   :  { %v6075_v7 = vadd.f32 %v6074_v53, %v6073_v49 }
0x20a0   :  { %v6076_v28 = vrot.slane %v6075_v7, 4 }
0x20a2   :  { %v6077_v9 = vadd.f32 %v6076_v28, %v6075_v7 }
0x20a4   :  { %v6078_v55 = vrot.slane %v6077_v9, 2 }
0x20a6   :  { %v6079_v11 = vadd.f32 %v6078_v55, %v6077_v9 }
0x20a8   :  { %v6080_v17 = vrot.slane %v6079_v11, 1 }
0x20aa   :  { %v6081_v18 = vadd.f32 %v6080_v17, %v6079_v11 }
0x20ac   :  { %v6082_v48 = vmul.f32 0.03125, %v6081_v18 }
0x20ae   :  { %v6083_v51 = vsub.f32 %v6046_v42, %v6082_v48  ;;  %v6084_v3 = vsub.f32 %v15803_v8, %v6082_v48  ;;  %v6085_v19 = vsub.f32 %v6056_v6, %v6082_v48  ;;  %v6086_v29 = vsub.f32 %v15806_v5, %v6082_v48 }
0x20b0   :  { %v6087_v25 = vmul.f32 %v6083_v51, %v6083_v51  ;;  %v6088_v45 = vmul.f32 %v6084_v3, %v6084_v3  ;;  %v6089_v0 = vmul.f32 %v6085_v19, %v6085_v19  ;;  %v6090_v13 = vmul.f32 %v6086_v29, %v6086_v29 }
0x20b2   :  { %v6091_v30 = vsel %vm43_vm0, %v6087_v25, 0.0  ;;  %v6092_v31 = vsel %vm43_vm0, %v6088_v45, 0.0  ;;  %v6094_v33 = vsel %vm43_vm0, %v6089_v0, 0.0  ;;  %v6096_v35 = vsel %vm43_vm0, %v6090_v13, 0.0 }
0x20b3   :  { %v6093_v32 = vadd.f32 %v6092_v31, %v6091_v30 }
0x20b5   :  { %v6095_v34 = vadd.f32 %v6094_v33, %v6093_v32 }
0x20b7   :  { %v6097_v36 = vadd.f32 %v6096_v35, %v6095_v34 }
0x20b9   :  { %v6098_v37 = vrot.slane %v6097_v36, 4 }
0x20bb   :  { %v6099_v38 = vadd.f32 %v6098_v37, %v6097_v36 }
0x20bd   :  { %v6100_v40 = vrot.slane %v6099_v38, 2 }
0x20bf   :  { %v6101_v46 = vadd.f32 %v6100_v40, %v6099_v38 }
0x20c1   :  { %v6102_v60 = vrot.slane %v6101_v46, 1 }
0x20c3   :  { %v6103_v62 = vadd.f32 %v6102_v60, %v6101_v46 }
0x20c5   :  { %v6104_v1 = vmul.f32 0.03125, %v6103_v62  ;;  %v6613_v62 = vld [vmem:[#allocation2 + $0x1c0] sm:$0xff] }
0x20c7   :  { %v6107_v12 = vadd.f32 1e-05, %v6104_v1  ;;  %v6614_v1 = vld [vmem:[#allocation2 + $0x1c8] sm:$0xff] }
0x20c9   :  { %18473 = vrsqrt.f32 %v6107_v12  ;;  %v17151_v12 = vpack.c.bf16 %v6614_v1, %v6613_v62 }
0x20cb   :  { %17152 = vmatprep.subr.bf16.mxu1 %v17151_v12 }
0x20cc   :  { %17154 = vmatpush3.bf16.msra.mxu1 %v17151_v12 }
0x20d3   :  { %v18474_v63 = vpop.eup %18473 }
0x20d4   :  { %v6109_v14 = vmul.f32 %v18474_v63, %v13861_v15  ;;  %v6615_v15 = vld [vmem:[#allocation2 + $0x1d0] sm:$0xff]  ;;  %v6616_v63 = vld [vmem:[#allocation2 + $0x1d8] sm:$0xff] }
0x20d6   :  { %v6112_v4 = vmul.f32 %v6109_v14, %v6082_v48  ;;  %v6118_v58 = vrot.slane %v6109_v14, %v18805_v52  ;;  %v17155_v14 = vpack.c.bf16 %v6616_v63, %v6615_v15 }
0x20d8   :  { %v6113_v10 = vsub.f32 %v13862_v59, %v6112_v4  ;;  %v6122_v44 = vmul.f32 %v6118_v58, %v6056_v6  ;;  %v6120_v57 = vmul.f32 %v6118_v58, %v6046_v42  ;;  %v6121_v61 = vmul.f32 %v15803_v8, %v6118_v58  ;;  %17156 = vmatprep.subr.bf16.mxu1 %v17155_v14 }
0x20d9   :  { %v6123_v41 = vmul.f32 %v15806_v5, %v6118_v58  ;;  %17158 = vmatpush3.bf16.msra.mxu1 %v17155_v14 }
0x20da   :  { %v6128_v16 = vrot.slane %v6113_v10, %v18805_v52 }
0x20dc   :  { %v6132_v21 = vadd.f32 %v6128_v16, %v6122_v44  ;;  %v6130_v47 = vadd.f32 %v6128_v16, %v6120_v57  ;;  %v6131_v49 = vadd.f32 %v6128_v16, %v6121_v61  ;;  %v6133_v53 = vadd.f32 %v6128_v16, %v6123_v41 }
0x20de   :  { %vm6134_vm4 = vcmp.ge.f32.partialorder %v6130_v47, 0.0  ;;  %v6138_v7 = vmul.f32 0.2, %v6130_v47  ;;  %vm6135_vm5 = vcmp.ge.f32.partialorder %v6131_v49, 0.0  ;;  %v6139_v28 = vmul.f32 0.2, %v6131_v49 }
0x20df   :  { %vm6136_vm6 = vcmp.ge.f32.partialorder %v6132_v21, 0.0  ;;  %v6140_v9 = vmul.f32 0.2, %v6132_v21  ;;  %v6141_v6 = vmul.f32 0.2, %v6133_v53  ;;  %vm6137_vm7 = vcmp.ge.f32.partialorder %v6133_v53, 0.0 }
0x20e0   :  { %v6142_v55 = vsel %vm6134_vm4, %v6130_v47, %v6138_v7  ;;  %v6143_v11 = vsel %vm6135_vm5, %v6131_v49, %v6139_v28 }
0x20e1   :  { %15815 = vmatprep.mubr.msk.f32.mxu0 %vm43_vm0, %v6142_v55  ;;  %v6144_v8 = vsel %vm6136_vm6, %v6132_v21, %v6140_v9  ;;  %v6145_v42 = vsel %vm6137_vm7, %v6133_v53, %v6141_v6 }
0x20e2   :  { %15816 = vmatmul.mubr.msk.f32.vlgmr.msra.gmra.mrb[56].mxu0 %vm43_vm0, %v6143_v11 }
0x20e3   :  { %15818 = vmatprep.mubr.msk.f32.mxu0 %vm43_vm0, %v6144_v8 }
0x20e6   :  { %15819 = vmatmul.mubr.msk.f32.gmra.mrb[58].mxu0 %vm43_vm0, %v6145_v42 }
0x20e7   :  { %15829 = vmatprep.mubr.msk.f32.mxu0 %vm43_vm0, %v19467_v24 }
0x21b5   :  { %v15817_v5 = vpop.f32.mrb[56].mxu0 }
0x21b6   :  { %v6229_v17 = vpop.f32.mrb[57].mxu0 }
0x21b7   :  { %v18139_v18 = vpack.i.bf16 %v15817_v5, %v6229_v17  ;;  %v17135_v48 = vpack.c.bf16 %v15817_v5, %v6229_v17 }
0x21b9   :  { %18130 = vrot.lane.b32.xlu0 %v18139_v18, %s18642_s16  ;;  %v15820_v51 = vpop.f32.mrb[58].mxu0 }
0x21ba   :  { %v6239_v3 = vpop.f32.mrb[59].mxu0 }
0x21bb   :  { %v18144_v19 = vpack.i.bf16 %v15820_v51, %v6239_v3  ;;  %v17139_v29 = vpack.c.bf16 %v15820_v51, %v6239_v3 }
0x21bd   :  { %18140 = vrot.lane.b32.xlu0 %v18139_v18, %s18643_s18  ;;  %18135 = vrot.lane.b32.xlu1 %v18144_v19, %s18642_s16 }
0x21c1   :  { %18145 = vrot.lane.b32.xlu1 %v18144_v19, %s18643_s18 }
0x222b   :  { %v18131_v25 = vpop.permute.xlu0 %18130 }
0x222c   :  { %v18133_v45 = vunpack.i.h.bf16 %v18131_v25  ;;  %v18132_v0 = vunpack.i.l.bf16 %v18131_v25 }
0x222e   :  { %v17127_v13 = vpack.c.bf16 %v18133_v45, %v18132_v0 }
0x222f   :  { %v18136_v30 = vpop.permute.xlu1 %18135  ;;  %v18141_v34 = vpop.permute.xlu0 %18140 }
0x2230   :  { %v18138_v31 = vunpack.i.h.bf16 %v18136_v30  ;;  %v18137_v32 = vunpack.i.l.bf16 %v18136_v30  ;;  %17128 = vmatprep.subr.bf16.mxu0 %v17127_v13  ;;  %v18143_v35 = vunpack.i.h.bf16 %v18141_v34  ;;  %v18142_v36 = vunpack.i.l.bf16 %v18141_v34 }
0x2231   :  { %17130 = vmatpush3.bf16.msra.mxu0 %v17127_v13 }
0x2232   :  { %v17131_v33 = vpack.c.bf16 %v18138_v31, %v18137_v32  ;;  %v17143_v38 = vpack.c.bf16 %v18143_v35, %v18142_v36 }
0x2233   :  { %v18146_v37 = vpop.permute.xlu1 %18145 }
0x2234   :  { %17132 = vmatprep.subr.bf16.mxu0 %v17131_v33  ;;  %v18148_v40 = vunpack.i.h.bf16 %v18146_v37  ;;  %v18147_v46 = vunpack.i.l.bf16 %v18146_v37 }
0x2235   :  { %17134 = vmatpush3.bf16.msra.mxu0 %v17131_v33 }
0x2236   :  { %17136 = vmatprep.subr.bf16.mxu0 %v17135_v48  ;;  %v17147_v60 = vpack.c.bf16 %v18148_v40, %v18147_v46 }
0x2238   :  { %15830 = vmatmul.mubr.msk.f32.vlgmr.msra.gmra.mrb[60].mxu0 %vm43_vm0, %v19478_v54 }
0x2239   :  { %17138 = vmatpush3.bf16.msra.mxu0 %v17135_v48  ;;  %15832 = vmatprep.mubr.msk.f32.mxu0 %vm43_vm0, %v19485_v39 }
0x223a   :  { %17140 = vmatprep.subr.bf16.mxu0 %v17139_v29 }
0x223c   :  { %15833 = vmatmul.mubr.msk.f32.gmra.mrb[62].mxu0 %vm43_vm0, %v19492_v22 }
0x223d   :  { %17142 = vmatpush3.bf16.msra.mxu0 %v17139_v29  ;;  %15843 = vmatprep.mubr.msk.f32.mxu0 %vm43_vm0, %v19499_v43 }
0x223e   :  { %17144 = vmatprep.subr.bf16.mxu0 %v17143_v38 }
0x2240   :  { %15844 = vmatmul.mubr.msk.f32.vlgmr.msra.gmra.mrb[60].mxu0 %vm43_vm0, %v19506_v50 }
0x2241   :  { %17146 = vmatpush3.bf16.msra.mxu0 %v17143_v38  ;;  %15846 = vmatprep.mubr.msk.f32.mxu0 %vm43_vm0, %v19513_v2  ;;  %v13879_v38 = vld [vmem:[%s20562_s3 + $0xd] sm:$0x1] }
0x2242   :  { %17148 = vmatprep.subr.bf16.mxu0 %v17147_v60 }
0x2244   :  { %15847 = vmatmul.mubr.msk.f32.gmra.mrb[62].mxu0 %vm43_vm0, %v19520_v56 }
0x2245   :  { %17150 = vmatpush3.bf16.msra.mxu0 %v17147_v60  ;;  %15857 = vmatprep.mubr.msk.f32.mxu0 %vm43_vm0, %v19527_v23  ;;  %v13880_v60 = vld [vmem:[%s20563_s4 + $0xd] sm:$0x1] }
0x2248   :  { %15858 = vmatmul.mubr.msk.f32.vlgmr.msra.gmra.mrb[60].mxu0 %vm43_vm0, %v19534_v26 }
0x2249   :  { %15860 = vmatprep.mubr.msk.f32.mxu0 %vm43_vm0, %v19541_v27 }
0x224c   :  { %15861 = vmatmul.mubr.msk.f32.gmra.mrb[62].mxu0 %vm43_vm0, %v19548_v20 }
0x231b   :  { %v15859_v59 = vpop.f32.mrb[60].mxu0 }
0x231c   :  { %v6536_v4 = vsel %vm43_vm0, %v15859_v59, 0.0  ;;  %v6512_v58 = vpop.f32.mrb[61].mxu0 }
0x231d   :  { %v6535_v10 = vsel %vm43_vm0, %v6512_v58, 0.0 }
0x231e   :  { %v6537_v44 = vadd.f32 %v6536_v4, %v6535_v10 }
0x231f   :  { %v15862_v57 = vpop.f32.mrb[62].mxu0 }
0x2320   :  { %v6522_v61 = vpop.f32.mrb[63].mxu0  ;;  %v6540_v21 = vsel %vm43_vm0, %v15862_v57, 0.0 }
0x2321   :  { %v6538_v41 = vsel %vm43_vm0, %v6522_v61, 0.0 }
0x2322   :  { %v6539_v16 = vadd.f32 %v6538_v41, %v6537_v44 }
0x2324   :  { %v6541_v47 = vadd.f32 %v6540_v21, %v6539_v16 }
0x2326   :  { %v6542_v49 = vrot.slane %v6541_v47, 4 }
0x2328   :  { %v6543_v53 = vadd.f32 %v6542_v49, %v6541_v47 }
0x232a   :  { %v6544_v7 = vrot.slane %v6543_v53, 2 }
0x232c   :  { %v6545_v28 = vadd.f32 %v6544_v7, %v6543_v53 }
0x232e   :  { %v6546_v9 = vrot.slane %v6545_v28, 1 }
0x2330   :  { %v6547_v55 = vadd.f32 %v6546_v9, %v6545_v28 }
0x2332   :  { %v6548_v11 = vmul.f32 0.03125, %v6547_v55 }
0x2334   :  { %v6549_v6 = vsub.f32 %v6512_v58, %v6548_v11  ;;  %v6550_v8 = vsub.f32 %v15859_v59, %v6548_v11  ;;  %v6551_v42 = vsub.f32 %v6522_v61, %v6548_v11  ;;  %v6552_v5 = vsub.f32 %v15862_v57, %v6548_v11 }
0x2336   :  { %v6553_v17 = vmul.f32 %v6549_v6, %v6549_v6  ;;  %v6554_v18 = vmul.f32 %v6550_v8, %v6550_v8  ;;  %v6555_v48 = vmul.f32 %v6551_v42, %v6551_v42  ;;  %v6556_v51 = vmul.f32 %v6552_v5, %v6552_v5 }
0x2338   :  { %v6557_v3 = vsel %vm43_vm0, %v6553_v17, 0.0  ;;  %v6558_v19 = vsel %vm43_vm0, %v6554_v18, 0.0  ;;  %v6560_v25 = vsel %vm43_vm0, %v6555_v48, 0.0  ;;  %v6562_v0 = vsel %vm43_vm0, %v6556_v51, 0.0 }
0x2339   :  { %v6559_v29 = vadd.f32 %v6558_v19, %v6557_v3 }
0x233b   :  { %v6561_v45 = vadd.f32 %v6560_v25, %v6559_v29 }
0x233d   :  { %v6563_v13 = vadd.f32 %v6562_v0, %v6561_v45 }
0x233f   :  { %v6564_v30 = vrot.slane %v6563_v13, 4 }
0x2341   :  { %v6565_v31 = vadd.f32 %v6564_v30, %v6563_v13 }
0x2343   :  { %v6566_v32 = vrot.slane %v6565_v31, 2 }
0x2345   :  { %v6567_v33 = vadd.f32 %v6566_v32, %v6565_v31 }
0x2347   :  { %v6568_v34 = vrot.slane %v6567_v33, 1 }
0x2349   :  { %v6569_v35 = vadd.f32 %v6568_v34, %v6567_v33 }
0x234b   :  { %v6570_v36 = vmul.f32 0.03125, %v6569_v35  ;;  %v7079_v35 = vld [vmem:[#allocation2 + $0x1e0] sm:$0xff] }
0x234d   :  { %v6573_v37 = vadd.f32 1e-05, %v6570_v36  ;;  %v7080_v36 = vld [vmem:[#allocation2 + $0x1e8] sm:$0xff] }
0x234f   :  { %18475 = vrsqrt.f32 %v6573_v37  ;;  %v17183_v37 = vpack.c.bf16 %v7080_v36, %v7079_v35 }
0x2351   :  { %17184 = vmatprep.subr.bf16.mxu0 %v17183_v37 }
0x2352   :  { %17186 = vmatpush3.bf16.msra.mxu0 %v17183_v37 }
0x2359   :  { %v18476_v40 = vpop.eup %18475 }
0x235a   :  { %v6575_v46 = vmul.f32 %v18476_v40, %v13879_v38  ;;  %v7081_v38 = vld [vmem:[#allocation2 + $0x1f0] sm:$0xff]  ;;  %v7082_v40 = vld [vmem:[#allocation2 + $0x1f8] sm:$0xff] }
0x235c   :  { %v6578_v62 = vmul.f32 %v6575_v46, %v6548_v11  ;;  %v6584_v1 = vrot.slane %v6575_v46, %v18805_v52  ;;  %v17187_v46 = vpack.c.bf16 %v7082_v40, %v7081_v38 }
0x235e   :  { %v6579_v12 = vsub.f32 %v13880_v60, %v6578_v62  ;;  %v6588_v15 = vmul.f32 %v6584_v1, %v6522_v61  ;;  %v6586_v63 = vmul.f32 %v6584_v1, %v6512_v58  ;;  %v6587_v14 = vmul.f32 %v15859_v59, %v6584_v1  ;;  %17188 = vmatprep.subr.bf16.mxu0 %v17187_v46 }
0x235f   :  { %v6589_v4 = vmul.f32 %v15862_v57, %v6584_v1  ;;  %17190 = vmatpush3.bf16.msra.mxu0 %v17187_v46 }
0x2360   :  { %v6594_v10 = vrot.slane %v6579_v12, %v18805_v52 }
0x2362   :  { %v6598_v44 = vadd.f32 %v6594_v10, %v6588_v15  ;;  %v6596_v41 = vadd.f32 %v6594_v10, %v6586_v63  ;;  %v6597_v16 = vadd.f32 %v6594_v10, %v6587_v14  ;;  %v6599_v21 = vadd.f32 %v6594_v10, %v6589_v4 }
0x2364   :  { %vm6600_vm8 = vcmp.ge.f32.partialorder %v6596_v41, 0.0  ;;  %v6604_v47 = vmul.f32 0.2, %v6596_v41  ;;  %vm6601_vm9 = vcmp.ge.f32.partialorder %v6597_v16, 0.0  ;;  %v6605_v49 = vmul.f32 0.2, %v6597_v16 }
0x2365   :  { %vm6602_vm10 = vcmp.ge.f32.partialorder %v6598_v44, 0.0  ;;  %v6606_v53 = vmul.f32 0.2, %v6598_v44  ;;  %v6607_v61 = vmul.f32 0.2, %v6599_v21  ;;  %vm6603_vm11 = vcmp.ge.f32.partialorder %v6599_v21, 0.0 }
0x2366   :  { %v6608_v7 = vsel %vm6600_vm8, %v6596_v41, %v6604_v47  ;;  %v6609_v28 = vsel %vm6601_vm9, %v6597_v16, %v6605_v49 }
0x2367   :  { %15871 = vmatprep.mubr.msk.f32.mxu1 %vm43_vm0, %v6608_v7  ;;  %v6610_v59 = vsel %vm6602_vm10, %v6598_v44, %v6606_v53  ;;  %v6611_v58 = vsel %vm6603_vm11, %v6599_v21, %v6607_v61 }
0x2368   :  { %15872 = vmatmul.mubr.msk.f32.vlgmr.msra.gmra.mrb[52].mxu1 %vm43_vm0, %v6609_v28 }
0x2369   :  { %15874 = vmatprep.mubr.msk.f32.mxu1 %vm43_vm0, %v6610_v59 }
0x236c   :  { %15875 = vmatmul.mubr.msk.f32.gmra.mrb[54].mxu1 %vm43_vm0, %v6611_v58 }
0x236d   :  { %15885 = vmatprep.mubr.msk.f32.mxu1 %vm43_vm0, %v19467_v24 }
0x243b   :  { %v15873_v57 = vpop.f32.mrb[52].mxu1 }
0x243c   :  { %v6695_v9 = vpop.f32.mrb[53].mxu1 }
0x243d   :  { %v18159_v55 = vpack.i.bf16 %v15873_v57, %v6695_v9  ;;  %v17167_v11 = vpack.c.bf16 %v15873_v57, %v6695_v9 }
0x243f   :  { %18150 = vrot.lane.b32.xlu0 %v18159_v55, %s18642_s16  ;;  %v15876_v6 = vpop.f32.mrb[54].mxu1 }
0x2440   :  { %v6705_v8 = vpop.f32.mrb[55].mxu1 }
0x2441   :  { %v18164_v42 = vpack.i.bf16 %v15876_v6, %v6705_v8  ;;  %v17171_v5 = vpack.c.bf16 %v15876_v6, %v6705_v8 }
0x2443   :  { %18160 = vrot.lane.b32.xlu0 %v18159_v55, %s18643_s18  ;;  %18155 = vrot.lane.b32.xlu1 %v18164_v42, %s18642_s16 }
0x2447   :  { %18165 = vrot.lane.b32.xlu1 %v18164_v42, %s18643_s18 }
0x24b1   :  { %v18151_v17 = vpop.permute.xlu0 %18150 }
0x24b2   :  { %v18153_v18 = vunpack.i.h.bf16 %v18151_v17  ;;  %v18152_v48 = vunpack.i.l.bf16 %v18151_v17 }
0x24b4   :  { %v17159_v51 = vpack.c.bf16 %v18153_v18, %v18152_v48 }
0x24b5   :  { %v18156_v3 = vpop.permute.xlu1 %18155  ;;  %v18161_v45 = vpop.permute.xlu0 %18160 }
0x24b6   :  { %v18158_v19 = vunpack.i.h.bf16 %v18156_v3  ;;  %v18157_v29 = vunpack.i.l.bf16 %v18156_v3  ;;  %17160 = vmatprep.subr.bf16.mxu1 %v17159_v51  ;;  %v18163_v0 = vunpack.i.h.bf16 %v18161_v45  ;;  %v18162_v13 = vunpack.i.l.bf16 %v18161_v45 }
0x24b7   :  { %17162 = vmatpush3.bf16.msra.mxu1 %v17159_v51 }
0x24b8   :  { %v17163_v25 = vpack.c.bf16 %v18158_v19, %v18157_v29  ;;  %v17175_v31 = vpack.c.bf16 %v18163_v0, %v18162_v13 }
0x24b9   :  { %v18166_v30 = vpop.permute.xlu1 %18165 }
0x24ba   :  { %17164 = vmatprep.subr.bf16.mxu1 %v17163_v25  ;;  %v18168_v32 = vunpack.i.h.bf16 %v18166_v30  ;;  %v18167_v33 = vunpack.i.l.bf16 %v18166_v30 }
0x24bb   :  { %17166 = vmatpush3.bf16.msra.mxu1 %v17163_v25 }
0x24bc   :  { %17168 = vmatprep.subr.bf16.mxu1 %v17167_v11  ;;  %v17179_v34 = vpack.c.bf16 %v18168_v32, %v18167_v33 }
0x24be   :  { %15886 = vmatmul.mubr.msk.f32.vlgmr.msra.gmra.mrb[56].mxu1 %vm43_vm0, %v19478_v54 }
0x24bf   :  { %17170 = vmatpush3.bf16.msra.mxu1 %v17167_v11  ;;  %15888 = vmatprep.mubr.msk.f32.mxu1 %vm43_vm0, %v19485_v39 }
0x24c0   :  { %17172 = vmatprep.subr.bf16.mxu1 %v17171_v5 }
0x24c2   :  { %15889 = vmatmul.mubr.msk.f32.gmra.mrb[58].mxu1 %vm43_vm0, %v19492_v22 }
0x24c3   :  { %17174 = vmatpush3.bf16.msra.mxu1 %v17171_v5  ;;  %15899 = vmatprep.mubr.msk.f32.mxu1 %vm43_vm0, %v19499_v43 }
0x24c4   :  { %17176 = vmatprep.subr.bf16.mxu1 %v17175_v31 }
0x24c6   :  { %15900 = vmatmul.mubr.msk.f32.vlgmr.msra.gmra.mrb[56].mxu1 %vm43_vm0, %v19506_v50 }
0x24c7   :  { %17178 = vmatpush3.bf16.msra.mxu1 %v17175_v31  ;;  %15902 = vmatprep.mubr.msk.f32.mxu1 %vm43_vm0, %v19513_v2  ;;  %v13897_v31 = vld [vmem:[%s20562_s3 + $0xe] sm:$0x1] }
0x24c8   :  { %17180 = vmatprep.subr.bf16.mxu1 %v17179_v34 }
0x24ca   :  { %15903 = vmatmul.mubr.msk.f32.gmra.mrb[58].mxu1 %vm43_vm0, %v19520_v56 }
0x24cb   :  { %17182 = vmatpush3.bf16.msra.mxu1 %v17179_v34  ;;  %15913 = vmatprep.mubr.msk.f32.mxu1 %vm43_vm0, %v19527_v23  ;;  %v13898_v34 = vld [vmem:[%s20563_s4 + $0xe] sm:$0x1] }
0x24ce   :  { %15914 = vmatmul.mubr.msk.f32.vlgmr.msra.gmra.mrb[56].mxu1 %vm43_vm0, %v19534_v26 }
0x24cf   :  { %15916 = vmatprep.mubr.msk.f32.mxu1 %vm43_vm0, %v19541_v27 }
0x24d2   :  { %15917 = vmatmul.mubr.msk.f32.gmra.mrb[58].mxu1 %vm43_vm0, %v19548_v20 }
0x25a1   :  { %v15915_v60 = vpop.f32.mrb[56].mxu1 }
0x25a2   :  { %v7002_v62 = vsel %vm43_vm0, %v15915_v60, 0.0  ;;  %v6978_v1 = vpop.f32.mrb[57].mxu1 }
0x25a3   :  { %v7001_v12 = vsel %vm43_vm0, %v6978_v1, 0.0 }
0x25a4   :  { %v7003_v15 = vadd.f32 %v7002_v62, %v7001_v12 }
0x25a5   :  { %v15918_v63 = vpop.f32.mrb[58].mxu1 }
0x25a6   :  { %v6988_v14 = vpop.f32.mrb[59].mxu1  ;;  %v7006_v44 = vsel %vm43_vm0, %v15918_v63, 0.0 }
0x25a7   :  { %v7004_v4 = vsel %vm43_vm0, %v6988_v14, 0.0 }
0x25a8   :  { %v7005_v10 = vadd.f32 %v7004_v4, %v7003_v15 }
0x25aa   :  { %v7007_v41 = vadd.f32 %v7006_v44, %v7005_v10 }
0x25ac   :  { %v7008_v16 = vrot.slane %v7007_v41, 4 }
0x25ae   :  { %v7009_v21 = vadd.f32 %v7008_v16, %v7007_v41 }
0x25b0   :  { %v7010_v47 = vrot.slane %v7009_v21, 2 }
0x25b2   :  { %v7011_v49 = vadd.f32 %v7010_v47, %v7009_v21 }
0x25b4   :  { %v7012_v53 = vrot.slane %v7011_v49, 1 }
0x25b6   :  { %v7013_v7 = vadd.f32 %v7012_v53, %v7011_v49 }
0x25b8   :  { %v7014_v28 = vmul.f32 0.03125, %v7013_v7 }
0x25ba   :  { %v7015_v61 = vsub.f32 %v6978_v1, %v7014_v28  ;;  %v7016_v59 = vsub.f32 %v15915_v60, %v7014_v28  ;;  %v7017_v58 = vsub.f32 %v6988_v14, %v7014_v28  ;;  %v7018_v57 = vsub.f32 %v15918_v63, %v7014_v28 }
0x25bc   :  { %v7019_v9 = vmul.f32 %v7015_v61, %v7015_v61  ;;  %v7020_v55 = vmul.f32 %v7016_v59, %v7016_v59  ;;  %v7021_v11 = vmul.f32 %v7017_v58, %v7017_v58  ;;  %v7022_v6 = vmul.f32 %v7018_v57, %v7018_v57 }
0x25be   :  { %v7023_v8 = vsel %vm43_vm0, %v7019_v9, 0.0  ;;  %v7024_v42 = vsel %vm43_vm0, %v7020_v55, 0.0  ;;  %v7026_v17 = vsel %vm43_vm0, %v7021_v11, 0.0  ;;  %v7028_v48 = vsel %vm43_vm0, %v7022_v6, 0.0 }
0x25bf   :  { %v7025_v5 = vadd.f32 %v7024_v42, %v7023_v8 }
0x25c1   :  { %v7027_v18 = vadd.f32 %v7026_v17, %v7025_v5 }
0x25c3   :  { %v7029_v51 = vadd.f32 %v7028_v48, %v7027_v18 }
0x25c5   :  { %v7030_v3 = vrot.slane %v7029_v51, 4 }
0x25c7   :  { %v7031_v19 = vadd.f32 %v7030_v3, %v7029_v51 }
0x25c9   :  { %v7032_v29 = vrot.slane %v7031_v19, 2 }
0x25cb   :  { %v7033_v25 = vadd.f32 %v7032_v29, %v7031_v19 }
0x25cd   :  { %v7034_v45 = vrot.slane %v7033_v25, 1 }
0x25cf   :  { %v7035_v0 = vadd.f32 %v7034_v45, %v7033_v25 }
0x25d1   :  { %v7036_v13 = vmul.f32 0.03125, %v7035_v0 }
0x25d3   :  { %v7039_v30 = vadd.f32 1e-05, %v7036_v13 }
0x25d5   :  { %18477 = vrsqrt.f32 %v7039_v30 }
0x25df   :  { %v18478_v32 = vpop.eup %18477 }
0x25e0   :  { %v7041_v33 = vmul.f32 %v18478_v32, %v13897_v31 }
0x25e2   :  { %v7044_v35 = vmul.f32 %v7041_v33, %v7014_v28  ;;  %v7050_v36 = vrot.slane %v7041_v33, %v18805_v52 }
0x25e4   :  { %v7045_v37 = vsub.f32 %v13898_v34, %v7044_v35  ;;  %v7054_v38 = vmul.f32 %v7050_v36, %v6988_v14  ;;  %v7052_v40 = vmul.f32 %v7050_v36, %v6978_v1  ;;  %v7053_v46 = vmul.f32 %v15915_v60, %v7050_v36 }
0x25e5   :  { %v7055_v62 = vmul.f32 %v15918_v63, %v7050_v36 }
0x25e6   :  { %v7060_v12 = vrot.slane %v7045_v37, %v18805_v52 }
0x25e8   :  { %v7064_v15 = vadd.f32 %v7060_v12, %v7054_v38  ;;  %v7062_v4 = vadd.f32 %v7060_v12, %v7052_v40  ;;  %v7063_v10 = vadd.f32 %v7060_v12, %v7053_v46  ;;  %v7065_v44 = vadd.f32 %v7060_v12, %v7055_v62 }
0x25ea   :  { %vm7066_vm12 = vcmp.ge.f32.partialorder %v7062_v4, 0.0  ;;  %v7070_v41 = vmul.f32 0.2, %v7062_v4  ;;  %vm7067_vm13 = vcmp.ge.f32.partialorder %v7063_v10, 0.0  ;;  %v7071_v16 = vmul.f32 0.2, %v7063_v10 }
0x25eb   :  { %vm7068_vm14 = vcmp.ge.f32.partialorder %v7064_v15, 0.0  ;;  %v7072_v21 = vmul.f32 0.2, %v7064_v15  ;;  %v7073_v14 = vmul.f32 0.2, %v7065_v44  ;;  %vm7069_vm15 = vcmp.ge.f32.partialorder %v7065_v44, 0.0 }
0x25ec   :  { %v7074_v47 = vsel %vm7066_vm12, %v7062_v4, %v7070_v41  ;;  %v7075_v49 = vsel %vm7067_vm13, %v7063_v10, %v7071_v16 }
0x25ed   :  { %15927 = vmatprep.mubr.msk.f32.mxu0 %vm43_vm0, %v7074_v47  ;;  %v7076_v60 = vsel %vm7068_vm14, %v7064_v15, %v7072_v21  ;;  %v7077_v1 = vsel %vm7069_vm15, %v7065_v44, %v7073_v14 }
0x25ee   :  { %15928 = vmatmul.mubr.msk.f32.vlgmr.msra.gmra.mrb[64].mxu0 %vm43_vm0, %v7075_v49 }
0x25ef   :  { %15930 = vmatprep.mubr.msk.f32.mxu0 %vm43_vm0, %v7076_v60 }
0x25f2   :  { %15931 = vmatmul.mubr.msk.f32.gmra.mrb[66].mxu0 %vm43_vm0, %v7077_v1 }
0x25f3   :  { %15941 = vmatprep.mubr.msk.f32.mxu0 %vm43_vm0, %v19467_v24 }
0x26c1   :  { %v15929_v63 = vpop.f32.mrb[64].mxu0 }
0x26c2   :  { %v7161_v53 = vpop.f32.mrb[65].mxu0 }
0x26c3   :  { %v18179_v7 = vpack.i.bf16 %v15929_v63, %v7161_v53  ;;  %v17199_v28 = vpack.c.bf16 %v15929_v63, %v7161_v53 }
0x26c5   :  { %18170 = vrot.lane.b32.xlu0 %v18179_v7, %s18642_s16  ;;  %v15932_v61 = vpop.f32.mrb[66].mxu0 }
0x26c6   :  { %v7171_v59 = vpop.f32.mrb[67].mxu0 }
0x26c7   :  { %v18184_v58 = vpack.i.bf16 %v15932_v61, %v7171_v59  ;;  %v17203_v57 = vpack.c.bf16 %v15932_v61, %v7171_v59 }
0x26c9   :  { %18180 = vrot.lane.b32.xlu0 %v18179_v7, %s18643_s18  ;;  %18175 = vrot.lane.b32.xlu1 %v18184_v58, %s18642_s16 }
0x26cd   :  { %18185 = vrot.lane.b32.xlu1 %v18184_v58, %s18643_s18 }
0x2737   :  { %v18171_v9 = vpop.permute.xlu0 %18170 }
0x2738   :  { %v18173_v55 = vunpack.i.h.bf16 %v18171_v9  ;;  %v18172_v11 = vunpack.i.l.bf16 %v18171_v9  ;;  %v13915_v9 = vld [vmem:[%s20562_s3 + $0xf] sm:$0x1] }
0x273a   :  { %v17191_v24 = vpack.c.bf16 %v18173_v55, %v18172_v11 }
0x273b   :  { %v18176_v6 = vpop.permute.xlu1 %18175  ;;  %v18181_v17 = vpop.permute.xlu0 %18180 }
0x273c   :  { %v18178_v8 = vunpack.i.h.bf16 %v18176_v6  ;;  %v18177_v42 = vunpack.i.l.bf16 %v18176_v6  ;;  %17192 = vmatprep.subr.bf16.mxu0 %v17191_v24  ;;  %v18183_v18 = vunpack.i.h.bf16 %v18181_v17  ;;  %v18182_v48 = vunpack.i.l.bf16 %v18181_v17 }
0x273d   :  { %17194 = vmatpush3.bf16.msra.mxu0 %v17191_v24  ;;  %v13916_v24 = vld [vmem:[%s20563_s4 + $0xf] sm:$0x1] }
0x273e   :  { %v17195_v5 = vpack.c.bf16 %v18178_v8, %v18177_v42  ;;  %v17207_v3 = vpack.c.bf16 %v18183_v18, %v18182_v48 }
0x273f   :  { %v18186_v51 = vpop.permute.xlu1 %18185 }
0x2740   :  { %17196 = vmatprep.subr.bf16.mxu0 %v17195_v5  ;;  %v18188_v19 = vunpack.i.h.bf16 %v18186_v51  ;;  %v18187_v29 = vunpack.i.l.bf16 %v18186_v51 }
0x2741   :  { %17198 = vmatpush3.bf16.msra.mxu0 %v17195_v5 }
0x2742   :  { %17200 = vmatprep.subr.bf16.mxu0 %v17199_v28  ;;  %v17211_v25 = vpack.c.bf16 %v18188_v19, %v18187_v29 }
0x2744   :  { %15942 = vmatmul.mubr.msk.f32.vlgmr.msra.gmra.mrb[68].mxu0 %vm43_vm0, %v19478_v54  ;;  %v7545_v54 = vld [vmem:[#allocation2 + $0x200] sm:$0xff] }
0x2745   :  { %17202 = vmatpush3.bf16.msra.mxu0 %v17199_v28  ;;  %15944 = vmatprep.mubr.msk.f32.mxu0 %vm43_vm0, %v19485_v39  ;;  %v7546_v39 = vld [vmem:[#allocation2 + $0x208] sm:$0xff] }
0x2746   :  { %17204 = vmatprep.subr.bf16.mxu0 %v17203_v57 }
0x2748   :  { %15945 = vmatmul.mubr.msk.f32.gmra.mrb[70].mxu0 %vm43_vm0, %v19492_v22  ;;  %v17215_v22 = vpack.c.bf16 %v7546_v39, %v7545_v54 }
0x2749   :  { %17206 = vmatpush3.bf16.msra.mxu0 %v17203_v57  ;;  %15955 = vmatprep.mubr.msk.f32.mxu0 %vm43_vm0, %v19499_v43  ;;  %v7547_v43 = vld [vmem:[#allocation2 + $0x210] sm:$0xff] }
0x274a   :  { %17208 = vmatprep.subr.bf16.mxu0 %v17207_v3  ;;  %17216 = vmatprep.subr.bf16.mxu1 %v17215_v22 }
0x274b   :  { %17218 = vmatpush3.bf16.msra.mxu1 %v17215_v22 }
0x274c   :  { %15956 = vmatmul.mubr.msk.f32.vlgmr.msra.gmra.mrb[68].mxu0 %vm43_vm0, %v19506_v50  ;;  %v7548_v50 = vld [vmem:[#allocation2 + $0x218] sm:$0xff] }
0x274d   :  { %17210 = vmatpush3.bf16.msra.mxu0 %v17207_v3  ;;  %15958 = vmatprep.mubr.msk.f32.mxu0 %vm43_vm0, %v19513_v2  ;;  %v17219_v2 = vpack.c.bf16 %v7548_v50, %v7547_v43 }
0x274e   :  { %17212 = vmatprep.subr.bf16.mxu0 %v17211_v25 }
0x274f   :  { %17220 = vmatprep.subr.bf16.mxu1 %v17219_v2 }
0x2750   :  { %15959 = vmatmul.mubr.msk.f32.gmra.mrb[70].mxu0 %vm43_vm0, %v19520_v56  ;;  %17222 = vmatpush3.bf16.msra.mxu1 %v17219_v2 }
0x2751   :  { %17214 = vmatpush3.bf16.msra.mxu0 %v17211_v25  ;;  %15969 = vmatprep.mubr.msk.f32.mxu0 %vm43_vm0, %v19527_v23 }
0x2754   :  { %15970 = vmatmul.mubr.msk.f32.vlgmr.msra.gmra.mrb[68].mxu0 %vm43_vm0, %v19534_v26 }
0x2755   :  { %15972 = vmatprep.mubr.msk.f32.mxu0 %vm43_vm0, %v19541_v27 }
0x2758   :  { %15973 = vmatmul.mubr.msk.f32.gmra.mrb[70].mxu0 %vm43_vm0, %v19548_v20 }
0x2827   :  { %v15971_v56 = vpop.f32.mrb[68].mxu0 }
0x2828   :  { %v7468_v23 = vsel %vm43_vm0, %v15971_v56, 0.0  ;;  %v7444_v26 = vpop.f32.mrb[69].mxu0 }
0x2829   :  { %v7467_v45 = vsel %vm43_vm0, %v7444_v26, 0.0 }
0x282a   :  { %v7469_v27 = vadd.f32 %v7468_v23, %v7467_v45 }
0x282b   :  { %v15974_v0 = vpop.f32.mrb[70].mxu0 }
0x282c   :  { %v7454_v13 = vpop.f32.mrb[71].mxu0  ;;  %v7472_v31 = vsel %vm43_vm0, %v15974_v0, 0.0 }
0x282d   :  { %v7470_v20 = vsel %vm43_vm0, %v7454_v13, 0.0 }
0x282e   :  { %v7471_v30 = vadd.f32 %v7470_v20, %v7469_v27 }
0x2830   :  { %v7473_v32 = vadd.f32 %v7472_v31, %v7471_v30 }
0x2832   :  { %v7474_v33 = vrot.slane %v7473_v32, 4 }
0x2834   :  { %v7475_v34 = vadd.f32 %v7474_v33, %v7473_v32 }
0x2836   :  { %v7476_v35 = vrot.slane %v7475_v34, 2 }
0x2838   :  { %v7477_v36 = vadd.f32 %v7476_v35, %v7475_v34 }
0x283a   :  { %v7478_v37 = vrot.slane %v7477_v36, 1 }
0x283c   :  { %v7479_v38 = vadd.f32 %v7478_v37, %v7477_v36 }
0x283e   :  { %v7480_v40 = vmul.f32 0.03125, %v7479_v38 }
0x2840   :  { %v7481_v46 = vsub.f32 %v7444_v26, %v7480_v40  ;;  %v7482_v62 = vsub.f32 %v15971_v56, %v7480_v40  ;;  %v7483_v12 = vsub.f32 %v7454_v13, %v7480_v40  ;;  %v7484_v15 = vsub.f32 %v15974_v0, %v7480_v40 }
0x2842   :  { %v7485_v4 = vmul.f32 %v7481_v46, %v7481_v46  ;;  %v7486_v10 = vmul.f32 %v7482_v62, %v7482_v62  ;;  %v7487_v44 = vmul.f32 %v7483_v12, %v7483_v12  ;;  %v7488_v41 = vmul.f32 %v7484_v15, %v7484_v15 }
0x2844   :  { %v7489_v16 = vsel %vm43_vm0, %v7485_v4, 0.0  ;;  %v7490_v21 = vsel %vm43_vm0, %v7486_v10, 0.0  ;;  %v7492_v49 = vsel %vm43_vm0, %v7487_v44, 0.0  ;;  %v7494_v60 = vsel %vm43_vm0, %v7488_v41, 0.0  ;;  %v19730_v4 = vld [vmem:[%s20560_s1 + $0x28] sm:$0xff]  ;;  %v19737_v44 = vld [vmem:[%s20560_s1 + $0x30] sm:$0xff] }
0x2845   :  { %v7491_v47 = vadd.f32 %v7490_v21, %v7489_v16 }
0x2847   :  { %v7493_v14 = vadd.f32 %v7492_v49, %v7491_v47  ;;  %v19744_v47 = vld [vmem:[%s20560_s1 + $0x38] sm:$0xff]  ;;  %v19751_v49 = vld [vmem:[%s20560_s1] sm:$0xff] }
0x2849   :  { %v7495_v1 = vadd.f32 %v7494_v60, %v7493_v14  ;;  %v19758_v60 = vld [vmem:[%s20560_s1 + $0x8] sm:$0xff] }
0x284b   :  { %v7496_v63 = vrot.slane %v7495_v1, 4 }
0x284d   :  { %v7497_v53 = vadd.f32 %v7496_v63, %v7495_v1  ;;  %v19765_v1 = vld [vmem:[%s20560_s1 + $0x10] sm:$0xff]  ;;  %v19772_v63 = vld [vmem:[%s20560_s1 + $0x18] sm:$0xff] }
0x284f   :  { %v7498_v7 = vrot.slane %v7497_v53, 2 }
0x2851   :  { %v7499_v28 = vadd.f32 %v7498_v7, %v7497_v53  ;;  %v19779_v53 = vld [vmem:[%s20560_s1 + $0x40] sm:$0xff]  ;;  %v19786_v7 = vld [vmem:[%s20560_s1 + $0x48] sm:$0xff] }
0x2853   :  { %v7500_v61 = vrot.slane %v7499_v28, 1 }
0x2855   :  { %v7501_v59 = vadd.f32 %v7500_v61, %v7499_v28  ;;  %v19793_v28 = vld [vmem:[%s20560_s1 + $0x50] sm:$0xff]  ;;  %v19800_v61 = vld [vmem:[%s20560_s1 + $0x58] sm:$0xff] }
0x2857   :  { %v7502_v58 = vmul.f32 0.03125, %v7501_v59  ;;  %v8011_v59 = vld [vmem:[#allocation2 + $0x220] sm:$0xff] }
0x2859   :  { %v7505_v57 = vadd.f32 1e-05, %v7502_v58  ;;  %v8012_v58 = vld [vmem:[#allocation2 + $0x228] sm:$0xff] }
0x285b   :  { %18479 = vrsqrt.f32 %v7505_v57  ;;  %v17247_v57 = vpack.c.bf16 %v8012_v58, %v8011_v59 }
0x285d   :  { %17248 = vmatprep.subr.bf16.mxu0 %v17247_v57 }
0x285e   :  { %17250 = vmatpush3.bf16.msra.mxu0 %v17247_v57 }
0x2865   :  { %v18480_v55 = vpop.eup %18479 }
0x2866   :  { %v7507_v11 = vmul.f32 %v18480_v55, %v13915_v9  ;;  %v8013_v9 = vld [vmem:[#allocation2 + $0x230] sm:$0xff]  ;;  %v8014_v55 = vld [vmem:[#allocation2 + $0x238] sm:$0xff] }
0x2868   :  { %v7510_v6 = vmul.f32 %v7507_v11, %v7480_v40  ;;  %v7516_v8 = vrot.slane %v7507_v11, %v18805_v52  ;;  %v17251_v11 = vpack.c.bf16 %v8014_v55, %v8013_v9 }
0x286a   :  { %v7511_v42 = vsub.f32 %v13916_v24, %v7510_v6  ;;  %v7520_v5 = vmul.f32 %v7516_v8, %v7454_v13  ;;  %v7518_v17 = vmul.f32 %v7516_v8, %v7444_v26  ;;  %v7519_v18 = vmul.f32 %v15971_v56, %v7516_v8  ;;  %v19719_v26 = vld [vmem:[%s20560_s1 + $0x20] sm:$0xff]  ;;  %17252 = vmatprep.subr.bf16.mxu0 %v17251_v11 }
0x286b   :  { %v7521_v48 = vmul.f32 %v15974_v0, %v7516_v8  ;;  %17254 = vmatpush3.bf16.msra.mxu0 %v17251_v11 }
0x286c   :  { %v7526_v51 = vrot.slane %v7511_v42, %v18805_v52 }
0x286e   :  { %v7530_v3 = vadd.f32 %v7526_v51, %v7520_v5  ;;  %v7528_v19 = vadd.f32 %v7526_v51, %v7518_v17  ;;  %v7529_v29 = vadd.f32 %v7526_v51, %v7519_v18  ;;  %v7531_v25 = vadd.f32 %v7526_v51, %v7521_v48 }
0x2870   :  { %vm7532_vm1 = vcmp.ge.f32.partialorder %v7528_v19, 0.0  ;;  %v7536_v54 = vmul.f32 0.2, %v7528_v19  ;;  %vm7533_vm2 = vcmp.ge.f32.partialorder %v7529_v29, 0.0  ;;  %v7537_v39 = vmul.f32 0.2, %v7529_v29 }
0x2871   :  { %vm7534_vm3 = vcmp.ge.f32.partialorder %v7530_v3, 0.0  ;;  %v7538_v22 = vmul.f32 0.2, %v7530_v3  ;;  %v7539_v2 = vmul.f32 0.2, %v7531_v25  ;;  %vm7535_vm4 = vcmp.ge.f32.partialorder %v7531_v25, 0.0 }
0x2872   :  { %v7540_v43 = vsel %vm7532_vm1, %v7528_v19, %v7536_v54  ;;  %v7541_v50 = vsel %vm7533_vm2, %v7529_v29, %v7537_v39 }
0x2873   :  { %15983 = vmatprep.mubr.msk.f32.mxu1 %vm43_vm0, %v7540_v43  ;;  %v7542_v56 = vsel %vm7534_vm3, %v7530_v3, %v7538_v22  ;;  %v7543_v23 = vsel %vm7535_vm4, %v7531_v25, %v7539_v2 }
0x2874   :  { %15984 = vmatmul.mubr.msk.f32.vlgmr.msra.gmra.mrb[60].mxu1 %vm43_vm0, %v7541_v50 }
0x2875   :  { %15986 = vmatprep.mubr.msk.f32.mxu1 %vm43_vm0, %v7542_v56 }
0x2878   :  { %15987 = vmatmul.mubr.msk.f32.gmra.mrb[62].mxu1 %vm43_vm0, %v7543_v23 }
0x2879   :  { %15997 = vmatprep.mubr.msk.f32.mxu1 %vm43_vm0, %v19719_v26 }
0x2947   :  { %v15985_v45 = vpop.f32.mrb[60].mxu1 }
0x2948   :  { %v7627_v27 = vpop.f32.mrb[61].mxu1 }
0x2949   :  { %v18199_v0 = vpack.i.bf16 %v15985_v45, %v7627_v27  ;;  %v17231_v13 = vpack.c.bf16 %v15985_v45, %v7627_v27 }
0x294b   :  { %18190 = vrot.lane.b32.xlu0 %v18199_v0, %s18642_s16  ;;  %v15988_v20 = vpop.f32.mrb[62].mxu1 }
0x294c   :  { %v7637_v30 = vpop.f32.mrb[63].mxu1 }
0x294d   :  { %v18204_v31 = vpack.i.bf16 %v15988_v20, %v7637_v30  ;;  %v17235_v32 = vpack.c.bf16 %v15988_v20, %v7637_v30 }
0x294f   :  { %18200 = vrot.lane.b32.xlu0 %v18199_v0, %s18643_s18  ;;  %18195 = vrot.lane.b32.xlu1 %v18204_v31, %s18642_s16 }
0x2953   :  { %18205 = vrot.lane.b32.xlu1 %v18204_v31, %s18643_s18 }
0x29bd   :  { %v18191_v33 = vpop.permute.xlu0 %18190 }
0x29be   :  { %v18193_v34 = vunpack.i.h.bf16 %v18191_v33  ;;  %v18192_v35 = vunpack.i.l.bf16 %v18191_v33 }
0x29c0   :  { %v17223_v36 = vpack.c.bf16 %v18193_v34, %v18192_v35 }
0x29c1   :  { %v18196_v37 = vpop.permute.xlu1 %18195  ;;  %v18201_v62 = vpop.permute.xlu0 %18200 }
0x29c2   :  { %v18198_v38 = vunpack.i.h.bf16 %v18196_v37  ;;  %v18197_v40 = vunpack.i.l.bf16 %v18196_v37  ;;  %17224 = vmatprep.subr.bf16.mxu1 %v17223_v36  ;;  %v18203_v12 = vunpack.i.h.bf16 %v18201_v62  ;;  %v18202_v15 = vunpack.i.l.bf16 %v18201_v62 }
0x29c3   :  { %17226 = vmatpush3.bf16.msra.mxu1 %v17223_v36 }
0x29c4   :  { %v17227_v46 = vpack.c.bf16 %v18198_v38, %v18197_v40  ;;  %v17239_v41 = vpack.c.bf16 %v18203_v12, %v18202_v15 }
0x29c5   :  { %v18206_v10 = vpop.permute.xlu1 %18205 }
0x29c6   :  { %17228 = vmatprep.subr.bf16.mxu1 %v17227_v46  ;;  %v18208_v16 = vunpack.i.h.bf16 %v18206_v10  ;;  %v18207_v21 = vunpack.i.l.bf16 %v18206_v10 }
0x29c7   :  { %17230 = vmatpush3.bf16.msra.mxu1 %v17227_v46 }
0x29c8   :  { %17232 = vmatprep.subr.bf16.mxu1 %v17231_v13  ;;  %v17243_v14 = vpack.c.bf16 %v18208_v16, %v18207_v21 }
0x29ca   :  { %15998 = vmatmul.mubr.msk.f32.vlgmr.msra.gmra.mrb[64].mxu1 %vm43_vm0, %v19730_v4 }
0x29cb   :  { %17234 = vmatpush3.bf16.msra.mxu1 %v17231_v13  ;;  %16000 = vmatprep.mubr.msk.f32.mxu1 %vm43_vm0, %v19737_v44 }
0x29cc   :  { %17236 = vmatprep.subr.bf16.mxu1 %v17235_v32 }
0x29ce   :  { %16001 = vmatmul.mubr.msk.f32.gmra.mrb[66].mxu1 %vm43_vm0, %v19744_v47 }
0x29cf   :  { %17238 = vmatpush3.bf16.msra.mxu1 %v17235_v32  ;;  %16011 = vmatprep.mubr.msk.f32.mxu1 %vm43_vm0, %v19751_v49 }
0x29d0   :  { %17240 = vmatprep.subr.bf16.mxu1 %v17239_v41 }
0x29d2   :  { %16012 = vmatmul.mubr.msk.f32.vlgmr.msra.gmra.mrb[64].mxu1 %vm43_vm0, %v19758_v60 }
0x29d3   :  { %17242 = vmatpush3.bf16.msra.mxu1 %v17239_v41  ;;  %16014 = vmatprep.mubr.msk.f32.mxu1 %vm43_vm0, %v19765_v1  ;;  %v13933_v41 = vld [vmem:[%s20562_s3 + $0x10] sm:$0x1] }
0x29d4   :  { %17244 = vmatprep.subr.bf16.mxu1 %v17243_v14 }
0x29d6   :  { %16015 = vmatmul.mubr.msk.f32.gmra.mrb[66].mxu1 %vm43_vm0, %v19772_v63 }
0x29d7   :  { %17246 = vmatpush3.bf16.msra.mxu1 %v17243_v14  ;;  %16025 = vmatprep.mubr.msk.f32.mxu1 %vm43_vm0, %v19779_v53  ;;  %v13934_v14 = vld [vmem:[%s20563_s4 + $0x10] sm:$0x1] }
0x29da   :  { %16026 = vmatmul.mubr.msk.f32.vlgmr.msra.gmra.mrb[64].mxu1 %vm43_vm0, %v19786_v7 }
0x29db   :  { %16028 = vmatprep.mubr.msk.f32.mxu1 %vm43_vm0, %v19793_v28 }
0x29de   :  { %16029 = vmatmul.mubr.msk.f32.gmra.mrb[66].mxu1 %vm43_vm0, %v19800_v61 }
0x2aad   :  { %v16027_v24 = vpop.f32.mrb[64].mxu1 }
0x2aae   :  { %v7934_v6 = vsel %vm43_vm0, %v16027_v24, 0.0  ;;  %v7910_v8 = vpop.f32.mrb[65].mxu1 }
0x2aaf   :  { %v7933_v42 = vsel %vm43_vm0, %v7910_v8, 0.0 }
0x2ab0   :  { %v7935_v5 = vadd.f32 %v7934_v6, %v7933_v42 }
0x2ab1   :  { %v16030_v17 = vpop.f32.mrb[66].mxu1 }
0x2ab2   :  { %v7920_v18 = vpop.f32.mrb[67].mxu1  ;;  %v7938_v3 = vsel %vm43_vm0, %v16030_v17, 0.0 }
0x2ab3   :  { %v7936_v48 = vsel %vm43_vm0, %v7920_v18, 0.0 }
0x2ab4   :  { %v7937_v51 = vadd.f32 %v7936_v48, %v7935_v5 }
0x2ab6   :  { %v7939_v19 = vadd.f32 %v7938_v3, %v7937_v51 }
0x2ab8   :  { %v7940_v29 = vrot.slane %v7939_v19, 4 }
0x2aba   :  { %v7941_v25 = vadd.f32 %v7940_v29, %v7939_v19 }
0x2abc   :  { %v7942_v54 = vrot.slane %v7941_v25, 2 }
0x2abe   :  { %v7943_v39 = vadd.f32 %v7942_v54, %v7941_v25 }
0x2ac0   :  { %v7944_v22 = vrot.slane %v7943_v39, 1 }
0x2ac2   :  { %v7945_v43 = vadd.f32 %v7944_v22, %v7943_v39 }
0x2ac4   :  { %v7946_v50 = vmul.f32 0.03125, %v7945_v43 }
0x2ac6   :  { %v7947_v2 = vsub.f32 %v7910_v8, %v7946_v50  ;;  %v7948_v56 = vsub.f32 %v16027_v24, %v7946_v50  ;;  %v7949_v23 = vsub.f32 %v7920_v18, %v7946_v50  ;;  %v7950_v45 = vsub.f32 %v16030_v17, %v7946_v50 }
0x2ac8   :  { %v7951_v27 = vmul.f32 %v7947_v2, %v7947_v2  ;;  %v7952_v0 = vmul.f32 %v7948_v56, %v7948_v56  ;;  %v7953_v13 = vmul.f32 %v7949_v23, %v7949_v23  ;;  %v7954_v20 = vmul.f32 %v7950_v45, %v7950_v45 }
0x2aca   :  { %v7955_v30 = vsel %vm43_vm0, %v7951_v27, 0.0  ;;  %v7956_v31 = vsel %vm43_vm0, %v7952_v0, 0.0  ;;  %v7958_v33 = vsel %vm43_vm0, %v7953_v13, 0.0  ;;  %v7960_v35 = vsel %vm43_vm0, %v7954_v20, 0.0 }
0x2acb   :  { %v7957_v32 = vadd.f32 %v7956_v31, %v7955_v30 }
0x2acd   :  { %v7959_v34 = vadd.f32 %v7958_v33, %v7957_v32 }
0x2acf   :  { %v7961_v36 = vadd.f32 %v7960_v35, %v7959_v34 }
0x2ad1   :  { %v7962_v37 = vrot.slane %v7961_v36, 4 }
0x2ad3   :  { %v7963_v38 = vadd.f32 %v7962_v37, %v7961_v36 }
0x2ad5   :  { %v7964_v40 = vrot.slane %v7963_v38, 2 }
0x2ad7   :  { %v7965_v46 = vadd.f32 %v7964_v40, %v7963_v38 }
0x2ad9   :  { %v7966_v62 = vrot.slane %v7965_v46, 1 }
0x2adb   :  { %v7967_v12 = vadd.f32 %v7966_v62, %v7965_v46 }
0x2add   :  { %v7968_v15 = vmul.f32 0.03125, %v7967_v12  ;;  %v8477_v12 = vld [vmem:[#allocation2 + $0x240] sm:$0xff] }
0x2adf   :  { %v7971_v10 = vadd.f32 1e-05, %v7968_v15  ;;  %v8478_v15 = vld [vmem:[#allocation2 + $0x248] sm:$0xff] }
0x2ae1   :  { %18481 = vrsqrt.f32 %v7971_v10  ;;  %v17279_v10 = vpack.c.bf16 %v8478_v15, %v8477_v12 }
0x2ae3   :  { %17280 = vmatprep.subr.bf16.mxu1 %v17279_v10 }
0x2ae4   :  { %17282 = vmatpush3.bf16.msra.mxu1 %v17279_v10 }
0x2aeb   :  { %v18482_v16 = vpop.eup %18481 }
0x2aec   :  { %v7973_v21 = vmul.f32 %v18482_v16, %v13933_v41  ;;  %v8479_v41 = vld [vmem:[#allocation2 + $0x250] sm:$0xff]  ;;  %v8480_v16 = vld [vmem:[#allocation2 + $0x258] sm:$0xff] }
0x2aee   :  { %v7976_v59 = vmul.f32 %v7973_v21, %v7946_v50  ;;  %v7982_v58 = vrot.slane %v7973_v21, %v18805_v52  ;;  %v17283_v21 = vpack.c.bf16 %v8480_v16, %v8479_v41 }
0x2af0   :  { %v7977_v57 = vsub.f32 %v13934_v14, %v7976_v59  ;;  %v7986_v9 = vmul.f32 %v7982_v58, %v7920_v18  ;;  %v7984_v55 = vmul.f32 %v7982_v58, %v7910_v8  ;;  %v7985_v11 = vmul.f32 %v16027_v24, %v7982_v58  ;;  %17284 = vmatprep.subr.bf16.mxu1 %v17283_v21 }
0x2af1   :  { %v7987_v6 = vmul.f32 %v16030_v17, %v7982_v58  ;;  %17286 = vmatpush3.bf16.msra.mxu1 %v17283_v21 }
0x2af2   :  { %v7992_v42 = vrot.slane %v7977_v57, %v18805_v52 }
0x2af4   :  { %v7996_v5 = vadd.f32 %v7992_v42, %v7986_v9  ;;  %v7994_v48 = vadd.f32 %v7992_v42, %v7984_v55  ;;  %v7995_v51 = vadd.f32 %v7992_v42, %v7985_v11  ;;  %v7997_v3 = vadd.f32 %v7992_v42, %v7987_v6 }
0x2af6   :  { %vm7998_vm5 = vcmp.ge.f32.partialorder %v7994_v48, 0.0  ;;  %v8002_v19 = vmul.f32 0.2, %v7994_v48  ;;  %vm7999_vm6 = vcmp.ge.f32.partialorder %v7995_v51, 0.0  ;;  %v8003_v29 = vmul.f32 0.2, %v7995_v51 }
0x2af7   :  { %vm8000_vm7 = vcmp.ge.f32.partialorder %v7996_v5, 0.0  ;;  %v8004_v25 = vmul.f32 0.2, %v7996_v5  ;;  %v8005_v18 = vmul.f32 0.2, %v7997_v3  ;;  %vm8001_vm8 = vcmp.ge.f32.partialorder %v7997_v3, 0.0 }
0x2af8   :  { %v8006_v54 = vsel %vm7998_vm5, %v7994_v48, %v8002_v19  ;;  %v8007_v39 = vsel %vm7999_vm6, %v7995_v51, %v8003_v29 }
0x2af9   :  { %16039 = vmatprep.mubr.msk.f32.mxu0 %vm43_vm0, %v8006_v54  ;;  %v8008_v24 = vsel %vm8000_vm7, %v7996_v5, %v8004_v25  ;;  %v8009_v8 = vsel %vm8001_vm8, %v7997_v3, %v8005_v18 }
0x2afa   :  { %16040 = vmatmul.mubr.msk.f32.vlgmr.msra.gmra.mrb[72].mxu0 %vm43_vm0, %v8007_v39 }
0x2afb   :  { %16042 = vmatprep.mubr.msk.f32.mxu0 %vm43_vm0, %v8008_v24 }
0x2afe   :  { %16043 = vmatmul.mubr.msk.f32.gmra.mrb[74].mxu0 %vm43_vm0, %v8009_v8 }
0x2aff   :  { %16053 = vmatprep.mubr.msk.f32.mxu0 %vm43_vm0, %v19719_v26 }
0x2bcd   :  { %v16041_v17 = vpop.f32.mrb[72].mxu0 }
0x2bce   :  { %v8093_v22 = vpop.f32.mrb[73].mxu0 }
0x2bcf   :  { %v18219_v43 = vpack.i.bf16 %v16041_v17, %v8093_v22  ;;  %v17263_v50 = vpack.c.bf16 %v16041_v17, %v8093_v22 }
0x2bd1   :  { %18210 = vrot.lane.b32.xlu0 %v18219_v43, %s18642_s16  ;;  %v16044_v2 = vpop.f32.mrb[74].mxu0 }
0x2bd2   :  { %v8103_v56 = vpop.f32.mrb[75].mxu0 }
0x2bd3   :  { %v18224_v23 = vpack.i.bf16 %v16044_v2, %v8103_v56  ;;  %v17267_v45 = vpack.c.bf16 %v16044_v2, %v8103_v56 }
0x2bd5   :  { %18220 = vrot.lane.b32.xlu0 %v18219_v43, %s18643_s18  ;;  %18215 = vrot.lane.b32.xlu1 %v18224_v23, %s18642_s16 }
0x2bd9   :  { %18225 = vrot.lane.b32.xlu1 %v18224_v23, %s18643_s18 }
0x2c43   :  { %v18211_v27 = vpop.permute.xlu0 %18210 }
0x2c44   :  { %v18213_v0 = vunpack.i.h.bf16 %v18211_v27  ;;  %v18212_v13 = vunpack.i.l.bf16 %v18211_v27 }
0x2c46   :  { %v17255_v20 = vpack.c.bf16 %v18213_v0, %v18212_v13 }
0x2c47   :  { %v18216_v30 = vpop.permute.xlu1 %18215  ;;  %v18221_v34 = vpop.permute.xlu0 %18220 }
0x2c48   :  { %v18218_v31 = vunpack.i.h.bf16 %v18216_v30  ;;  %v18217_v32 = vunpack.i.l.bf16 %v18216_v30  ;;  %17256 = vmatprep.subr.bf16.mxu0 %v17255_v20  ;;  %v18223_v35 = vunpack.i.h.bf16 %v18221_v34  ;;  %v18222_v36 = vunpack.i.l.bf16 %v18221_v34 }
0x2c49   :  { %17258 = vmatpush3.bf16.msra.mxu0 %v17255_v20 }
0x2c4a   :  { %v17259_v33 = vpack.c.bf16 %v18218_v31, %v18217_v32  ;;  %v17271_v38 = vpack.c.bf16 %v18223_v35, %v18222_v36 }
0x2c4b   :  { %v18226_v37 = vpop.permute.xlu1 %18225 }
0x2c4c   :  { %17260 = vmatprep.subr.bf16.mxu0 %v17259_v33  ;;  %v18228_v40 = vunpack.i.h.bf16 %v18226_v37  ;;  %v18227_v46 = vunpack.i.l.bf16 %v18226_v37 }
0x2c4d   :  { %17262 = vmatpush3.bf16.msra.mxu0 %v17259_v33 }
0x2c4e   :  { %17264 = vmatprep.subr.bf16.mxu0 %v17263_v50  ;;  %v17275_v62 = vpack.c.bf16 %v18228_v40, %v18227_v46 }
0x2c50   :  { %16054 = vmatmul.mubr.msk.f32.vlgmr.msra.gmra.mrb[76].mxu0 %vm43_vm0, %v19730_v4 }
0x2c51   :  { %17266 = vmatpush3.bf16.msra.mxu0 %v17263_v50  ;;  %16056 = vmatprep.mubr.msk.f32.mxu0 %vm43_vm0, %v19737_v44 }
0x2c52   :  { %17268 = vmatprep.subr.bf16.mxu0 %v17267_v45 }
0x2c54   :  { %16057 = vmatmul.mubr.msk.f32.gmra.mrb[78].mxu0 %vm43_vm0, %v19744_v47 }
0x2c55   :  { %17270 = vmatpush3.bf16.msra.mxu0 %v17267_v45  ;;  %16067 = vmatprep.mubr.msk.f32.mxu0 %vm43_vm0, %v19751_v49 }
0x2c56   :  { %17272 = vmatprep.subr.bf16.mxu0 %v17271_v38 }
0x2c58   :  { %16068 = vmatmul.mubr.msk.f32.vlgmr.msra.gmra.mrb[76].mxu0 %vm43_vm0, %v19758_v60 }
0x2c59   :  { %17274 = vmatpush3.bf16.msra.mxu0 %v17271_v38  ;;  %16070 = vmatprep.mubr.msk.f32.mxu0 %vm43_vm0, %v19765_v1  ;;  %v13951_v38 = vld [vmem:[%s20562_s3 + $0x11] sm:$0x1] }
0x2c5a   :  { %17276 = vmatprep.subr.bf16.mxu0 %v17275_v62 }
0x2c5c   :  { %16071 = vmatmul.mubr.msk.f32.gmra.mrb[78].mxu0 %vm43_vm0, %v19772_v63 }
0x2c5d   :  { %17278 = vmatpush3.bf16.msra.mxu0 %v17275_v62  ;;  %16081 = vmatprep.mubr.msk.f32.mxu0 %vm43_vm0, %v19779_v53  ;;  %v13952_v62 = vld [vmem:[%s20563_s4 + $0x11] sm:$0x1] }
0x2c60   :  { %16082 = vmatmul.mubr.msk.f32.vlgmr.msra.gmra.mrb[76].mxu0 %vm43_vm0, %v19786_v7 }
0x2c61   :  { %16084 = vmatprep.mubr.msk.f32.mxu0 %vm43_vm0, %v19793_v28 }
0x2c64   :  { %16085 = vmatmul.mubr.msk.f32.gmra.mrb[78].mxu0 %vm43_vm0, %v19800_v61 }
0x2d33   :  { %v16083_v14 = vpop.f32.mrb[76].mxu0 }
0x2d34   :  { %v8400_v59 = vsel %vm43_vm0, %v16083_v14, 0.0  ;;  %v8376_v58 = vpop.f32.mrb[77].mxu0 }
0x2d35   :  { %v8399_v57 = vsel %vm43_vm0, %v8376_v58, 0.0 }
0x2d36   :  { %v8401_v9 = vadd.f32 %v8400_v59, %v8399_v57 }
0x2d37   :  { %v16086_v55 = vpop.f32.mrb[78].mxu0 }
0x2d38   :  { %v8386_v11 = vpop.f32.mrb[79].mxu0  ;;  %v8404_v5 = vsel %vm43_vm0, %v16086_v55, 0.0 }
0x2d39   :  { %v8402_v6 = vsel %vm43_vm0, %v8386_v11, 0.0 }
0x2d3a   :  { %v8403_v42 = vadd.f32 %v8402_v6, %v8401_v9 }
0x2d3c   :  { %v8405_v48 = vadd.f32 %v8404_v5, %v8403_v42 }
0x2d3e   :  { %v8406_v51 = vrot.slane %v8405_v48, 4 }
0x2d40   :  { %v8407_v3 = vadd.f32 %v8406_v51, %v8405_v48 }
0x2d42   :  { %v8408_v19 = vrot.slane %v8407_v3, 2 }
0x2d44   :  { %v8409_v29 = vadd.f32 %v8408_v19, %v8407_v3 }
0x2d46   :  { %v8410_v25 = vrot.slane %v8409_v29, 1 }
0x2d48   :  { %v8411_v54 = vadd.f32 %v8410_v25, %v8409_v29 }
0x2d4a   :  { %v8412_v39 = vmul.f32 0.03125, %v8411_v54 }
0x2d4c   :  { %v8413_v18 = vsub.f32 %v8376_v58, %v8412_v39  ;;  %v8414_v24 = vsub.f32 %v16083_v14, %v8412_v39  ;;  %v8415_v8 = vsub.f32 %v8386_v11, %v8412_v39  ;;  %v8416_v17 = vsub.f32 %v16086_v55, %v8412_v39 }
0x2d4e   :  { %v8417_v22 = vmul.f32 %v8413_v18, %v8413_v18  ;;  %v8418_v43 = vmul.f32 %v8414_v24, %v8414_v24  ;;  %v8419_v50 = vmul.f32 %v8415_v8, %v8415_v8  ;;  %v8420_v2 = vmul.f32 %v8416_v17, %v8416_v17 }
0x2d50   :  { %v8421_v56 = vsel %vm43_vm0, %v8417_v22, 0.0  ;;  %v8422_v23 = vsel %vm43_vm0, %v8418_v43, 0.0  ;;  %v8424_v27 = vsel %vm43_vm0, %v8419_v50, 0.0  ;;  %v8426_v13 = vsel %vm43_vm0, %v8420_v2, 0.0 }
0x2d51   :  { %v8423_v45 = vadd.f32 %v8422_v23, %v8421_v56 }
0x2d53   :  { %v8425_v0 = vadd.f32 %v8424_v27, %v8423_v45 }
0x2d55   :  { %v8427_v20 = vadd.f32 %v8426_v13, %v8425_v0 }
0x2d57   :  { %v8428_v30 = vrot.slane %v8427_v20, 4 }
0x2d59   :  { %v8429_v31 = vadd.f32 %v8428_v30, %v8427_v20 }
0x2d5b   :  { %v8430_v32 = vrot.slane %v8429_v31, 2 }
0x2d5d   :  { %v8431_v33 = vadd.f32 %v8430_v32, %v8429_v31 }
0x2d5f   :  { %v8432_v34 = vrot.slane %v8431_v33, 1 }
0x2d61   :  { %v8433_v35 = vadd.f32 %v8432_v34, %v8431_v33 }
0x2d63   :  { %v8434_v36 = vmul.f32 0.03125, %v8433_v35  ;;  %v8943_v35 = vld [vmem:[#allocation2 + $0x260] sm:$0xff] }
0x2d65   :  { %v8437_v37 = vadd.f32 1e-05, %v8434_v36  ;;  %v8944_v36 = vld [vmem:[#allocation2 + $0x268] sm:$0xff] }
0x2d67   :  { %18483 = vrsqrt.f32 %v8437_v37  ;;  %v17311_v37 = vpack.c.bf16 %v8944_v36, %v8943_v35 }
0x2d69   :  { %17312 = vmatprep.subr.bf16.mxu0 %v17311_v37 }
0x2d6a   :  { %17314 = vmatpush3.bf16.msra.mxu0 %v17311_v37 }
0x2d71   :  { %v18484_v40 = vpop.eup %18483 }
0x2d72   :  { %v8439_v46 = vmul.f32 %v18484_v40, %v13951_v38  ;;  %v8945_v38 = vld [vmem:[#allocation2 + $0x270] sm:$0xff]  ;;  %v8946_v40 = vld [vmem:[#allocation2 + $0x278] sm:$0xff] }
0x2d74   :  { %v8442_v12 = vmul.f32 %v8439_v46, %v8412_v39  ;;  %v8448_v15 = vrot.slane %v8439_v46, %v18805_v52  ;;  %v17315_v46 = vpack.c.bf16 %v8946_v40, %v8945_v38 }
0x2d76   :  { %v8443_v10 = vsub.f32 %v13952_v62, %v8442_v12  ;;  %v8452_v41 = vmul.f32 %v8448_v15, %v8386_v11  ;;  %v8450_v16 = vmul.f32 %v8448_v15, %v8376_v58  ;;  %v8451_v21 = vmul.f32 %v16083_v14, %v8448_v15  ;;  %17316 = vmatprep.subr.bf16.mxu0 %v17315_v46 }
0x2d77   :  { %v8453_v59 = vmul.f32 %v16086_v55, %v8448_v15  ;;  %17318 = vmatpush3.bf16.msra.mxu0 %v17315_v46 }
0x2d78   :  { %v8458_v57 = vrot.slane %v8443_v10, %v18805_v52 }
0x2d7a   :  { %v8462_v9 = vadd.f32 %v8458_v57, %v8452_v41  ;;  %v8460_v6 = vadd.f32 %v8458_v57, %v8450_v16  ;;  %v8461_v42 = vadd.f32 %v8458_v57, %v8451_v21  ;;  %v8463_v5 = vadd.f32 %v8458_v57, %v8453_v59 }
0x2d7c   :  { %vm8464_vm9 = vcmp.ge.f32.partialorder %v8460_v6, 0.0  ;;  %v8468_v48 = vmul.f32 0.2, %v8460_v6  ;;  %vm8465_vm10 = vcmp.ge.f32.partialorder %v8461_v42, 0.0  ;;  %v8469_v51 = vmul.f32 0.2, %v8461_v42 }
0x2d7d   :  { %vm8466_vm11 = vcmp.ge.f32.partialorder %v8462_v9, 0.0  ;;  %v8470_v3 = vmul.f32 0.2, %v8462_v9  ;;  %v8471_v11 = vmul.f32 0.2, %v8463_v5  ;;  %vm8467_vm12 = vcmp.ge.f32.partialorder %v8463_v5, 0.0 }
0x2d7e   :  { %v8472_v19 = vsel %vm8464_vm9, %v8460_v6, %v8468_v48  ;;  %v8473_v29 = vsel %vm8465_vm10, %v8461_v42, %v8469_v51 }
0x2d7f   :  { %16095 = vmatprep.mubr.msk.f32.mxu1 %vm43_vm0, %v8472_v19  ;;  %v8474_v14 = vsel %vm8466_vm11, %v8462_v9, %v8470_v3  ;;  %v8475_v58 = vsel %vm8467_vm12, %v8463_v5, %v8471_v11 }
0x2d80   :  { %16096 = vmatmul.mubr.msk.f32.vlgmr.msra.gmra.mrb[68].mxu1 %vm43_vm0, %v8473_v29 }
0x2d81   :  { %16098 = vmatprep.mubr.msk.f32.mxu1 %vm43_vm0, %v8474_v14 }
0x2d84   :  { %16099 = vmatmul.mubr.msk.f32.gmra.mrb[70].mxu1 %vm43_vm0, %v8475_v58 }
0x2d85   :  { %16109 = vmatprep.mubr.msk.f32.mxu1 %vm43_vm0, %v19719_v26 }
0x2e53   :  { %v16097_v55 = vpop.f32.mrb[68].mxu1 }
0x2e54   :  { %v8559_v25 = vpop.f32.mrb[69].mxu1 }
0x2e55   :  { %v18239_v54 = vpack.i.bf16 %v16097_v55, %v8559_v25  ;;  %v17295_v39 = vpack.c.bf16 %v16097_v55, %v8559_v25 }
0x2e57   :  { %18230 = vrot.lane.b32.xlu0 %v18239_v54, %s18642_s16  ;;  %v16100_v18 = vpop.f32.mrb[70].mxu1 }
0x2e58   :  { %v8569_v24 = vpop.f32.mrb[71].mxu1 }
0x2e59   :  { %v18244_v8 = vpack.i.bf16 %v16100_v18, %v8569_v24  ;;  %v17299_v17 = vpack.c.bf16 %v16100_v18, %v8569_v24 }
0x2e5b   :  { %18240 = vrot.lane.b32.xlu0 %v18239_v54, %s18643_s18  ;;  %18235 = vrot.lane.b32.xlu1 %v18244_v8, %s18642_s16 }
0x2e5f   :  { %18245 = vrot.lane.b32.xlu1 %v18244_v8, %s18643_s18 }
0x2ec9   :  { %v18231_v22 = vpop.permute.xlu0 %18230 }
0x2eca   :  { %v18233_v43 = vunpack.i.h.bf16 %v18231_v22  ;;  %v18232_v50 = vunpack.i.l.bf16 %v18231_v22 }
0x2ecc   :  { %v17287_v2 = vpack.c.bf16 %v18233_v43, %v18232_v50 }
0x2ecd   :  { %v18236_v56 = vpop.permute.xlu1 %18235  ;;  %v18241_v0 = vpop.permute.xlu0 %18240 }
0x2ece   :  { %v18238_v23 = vunpack.i.h.bf16 %v18236_v56  ;;  %v18237_v45 = vunpack.i.l.bf16 %v18236_v56  ;;  %17288 = vmatprep.subr.bf16.mxu1 %v17287_v2  ;;  %v18243_v13 = vunpack.i.h.bf16 %v18241_v0  ;;  %v18242_v20 = vunpack.i.l.bf16 %v18241_v0 }
0x2ecf   :  { %17290 = vmatpush3.bf16.msra.mxu1 %v17287_v2 }
0x2ed0   :  { %v17291_v27 = vpack.c.bf16 %v18238_v23, %v18237_v45  ;;  %v17303_v31 = vpack.c.bf16 %v18243_v13, %v18242_v20 }
0x2ed1   :  { %v18246_v30 = vpop.permute.xlu1 %18245 }
0x2ed2   :  { %17292 = vmatprep.subr.bf16.mxu1 %v17291_v27  ;;  %v18248_v32 = vunpack.i.h.bf16 %v18246_v30  ;;  %v18247_v33 = vunpack.i.l.bf16 %v18246_v30 }
0x2ed3   :  { %17294 = vmatpush3.bf16.msra.mxu1 %v17291_v27 }
0x2ed4   :  { %17296 = vmatprep.subr.bf16.mxu1 %v17295_v39  ;;  %v17307_v34 = vpack.c.bf16 %v18248_v32, %v18247_v33 }
0x2ed6   :  { %16110 = vmatmul.mubr.msk.f32.vlgmr.msra.gmra.mrb[72].mxu1 %vm43_vm0, %v19730_v4 }
0x2ed7   :  { %17298 = vmatpush3.bf16.msra.mxu1 %v17295_v39  ;;  %16112 = vmatprep.mubr.msk.f32.mxu1 %vm43_vm0, %v19737_v44 }
0x2ed8   :  { %17300 = vmatprep.subr.bf16.mxu1 %v17299_v17 }
0x2eda   :  { %16113 = vmatmul.mubr.msk.f32.gmra.mrb[74].mxu1 %vm43_vm0, %v19744_v47 }
0x2edb   :  { %17302 = vmatpush3.bf16.msra.mxu1 %v17299_v17  ;;  %16123 = vmatprep.mubr.msk.f32.mxu1 %vm43_vm0, %v19751_v49 }
0x2edc   :  { %17304 = vmatprep.subr.bf16.mxu1 %v17303_v31 }
0x2ede   :  { %16124 = vmatmul.mubr.msk.f32.vlgmr.msra.gmra.mrb[72].mxu1 %vm43_vm0, %v19758_v60 }
0x2edf   :  { %17306 = vmatpush3.bf16.msra.mxu1 %v17303_v31  ;;  %16126 = vmatprep.mubr.msk.f32.mxu1 %vm43_vm0, %v19765_v1  ;;  %v13969_v31 = vld [vmem:[%s20562_s3 + $0x12] sm:$0x1] }
0x2ee0   :  { %17308 = vmatprep.subr.bf16.mxu1 %v17307_v34 }
0x2ee2   :  { %16127 = vmatmul.mubr.msk.f32.gmra.mrb[74].mxu1 %vm43_vm0, %v19772_v63 }
0x2ee3   :  { %17310 = vmatpush3.bf16.msra.mxu1 %v17307_v34  ;;  %16137 = vmatprep.mubr.msk.f32.mxu1 %vm43_vm0, %v19779_v53  ;;  %v13970_v34 = vld [vmem:[%s20563_s4 + $0x12] sm:$0x1] }
0x2ee6   :  { %16138 = vmatmul.mubr.msk.f32.vlgmr.msra.gmra.mrb[72].mxu1 %vm43_vm0, %v19786_v7 }
0x2ee7   :  { %16140 = vmatprep.mubr.msk.f32.mxu1 %vm43_vm0, %v19793_v28 }
0x2eea   :  { %16141 = vmatmul.mubr.msk.f32.gmra.mrb[74].mxu1 %vm43_vm0, %v19800_v61 }
0x2fb9   :  { %v16139_v62 = vpop.f32.mrb[72].mxu1 }
0x2fba   :  { %v8866_v12 = vsel %vm43_vm0, %v16139_v62, 0.0  ;;  %v8842_v15 = vpop.f32.mrb[73].mxu1 }
0x2fbb   :  { %v8865_v10 = vsel %vm43_vm0, %v8842_v15, 0.0 }
0x2fbc   :  { %v8867_v41 = vadd.f32 %v8866_v12, %v8865_v10 }
0x2fbd   :  { %v16142_v16 = vpop.f32.mrb[74].mxu1 }
0x2fbe   :  { %v8852_v21 = vpop.f32.mrb[75].mxu1  ;;  %v8870_v9 = vsel %vm43_vm0, %v16142_v16, 0.0 }
0x2fbf   :  { %v8868_v59 = vsel %vm43_vm0, %v8852_v21, 0.0 }
0x2fc0   :  { %v8869_v57 = vadd.f32 %v8868_v59, %v8867_v41 }
0x2fc2   :  { %v8871_v6 = vadd.f32 %v8870_v9, %v8869_v57 }
0x2fc4   :  { %v8872_v42 = vrot.slane %v8871_v6, 4 }
0x2fc6   :  { %v8873_v5 = vadd.f32 %v8872_v42, %v8871_v6 }
0x2fc8   :  { %v8874_v48 = vrot.slane %v8873_v5, 2 }
0x2fca   :  { %v8875_v51 = vadd.f32 %v8874_v48, %v8873_v5 }
0x2fcc   :  { %v8876_v3 = vrot.slane %v8875_v51, 1 }
0x2fce   :  { %v8877_v19 = vadd.f32 %v8876_v3, %v8875_v51 }
0x2fd0   :  { %v8878_v29 = vmul.f32 0.03125, %v8877_v19 }
0x2fd2   :  { %v8879_v11 = vsub.f32 %v8842_v15, %v8878_v29  ;;  %v8880_v14 = vsub.f32 %v16139_v62, %v8878_v29  ;;  %v8881_v58 = vsub.f32 %v8852_v21, %v8878_v29  ;;  %v8882_v55 = vsub.f32 %v16142_v16, %v8878_v29 }
0x2fd4   :  { %v8883_v25 = vmul.f32 %v8879_v11, %v8879_v11  ;;  %v8884_v54 = vmul.f32 %v8880_v14, %v8880_v14  ;;  %v8885_v39 = vmul.f32 %v8881_v58, %v8881_v58  ;;  %v8886_v18 = vmul.f32 %v8882_v55, %v8882_v55 }
0x2fd6   :  { %v8887_v24 = vsel %vm43_vm0, %v8883_v25, 0.0  ;;  %v8888_v8 = vsel %vm43_vm0, %v8884_v54, 0.0  ;;  %v8890_v22 = vsel %vm43_vm0, %v8885_v39, 0.0  ;;  %v8892_v50 = vsel %vm43_vm0, %v8886_v18, 0.0 }
0x2fd7   :  { %v8889_v17 = vadd.f32 %v8888_v8, %v8887_v24 }
0x2fd9   :  { %v8891_v43 = vadd.f32 %v8890_v22, %v8889_v17 }
0x2fdb   :  { %v8893_v2 = vadd.f32 %v8892_v50, %v8891_v43 }
0x2fdd   :  { %v8894_v56 = vrot.slane %v8893_v2, 4 }
0x2fdf   :  { %v8895_v23 = vadd.f32 %v8894_v56, %v8893_v2 }
0x2fe1   :  { %v8896_v45 = vrot.slane %v8895_v23, 2 }
0x2fe3   :  { %v8897_v27 = vadd.f32 %v8896_v45, %v8895_v23 }
0x2fe5   :  { %v8898_v0 = vrot.slane %v8897_v27, 1 }
0x2fe7   :  { %v8899_v13 = vadd.f32 %v8898_v0, %v8897_v27 }
0x2fe9   :  { %v8900_v20 = vmul.f32 0.03125, %v8899_v13 }
0x2feb   :  { %v8903_v30 = vadd.f32 1e-05, %v8900_v20 }
0x2fed   :  { %18485 = vrsqrt.f32 %v8903_v30 }
0x2ff7   :  { %v18486_v32 = vpop.eup %18485 }
0x2ff8   :  { %v8905_v33 = vmul.f32 %v18486_v32, %v13969_v31 }
0x2ffa   :  { %v8908_v35 = vmul.f32 %v8905_v33, %v8878_v29  ;;  %v8914_v36 = vrot.slane %v8905_v33, %v18805_v52 }
0x2ffc   :  { %v8909_v37 = vsub.f32 %v13970_v34, %v8908_v35  ;;  %v8918_v38 = vmul.f32 %v8914_v36, %v8852_v21  ;;  %v8916_v40 = vmul.f32 %v8914_v36, %v8842_v15  ;;  %v8917_v46 = vmul.f32 %v16139_v62, %v8914_v36 }
0x2ffd   :  { %v8919_v12 = vmul.f32 %v16142_v16, %v8914_v36 }
0x2ffe   :  { %v8924_v10 = vrot.slane %v8909_v37, %v18805_v52 }
0x3000   :  { %v8928_v41 = vadd.f32 %v8924_v10, %v8918_v38  ;;  %v8926_v59 = vadd.f32 %v8924_v10, %v8916_v40  ;;  %v8927_v57 = vadd.f32 %v8924_v10, %v8917_v46  ;;  %v8929_v9 = vadd.f32 %v8924_v10, %v8919_v12 }
0x3002   :  { %vm8930_vm13 = vcmp.ge.f32.partialorder %v8926_v59, 0.0  ;;  %v8934_v6 = vmul.f32 0.2, %v8926_v59  ;;  %vm8931_vm14 = vcmp.ge.f32.partialorder %v8927_v57, 0.0  ;;  %v8935_v42 = vmul.f32 0.2, %v8927_v57 }
0x3003   :  { %vm8932_vm15 = vcmp.ge.f32.partialorder %v8928_v41, 0.0  ;;  %v8936_v5 = vmul.f32 0.2, %v8928_v41  ;;  %v8937_v21 = vmul.f32 0.2, %v8929_v9  ;;  %vm8933_vm1 = vcmp.ge.f32.partialorder %v8929_v9, 0.0 }
0x3004   :  { %v8938_v48 = vsel %vm8930_vm13, %v8926_v59, %v8934_v6  ;;  %v8939_v51 = vsel %vm8931_vm14, %v8927_v57, %v8935_v42 }
0x3005   :  { %16151 = vmatprep.mubr.msk.f32.mxu0 %vm43_vm0, %v8938_v48  ;;  %v8940_v62 = vsel %vm8932_vm15, %v8928_v41, %v8936_v5  ;;  %v8941_v15 = vsel %vm8933_vm1, %v8929_v9, %v8937_v21 }
0x3006   :  { %16152 = vmatmul.mubr.msk.f32.vlgmr.msra.gmra.mrb[80].mxu0 %vm43_vm0, %v8939_v51 }
0x3007   :  { %16154 = vmatprep.mubr.msk.f32.mxu0 %vm43_vm0, %v8940_v62 }
0x300a   :  { %16155 = vmatmul.mubr.msk.f32.gmra.mrb[82].mxu0 %vm43_vm0, %v8941_v15 }
0x300b   :  { %16165 = vmatprep.mubr.msk.f32.mxu0 %vm43_vm0, %v19719_v26 }
0x30d9   :  { %v16153_v16 = vpop.f32.mrb[80].mxu0 }
0x30da   :  { %v9025_v3 = vpop.f32.mrb[81].mxu0 }
0x30db   :  { %v18259_v19 = vpack.i.bf16 %v16153_v16, %v9025_v3  ;;  %v17327_v29 = vpack.c.bf16 %v16153_v16, %v9025_v3 }
0x30dd   :  { %18250 = vrot.lane.b32.xlu0 %v18259_v19, %s18642_s16  ;;  %v16156_v11 = vpop.f32.mrb[82].mxu0 }
0x30de   :  { %v9035_v14 = vpop.f32.mrb[83].mxu0 }
0x30df   :  { %v18264_v58 = vpack.i.bf16 %v16156_v11, %v9035_v14  ;;  %v17331_v55 = vpack.c.bf16 %v16156_v11, %v9035_v14 }
0x30e1   :  { %18260 = vrot.lane.b32.xlu0 %v18259_v19, %s18643_s18  ;;  %18255 = vrot.lane.b32.xlu1 %v18264_v58, %s18642_s16 }
0x30e5   :  { %18265 = vrot.lane.b32.xlu1 %v18264_v58, %s18643_s18 }
0x314f   :  { %v18251_v25 = vpop.permute.xlu0 %18250 }
0x3150   :  { %v18253_v54 = vunpack.i.h.bf16 %v18251_v25  ;;  %v18252_v39 = vunpack.i.l.bf16 %v18251_v25  ;;  %v13987_v25 = vld [vmem:[%s20562_s3 + $0x13] sm:$0x1] }
0x3152   :  { %v17319_v26 = vpack.c.bf16 %v18253_v54, %v18252_v39 }
0x3153   :  { %v18256_v18 = vpop.permute.xlu1 %18255  ;;  %v18261_v22 = vpop.permute.xlu0 %18260 }
0x3154   :  { %v18258_v24 = vunpack.i.h.bf16 %v18256_v18  ;;  %v18257_v8 = vunpack.i.l.bf16 %v18256_v18  ;;  %17320 = vmatprep.subr.bf16.mxu0 %v17319_v26  ;;  %v18263_v43 = vunpack.i.h.bf16 %v18261_v22  ;;  %v18262_v50 = vunpack.i.l.bf16 %v18261_v22 }
0x3155   :  { %17322 = vmatpush3.bf16.msra.mxu0 %v17319_v26  ;;  %v13988_v26 = vld [vmem:[%s20563_s4 + $0x13] sm:$0x1] }
0x3156   :  { %v17323_v17 = vpack.c.bf16 %v18258_v24, %v18257_v8  ;;  %v17335_v56 = vpack.c.bf16 %v18263_v43, %v18262_v50 }
0x3157   :  { %v18266_v2 = vpop.permute.xlu1 %18265 }
0x3158   :  { %17324 = vmatprep.subr.bf16.mxu0 %v17323_v17  ;;  %v18268_v23 = vunpack.i.h.bf16 %v18266_v2  ;;  %v18267_v45 = vunpack.i.l.bf16 %v18266_v2 }
0x3159   :  { %17326 = vmatpush3.bf16.msra.mxu0 %v17323_v17 }
0x315a   :  { %17328 = vmatprep.subr.bf16.mxu0 %v17327_v29  ;;  %v17339_v27 = vpack.c.bf16 %v18268_v23, %v18267_v45 }
0x315c   :  { %16166 = vmatmul.mubr.msk.f32.vlgmr.msra.gmra.mrb[84].mxu0 %vm43_vm0, %v19730_v4  ;;  %v9409_v4 = vld [vmem:[#allocation2 + $0x280] sm:$0xff] }
0x315d   :  { %17330 = vmatpush3.bf16.msra.mxu0 %v17327_v29  ;;  %16168 = vmatprep.mubr.msk.f32.mxu0 %vm43_vm0, %v19737_v44  ;;  %v9410_v44 = vld [vmem:[#allocation2 + $0x288] sm:$0xff] }
0x315e   :  { %17332 = vmatprep.subr.bf16.mxu0 %v17331_v55 }
0x3160   :  { %16169 = vmatmul.mubr.msk.f32.gmra.mrb[86].mxu0 %vm43_vm0, %v19744_v47  ;;  %v17343_v47 = vpack.c.bf16 %v9410_v44, %v9409_v4 }
0x3161   :  { %17334 = vmatpush3.bf16.msra.mxu0 %v17331_v55  ;;  %16179 = vmatprep.mubr.msk.f32.mxu0 %vm43_vm0, %v19751_v49  ;;  %v9411_v49 = vld [vmem:[#allocation2 + $0x290] sm:$0xff] }
0x3162   :  { %17336 = vmatprep.subr.bf16.mxu0 %v17335_v56  ;;  %17344 = vmatprep.subr.bf16.mxu1 %v17343_v47 }
0x3163   :  { %17346 = vmatpush3.bf16.msra.mxu1 %v17343_v47 }
0x3164   :  { %16180 = vmatmul.mubr.msk.f32.vlgmr.msra.gmra.mrb[84].mxu0 %vm43_vm0, %v19758_v60  ;;  %v9412_v60 = vld [vmem:[#allocation2 + $0x298] sm:$0xff] }
0x3165   :  { %17338 = vmatpush3.bf16.msra.mxu0 %v17335_v56  ;;  %16182 = vmatprep.mubr.msk.f32.mxu0 %vm43_vm0, %v19765_v1  ;;  %v17347_v1 = vpack.c.bf16 %v9412_v60, %v9411_v49 }
0x3166   :  { %17340 = vmatprep.subr.bf16.mxu0 %v17339_v27 }
0x3167   :  { %17348 = vmatprep.subr.bf16.mxu1 %v17347_v1 }
0x3168   :  { %16183 = vmatmul.mubr.msk.f32.gmra.mrb[86].mxu0 %vm43_vm0, %v19772_v63  ;;  %17350 = vmatpush3.bf16.msra.mxu1 %v17347_v1 }
0x3169   :  { %17342 = vmatpush3.bf16.msra.mxu0 %v17339_v27  ;;  %16193 = vmatprep.mubr.msk.f32.mxu0 %vm43_vm0, %v19779_v53 }
0x316c   :  { %16194 = vmatmul.mubr.msk.f32.vlgmr.msra.gmra.mrb[84].mxu0 %vm43_vm0, %v19786_v7 }
0x316d   :  { %16196 = vmatprep.mubr.msk.f32.mxu0 %vm43_vm0, %v19793_v28 }
0x3170   :  { %16197 = vmatmul.mubr.msk.f32.gmra.mrb[86].mxu0 %vm43_vm0, %v19800_v61 }
0x323f   :  { %v16195_v63 = vpop.f32.mrb[84].mxu0 }
0x3240   :  { %v9332_v53 = vsel %vm43_vm0, %v16195_v63, 0.0  ;;  %v9308_v7 = vpop.f32.mrb[85].mxu0 }
0x3241   :  { %v9331_v0 = vsel %vm43_vm0, %v9308_v7, 0.0 }
0x3242   :  { %v9333_v28 = vadd.f32 %v9332_v53, %v9331_v0 }
0x3243   :  { %v16198_v13 = vpop.f32.mrb[86].mxu0 }
0x3244   :  { %v9318_v20 = vpop.f32.mrb[87].mxu0  ;;  %v9336_v31 = vsel %vm43_vm0, %v16198_v13, 0.0 }
0x3245   :  { %v9334_v61 = vsel %vm43_vm0, %v9318_v20, 0.0 }
0x3246   :  { %v9335_v30 = vadd.f32 %v9334_v61, %v9333_v28 }
0x3248   :  { %v9337_v32 = vadd.f32 %v9336_v31, %v9335_v30 }
0x324a   :  { %v9338_v33 = vrot.slane %v9337_v32, 4 }
0x324c   :  { %v9339_v34 = vadd.f32 %v9338_v33, %v9337_v32 }
0x324e   :  { %v9340_v35 = vrot.slane %v9339_v34, 2 }
0x3250   :  { %v9341_v36 = vadd.f32 %v9340_v35, %v9339_v34 }
0x3252   :  { %v9342_v37 = vrot.slane %v9341_v36, 1 }
0x3254   :  { %v9343_v38 = vadd.f32 %v9342_v37, %v9341_v36 }
0x3256   :  { %v9344_v40 = vmul.f32 0.03125, %v9343_v38 }
0x3258   :  { %v9345_v46 = vsub.f32 %v9308_v7, %v9344_v40  ;;  %v9346_v12 = vsub.f32 %v16195_v63, %v9344_v40  ;;  %v9347_v10 = vsub.f32 %v9318_v20, %v9344_v40  ;;  %v9348_v41 = vsub.f32 %v16198_v13, %v9344_v40 }
0x325a   :  { %v9349_v59 = vmul.f32 %v9345_v46, %v9345_v46  ;;  %v9350_v57 = vmul.f32 %v9346_v12, %v9346_v12  ;;  %v9351_v9 = vmul.f32 %v9347_v10, %v9347_v10  ;;  %v9352_v6 = vmul.f32 %v9348_v41, %v9348_v41 }
0x325c   :  { %v9353_v42 = vsel %vm43_vm0, %v9349_v59, 0.0  ;;  %v9354_v5 = vsel %vm43_vm0, %v9350_v57, 0.0  ;;  %v9356_v51 = vsel %vm43_vm0, %v9351_v9, 0.0  ;;  %v9358_v62 = vsel %vm43_vm0, %v9352_v6, 0.0  ;;  %v19982_v59 = vld [vmem:[%s20560_s1 + $0x28] sm:$0xff]  ;;  %v19989_v9 = vld [vmem:[%s20560_s1 + $0x30] sm:$0xff] }
0x325d   :  { %v9355_v48 = vadd.f32 %v9354_v5, %v9353_v42 }
0x325f   :  { %v9357_v21 = vadd.f32 %v9356_v51, %v9355_v48  ;;  %v19996_v48 = vld [vmem:[%s20560_s1 + $0x38] sm:$0xff]  ;;  %v20003_v51 = vld [vmem:[%s20560_s1] sm:$0xff] }
0x3261   :  { %v9359_v15 = vadd.f32 %v9358_v62, %v9357_v21  ;;  %v20010_v62 = vld [vmem:[%s20560_s1 + $0x8] sm:$0xff] }
0x3263   :  { %v9360_v16 = vrot.slane %v9359_v15, 4 }
0x3265   :  { %v9361_v3 = vadd.f32 %v9360_v16, %v9359_v15  ;;  %v20017_v15 = vld [vmem:[%s20560_s1 + $0x10] sm:$0xff]  ;;  %v20024_v16 = vld [vmem:[%s20560_s1 + $0x18] sm:$0xff] }
0x3267   :  { %v9362_v19 = vrot.slane %v9361_v3, 2 }
0x3269   :  { %v9363_v29 = vadd.f32 %v9362_v19, %v9361_v3  ;;  %v20031_v3 = vld [vmem:[%s20560_s1 + $0x40] sm:$0xff]  ;;  %v20038_v19 = vld [vmem:[%s20560_s1 + $0x48] sm:$0xff] }
0x326b   :  { %v9364_v11 = vrot.slane %v9363_v29, 1 }
0x326d   :  { %v9365_v14 = vadd.f32 %v9364_v11, %v9363_v29  ;;  %v20045_v29 = vld [vmem:[%s20560_s1 + $0x50] sm:$0xff]  ;;  %v20052_v11 = vld [vmem:[%s20560_s1 + $0x58] sm:$0xff] }
0x326f   :  { %v9366_v58 = vmul.f32 0.03125, %v9365_v14  ;;  %v9875_v14 = vld [vmem:[#allocation2 + $0x2a0] sm:$0xff] }
0x3271   :  { %v9369_v55 = vadd.f32 1e-05, %v9366_v58  ;;  %v9876_v58 = vld [vmem:[#allocation2 + $0x2a8] sm:$0xff] }
0x3273   :  { %18487 = vrsqrt.f32 %v9369_v55  ;;  %v17375_v55 = vpack.c.bf16 %v9876_v58, %v9875_v14 }
0x3275   :  { %17376 = vmatprep.subr.bf16.mxu0 %v17375_v55 }
0x3276   :  { %17378 = vmatpush3.bf16.msra.mxu0 %v17375_v55 }
0x327d   :  { %v18488_v54 = vpop.eup %18487 }
0x327e   :  { %v9371_v39 = vmul.f32 %v18488_v54, %v13987_v25  ;;  %v9877_v25 = vld [vmem:[#allocation2 + $0x2b0] sm:$0xff]  ;;  %v9878_v54 = vld [vmem:[#allocation2 + $0x2b8] sm:$0xff] }
0x3280   :  { %v9374_v18 = vmul.f32 %v9371_v39, %v9344_v40  ;;  %v9380_v24 = vrot.slane %v9371_v39, %v18805_v52  ;;  %v17379_v39 = vpack.c.bf16 %v9878_v54, %v9877_v25 }
0x3282   :  { %v9375_v8 = vsub.f32 %v13988_v26, %v9374_v18  ;;  %v9384_v17 = vmul.f32 %v9380_v24, %v9318_v20  ;;  %v9382_v22 = vmul.f32 %v9380_v24, %v9308_v7  ;;  %v9383_v43 = vmul.f32 %v16195_v63, %v9380_v24  ;;  %v19971_v7 = vld [vmem:[%s20560_s1 + $0x20] sm:$0xff]  ;;  %17380 = vmatprep.subr.bf16.mxu0 %v17379_v39 }
0x3283   :  { %v9385_v50 = vmul.f32 %v16198_v13, %v9380_v24  ;;  %17382 = vmatpush3.bf16.msra.mxu0 %v17379_v39 }
0x3284   :  { %v9390_v2 = vrot.slane %v9375_v8, %v18805_v52 }
0x3286   :  { %v9394_v56 = vadd.f32 %v9390_v2, %v9384_v17  ;;  %v9392_v23 = vadd.f32 %v9390_v2, %v9382_v22  ;;  %v9393_v45 = vadd.f32 %v9390_v2, %v9383_v43  ;;  %v9395_v27 = vadd.f32 %v9390_v2, %v9385_v50 }
0x3288   :  { %vm9396_vm2 = vcmp.ge.f32.partialorder %v9392_v23, 0.0  ;;  %v9400_v4 = vmul.f32 0.2, %v9392_v23  ;;  %vm9397_vm3 = vcmp.ge.f32.partialorder %v9393_v45, 0.0  ;;  %v9401_v44 = vmul.f32 0.2, %v9393_v45 }
0x3289   :  { %vm9398_vm4 = vcmp.ge.f32.partialorder %v9394_v56, 0.0  ;;  %v9402_v47 = vmul.f32 0.2, %v9394_v56  ;;  %v9403_v1 = vmul.f32 0.2, %v9395_v27  ;;  %vm9399_vm5 = vcmp.ge.f32.partialorder %v9395_v27, 0.0 }
0x328a   :  { %v9404_v49 = vsel %vm9396_vm2, %v9392_v23, %v9400_v4  ;;  %v9405_v60 = vsel %vm9397_vm3, %v9393_v45, %v9401_v44 }
0x328b   :  { %16207 = vmatprep.mubr.msk.f32.mxu1 %vm43_vm0, %v9404_v49  ;;  %v9406_v63 = vsel %vm9398_vm4, %v9394_v56, %v9402_v47  ;;  %v9407_v53 = vsel %vm9399_vm5, %v9395_v27, %v9403_v1 }
0x328c   :  { %16208 = vmatmul.mubr.msk.f32.vlgmr.msra.gmra.mrb[76].mxu1 %vm43_vm0, %v9405_v60 }
0x328d   :  { %16210 = vmatprep.mubr.msk.f32.mxu1 %vm43_vm0, %v9406_v63 }
0x3290   :  { %16211 = vmatmul.mubr.msk.f32.gmra.mrb[78].mxu1 %vm43_vm0, %v9407_v53 }
0x3291   :  { %16221 = vmatprep.mubr.msk.f32.mxu1 %vm43_vm0, %v19971_v7 }
0x335f   :  { %v16209_v0 = vpop.f32.mrb[76].mxu1 }
0x3360   :  { %v9491_v28 = vpop.f32.mrb[77].mxu1 }
0x3361   :  { %v18279_v13 = vpack.i.bf16 %v16209_v0, %v9491_v28  ;;  %v17359_v20 = vpack.c.bf16 %v16209_v0, %v9491_v28 }
0x3363   :  { %18270 = vrot.lane.b32.xlu0 %v18279_v13, %s18642_s16  ;;  %v16212_v61 = vpop.f32.mrb[78].mxu1 }
0x3364   :  { %v9501_v30 = vpop.f32.mrb[79].mxu1 }
0x3365   :  { %v18284_v31 = vpack.i.bf16 %v16212_v61, %v9501_v30  ;;  %v17363_v32 = vpack.c.bf16 %v16212_v61, %v9501_v30 }
0x3367   :  { %18280 = vrot.lane.b32.xlu0 %v18279_v13, %s18643_s18  ;;  %18275 = vrot.lane.b32.xlu1 %v18284_v31, %s18642_s16 }
0x336b   :  { %18285 = vrot.lane.b32.xlu1 %v18284_v31, %s18643_s18 }
0x33d5   :  { %v18271_v33 = vpop.permute.xlu0 %18270 }
0x33d6   :  { %v18273_v34 = vunpack.i.h.bf16 %v18271_v33  ;;  %v18272_v35 = vunpack.i.l.bf16 %v18271_v33 }
0x33d8   :  { %v17351_v36 = vpack.c.bf16 %v18273_v34, %v18272_v35 }
0x33d9   :  { %v18276_v37 = vpop.permute.xlu1 %18275  ;;  %v18281_v12 = vpop.permute.xlu0 %18280 }
0x33da   :  { %v18278_v38 = vunpack.i.h.bf16 %v18276_v37  ;;  %v18277_v40 = vunpack.i.l.bf16 %v18276_v37  ;;  %17352 = vmatprep.subr.bf16.mxu1 %v17351_v36  ;;  %v18283_v10 = vunpack.i.h.bf16 %v18281_v12  ;;  %v18282_v41 = vunpack.i.l.bf16 %v18281_v12 }
0x33db   :  { %17354 = vmatpush3.bf16.msra.mxu1 %v17351_v36 }
0x33dc   :  { %v17355_v46 = vpack.c.bf16 %v18278_v38, %v18277_v40  ;;  %v17367_v6 = vpack.c.bf16 %v18283_v10, %v18282_v41 }
0x33dd   :  { %v18286_v57 = vpop.permute.xlu1 %18285 }
0x33de   :  { %17356 = vmatprep.subr.bf16.mxu1 %v17355_v46  ;;  %v18288_v42 = vunpack.i.h.bf16 %v18286_v57  ;;  %v18287_v5 = vunpack.i.l.bf16 %v18286_v57 }
0x33df   :  { %17358 = vmatpush3.bf16.msra.mxu1 %v17355_v46 }
0x33e0   :  { %17360 = vmatprep.subr.bf16.mxu1 %v17359_v20  ;;  %v17371_v21 = vpack.c.bf16 %v18288_v42, %v18287_v5 }
0x33e2   :  { %16222 = vmatmul.mubr.msk.f32.vlgmr.msra.gmra.mrb[80].mxu1 %vm43_vm0, %v19982_v59 }
0x33e3   :  { %17362 = vmatpush3.bf16.msra.mxu1 %v17359_v20  ;;  %16224 = vmatprep.mubr.msk.f32.mxu1 %vm43_vm0, %v19989_v9 }
0x33e4   :  { %17364 = vmatprep.subr.bf16.mxu1 %v17363_v32 }
0x33e6   :  { %16225 = vmatmul.mubr.msk.f32.gmra.mrb[82].mxu1 %vm43_vm0, %v19996_v48 }
0x33e7   :  { %17366 = vmatpush3.bf16.msra.mxu1 %v17363_v32  ;;  %16235 = vmatprep.mubr.msk.f32.mxu1 %vm43_vm0, %v20003_v51 }
0x33e8   :  { %17368 = vmatprep.subr.bf16.mxu1 %v17367_v6 }
0x33ea   :  { %16236 = vmatmul.mubr.msk.f32.vlgmr.msra.gmra.mrb[80].mxu1 %vm43_vm0, %v20010_v62 }
0x33eb   :  { %17370 = vmatpush3.bf16.msra.mxu1 %v17367_v6  ;;  %16238 = vmatprep.mubr.msk.f32.mxu1 %vm43_vm0, %v20017_v15  ;;  %v14005_v6 = vld [vmem:[%s20562_s3 + $0x14] sm:$0x1] }
0x33ec   :  { %17372 = vmatprep.subr.bf16.mxu1 %v17371_v21 }
0x33ee   :  { %16239 = vmatmul.mubr.msk.f32.gmra.mrb[82].mxu1 %vm43_vm0, %v20024_v16 }
0x33ef   :  { %17374 = vmatpush3.bf16.msra.mxu1 %v17371_v21  ;;  %16249 = vmatprep.mubr.msk.f32.mxu1 %vm43_vm0, %v20031_v3  ;;  %v14006_v21 = vld [vmem:[%s20563_s4 + $0x14] sm:$0x1] }
0x33f2   :  { %16250 = vmatmul.mubr.msk.f32.vlgmr.msra.gmra.mrb[80].mxu1 %vm43_vm0, %v20038_v19 }
0x33f3   :  { %16252 = vmatprep.mubr.msk.f32.mxu1 %vm43_vm0, %v20045_v29 }
0x33f6   :  { %16253 = vmatmul.mubr.msk.f32.gmra.mrb[82].mxu1 %vm43_vm0, %v20052_v11 }
0x34c5   :  { %v16251_v26 = vpop.f32.mrb[80].mxu1 }
0x34c6   :  { %v9798_v18 = vsel %vm43_vm0, %v16251_v26, 0.0  ;;  %v9774_v24 = vpop.f32.mrb[81].mxu1 }
0x34c7   :  { %v9797_v8 = vsel %vm43_vm0, %v9774_v24, 0.0 }
0x34c8   :  { %v9799_v17 = vadd.f32 %v9798_v18, %v9797_v8 }
0x34c9   :  { %v16254_v22 = vpop.f32.mrb[82].mxu1 }
0x34ca   :  { %v9784_v43 = vpop.f32.mrb[83].mxu1  ;;  %v9802_v56 = vsel %vm43_vm0, %v16254_v22, 0.0 }
0x34cb   :  { %v9800_v50 = vsel %vm43_vm0, %v9784_v43, 0.0 }
0x34cc   :  { %v9801_v2 = vadd.f32 %v9800_v50, %v9799_v17 }
0x34ce   :  { %v9803_v23 = vadd.f32 %v9802_v56, %v9801_v2 }
0x34d0   :  { %v9804_v45 = vrot.slane %v9803_v23, 4 }
0x34d2   :  { %v9805_v27 = vadd.f32 %v9804_v45, %v9803_v23 }
0x34d4   :  { %v9806_v4 = vrot.slane %v9805_v27, 2 }
0x34d6   :  { %v9807_v44 = vadd.f32 %v9806_v4, %v9805_v27 }
0x34d8   :  { %v9808_v47 = vrot.slane %v9807_v44, 1 }
0x34da   :  { %v9809_v49 = vadd.f32 %v9808_v47, %v9807_v44 }
0x34dc   :  { %v9810_v60 = vmul.f32 0.03125, %v9809_v49 }
0x34de   :  { %v9811_v1 = vsub.f32 %v9774_v24, %v9810_v60  ;;  %v9812_v63 = vsub.f32 %v16251_v26, %v9810_v60  ;;  %v9813_v53 = vsub.f32 %v9784_v43, %v9810_v60  ;;  %v9814_v0 = vsub.f32 %v16254_v22, %v9810_v60 }
0x34e0   :  { %v9815_v28 = vmul.f32 %v9811_v1, %v9811_v1  ;;  %v9816_v13 = vmul.f32 %v9812_v63, %v9812_v63  ;;  %v9817_v20 = vmul.f32 %v9813_v53, %v9813_v53  ;;  %v9818_v61 = vmul.f32 %v9814_v0, %v9814_v0 }
0x34e2   :  { %v9819_v30 = vsel %vm43_vm0, %v9815_v28, 0.0  ;;  %v9820_v31 = vsel %vm43_vm0, %v9816_v13, 0.0  ;;  %v9822_v33 = vsel %vm43_vm0, %v9817_v20, 0.0  ;;  %v9824_v35 = vsel %vm43_vm0, %v9818_v61, 0.0 }
0x34e3   :  { %v9821_v32 = vadd.f32 %v9820_v31, %v9819_v30 }
0x34e5   :  { %v9823_v34 = vadd.f32 %v9822_v33, %v9821_v32 }
0x34e7   :  { %v9825_v36 = vadd.f32 %v9824_v35, %v9823_v34 }
0x34e9   :  { %v9826_v37 = vrot.slane %v9825_v36, 4 }
0x34eb   :  { %v9827_v38 = vadd.f32 %v9826_v37, %v9825_v36 }
0x34ed   :  { %v9828_v40 = vrot.slane %v9827_v38, 2 }
0x34ef   :  { %v9829_v46 = vadd.f32 %v9828_v40, %v9827_v38 }
0x34f1   :  { %v9830_v12 = vrot.slane %v9829_v46, 1 }
0x34f3   :  { %v9831_v10 = vadd.f32 %v9830_v12, %v9829_v46 }
0x34f5   :  { %v9832_v41 = vmul.f32 0.03125, %v9831_v10  ;;  %v10341_v10 = vld [vmem:[#allocation2 + $0x2c0] sm:$0xff] }
0x34f7   :  { %v9835_v57 = vadd.f32 1e-05, %v9832_v41  ;;  %v10342_v41 = vld [vmem:[#allocation2 + $0x2c8] sm:$0xff] }
0x34f9   :  { %18489 = vrsqrt.f32 %v9835_v57  ;;  %v17407_v57 = vpack.c.bf16 %v10342_v41, %v10341_v10 }
0x34fb   :  { %17408 = vmatprep.subr.bf16.mxu1 %v17407_v57 }
0x34fc   :  { %17410 = vmatpush3.bf16.msra.mxu1 %v17407_v57 }
0x3503   :  { %v18490_v42 = vpop.eup %18489 }
0x3504   :  { %v9837_v5 = vmul.f32 %v18490_v42, %v14005_v6  ;;  %v10343_v6 = vld [vmem:[#allocation2 + $0x2d0] sm:$0xff]  ;;  %v10344_v42 = vld [vmem:[#allocation2 + $0x2d8] sm:$0xff] }
0x3506   :  { %v9840_v14 = vmul.f32 %v9837_v5, %v9810_v60  ;;  %v9846_v58 = vrot.slane %v9837_v5, %v18805_v52  ;;  %v17411_v5 = vpack.c.bf16 %v10344_v42, %v10343_v6 }
0x3508   :  { %v9841_v55 = vsub.f32 %v14006_v21, %v9840_v14  ;;  %v9850_v25 = vmul.f32 %v9846_v58, %v9784_v43  ;;  %v9848_v54 = vmul.f32 %v9846_v58, %v9774_v24  ;;  %v9849_v39 = vmul.f32 %v16251_v26, %v9846_v58  ;;  %17412 = vmatprep.subr.bf16.mxu1 %v17411_v5 }
0x3509   :  { %v9851_v18 = vmul.f32 %v16254_v22, %v9846_v58  ;;  %17414 = vmatpush3.bf16.msra.mxu1 %v17411_v5 }
0x350a   :  { %v9856_v8 = vrot.slane %v9841_v55, %v18805_v52 }
0x350c   :  { %v9860_v17 = vadd.f32 %v9856_v8, %v9850_v25  ;;  %v9858_v50 = vadd.f32 %v9856_v8, %v9848_v54  ;;  %v9859_v2 = vadd.f32 %v9856_v8, %v9849_v39  ;;  %v9861_v56 = vadd.f32 %v9856_v8, %v9851_v18 }
0x350e   :  { %vm9862_vm6 = vcmp.ge.f32.partialorder %v9858_v50, 0.0  ;;  %v9866_v23 = vmul.f32 0.2, %v9858_v50  ;;  %vm9863_vm7 = vcmp.ge.f32.partialorder %v9859_v2, 0.0  ;;  %v9867_v45 = vmul.f32 0.2, %v9859_v2 }
0x350f   :  { %vm9864_vm8 = vcmp.ge.f32.partialorder %v9860_v17, 0.0  ;;  %v9868_v27 = vmul.f32 0.2, %v9860_v17  ;;  %v9869_v43 = vmul.f32 0.2, %v9861_v56  ;;  %vm9865_vm9 = vcmp.ge.f32.partialorder %v9861_v56, 0.0 }
0x3510   :  { %v9870_v4 = vsel %vm9862_vm6, %v9858_v50, %v9866_v23  ;;  %v9871_v44 = vsel %vm9863_vm7, %v9859_v2, %v9867_v45 }
0x3511   :  { %16263 = vmatprep.mubr.msk.f32.mxu0 %vm43_vm0, %v9870_v4  ;;  %v9872_v26 = vsel %vm9864_vm8, %v9860_v17, %v9868_v27  ;;  %v9873_v24 = vsel %vm9865_vm9, %v9861_v56, %v9869_v43 }
0x3512   :  { %16264 = vmatmul.mubr.msk.f32.vlgmr.msra.gmra.mrb[88].mxu0 %vm43_vm0, %v9871_v44 }
0x3513   :  { %16266 = vmatprep.mubr.msk.f32.mxu0 %vm43_vm0, %v9872_v26 }
0x3516   :  { %16267 = vmatmul.mubr.msk.f32.gmra.mrb[90].mxu0 %vm43_vm0, %v9873_v24 }
0x3517   :  { %16277 = vmatprep.mubr.msk.f32.mxu0 %vm43_vm0, %v19971_v7 }
0x35e5   :  { %v16265_v22 = vpop.f32.mrb[88].mxu0 }
0x35e6   :  { %v9957_v47 = vpop.f32.mrb[89].mxu0 }
0x35e7   :  { %v18299_v49 = vpack.i.bf16 %v16265_v22, %v9957_v47  ;;  %v17391_v60 = vpack.c.bf16 %v16265_v22, %v9957_v47 }
0x35e9   :  { %18290 = vrot.lane.b32.xlu0 %v18299_v49, %s18642_s16  ;;  %v16268_v1 = vpop.f32.mrb[90].mxu0 }
0x35ea   :  { %v9967_v63 = vpop.f32.mrb[91].mxu0 }
0x35eb   :  { %v18304_v53 = vpack.i.bf16 %v16268_v1, %v9967_v63  ;;  %v17395_v0 = vpack.c.bf16 %v16268_v1, %v9967_v63 }
0x35ed   :  { %18300 = vrot.lane.b32.xlu0 %v18299_v49, %s18643_s18  ;;  %18295 = vrot.lane.b32.xlu1 %v18304_v53, %s18642_s16 }
0x35f1   :  { %18305 = vrot.lane.b32.xlu1 %v18304_v53, %s18643_s18 }
0x365b   :  { %v18291_v28 = vpop.permute.xlu0 %18290 }
0x365c   :  { %v18293_v13 = vunpack.i.h.bf16 %v18291_v28  ;;  %v18292_v20 = vunpack.i.l.bf16 %v18291_v28 }
0x365e   :  { %v17383_v61 = vpack.c.bf16 %v18293_v13, %v18292_v20 }
0x365f   :  { %v18296_v30 = vpop.permute.xlu1 %18295  ;;  %v18301_v34 = vpop.permute.xlu0 %18300 }
0x3660   :  { %v18298_v31 = vunpack.i.h.bf16 %v18296_v30  ;;  %v18297_v32 = vunpack.i.l.bf16 %v18296_v30  ;;  %17384 = vmatprep.subr.bf16.mxu0 %v17383_v61  ;;  %v18303_v35 = vunpack.i.h.bf16 %v18301_v34  ;;  %v18302_v36 = vunpack.i.l.bf16 %v18301_v34 }
0x3661   :  { %17386 = vmatpush3.bf16.msra.mxu0 %v17383_v61 }
0x3662   :  { %v17387_v33 = vpack.c.bf16 %v18298_v31, %v18297_v32  ;;  %v17399_v38 = vpack.c.bf16 %v18303_v35, %v18302_v36 }
0x3663   :  { %v18306_v37 = vpop.permute.xlu1 %18305 }
0x3664   :  { %17388 = vmatprep.subr.bf16.mxu0 %v17387_v33  ;;  %v18308_v40 = vunpack.i.h.bf16 %v18306_v37  ;;  %v18307_v46 = vunpack.i.l.bf16 %v18306_v37 }
0x3665   :  { %17390 = vmatpush3.bf16.msra.mxu0 %v17387_v33 }
0x3666   :  { %17392 = vmatprep.subr.bf16.mxu0 %v17391_v60  ;;  %v17403_v12 = vpack.c.bf16 %v18308_v40, %v18307_v46 }
0x3668   :  { %16278 = vmatmul.mubr.msk.f32.vlgmr.msra.gmra.mrb[92].mxu0 %vm43_vm0, %v19982_v59 }
0x3669   :  { %17394 = vmatpush3.bf16.msra.mxu0 %v17391_v60  ;;  %16280 = vmatprep.mubr.msk.f32.mxu0 %vm43_vm0, %v19989_v9 }
0x366a   :  { %17396 = vmatprep.subr.bf16.mxu0 %v17395_v0 }
0x366c   :  { %16281 = vmatmul.mubr.msk.f32.gmra.mrb[94].mxu0 %vm43_vm0, %v19996_v48 }
0x366d   :  { %17398 = vmatpush3.bf16.msra.mxu0 %v17395_v0  ;;  %16291 = vmatprep.mubr.msk.f32.mxu0 %vm43_vm0, %v20003_v51 }
0x366e   :  { %17400 = vmatprep.subr.bf16.mxu0 %v17399_v38 }
0x3670   :  { %16292 = vmatmul.mubr.msk.f32.vlgmr.msra.gmra.mrb[92].mxu0 %vm43_vm0, %v20010_v62 }
0x3671   :  { %17402 = vmatpush3.bf16.msra.mxu0 %v17399_v38  ;;  %16294 = vmatprep.mubr.msk.f32.mxu0 %vm43_vm0, %v20017_v15  ;;  %v14023_v38 = vld [vmem:[%s20562_s3 + $0x15] sm:$0x1] }
0x3672   :  { %17404 = vmatprep.subr.bf16.mxu0 %v17403_v12 }
0x3674   :  { %16295 = vmatmul.mubr.msk.f32.gmra.mrb[94].mxu0 %vm43_vm0, %v20024_v16 }
0x3675   :  { %17406 = vmatpush3.bf16.msra.mxu0 %v17403_v12  ;;  %16305 = vmatprep.mubr.msk.f32.mxu0 %vm43_vm0, %v20031_v3  ;;  %v14024_v12 = vld [vmem:[%s20563_s4 + $0x15] sm:$0x1] }
0x3678   :  { %16306 = vmatmul.mubr.msk.f32.vlgmr.msra.gmra.mrb[92].mxu0 %vm43_vm0, %v20038_v19 }
0x3679   :  { %16308 = vmatprep.mubr.msk.f32.mxu0 %vm43_vm0, %v20045_v29 }
0x367c   :  { %16309 = vmatmul.mubr.msk.f32.gmra.mrb[94].mxu0 %vm43_vm0, %v20052_v11 }
0x374b   :  { %v16307_v21 = vpop.f32.mrb[92].mxu0 }
0x374c   :  { %v10264_v14 = vsel %vm43_vm0, %v16307_v21, 0.0  ;;  %v10240_v58 = vpop.f32.mrb[93].mxu0 }
0x374d   :  { %v10263_v55 = vsel %vm43_vm0, %v10240_v58, 0.0 }
0x374e   :  { %v10265_v25 = vadd.f32 %v10264_v14, %v10263_v55 }
0x374f   :  { %v16310_v54 = vpop.f32.mrb[94].mxu0 }
0x3750   :  { %v10250_v39 = vpop.f32.mrb[95].mxu0  ;;  %v10268_v17 = vsel %vm43_vm0, %v16310_v54, 0.0 }
0x3751   :  { %v10266_v18 = vsel %vm43_vm0, %v10250_v39, 0.0 }
0x3752   :  { %v10267_v8 = vadd.f32 %v10266_v18, %v10265_v25 }
0x3754   :  { %v10269_v50 = vadd.f32 %v10268_v17, %v10267_v8 }
0x3756   :  { %v10270_v2 = vrot.slane %v10269_v50, 4 }
0x3758   :  { %v10271_v56 = vadd.f32 %v10270_v2, %v10269_v50 }
0x375a   :  { %v10272_v23 = vrot.slane %v10271_v56, 2 }
0x375c   :  { %v10273_v45 = vadd.f32 %v10272_v23, %v10271_v56 }
0x375e   :  { %v10274_v27 = vrot.slane %v10273_v45, 1 }
0x3760   :  { %v10275_v4 = vadd.f32 %v10274_v27, %v10273_v45 }
0x3762   :  { %v10276_v44 = vmul.f32 0.03125, %v10275_v4 }
0x3764   :  { %v10277_v43 = vsub.f32 %v10240_v58, %v10276_v44  ;;  %v10278_v26 = vsub.f32 %v16307_v21, %v10276_v44  ;;  %v10279_v24 = vsub.f32 %v10250_v39, %v10276_v44  ;;  %v10280_v22 = vsub.f32 %v16310_v54, %v10276_v44 }
0x3766   :  { %v10281_v47 = vmul.f32 %v10277_v43, %v10277_v43  ;;  %v10282_v49 = vmul.f32 %v10278_v26, %v10278_v26  ;;  %v10283_v60 = vmul.f32 %v10279_v24, %v10279_v24  ;;  %v10284_v1 = vmul.f32 %v10280_v22, %v10280_v22 }
0x3768   :  { %v10285_v63 = vsel %vm43_vm0, %v10281_v47, 0.0  ;;  %v10286_v53 = vsel %vm43_vm0, %v10282_v49, 0.0  ;;  %v10288_v28 = vsel %vm43_vm0, %v10283_v60, 0.0  ;;  %v10290_v20 = vsel %vm43_vm0, %v10284_v1, 0.0 }
0x3769   :  { %v10287_v0 = vadd.f32 %v10286_v53, %v10285_v63 }
0x376b   :  { %v10289_v13 = vadd.f32 %v10288_v28, %v10287_v0 }
0x376d   :  { %v10291_v61 = vadd.f32 %v10290_v20, %v10289_v13 }
0x376f   :  { %v10292_v30 = vrot.slane %v10291_v61, 4 }
0x3771   :  { %v10293_v31 = vadd.f32 %v10292_v30, %v10291_v61 }
0x3773   :  { %v10294_v32 = vrot.slane %v10293_v31, 2 }
0x3775   :  { %v10295_v33 = vadd.f32 %v10294_v32, %v10293_v31 }
0x3777   :  { %v10296_v34 = vrot.slane %v10295_v33, 1 }
0x3779   :  { %v10297_v35 = vadd.f32 %v10296_v34, %v10295_v33 }
0x377b   :  { %v10298_v36 = vmul.f32 0.03125, %v10297_v35  ;;  %v10807_v35 = vld [vmem:[#allocation2 + $0x2e0] sm:$0xff] }
0x377d   :  { %v10301_v37 = vadd.f32 1e-05, %v10298_v36  ;;  %v10808_v36 = vld [vmem:[#allocation2 + $0x2e8] sm:$0xff] }
0x377f   :  { %18491 = vrsqrt.f32 %v10301_v37  ;;  %v17439_v37 = vpack.c.bf16 %v10808_v36, %v10807_v35 }
0x3781   :  { %17440 = vmatprep.subr.bf16.mxu0 %v17439_v37 }
0x3782   :  { %17442 = vmatpush3.bf16.msra.mxu0 %v17439_v37 }
0x3789   :  { %v18492_v40 = vpop.eup %18491 }
0x378a   :  { %v10303_v46 = vmul.f32 %v18492_v40, %v14023_v38  ;;  %v10809_v38 = vld [vmem:[#allocation2 + $0x2f0] sm:$0xff]  ;;  %v10810_v40 = vld [vmem:[#allocation2 + $0x2f8] sm:$0xff] }
0x378c   :  { %v10306_v10 = vmul.f32 %v10303_v46, %v10276_v44  ;;  %v10312_v41 = vrot.slane %v10303_v46, %v18805_v52  ;;  %v17443_v46 = vpack.c.bf16 %v10810_v40, %v10809_v38 }
0x378e   :  { %v10307_v57 = vsub.f32 %v14024_v12, %v10306_v10  ;;  %v10316_v6 = vmul.f32 %v10312_v41, %v10250_v39  ;;  %v10314_v42 = vmul.f32 %v10312_v41, %v10240_v58  ;;  %v10315_v5 = vmul.f32 %v16307_v21, %v10312_v41  ;;  %17444 = vmatprep.subr.bf16.mxu0 %v17443_v46 }
0x378f   :  { %v10317_v14 = vmul.f32 %v16310_v54, %v10312_v41  ;;  %17446 = vmatpush3.bf16.msra.mxu0 %v17443_v46 }
0x3790   :  { %v10322_v55 = vrot.slane %v10307_v57, %v18805_v52 }
0x3792   :  { %v10326_v25 = vadd.f32 %v10322_v55, %v10316_v6  ;;  %v10324_v18 = vadd.f32 %v10322_v55, %v10314_v42  ;;  %v10325_v8 = vadd.f32 %v10322_v55, %v10315_v5  ;;  %v10327_v17 = vadd.f32 %v10322_v55, %v10317_v14 }
0x3794   :  { %vm10328_vm10 = vcmp.ge.f32.partialorder %v10324_v18, 0.0  ;;  %v10332_v50 = vmul.f32 0.2, %v10324_v18  ;;  %vm10329_vm11 = vcmp.ge.f32.partialorder %v10325_v8, 0.0  ;;  %v10333_v2 = vmul.f32 0.2, %v10325_v8 }
0x3795   :  { %vm10330_vm12 = vcmp.ge.f32.partialorder %v10326_v25, 0.0  ;;  %v10334_v56 = vmul.f32 0.2, %v10326_v25  ;;  %v10335_v39 = vmul.f32 0.2, %v10327_v17  ;;  %vm10331_vm13 = vcmp.ge.f32.partialorder %v10327_v17, 0.0 }
0x3796   :  { %v10336_v23 = vsel %vm10328_vm10, %v10324_v18, %v10332_v50  ;;  %v10337_v45 = vsel %vm10329_vm11, %v10325_v8, %v10333_v2 }
0x3797   :  { %16319 = vmatprep.mubr.msk.f32.mxu1 %vm43_vm0, %v10336_v23  ;;  %v10338_v21 = vsel %vm10330_vm12, %v10326_v25, %v10334_v56  ;;  %v10339_v58 = vsel %vm10331_vm13, %v10327_v17, %v10335_v39 }
0x3798   :  { %16320 = vmatmul.mubr.msk.f32.vlgmr.msra.gmra.mrb[84].mxu1 %vm43_vm0, %v10337_v45 }
0x3799   :  { %16322 = vmatprep.mubr.msk.f32.mxu1 %vm43_vm0, %v10338_v21 }
0x379c   :  { %16323 = vmatmul.mubr.msk.f32.gmra.mrb[86].mxu1 %vm43_vm0, %v10339_v58 }
0x379d   :  { %16333 = vmatprep.mubr.msk.f32.mxu1 %vm43_vm0, %v19971_v7 }
0x386b   :  { %v16321_v54 = vpop.f32.mrb[84].mxu1 }
0x386c   :  { %v10423_v27 = vpop.f32.mrb[85].mxu1 }
0x386d   :  { %v18319_v4 = vpack.i.bf16 %v16321_v54, %v10423_v27  ;;  %v17423_v44 = vpack.c.bf16 %v16321_v54, %v10423_v27 }
0x386f   :  { %18310 = vrot.lane.b32.xlu0 %v18319_v4, %s18642_s16  ;;  %v16324_v43 = vpop.f32.mrb[86].mxu1 }
0x3870   :  { %v10433_v26 = vpop.f32.mrb[87].mxu1 }
0x3871   :  { %v18324_v24 = vpack.i.bf16 %v16324_v43, %v10433_v26  ;;  %v17427_v22 = vpack.c.bf16 %v16324_v43, %v10433_v26 }
0x3873   :  { %18320 = vrot.lane.b32.xlu0 %v18319_v4, %s18643_s18  ;;  %18315 = vrot.lane.b32.xlu1 %v18324_v24, %s18642_s16 }
0x3877   :  { %18325 = vrot.lane.b32.xlu1 %v18324_v24, %s18643_s18 }
0x38e1   :  { %v18311_v47 = vpop.permute.xlu0 %18310 }
0x38e2   :  { %v18313_v49 = vunpack.i.h.bf16 %v18311_v47  ;;  %v18312_v60 = vunpack.i.l.bf16 %v18311_v47 }
0x38e4   :  { %v17415_v1 = vpack.c.bf16 %v18313_v49, %v18312_v60 }
0x38e5   :  { %v18316_v63 = vpop.permute.xlu1 %18315  ;;  %v18321_v13 = vpop.permute.xlu0 %18320 }
0x38e6   :  { %v18318_v53 = vunpack.i.h.bf16 %v18316_v63  ;;  %v18317_v0 = vunpack.i.l.bf16 %v18316_v63  ;;  %17416 = vmatprep.subr.bf16.mxu1 %v17415_v1  ;;  %v18323_v20 = vunpack.i.h.bf16 %v18321_v13  ;;  %v18322_v61 = vunpack.i.l.bf16 %v18321_v13 }
0x38e7   :  { %17418 = vmatpush3.bf16.msra.mxu1 %v17415_v1 }
0x38e8   :  { %v17419_v28 = vpack.c.bf16 %v18318_v53, %v18317_v0  ;;  %v17431_v31 = vpack.c.bf16 %v18323_v20, %v18322_v61 }
0x38e9   :  { %v18326_v30 = vpop.permute.xlu1 %18325 }
0x38ea   :  { %17420 = vmatprep.subr.bf16.mxu1 %v17419_v28  ;;  %v18328_v32 = vunpack.i.h.bf16 %v18326_v30  ;;  %v18327_v33 = vunpack.i.l.bf16 %v18326_v30 }
0x38eb   :  { %17422 = vmatpush3.bf16.msra.mxu1 %v17419_v28 }
0x38ec   :  { %17424 = vmatprep.subr.bf16.mxu1 %v17423_v44  ;;  %v17435_v34 = vpack.c.bf16 %v18328_v32, %v18327_v33 }
0x38ee   :  { %16334 = vmatmul.mubr.msk.f32.vlgmr.msra.gmra.mrb[88].mxu1 %vm43_vm0, %v19982_v59 }
0x38ef   :  { %17426 = vmatpush3.bf16.msra.mxu1 %v17423_v44  ;;  %16336 = vmatprep.mubr.msk.f32.mxu1 %vm43_vm0, %v19989_v9 }
0x38f0   :  { %17428 = vmatprep.subr.bf16.mxu1 %v17427_v22 }
0x38f2   :  { %16337 = vmatmul.mubr.msk.f32.gmra.mrb[90].mxu1 %vm43_vm0, %v19996_v48 }
0x38f3   :  { %17430 = vmatpush3.bf16.msra.mxu1 %v17427_v22  ;;  %16347 = vmatprep.mubr.msk.f32.mxu1 %vm43_vm0, %v20003_v51 }
0x38f4   :  { %17432 = vmatprep.subr.bf16.mxu1 %v17431_v31 }
0x38f6   :  { %16348 = vmatmul.mubr.msk.f32.vlgmr.msra.gmra.mrb[88].mxu1 %vm43_vm0, %v20010_v62 }
0x38f7   :  { %17434 = vmatpush3.bf16.msra.mxu1 %v17431_v31  ;;  %16350 = vmatprep.mubr.msk.f32.mxu1 %vm43_vm0, %v20017_v15  ;;  %v14041_v31 = vld [vmem:[%s20562_s3 + $0x16] sm:$0x1] }
0x38f8   :  { %17436 = vmatprep.subr.bf16.mxu1 %v17435_v34 }
0x38fa   :  { %16351 = vmatmul.mubr.msk.f32.gmra.mrb[90].mxu1 %vm43_vm0, %v20024_v16 }
0x38fb   :  { %17438 = vmatpush3.bf16.msra.mxu1 %v17435_v34  ;;  %16361 = vmatprep.mubr.msk.f32.mxu1 %vm43_vm0, %v20031_v3  ;;  %v14042_v34 = vld [vmem:[%s20563_s4 + $0x16] sm:$0x1] }
0x38fe   :  { %16362 = vmatmul.mubr.msk.f32.vlgmr.msra.gmra.mrb[88].mxu1 %vm43_vm0, %v20038_v19 }
0x38ff   :  { %16364 = vmatprep.mubr.msk.f32.mxu1 %vm43_vm0, %v20045_v29 }
0x3902   :  { %16365 = vmatmul.mubr.msk.f32.gmra.mrb[90].mxu1 %vm43_vm0, %v20052_v11 }
0x39d1   :  { %v16363_v12 = vpop.f32.mrb[88].mxu1 }
0x39d2   :  { %v10730_v10 = vsel %vm43_vm0, %v16363_v12, 0.0  ;;  %v10706_v41 = vpop.f32.mrb[89].mxu1 }
0x39d3   :  { %v10729_v57 = vsel %vm43_vm0, %v10706_v41, 0.0 }
0x39d4   :  { %v10731_v6 = vadd.f32 %v10730_v10, %v10729_v57 }
0x39d5   :  { %v16366_v42 = vpop.f32.mrb[90].mxu1 }
0x39d6   :  { %v10716_v5 = vpop.f32.mrb[91].mxu1  ;;  %v10734_v25 = vsel %vm43_vm0, %v16366_v42, 0.0 }
0x39d7   :  { %v10732_v14 = vsel %vm43_vm0, %v10716_v5, 0.0 }
0x39d8   :  { %v10733_v55 = vadd.f32 %v10732_v14, %v10731_v6 }
0x39da   :  { %v10735_v18 = vadd.f32 %v10734_v25, %v10733_v55 }
0x39dc   :  { %v10736_v8 = vrot.slane %v10735_v18, 4 }
0x39de   :  { %v10737_v17 = vadd.f32 %v10736_v8, %v10735_v18 }
0x39e0   :  { %v10738_v50 = vrot.slane %v10737_v17, 2 }
0x39e2   :  { %v10739_v2 = vadd.f32 %v10738_v50, %v10737_v17 }
0x39e4   :  { %v10740_v56 = vrot.slane %v10739_v2, 1 }
0x39e6   :  { %v10741_v23 = vadd.f32 %v10740_v56, %v10739_v2 }
0x39e8   :  { %v10742_v45 = vmul.f32 0.03125, %v10741_v23 }
0x39ea   :  { %v10743_v39 = vsub.f32 %v10706_v41, %v10742_v45  ;;  %v10744_v21 = vsub.f32 %v16363_v12, %v10742_v45  ;;  %v10745_v58 = vsub.f32 %v10716_v5, %v10742_v45  ;;  %v10746_v54 = vsub.f32 %v16366_v42, %v10742_v45 }
0x39ec   :  { %v10747_v27 = vmul.f32 %v10743_v39, %v10743_v39  ;;  %v10748_v4 = vmul.f32 %v10744_v21, %v10744_v21  ;;  %v10749_v44 = vmul.f32 %v10745_v58, %v10745_v58  ;;  %v10750_v43 = vmul.f32 %v10746_v54, %v10746_v54 }
0x39ee   :  { %v10751_v26 = vsel %vm43_vm0, %v10747_v27, 0.0  ;;  %v10752_v24 = vsel %vm43_vm0, %v10748_v4, 0.0  ;;  %v10754_v47 = vsel %vm43_vm0, %v10749_v44, 0.0  ;;  %v10756_v60 = vsel %vm43_vm0, %v10750_v43, 0.0 }
0x39ef   :  { %v10753_v22 = vadd.f32 %v10752_v24, %v10751_v26 }
0x39f1   :  { %v10755_v49 = vadd.f32 %v10754_v47, %v10753_v22 }
0x39f3   :  { %v10757_v1 = vadd.f32 %v10756_v60, %v10755_v49 }
0x39f5   :  { %v10758_v63 = vrot.slane %v10757_v1, 4 }
0x39f7   :  { %v10759_v53 = vadd.f32 %v10758_v63, %v10757_v1 }
0x39f9   :  { %v10760_v0 = vrot.slane %v10759_v53, 2 }
0x39fb   :  { %v10761_v28 = vadd.f32 %v10760_v0, %v10759_v53 }
0x39fd   :  { %v10762_v13 = vrot.slane %v10761_v28, 1 }
0x39ff   :  { %v10763_v20 = vadd.f32 %v10762_v13, %v10761_v28 }
0x3a01   :  { %v10764_v61 = vmul.f32 0.03125, %v10763_v20 }
0x3a03   :  { %v10767_v30 = vadd.f32 1e-05, %v10764_v61 }
0x3a05   :  { %18493 = vrsqrt.f32 %v10767_v30 }
0x3a0f   :  { %v18494_v32 = vpop.eup %18493 }
0x3a10   :  { %v10769_v33 = vmul.f32 %v18494_v32, %v14041_v31 }
0x3a12   :  { %v10772_v35 = vmul.f32 %v10769_v33, %v10742_v45  ;;  %v10778_v36 = vrot.slane %v10769_v33, %v18805_v52 }
0x3a14   :  { %v10773_v37 = vsub.f32 %v14042_v34, %v10772_v35  ;;  %v10782_v38 = vmul.f32 %v10778_v36, %v10716_v5  ;;  %v10780_v40 = vmul.f32 %v10778_v36, %v10706_v41  ;;  %v10781_v46 = vmul.f32 %v16363_v12, %v10778_v36 }
0x3a15   :  { %v10783_v10 = vmul.f32 %v16366_v42, %v10778_v36 }
0x3a16   :  { %v10788_v57 = vrot.slane %v10773_v37, %v18805_v52 }
0x3a18   :  { %v10792_v6 = vadd.f32 %v10788_v57, %v10782_v38  ;;  %v10790_v14 = vadd.f32 %v10788_v57, %v10780_v40  ;;  %v10791_v55 = vadd.f32 %v10788_v57, %v10781_v46  ;;  %v10793_v25 = vadd.f32 %v10788_v57, %v10783_v10 }
0x3a1a   :  { %vm10794_vm14 = vcmp.ge.f32.partialorder %v10790_v14, 0.0  ;;  %v10798_v18 = vmul.f32 0.2, %v10790_v14  ;;  %vm10795_vm15 = vcmp.ge.f32.partialorder %v10791_v55, 0.0  ;;  %v10799_v8 = vmul.f32 0.2, %v10791_v55 }
0x3a1b   :  { %vm10796_vm1 = vcmp.ge.f32.partialorder %v10792_v6, 0.0  ;;  %v10800_v17 = vmul.f32 0.2, %v10792_v6  ;;  %v10801_v5 = vmul.f32 0.2, %v10793_v25  ;;  %vm10797_vm2 = vcmp.ge.f32.partialorder %v10793_v25, 0.0 }
0x3a1c   :  { %v10802_v50 = vsel %vm10794_vm14, %v10790_v14, %v10798_v18  ;;  %v10803_v2 = vsel %vm10795_vm15, %v10791_v55, %v10799_v8 }
0x3a1d   :  { %16375 = vmatprep.mubr.msk.f32.mxu0 %vm43_vm0, %v10802_v50  ;;  %v10804_v12 = vsel %vm10796_vm1, %v10792_v6, %v10800_v17  ;;  %v10805_v41 = vsel %vm10797_vm2, %v10793_v25, %v10801_v5 }
0x3a1e   :  { %16376 = vmatmul.mubr.msk.f32.vlgmr.msra.gmra.mrb[96].mxu0 %vm43_vm0, %v10803_v2 }
0x3a1f   :  { %16378 = vmatprep.mubr.msk.f32.mxu0 %vm43_vm0, %v10804_v12 }
0x3a22   :  { %16379 = vmatmul.mubr.msk.f32.gmra.mrb[98].mxu0 %vm43_vm0, %v10805_v41 }
0x3a23   :  { %16389 = vmatprep.mubr.msk.f32.mxu0 %vm43_vm0, %v19971_v7 }
0x3af1   :  { %v16377_v42 = vpop.f32.mrb[96].mxu0 }
0x3af2   :  { %v10889_v56 = vpop.f32.mrb[97].mxu0 }
0x3af3   :  { %v18339_v23 = vpack.i.bf16 %v16377_v42, %v10889_v56  ;;  %v17455_v45 = vpack.c.bf16 %v16377_v42, %v10889_v56 }
0x3af5   :  { %18330 = vrot.lane.b32.xlu0 %v18339_v23, %s18642_s16  ;;  %v16380_v39 = vpop.f32.mrb[98].mxu0 }
0x3af6   :  { %v10899_v21 = vpop.f32.mrb[99].mxu0 }
0x3af7   :  { %v18344_v58 = vpack.i.bf16 %v16380_v39, %v10899_v21  ;;  %v17459_v54 = vpack.c.bf16 %v16380_v39, %v10899_v21 }
0x3af9   :  { %18340 = vrot.lane.b32.xlu0 %v18339_v23, %s18643_s18  ;;  %18335 = vrot.lane.b32.xlu1 %v18344_v58, %s18642_s16 }
0x3afd   :  { %18345 = vrot.lane.b32.xlu1 %v18344_v58, %s18643_s18 }
0x3b67   :  { %v18331_v27 = vpop.permute.xlu0 %18330 }
0x3b68   :  { %v18333_v4 = vunpack.i.h.bf16 %v18331_v27  ;;  %v18332_v44 = vunpack.i.l.bf16 %v18331_v27  ;;  %v14059_v27 = vld [vmem:[%s20562_s3 + $0x17] sm:$0x1] }
0x3b6a   :  { %v17447_v7 = vpack.c.bf16 %v18333_v4, %v18332_v44 }
0x3b6b   :  { %v18336_v43 = vpop.permute.xlu1 %18335  ;;  %v18341_v47 = vpop.permute.xlu0 %18340 }
0x3b6c   :  { %v18338_v26 = vunpack.i.h.bf16 %v18336_v43  ;;  %v18337_v24 = vunpack.i.l.bf16 %v18336_v43  ;;  %17448 = vmatprep.subr.bf16.mxu0 %v17447_v7  ;;  %v18343_v49 = vunpack.i.h.bf16 %v18341_v47  ;;  %v18342_v60 = vunpack.i.l.bf16 %v18341_v47 }
0x3b6d   :  { %17450 = vmatpush3.bf16.msra.mxu0 %v17447_v7  ;;  %v14060_v7 = vld [vmem:[%s20563_s4 + $0x17] sm:$0x1] }
0x3b6e   :  { %v17451_v22 = vpack.c.bf16 %v18338_v26, %v18337_v24  ;;  %v17463_v63 = vpack.c.bf16 %v18343_v49, %v18342_v60 }
0x3b6f   :  { %v18346_v1 = vpop.permute.xlu1 %18345 }
0x3b70   :  { %17452 = vmatprep.subr.bf16.mxu0 %v17451_v22  ;;  %v18348_v53 = vunpack.i.h.bf16 %v18346_v1  ;;  %v18347_v0 = vunpack.i.l.bf16 %v18346_v1 }
0x3b71   :  { %17454 = vmatpush3.bf16.msra.mxu0 %v17451_v22 }
0x3b72   :  { %17456 = vmatprep.subr.bf16.mxu0 %v17455_v45  ;;  %v17467_v28 = vpack.c.bf16 %v18348_v53, %v18347_v0 }
0x3b74   :  { %16390 = vmatmul.mubr.msk.f32.vlgmr.msra.gmra.mrb[100].mxu0 %vm43_vm0, %v19982_v59  ;;  %v11273_v59 = vld [vmem:[#allocation2 + $0x300] sm:$0xff] }
0x3b75   :  { %17458 = vmatpush3.bf16.msra.mxu0 %v17455_v45  ;;  %16392 = vmatprep.mubr.msk.f32.mxu0 %vm43_vm0, %v19989_v9  ;;  %v11274_v9 = vld [vmem:[#allocation2 + $0x308] sm:$0xff] }
0x3b76   :  { %17460 = vmatprep.subr.bf16.mxu0 %v17459_v54 }
0x3b78   :  { %16393 = vmatmul.mubr.msk.f32.gmra.mrb[102].mxu0 %vm43_vm0, %v19996_v48  ;;  %v17471_v48 = vpack.c.bf16 %v11274_v9, %v11273_v59 }
0x3b79   :  { %17462 = vmatpush3.bf16.msra.mxu0 %v17459_v54  ;;  %16403 = vmatprep.mubr.msk.f32.mxu0 %vm43_vm0, %v20003_v51  ;;  %v11275_v51 = vld [vmem:[#allocation2 + $0x310] sm:$0xff] }
0x3b7a   :  { %17464 = vmatprep.subr.bf16.mxu0 %v17463_v63  ;;  %17472 = vmatprep.subr.bf16.mxu1 %v17471_v48 }
0x3b7b   :  { %17474 = vmatpush3.bf16.msra.mxu1 %v17471_v48 }
0x3b7c   :  { %16404 = vmatmul.mubr.msk.f32.vlgmr.msra.gmra.mrb[100].mxu0 %vm43_vm0, %v20010_v62  ;;  %v11276_v62 = vld [vmem:[#allocation2 + $0x318] sm:$0xff] }
0x3b7d   :  { %17466 = vmatpush3.bf16.msra.mxu0 %v17463_v63  ;;  %16406 = vmatprep.mubr.msk.f32.mxu0 %vm43_vm0, %v20017_v15  ;;  %v17475_v15 = vpack.c.bf16 %v11276_v62, %v11275_v51 }
0x3b7e   :  { %17468 = vmatprep.subr.bf16.mxu0 %v17467_v28 }
0x3b7f   :  { %17476 = vmatprep.subr.bf16.mxu1 %v17475_v15 }
0x3b80   :  { %16407 = vmatmul.mubr.msk.f32.gmra.mrb[102].mxu0 %vm43_vm0, %v20024_v16  ;;  %17478 = vmatpush3.bf16.msra.mxu1 %v17475_v15 }
0x3b81   :  { %17470 = vmatpush3.bf16.msra.mxu0 %v17467_v28  ;;  %16417 = vmatprep.mubr.msk.f32.mxu0 %vm43_vm0, %v20031_v3 }
0x3b84   :  { %16418 = vmatmul.mubr.msk.f32.vlgmr.msra.gmra.mrb[100].mxu0 %vm43_vm0, %v20038_v19 }
0x3b85   :  { %16420 = vmatprep.mubr.msk.f32.mxu0 %vm43_vm0, %v20045_v29 }
0x3b88   :  { %16421 = vmatmul.mubr.msk.f32.gmra.mrb[102].mxu0 %vm43_vm0, %v20052_v11 }
0x3c57   :  { %v16419_v16 = vpop.f32.mrb[100].mxu0 }
0x3c58   :  { %v11196_v3 = vsel %vm43_vm0, %v16419_v16, 0.0  ;;  %v11172_v19 = vpop.f32.mrb[101].mxu0 }
0x3c59   :  { %v11195_v13 = vsel %vm43_vm0, %v11172_v19, 0.0 }
0x3c5a   :  { %v11197_v29 = vadd.f32 %v11196_v3, %v11195_v13 }
0x3c5b   :  { %v16422_v20 = vpop.f32.mrb[102].mxu0 }
0x3c5c   :  { %v11182_v61 = vpop.f32.mrb[103].mxu0  ;;  %v11200_v31 = vsel %vm43_vm0, %v16422_v20, 0.0 }
0x3c5d   :  { %v11198_v11 = vsel %vm43_vm0, %v11182_v61, 0.0 }
0x3c5e   :  { %v11199_v30 = vadd.f32 %v11198_v11, %v11197_v29 }
0x3c60   :  { %v11201_v32 = vadd.f32 %v11200_v31, %v11199_v30 }
0x3c62   :  { %v11202_v33 = vrot.slane %v11201_v32, 4 }
0x3c64   :  { %v11203_v34 = vadd.f32 %v11202_v33, %v11201_v32 }
0x3c66   :  { %v11204_v35 = vrot.slane %v11203_v34, 2 }
0x3c68   :  { %v11205_v36 = vadd.f32 %v11204_v35, %v11203_v34 }
0x3c6a   :  { %v11206_v37 = vrot.slane %v11205_v36, 1 }
0x3c6c   :  { %v11207_v38 = vadd.f32 %v11206_v37, %v11205_v36 }
0x3c6e   :  { %v11208_v40 = vmul.f32 0.03125, %v11207_v38 }
0x3c70   :  { %v11209_v46 = vsub.f32 %v11172_v19, %v11208_v40  ;;  %v11210_v10 = vsub.f32 %v16419_v16, %v11208_v40  ;;  %v11211_v57 = vsub.f32 %v11182_v61, %v11208_v40  ;;  %v11212_v6 = vsub.f32 %v16422_v20, %v11208_v40 }
0x3c72   :  { %v11213_v14 = vmul.f32 %v11209_v46, %v11209_v46  ;;  %v11214_v55 = vmul.f32 %v11210_v10, %v11210_v10  ;;  %v11215_v25 = vmul.f32 %v11211_v57, %v11211_v57  ;;  %v11216_v18 = vmul.f32 %v11212_v6, %v11212_v6 }
0x3c74   :  { %v11217_v8 = vsel %vm43_vm0, %v11213_v14, 0.0  ;;  %v11218_v17 = vsel %vm43_vm0, %v11214_v55, 0.0  ;;  %v11220_v2 = vsel %vm43_vm0, %v11215_v25, 0.0  ;;  %v11222_v12 = vsel %vm43_vm0, %v11216_v18, 0.0  ;;  %v20234_v14 = vld [vmem:[%s20560_s1 + $0x28] sm:$0xff]  ;;  %v20241_v25 = vld [vmem:[%s20560_s1 + $0x30] sm:$0xff] }
0x3c75   :  { %v11219_v50 = vadd.f32 %v11218_v17, %v11217_v8 }
0x3c77   :  { %v11221_v5 = vadd.f32 %v11220_v2, %v11219_v50  ;;  %v20248_v50 = vld [vmem:[%s20560_s1 + $0x38] sm:$0xff]  ;;  %v20255_v2 = vld [vmem:[%s20560_s1] sm:$0xff] }
0x3c79   :  { %v11223_v41 = vadd.f32 %v11222_v12, %v11221_v5  ;;  %v20262_v12 = vld [vmem:[%s20560_s1 + $0x8] sm:$0xff] }
0x3c7b   :  { %v11224_v42 = vrot.slane %v11223_v41, 4 }
0x3c7d   :  { %v11225_v56 = vadd.f32 %v11224_v42, %v11223_v41  ;;  %v20269_v41 = vld [vmem:[%s20560_s1 + $0x10] sm:$0xff]  ;;  %v20276_v42 = vld [vmem:[%s20560_s1 + $0x18] sm:$0xff] }
0x3c7f   :  { %v11226_v23 = vrot.slane %v11225_v56, 2 }
0x3c81   :  { %v11227_v45 = vadd.f32 %v11226_v23, %v11225_v56  ;;  %v20283_v56 = vld [vmem:[%s20560_s1 + $0x40] sm:$0xff]  ;;  %v20290_v23 = vld [vmem:[%s20560_s1 + $0x48] sm:$0xff] }
0x3c83   :  { %v11228_v39 = vrot.slane %v11227_v45, 1 }
0x3c85   :  { %v11229_v21 = vadd.f32 %v11228_v39, %v11227_v45  ;;  %v20297_v45 = vld [vmem:[%s20560_s1 + $0x50] sm:$0xff]  ;;  %v20304_v39 = vld [vmem:[%s20560_s1 + $0x58] sm:$0xff] }
0x3c87   :  { %v11230_v58 = vmul.f32 0.03125, %v11229_v21  ;;  %v11739_v21 = vld [vmem:[#allocation2 + $0x320] sm:$0xff] }
0x3c89   :  { %v11233_v54 = vadd.f32 1e-05, %v11230_v58  ;;  %v11740_v58 = vld [vmem:[#allocation2 + $0x328] sm:$0xff] }
0x3c8b   :  { %18495 = vrsqrt.f32 %v11233_v54  ;;  %v17503_v54 = vpack.c.bf16 %v11740_v58, %v11739_v21 }
0x3c8d   :  { %17504 = vmatprep.subr.bf16.mxu0 %v17503_v54 }
0x3c8e   :  { %17506 = vmatpush3.bf16.msra.mxu0 %v17503_v54 }
0x3c95   :  { %v18496_v4 = vpop.eup %18495 }
0x3c96   :  { %v11235_v44 = vmul.f32 %v18496_v4, %v14059_v27  ;;  %v11741_v27 = vld [vmem:[#allocation2 + $0x330] sm:$0xff]  ;;  %v11742_v4 = vld [vmem:[#allocation2 + $0x338] sm:$0xff] }
0x3c98   :  { %v11238_v43 = vmul.f32 %v11235_v44, %v11208_v40  ;;  %v11244_v26 = vrot.slane %v11235_v44, %v18805_v52  ;;  %v17507_v44 = vpack.c.bf16 %v11742_v4, %v11741_v27 }
0x3c9a   :  { %v11239_v24 = vsub.f32 %v14060_v7, %v11238_v43  ;;  %v11248_v22 = vmul.f32 %v11244_v26, %v11182_v61  ;;  %v11246_v47 = vmul.f32 %v11244_v26, %v11172_v19  ;;  %v11247_v49 = vmul.f32 %v16419_v16, %v11244_v26  ;;  %v20223_v19 = vld [vmem:[%s20560_s1 + $0x20] sm:$0xff]  ;;  %17508 = vmatprep.subr.bf16.mxu0 %v17507_v44 }
0x3c9b   :  { %v11249_v60 = vmul.f32 %v16422_v20, %v11244_v26  ;;  %17510 = vmatpush3.bf16.msra.mxu0 %v17507_v44 }
0x3c9c   :  { %v11254_v1 = vrot.slane %v11239_v24, %v18805_v52 }
0x3c9e   :  { %v11258_v63 = vadd.f32 %v11254_v1, %v11248_v22  ;;  %v11256_v53 = vadd.f32 %v11254_v1, %v11246_v47  ;;  %v11257_v0 = vadd.f32 %v11254_v1, %v11247_v49  ;;  %v11259_v28 = vadd.f32 %v11254_v1, %v11249_v60 }
0x3ca0   :  { %vm11260_vm3 = vcmp.ge.f32.partialorder %v11256_v53, 0.0  ;;  %v11264_v59 = vmul.f32 0.2, %v11256_v53  ;;  %vm11261_vm4 = vcmp.ge.f32.partialorder %v11257_v0, 0.0  ;;  %v11265_v9 = vmul.f32 0.2, %v11257_v0 }
0x3ca1   :  { %vm11262_vm5 = vcmp.ge.f32.partialorder %v11258_v63, 0.0  ;;  %v11266_v48 = vmul.f32 0.2, %v11258_v63  ;;  %v11267_v15 = vmul.f32 0.2, %v11259_v28  ;;  %vm11263_vm6 = vcmp.ge.f32.partialorder %v11259_v28, 0.0 }
0x3ca2   :  { %v11268_v51 = vsel %vm11260_vm3, %v11256_v53, %v11264_v59  ;;  %v11269_v62 = vsel %vm11261_vm4, %v11257_v0, %v11265_v9 }
0x3ca3   :  { %16431 = vmatprep.mubr.msk.f32.mxu1 %vm43_vm0, %v11268_v51  ;;  %v11270_v16 = vsel %vm11262_vm5, %v11258_v63, %v11266_v48  ;;  %v11271_v3 = vsel %vm11263_vm6, %v11259_v28, %v11267_v15 }
0x3ca4   :  { %16432 = vmatmul.mubr.msk.f32.vlgmr.msra.gmra.mrb[92].mxu1 %vm43_vm0, %v11269_v62 }
0x3ca5   :  { %16434 = vmatprep.mubr.msk.f32.mxu1 %vm43_vm0, %v11270_v16 }
0x3ca8   :  { %16435 = vmatmul.mubr.msk.f32.gmra.mrb[94].mxu1 %vm43_vm0, %v11271_v3 }
0x3ca9   :  { %16445 = vmatprep.mubr.msk.f32.mxu1 %vm43_vm0, %v20223_v19 }
0x3d77   :  { %v16433_v13 = vpop.f32.mrb[92].mxu1 }
0x3d78   :  { %v11355_v29 = vpop.f32.mrb[93].mxu1 }
0x3d79   :  { %v18359_v20 = vpack.i.bf16 %v16433_v13, %v11355_v29  ;;  %v17487_v61 = vpack.c.bf16 %v16433_v13, %v11355_v29 }
0x3d7b   :  { %18350 = vrot.lane.b32.xlu0 %v18359_v20, %s18642_s16  ;;  %v16436_v11 = vpop.f32.mrb[94].mxu1 }
0x3d7c   :  { %v11365_v30 = vpop.f32.mrb[95].mxu1 }
0x3d7d   :  { %v18364_v31 = vpack.i.bf16 %v16436_v11, %v11365_v30  ;;  %v17491_v32 = vpack.c.bf16 %v16436_v11, %v11365_v30 }
0x3d7f   :  { %18360 = vrot.lane.b32.xlu0 %v18359_v20, %s18643_s18  ;;  %18355 = vrot.lane.b32.xlu1 %v18364_v31, %s18642_s16 }
0x3d83   :  { %18365 = vrot.lane.b32.xlu1 %v18364_v31, %s18643_s18 }
0x3ded   :  { %v18351_v33 = vpop.permute.xlu0 %18350 }
0x3dee   :  { %v18353_v34 = vunpack.i.h.bf16 %v18351_v33  ;;  %v18352_v35 = vunpack.i.l.bf16 %v18351_v33 }
0x3df0   :  { %v17479_v36 = vpack.c.bf16 %v18353_v34, %v18352_v35 }
0x3df1   :  { %v18356_v37 = vpop.permute.xlu1 %18355  ;;  %v18361_v10 = vpop.permute.xlu0 %18360 }
0x3df2   :  { %v18358_v38 = vunpack.i.h.bf16 %v18356_v37  ;;  %v18357_v40 = vunpack.i.l.bf16 %v18356_v37  ;;  %17480 = vmatprep.subr.bf16.mxu1 %v17479_v36  ;;  %v18363_v57 = vunpack.i.h.bf16 %v18361_v10  ;;  %v18362_v6 = vunpack.i.l.bf16 %v18361_v10 }
0x3df3   :  { %17482 = vmatpush3.bf16.msra.mxu1 %v17479_v36 }
0x3df4   :  { %v17483_v46 = vpack.c.bf16 %v18358_v38, %v18357_v40  ;;  %v17495_v18 = vpack.c.bf16 %v18363_v57, %v18362_v6 }
0x3df5   :  { %v18366_v55 = vpop.permute.xlu1 %18365 }
0x3df6   :  { %17484 = vmatprep.subr.bf16.mxu1 %v17483_v46  ;;  %v18368_v8 = vunpack.i.h.bf16 %v18366_v55  ;;  %v18367_v17 = vunpack.i.l.bf16 %v18366_v55 }
0x3df7   :  { %17486 = vmatpush3.bf16.msra.mxu1 %v17483_v46 }
0x3df8   :  { %17488 = vmatprep.subr.bf16.mxu1 %v17487_v61  ;;  %v17499_v5 = vpack.c.bf16 %v18368_v8, %v18367_v17 }
0x3dfa   :  { %16446 = vmatmul.mubr.msk.f32.vlgmr.msra.gmra.mrb[96].mxu1 %vm43_vm0, %v20234_v14 }
0x3dfb   :  { %17490 = vmatpush3.bf16.msra.mxu1 %v17487_v61  ;;  %16448 = vmatprep.mubr.msk.f32.mxu1 %vm43_vm0, %v20241_v25 }
0x3dfc   :  { %17492 = vmatprep.subr.bf16.mxu1 %v17491_v32 }
0x3dfe   :  { %16449 = vmatmul.mubr.msk.f32.gmra.mrb[98].mxu1 %vm43_vm0, %v20248_v50 }
0x3dff   :  { %17494 = vmatpush3.bf16.msra.mxu1 %v17491_v32  ;;  %16459 = vmatprep.mubr.msk.f32.mxu1 %vm43_vm0, %v20255_v2 }
0x3e00   :  { %17496 = vmatprep.subr.bf16.mxu1 %v17495_v18 }
0x3e02   :  { %16460 = vmatmul.mubr.msk.f32.vlgmr.msra.gmra.mrb[96].mxu1 %vm43_vm0, %v20262_v12 }
0x3e03   :  { %17498 = vmatpush3.bf16.msra.mxu1 %v17495_v18  ;;  %16462 = vmatprep.mubr.msk.f32.mxu1 %vm43_vm0, %v20269_v41  ;;  %v14077_v18 = vld [vmem:[%s20562_s3 + $0x18] sm:$0x1] }
0x3e04   :  { %17500 = vmatprep.subr.bf16.mxu1 %v17499_v5 }
0x3e06   :  { %16463 = vmatmul.mubr.msk.f32.gmra.mrb[98].mxu1 %vm43_vm0, %v20276_v42 }
0x3e07   :  { %17502 = vmatpush3.bf16.msra.mxu1 %v17499_v5  ;;  %16473 = vmatprep.mubr.msk.f32.mxu1 %vm43_vm0, %v20283_v56  ;;  %v14078_v5 = vld [vmem:[%s20563_s4 + $0x18] sm:$0x1] }
0x3e0a   :  { %16474 = vmatmul.mubr.msk.f32.vlgmr.msra.gmra.mrb[96].mxu1 %vm43_vm0, %v20290_v23 }
0x3e0b   :  { %16476 = vmatprep.mubr.msk.f32.mxu1 %vm43_vm0, %v20297_v45 }
0x3e0e   :  { %16477 = vmatmul.mubr.msk.f32.gmra.mrb[98].mxu1 %vm43_vm0, %v20304_v39 }
0x3edd   :  { %v16475_v7 = vpop.f32.mrb[96].mxu1 }
0x3ede   :  { %v11662_v43 = vsel %vm43_vm0, %v16475_v7, 0.0  ;;  %v11638_v26 = vpop.f32.mrb[97].mxu1 }
0x3edf   :  { %v11661_v24 = vsel %vm43_vm0, %v11638_v26, 0.0 }
0x3ee0   :  { %v11663_v22 = vadd.f32 %v11662_v43, %v11661_v24 }
0x3ee1   :  { %v16478_v47 = vpop.f32.mrb[98].mxu1 }
0x3ee2   :  { %v11648_v49 = vpop.f32.mrb[99].mxu1  ;;  %v11666_v63 = vsel %vm43_vm0, %v16478_v47, 0.0 }
0x3ee3   :  { %v11664_v60 = vsel %vm43_vm0, %v11648_v49, 0.0 }
0x3ee4   :  { %v11665_v1 = vadd.f32 %v11664_v60, %v11663_v22 }
0x3ee6   :  { %v11667_v53 = vadd.f32 %v11666_v63, %v11665_v1 }
0x3ee8   :  { %v11668_v0 = vrot.slane %v11667_v53, 4 }
0x3eea   :  { %v11669_v28 = vadd.f32 %v11668_v0, %v11667_v53 }
0x3eec   :  { %v11670_v59 = vrot.slane %v11669_v28, 2 }
0x3eee   :  { %v11671_v9 = vadd.f32 %v11670_v59, %v11669_v28 }
0x3ef0   :  { %v11672_v48 = vrot.slane %v11671_v9, 1 }
0x3ef2   :  { %v11673_v51 = vadd.f32 %v11672_v48, %v11671_v9 }
0x3ef4   :  { %v11674_v62 = vmul.f32 0.03125, %v11673_v51 }
0x3ef6   :  { %v11675_v15 = vsub.f32 %v11638_v26, %v11674_v62  ;;  %v11676_v16 = vsub.f32 %v16475_v7, %v11674_v62  ;;  %v11677_v3 = vsub.f32 %v11648_v49, %v11674_v62  ;;  %v11678_v13 = vsub.f32 %v16478_v47, %v11674_v62 }
0x3ef8   :  { %v11679_v29 = vmul.f32 %v11675_v15, %v11675_v15  ;;  %v11680_v20 = vmul.f32 %v11676_v16, %v11676_v16  ;;  %v11681_v61 = vmul.f32 %v11677_v3, %v11677_v3  ;;  %v11682_v11 = vmul.f32 %v11678_v13, %v11678_v13 }
0x3efa   :  { %v11683_v30 = vsel %vm43_vm0, %v11679_v29, 0.0  ;;  %v11684_v31 = vsel %vm43_vm0, %v11680_v20, 0.0  ;;  %v11686_v33 = vsel %vm43_vm0, %v11681_v61, 0.0  ;;  %v11688_v35 = vsel %vm43_vm0, %v11682_v11, 0.0 }
0x3efb   :  { %v11685_v32 = vadd.f32 %v11684_v31, %v11683_v30 }
0x3efd   :  { %v11687_v34 = vadd.f32 %v11686_v33, %v11685_v32 }
0x3eff   :  { %v11689_v36 = vadd.f32 %v11688_v35, %v11687_v34 }
0x3f01   :  { %v11690_v37 = vrot.slane %v11689_v36, 4 }
0x3f03   :  { %v11691_v38 = vadd.f32 %v11690_v37, %v11689_v36 }
0x3f05   :  { %v11692_v40 = vrot.slane %v11691_v38, 2 }
0x3f07   :  { %v11693_v46 = vadd.f32 %v11692_v40, %v11691_v38 }
0x3f09   :  { %v11694_v10 = vrot.slane %v11693_v46, 1 }
0x3f0b   :  { %v11695_v57 = vadd.f32 %v11694_v10, %v11693_v46 }
0x3f0d   :  { %v11696_v6 = vmul.f32 0.03125, %v11695_v57  ;;  %v12205_v57 = vld [vmem:[#allocation2 + $0x340] sm:$0xff] }
0x3f0f   :  { %v11699_v55 = vadd.f32 1e-05, %v11696_v6  ;;  %v12206_v6 = vld [vmem:[#allocation2 + $0x348] sm:$0xff] }
0x3f11   :  { %18497 = vrsqrt.f32 %v11699_v55  ;;  %v17535_v55 = vpack.c.bf16 %v12206_v6, %v12205_v57 }
0x3f13   :  { %17536 = vmatprep.subr.bf16.mxu1 %v17535_v55 }
0x3f14   :  { %17538 = vmatpush3.bf16.msra.mxu1 %v17535_v55 }
0x3f1b   :  { %v18498_v8 = vpop.eup %18497 }
0x3f1c   :  { %v11701_v17 = vmul.f32 %v18498_v8, %v14077_v18  ;;  %v12207_v18 = vld [vmem:[#allocation2 + $0x350] sm:$0xff]  ;;  %v12208_v8 = vld [vmem:[#allocation2 + $0x358] sm:$0xff] }
0x3f1e   :  { %v11704_v21 = vmul.f32 %v11701_v17, %v11674_v62  ;;  %v11710_v58 = vrot.slane %v11701_v17, %v18805_v52  ;;  %v17539_v17 = vpack.c.bf16 %v12208_v8, %v12207_v18 }
0x3f20   :  { %v11705_v54 = vsub.f32 %v14078_v5, %v11704_v21  ;;  %v11714_v27 = vmul.f32 %v11710_v58, %v11648_v49  ;;  %v11712_v4 = vmul.f32 %v11710_v58, %v11638_v26  ;;  %v11713_v44 = vmul.f32 %v16475_v7, %v11710_v58  ;;  %17540 = vmatprep.subr.bf16.mxu1 %v17539_v17 }
0x3f21   :  { %v11715_v43 = vmul.f32 %v16478_v47, %v11710_v58  ;;  %17542 = vmatpush3.bf16.msra.mxu1 %v17539_v17 }
0x3f22   :  { %v11720_v24 = vrot.slane %v11705_v54, %v18805_v52 }
0x3f24   :  { %v11724_v22 = vadd.f32 %v11720_v24, %v11714_v27  ;;  %v11722_v60 = vadd.f32 %v11720_v24, %v11712_v4  ;;  %v11723_v1 = vadd.f32 %v11720_v24, %v11713_v44  ;;  %v11725_v63 = vadd.f32 %v11720_v24, %v11715_v43 }
0x3f26   :  { %vm11726_vm7 = vcmp.ge.f32.partialorder %v11722_v60, 0.0  ;;  %v11730_v53 = vmul.f32 0.2, %v11722_v60  ;;  %vm11727_vm8 = vcmp.ge.f32.partialorder %v11723_v1, 0.0  ;;  %v11731_v0 = vmul.f32 0.2, %v11723_v1 }
0x3f27   :  { %vm11728_vm9 = vcmp.ge.f32.partialorder %v11724_v22, 0.0  ;;  %v11732_v28 = vmul.f32 0.2, %v11724_v22  ;;  %v11733_v49 = vmul.f32 0.2, %v11725_v63  ;;  %vm11729_vm10 = vcmp.ge.f32.partialorder %v11725_v63, 0.0 }
0x3f28   :  { %v11734_v59 = vsel %vm11726_vm7, %v11722_v60, %v11730_v53  ;;  %v11735_v9 = vsel %vm11727_vm8, %v11723_v1, %v11731_v0 }
0x3f29   :  { %16487 = vmatprep.mubr.msk.f32.mxu0 %vm43_vm0, %v11734_v59  ;;  %v11736_v7 = vsel %vm11728_vm9, %v11724_v22, %v11732_v28  ;;  %v11737_v26 = vsel %vm11729_vm10, %v11725_v63, %v11733_v49 }
0x3f2a   :  { %16488 = vmatmul.mubr.msk.f32.vlgmr.msra.gmra.mrb[104].mxu0 %vm43_vm0, %v11735_v9 }
0x3f2b   :  { %16490 = vmatprep.mubr.msk.f32.mxu0 %vm43_vm0, %v11736_v7 }
0x3f2e   :  { %16491 = vmatmul.mubr.msk.f32.gmra.mrb[106].mxu0 %vm43_vm0, %v11737_v26 }
0x3f2f   :  { %16501 = vmatprep.mubr.msk.f32.mxu0 %vm43_vm0, %v20223_v19 }
0x3ffd   :  { %v16489_v47 = vpop.f32.mrb[104].mxu0 }
0x3ffe   :  { %v11821_v48 = vpop.f32.mrb[105].mxu0 }
0x3fff   :  { %v18379_v51 = vpack.i.bf16 %v16489_v47, %v11821_v48  ;;  %v17519_v62 = vpack.c.bf16 %v16489_v47, %v11821_v48 }
0x4001   :  { %18370 = vrot.lane.b32.xlu0 %v18379_v51, %s18642_s16  ;;  %v16492_v15 = vpop.f32.mrb[106].mxu0 }
0x4002   :  { %v11831_v16 = vpop.f32.mrb[107].mxu0 }
0x4003   :  { %v18384_v3 = vpack.i.bf16 %v16492_v15, %v11831_v16  ;;  %v17523_v13 = vpack.c.bf16 %v16492_v15, %v11831_v16 }
0x4005   :  { %18380 = vrot.lane.b32.xlu0 %v18379_v51, %s18643_s18  ;;  %18375 = vrot.lane.b32.xlu1 %v18384_v3, %s18642_s16 }
0x4009   :  { %18385 = vrot.lane.b32.xlu1 %v18384_v3, %s18643_s18 }
0x4073   :  { %v18371_v29 = vpop.permute.xlu0 %18370 }
0x4074   :  { %v18373_v20 = vunpack.i.h.bf16 %v18371_v29  ;;  %v18372_v61 = vunpack.i.l.bf16 %v18371_v29 }
0x4076   :  { %v17511_v11 = vpack.c.bf16 %v18373_v20, %v18372_v61 }
0x4077   :  { %v18376_v30 = vpop.permute.xlu1 %18375  ;;  %v18381_v34 = vpop.permute.xlu0 %18380 }
0x4078   :  { %v18378_v31 = vunpack.i.h.bf16 %v18376_v30  ;;  %v18377_v32 = vunpack.i.l.bf16 %v18376_v30  ;;  %17512 = vmatprep.subr.bf16.mxu0 %v17511_v11  ;;  %v18383_v35 = vunpack.i.h.bf16 %v18381_v34  ;;  %v18382_v36 = vunpack.i.l.bf16 %v18381_v34 }
0x4079   :  { %17514 = vmatpush3.bf16.msra.mxu0 %v17511_v11 }
0x407a   :  { %v17515_v33 = vpack.c.bf16 %v18378_v31, %v18377_v32  ;;  %v17527_v38 = vpack.c.bf16 %v18383_v35, %v18382_v36 }
0x407b   :  { %v18386_v37 = vpop.permute.xlu1 %18385 }
0x407c   :  { %17516 = vmatprep.subr.bf16.mxu0 %v17515_v33  ;;  %v18388_v40 = vunpack.i.h.bf16 %v18386_v37  ;;  %v18387_v46 = vunpack.i.l.bf16 %v18386_v37 }
0x407d   :  { %17518 = vmatpush3.bf16.msra.mxu0 %v17515_v33 }
0x407e   :  { %17520 = vmatprep.subr.bf16.mxu0 %v17519_v62  ;;  %v17531_v10 = vpack.c.bf16 %v18388_v40, %v18387_v46 }
0x4080   :  { %16502 = vmatmul.mubr.msk.f32.vlgmr.msra.gmra.mrb[108].mxu0 %vm43_vm0, %v20234_v14 }
0x4081   :  { %17522 = vmatpush3.bf16.msra.mxu0 %v17519_v62  ;;  %16504 = vmatprep.mubr.msk.f32.mxu0 %vm43_vm0, %v20241_v25 }
0x4082   :  { %17524 = vmatprep.subr.bf16.mxu0 %v17523_v13 }
0x4084   :  { %16505 = vmatmul.mubr.msk.f32.gmra.mrb[110].mxu0 %vm43_vm0, %v20248_v50 }
0x4085   :  { %17526 = vmatpush3.bf16.msra.mxu0 %v17523_v13  ;;  %16515 = vmatprep.mubr.msk.f32.mxu0 %vm43_vm0, %v20255_v2 }
0x4086   :  { %17528 = vmatprep.subr.bf16.mxu0 %v17527_v38 }
0x4088   :  { %16516 = vmatmul.mubr.msk.f32.vlgmr.msra.gmra.mrb[108].mxu0 %vm43_vm0, %v20262_v12 }
0x4089   :  { %17530 = vmatpush3.bf16.msra.mxu0 %v17527_v38  ;;  %16518 = vmatprep.mubr.msk.f32.mxu0 %vm43_vm0, %v20269_v41  ;;  %v14095_v38 = vld [vmem:[%s20562_s3 + $0x19] sm:$0x1] }
0x408a   :  { %17532 = vmatprep.subr.bf16.mxu0 %v17531_v10 }
0x408c   :  { %16519 = vmatmul.mubr.msk.f32.gmra.mrb[110].mxu0 %vm43_vm0, %v20276_v42 }
0x408d   :  { %17534 = vmatpush3.bf16.msra.mxu0 %v17531_v10  ;;  %16529 = vmatprep.mubr.msk.f32.mxu0 %vm43_vm0, %v20283_v56  ;;  %v14096_v10 = vld [vmem:[%s20563_s4 + $0x19] sm:$0x1] }
0x4090   :  { %16530 = vmatmul.mubr.msk.f32.vlgmr.msra.gmra.mrb[108].mxu0 %vm43_vm0, %v20290_v23 }
0x4091   :  { %16532 = vmatprep.mubr.msk.f32.mxu0 %vm43_vm0, %v20297_v45 }
0x4094   :  { %16533 = vmatmul.mubr.msk.f32.gmra.mrb[110].mxu0 %vm43_vm0, %v20304_v39 }
0x4163   :  { %v16531_v5 = vpop.f32.mrb[108].mxu0 }
0x4164   :  { %v12128_v21 = vsel %vm43_vm0, %v16531_v5, 0.0  ;;  %v12104_v58 = vpop.f32.mrb[109].mxu0 }
0x4165   :  { %v12127_v54 = vsel %vm43_vm0, %v12104_v58, 0.0 }
0x4166   :  { %v12129_v27 = vadd.f32 %v12128_v21, %v12127_v54 }
0x4167   :  { %v16534_v4 = vpop.f32.mrb[110].mxu0 }
0x4168   :  { %v12114_v44 = vpop.f32.mrb[111].mxu0  ;;  %v12132_v22 = vsel %vm43_vm0, %v16534_v4, 0.0 }
0x4169   :  { %v12130_v43 = vsel %vm43_vm0, %v12114_v44, 0.0 }
0x416a   :  { %v12131_v24 = vadd.f32 %v12130_v43, %v12129_v27 }
0x416c   :  { %v12133_v60 = vadd.f32 %v12132_v22, %v12131_v24 }
0x416e   :  { %v12134_v1 = vrot.slane %v12133_v60, 4 }
0x4170   :  { %v12135_v63 = vadd.f32 %v12134_v1, %v12133_v60 }
0x4172   :  { %v12136_v53 = vrot.slane %v12135_v63, 2 }
0x4174   :  { %v12137_v0 = vadd.f32 %v12136_v53, %v12135_v63 }
0x4176   :  { %v12138_v28 = vrot.slane %v12137_v0, 1 }
0x4178   :  { %v12139_v59 = vadd.f32 %v12138_v28, %v12137_v0 }
0x417a   :  { %v12140_v9 = vmul.f32 0.03125, %v12139_v59 }
0x417c   :  { %v12141_v49 = vsub.f32 %v12104_v58, %v12140_v9  ;;  %v12142_v7 = vsub.f32 %v16531_v5, %v12140_v9  ;;  %v12143_v26 = vsub.f32 %v12114_v44, %v12140_v9  ;;  %v12144_v47 = vsub.f32 %v16534_v4, %v12140_v9 }
0x417e   :  { %v12145_v48 = vmul.f32 %v12141_v49, %v12141_v49  ;;  %v12146_v51 = vmul.f32 %v12142_v7, %v12142_v7  ;;  %v12147_v62 = vmul.f32 %v12143_v26, %v12143_v26  ;;  %v12148_v15 = vmul.f32 %v12144_v47, %v12144_v47 }
0x4180   :  { %v12149_v16 = vsel %vm43_vm0, %v12145_v48, 0.0  ;;  %v12150_v3 = vsel %vm43_vm0, %v12146_v51, 0.0  ;;  %v12152_v29 = vsel %vm43_vm0, %v12147_v62, 0.0  ;;  %v12154_v61 = vsel %vm43_vm0, %v12148_v15, 0.0 }
0x4181   :  { %v12151_v13 = vadd.f32 %v12150_v3, %v12149_v16 }
0x4183   :  { %v12153_v20 = vadd.f32 %v12152_v29, %v12151_v13 }
0x4185   :  { %v12155_v11 = vadd.f32 %v12154_v61, %v12153_v20 }
0x4187   :  { %v12156_v30 = vrot.slane %v12155_v11, 4 }
0x4189   :  { %v12157_v31 = vadd.f32 %v12156_v30, %v12155_v11 }
0x418b   :  { %v12158_v32 = vrot.slane %v12157_v31, 2 }
0x418d   :  { %v12159_v33 = vadd.f32 %v12158_v32, %v12157_v31 }
0x418f   :  { %v12160_v34 = vrot.slane %v12159_v33, 1 }
0x4191   :  { %v12161_v35 = vadd.f32 %v12160_v34, %v12159_v33 }
0x4193   :  { %v12162_v36 = vmul.f32 0.03125, %v12161_v35  ;;  %v12671_v35 = vld [vmem:[#allocation2 + $0x360] sm:$0xff] }
0x4195   :  { %v12165_v37 = vadd.f32 1e-05, %v12162_v36  ;;  %v12672_v36 = vld [vmem:[#allocation2 + $0x368] sm:$0xff] }
0x4197   :  { %18499 = vrsqrt.f32 %v12165_v37  ;;  %v17567_v37 = vpack.c.bf16 %v12672_v36, %v12671_v35 }
0x4199   :  { %17568 = vmatprep.subr.bf16.mxu0 %v17567_v37 }
0x419a   :  { %17570 = vmatpush3.bf16.msra.mxu0 %v17567_v37 }
0x41a1   :  { %v18500_v40 = vpop.eup %18499 }
0x41a2   :  { %v12167_v46 = vmul.f32 %v18500_v40, %v14095_v38  ;;  %v12673_v38 = vld [vmem:[#allocation2 + $0x370] sm:$0xff]  ;;  %v12674_v40 = vld [vmem:[#allocation2 + $0x378] sm:$0xff] }
0x41a4   :  { %v12170_v57 = vmul.f32 %v12167_v46, %v12140_v9  ;;  %v12176_v6 = vrot.slane %v12167_v46, %v18805_v52  ;;  %v17571_v46 = vpack.c.bf16 %v12674_v40, %v12673_v38 }
0x41a6   :  { %v12171_v55 = vsub.f32 %v14096_v10, %v12170_v57  ;;  %v12180_v18 = vmul.f32 %v12176_v6, %v12114_v44  ;;  %v12178_v8 = vmul.f32 %v12176_v6, %v12104_v58  ;;  %v12179_v17 = vmul.f32 %v16531_v5, %v12176_v6  ;;  %17572 = vmatprep.subr.bf16.mxu0 %v17571_v46 }
0x41a7   :  { %v12181_v21 = vmul.f32 %v16534_v4, %v12176_v6  ;;  %17574 = vmatpush3.bf16.msra.mxu0 %v17571_v46 }
0x41a8   :  { %v12186_v54 = vrot.slane %v12171_v55, %v18805_v52 }
0x41aa   :  { %v12190_v27 = vadd.f32 %v12186_v54, %v12180_v18  ;;  %v12188_v43 = vadd.f32 %v12186_v54, %v12178_v8  ;;  %v12189_v24 = vadd.f32 %v12186_v54, %v12179_v17  ;;  %v12191_v22 = vadd.f32 %v12186_v54, %v12181_v21 }
0x41ac   :  { %vm12192_vm11 = vcmp.ge.f32.partialorder %v12188_v43, 0.0  ;;  %v12196_v60 = vmul.f32 0.2, %v12188_v43  ;;  %vm12193_vm12 = vcmp.ge.f32.partialorder %v12189_v24, 0.0  ;;  %v12197_v1 = vmul.f32 0.2, %v12189_v24 }
0x41ad   :  { %vm12194_vm13 = vcmp.ge.f32.partialorder %v12190_v27, 0.0  ;;  %v12198_v63 = vmul.f32 0.2, %v12190_v27  ;;  %v12199_v44 = vmul.f32 0.2, %v12191_v22  ;;  %vm12195_vm14 = vcmp.ge.f32.partialorder %v12191_v22, 0.0 }
0x41ae   :  { %v12200_v53 = vsel %vm12192_vm11, %v12188_v43, %v12196_v60  ;;  %v12201_v0 = vsel %vm12193_vm12, %v12189_v24, %v12197_v1 }
0x41af   :  { %16543 = vmatprep.mubr.msk.f32.mxu1 %vm43_vm0, %v12200_v53  ;;  %v12202_v5 = vsel %vm12194_vm13, %v12190_v27, %v12198_v63  ;;  %v12203_v58 = vsel %vm12195_vm14, %v12191_v22, %v12199_v44 }
0x41b0   :  { %16544 = vmatmul.mubr.msk.f32.vlgmr.msra.gmra.mrb[100].mxu1 %vm43_vm0, %v12201_v0 }
0x41b1   :  { %16546 = vmatprep.mubr.msk.f32.mxu1 %vm43_vm0, %v12202_v5 }
0x41b4   :  { %16547 = vmatmul.mubr.msk.f32.gmra.mrb[102].mxu1 %vm43_vm0, %v12203_v58 }
0x41b5   :  { %16557 = vmatprep.mubr.msk.f32.mxu1 %vm43_vm0, %v20223_v19 }
0x4283   :  { %v16545_v4 = vpop.f32.mrb[100].mxu1 }
0x4284   :  { %v12287_v28 = vpop.f32.mrb[101].mxu1 }
0x4285   :  { %v18399_v59 = vpack.i.bf16 %v16545_v4, %v12287_v28  ;;  %v17551_v9 = vpack.c.bf16 %v16545_v4, %v12287_v28 }
0x4287   :  { %18390 = vrot.lane.b32.xlu0 %v18399_v59, %s18642_s16  ;;  %v16548_v49 = vpop.f32.mrb[102].mxu1 }
0x4288   :  { %v12297_v7 = vpop.f32.mrb[103].mxu1 }
0x4289   :  { %v18404_v26 = vpack.i.bf16 %v16548_v49, %v12297_v7  ;;  %v17555_v47 = vpack.c.bf16 %v16548_v49, %v12297_v7 }
0x428b   :  { %18400 = vrot.lane.b32.xlu0 %v18399_v59, %s18643_s18  ;;  %18395 = vrot.lane.b32.xlu1 %v18404_v26, %s18642_s16 }
0x428f   :  { %18405 = vrot.lane.b32.xlu1 %v18404_v26, %s18643_s18 }
0x42f9   :  { %v18391_v48 = vpop.permute.xlu0 %18390 }
0x42fa   :  { %v18393_v51 = vunpack.i.h.bf16 %v18391_v48  ;;  %v18392_v62 = vunpack.i.l.bf16 %v18391_v48 }
0x42fc   :  { %v17543_v15 = vpack.c.bf16 %v18393_v51, %v18392_v62 }
0x42fd   :  { %v18396_v16 = vpop.permute.xlu1 %18395  ;;  %v18401_v20 = vpop.permute.xlu0 %18400 }
0x42fe   :  { %v18398_v3 = vunpack.i.h.bf16 %v18396_v16  ;;  %v18397_v13 = vunpack.i.l.bf16 %v18396_v16  ;;  %17544 = vmatprep.subr.bf16.mxu1 %v17543_v15  ;;  %v18403_v61 = vunpack.i.h.bf16 %v18401_v20  ;;  %v18402_v11 = vunpack.i.l.bf16 %v18401_v20 }
0x42ff   :  { %17546 = vmatpush3.bf16.msra.mxu1 %v17543_v15 }
0x4300   :  { %v17547_v29 = vpack.c.bf16 %v18398_v3, %v18397_v13  ;;  %v17559_v31 = vpack.c.bf16 %v18403_v61, %v18402_v11 }
0x4301   :  { %v18406_v30 = vpop.permute.xlu1 %18405 }
0x4302   :  { %17548 = vmatprep.subr.bf16.mxu1 %v17547_v29  ;;  %v18408_v32 = vunpack.i.h.bf16 %v18406_v30  ;;  %v18407_v33 = vunpack.i.l.bf16 %v18406_v30 }
0x4303   :  { %17550 = vmatpush3.bf16.msra.mxu1 %v17547_v29 }
0x4304   :  { %17552 = vmatprep.subr.bf16.mxu1 %v17551_v9  ;;  %v17563_v34 = vpack.c.bf16 %v18408_v32, %v18407_v33 }
0x4306   :  { %16558 = vmatmul.mubr.msk.f32.vlgmr.msra.gmra.mrb[104].mxu1 %vm43_vm0, %v20234_v14 }
0x4307   :  { %17554 = vmatpush3.bf16.msra.mxu1 %v17551_v9  ;;  %16560 = vmatprep.mubr.msk.f32.mxu1 %vm43_vm0, %v20241_v25 }
0x4308   :  { %17556 = vmatprep.subr.bf16.mxu1 %v17555_v47 }
0x430a   :  { %16561 = vmatmul.mubr.msk.f32.gmra.mrb[106].mxu1 %vm43_vm0, %v20248_v50 }
0x430b   :  { %17558 = vmatpush3.bf16.msra.mxu1 %v17555_v47  ;;  %16571 = vmatprep.mubr.msk.f32.mxu1 %vm43_vm0, %v20255_v2 }
0x430c   :  { %17560 = vmatprep.subr.bf16.mxu1 %v17559_v31 }
0x430e   :  { %16572 = vmatmul.mubr.msk.f32.vlgmr.msra.gmra.mrb[104].mxu1 %vm43_vm0, %v20262_v12 }
0x430f   :  { %17562 = vmatpush3.bf16.msra.mxu1 %v17559_v31  ;;  %16574 = vmatprep.mubr.msk.f32.mxu1 %vm43_vm0, %v20269_v41  ;;  %v14113_v31 = vld [vmem:[%s20562_s3 + $0x1a] sm:$0x1] }
0x4310   :  { %17564 = vmatprep.subr.bf16.mxu1 %v17563_v34 }
0x4312   :  { %16575 = vmatmul.mubr.msk.f32.gmra.mrb[106].mxu1 %vm43_vm0, %v20276_v42 }
0x4313   :  { %17566 = vmatpush3.bf16.msra.mxu1 %v17563_v34  ;;  %16585 = vmatprep.mubr.msk.f32.mxu1 %vm43_vm0, %v20283_v56  ;;  %v14114_v34 = vld [vmem:[%s20563_s4 + $0x1a] sm:$0x1] }
0x4316   :  { %16586 = vmatmul.mubr.msk.f32.vlgmr.msra.gmra.mrb[104].mxu1 %vm43_vm0, %v20290_v23 }
0x4317   :  { %16588 = vmatprep.mubr.msk.f32.mxu1 %vm43_vm0, %v20297_v45 }
0x431a   :  { %16589 = vmatmul.mubr.msk.f32.gmra.mrb[106].mxu1 %vm43_vm0, %v20304_v39 }
0x43e9   :  { %v16587_v10 = vpop.f32.mrb[104].mxu1 }
0x43ea   :  { %v12594_v57 = vsel %vm43_vm0, %v16587_v10, 0.0  ;;  %v12570_v6 = vpop.f32.mrb[105].mxu1 }
0x43eb   :  { %v12593_v55 = vsel %vm43_vm0, %v12570_v6, 0.0 }
0x43ec   :  { %v12595_v18 = vadd.f32 %v12594_v57, %v12593_v55 }
0x43ed   :  { %v16590_v8 = vpop.f32.mrb[106].mxu1 }
0x43ee   :  { %v12580_v17 = vpop.f32.mrb[107].mxu1  ;;  %v12598_v27 = vsel %vm43_vm0, %v16590_v8, 0.0 }
0x43ef   :  { %v12596_v21 = vsel %vm43_vm0, %v12580_v17, 0.0 }
0x43f0   :  { %v12597_v54 = vadd.f32 %v12596_v21, %v12595_v18 }
0x43f2   :  { %v12599_v43 = vadd.f32 %v12598_v27, %v12597_v54 }
0x43f4   :  { %v12600_v24 = vrot.slane %v12599_v43, 4 }
0x43f6   :  { %v12601_v22 = vadd.f32 %v12600_v24, %v12599_v43 }
0x43f8   :  { %v12602_v60 = vrot.slane %v12601_v22, 2 }
0x43fa   :  { %v12603_v1 = vadd.f32 %v12602_v60, %v12601_v22 }
0x43fc   :  { %v12604_v63 = vrot.slane %v12603_v1, 1 }
0x43fe   :  { %v12605_v53 = vadd.f32 %v12604_v63, %v12603_v1 }
0x4400   :  { %v12606_v0 = vmul.f32 0.03125, %v12605_v53 }
0x4402   :  { %v12607_v44 = vsub.f32 %v12570_v6, %v12606_v0  ;;  %v12608_v5 = vsub.f32 %v16587_v10, %v12606_v0  ;;  %v12609_v58 = vsub.f32 %v12580_v17, %v12606_v0  ;;  %v12610_v4 = vsub.f32 %v16590_v8, %v12606_v0 }
0x4404   :  { %v12611_v28 = vmul.f32 %v12607_v44, %v12607_v44  ;;  %v12612_v59 = vmul.f32 %v12608_v5, %v12608_v5  ;;  %v12613_v9 = vmul.f32 %v12609_v58, %v12609_v58  ;;  %v12614_v49 = vmul.f32 %v12610_v4, %v12610_v4 }
0x4406   :  { %v12615_v7 = vsel %vm43_vm0, %v12611_v28, 0.0  ;;  %v12616_v26 = vsel %vm43_vm0, %v12612_v59, 0.0  ;;  %v12618_v48 = vsel %vm43_vm0, %v12613_v9, 0.0  ;;  %v12620_v62 = vsel %vm43_vm0, %v12614_v49, 0.0 }
0x4407   :  { %v12617_v47 = vadd.f32 %v12616_v26, %v12615_v7 }
0x4409   :  { %v12619_v51 = vadd.f32 %v12618_v48, %v12617_v47 }
0x440b   :  { %v12621_v15 = vadd.f32 %v12620_v62, %v12619_v51 }
0x440d   :  { %v12622_v16 = vrot.slane %v12621_v15, 4 }
0x440f   :  { %v12623_v3 = vadd.f32 %v12622_v16, %v12621_v15 }
0x4411   :  { %v12624_v13 = vrot.slane %v12623_v3, 2 }
0x4413   :  { %v12625_v29 = vadd.f32 %v12624_v13, %v12623_v3 }
0x4415   :  { %v12626_v20 = vrot.slane %v12625_v29, 1 }
0x4417   :  { %v12627_v61 = vadd.f32 %v12626_v20, %v12625_v29 }
0x4419   :  { %v12628_v11 = vmul.f32 0.03125, %v12627_v61 }
0x441b   :  { %v12631_v30 = vadd.f32 1e-05, %v12628_v11 }
0x441d   :  { %18501 = vrsqrt.f32 %v12631_v30 }
0x4427   :  { %v18502_v32 = vpop.eup %18501 }
0x4428   :  { %v12633_v33 = vmul.f32 %v18502_v32, %v14113_v31 }
0x442a   :  { %v12636_v35 = vmul.f32 %v12633_v33, %v12606_v0  ;;  %v12642_v36 = vrot.slane %v12633_v33, %v18805_v52 }
0x442c   :  { %v12637_v37 = vsub.f32 %v14114_v34, %v12636_v35  ;;  %v12646_v38 = vmul.f32 %v12642_v36, %v12580_v17  ;;  %v12644_v40 = vmul.f32 %v12642_v36, %v12570_v6  ;;  %v12645_v46 = vmul.f32 %v16587_v10, %v12642_v36 }
0x442d   :  { %v12647_v57 = vmul.f32 %v16590_v8, %v12642_v36 }
0x442e   :  { %v12652_v55 = vrot.slane %v12637_v37, %v18805_v52 }
0x4430   :  { %v12656_v18 = vadd.f32 %v12652_v55, %v12646_v38  ;;  %v12654_v21 = vadd.f32 %v12652_v55, %v12644_v40  ;;  %v12655_v54 = vadd.f32 %v12652_v55, %v12645_v46  ;;  %v12657_v27 = vadd.f32 %v12652_v55, %v12647_v57 }
0x4432   :  { %vm12658_vm15 = vcmp.ge.f32.partialorder %v12654_v21, 0.0  ;;  %v12662_v43 = vmul.f32 0.2, %v12654_v21  ;;  %vm12659_vm1 = vcmp.ge.f32.partialorder %v12655_v54, 0.0  ;;  %v12663_v24 = vmul.f32 0.2, %v12655_v54 }
0x4433   :  { %vm12660_vm2 = vcmp.ge.f32.partialorder %v12656_v18, 0.0  ;;  %v12664_v22 = vmul.f32 0.2, %v12656_v18  ;;  %v12665_v17 = vmul.f32 0.2, %v12657_v27  ;;  %vm12661_vm3 = vcmp.ge.f32.partialorder %v12657_v27, 0.0 }
0x4434   :  { %v12666_v60 = vsel %vm12658_vm15, %v12654_v21, %v12662_v43  ;;  %v12667_v1 = vsel %vm12659_vm1, %v12655_v54, %v12663_v24 }
0x4435   :  { %16599 = vmatprep.mubr.msk.f32.mxu0 %vm43_vm0, %v12666_v60  ;;  %v12668_v10 = vsel %vm12660_vm2, %v12656_v18, %v12664_v22  ;;  %v12669_v6 = vsel %vm12661_vm3, %v12657_v27, %v12665_v17 }
0x4436   :  { %16600 = vmatmul.mubr.msk.f32.vlgmr.msra.gmra.mrb[112].mxu0 %vm43_vm0, %v12667_v1 }
0x4437   :  { %16602 = vmatprep.mubr.msk.f32.mxu0 %vm43_vm0, %v12668_v10 }
0x443a   :  { %16603 = vmatmul.mubr.msk.f32.gmra.mrb[114].mxu0 %vm43_vm0, %v12669_v6 }
0x443b   :  { %16613 = vmatprep.mubr.msk.f32.mxu0 %vm43_vm0, %v20223_v19 }
0x4509   :  { %v16601_v8 = vpop.f32.mrb[112].mxu0 }
0x450a   :  { %v12753_v63 = vpop.f32.mrb[113].mxu0 }
0x450b   :  { %v18419_v53 = vpack.i.bf16 %v16601_v8, %v12753_v63  ;;  %v17583_v0 = vpack.c.bf16 %v16601_v8, %v12753_v63 }
0x450d   :  { %18410 = vrot.lane.b32.xlu0 %v18419_v53, %s18642_s16  ;;  %v16604_v44 = vpop.f32.mrb[114].mxu0 }
0x450e   :  { %v12763_v5 = vpop.f32.mrb[115].mxu0 }
0x450f   :  { %v18424_v58 = vpack.i.bf16 %v16604_v44, %v12763_v5  ;;  %v17587_v4 = vpack.c.bf16 %v16604_v44, %v12763_v5 }
0x4511   :  { %18420 = vrot.lane.b32.xlu0 %v18419_v53, %s18643_s18  ;;  %18415 = vrot.lane.b32.xlu1 %v18424_v58, %s18642_s16 }
0x4515   :  { %18425 = vrot.lane.b32.xlu1 %v18424_v58, %s18643_s18 }
0x457f   :  { %v18411_v28 = vpop.permute.xlu0 %18410 }
0x4580   :  { %v18413_v59 = vunpack.i.h.bf16 %v18411_v28  ;;  %v18412_v9 = vunpack.i.l.bf16 %v18411_v28  ;;  %v14131_v28 = vld [vmem:[%s20562_s3 + $0x1b] sm:$0x1] }
0x4582   :  { %v17575_v19 = vpack.c.bf16 %v18413_v59, %v18412_v9 }
0x4583   :  { %v18416_v49 = vpop.permute.xlu1 %18415  ;;  %v18421_v48 = vpop.permute.xlu0 %18420 }
0x4584   :  { %v18418_v7 = vunpack.i.h.bf16 %v18416_v49  ;;  %v18417_v26 = vunpack.i.l.bf16 %v18416_v49  ;;  %17576 = vmatprep.subr.bf16.mxu0 %v17575_v19  ;;  %v18423_v51 = vunpack.i.h.bf16 %v18421_v48  ;;  %v18422_v62 = vunpack.i.l.bf16 %v18421_v48 }
0x4585   :  { %17578 = vmatpush3.bf16.msra.mxu0 %v17575_v19  ;;  %v14132_v19 = vld [vmem:[%s20563_s4 + $0x1b] sm:$0x1] }
0x4586   :  { %v17579_v47 = vpack.c.bf16 %v18418_v7, %v18417_v26  ;;  %v17591_v16 = vpack.c.bf16 %v18423_v51, %v18422_v62 }
0x4587   :  { %v18426_v15 = vpop.permute.xlu1 %18425 }
0x4588   :  { %17580 = vmatprep.subr.bf16.mxu0 %v17579_v47  ;;  %v18428_v3 = vunpack.i.h.bf16 %v18426_v15  ;;  %v18427_v13 = vunpack.i.l.bf16 %v18426_v15 }
0x4589   :  { %17582 = vmatpush3.bf16.msra.mxu0 %v17579_v47 }
0x458a   :  { %17584 = vmatprep.subr.bf16.mxu0 %v17583_v0  ;;  %v17595_v29 = vpack.c.bf16 %v18428_v3, %v18427_v13 }
0x458c   :  { %16614 = vmatmul.mubr.msk.f32.vlgmr.msra.gmra.mrb[116].mxu0 %vm43_vm0, %v20234_v14  ;;  %v13137_v14 = vld [vmem:[#allocation2 + $0x380] sm:$0xff] }
0x458d   :  { %17586 = vmatpush3.bf16.msra.mxu0 %v17583_v0  ;;  %16616 = vmatprep.mubr.msk.f32.mxu0 %vm43_vm0, %v20241_v25  ;;  %v13138_v25 = vld [vmem:[#allocation2 + $0x388] sm:$0xff] }
0x458e   :  { %17588 = vmatprep.subr.bf16.mxu0 %v17587_v4 }
0x4590   :  { %16617 = vmatmul.mubr.msk.f32.gmra.mrb[118].mxu0 %vm43_vm0, %v20248_v50  ;;  %v17599_v50 = vpack.c.bf16 %v13138_v25, %v13137_v14 }
0x4591   :  { %17590 = vmatpush3.bf16.msra.mxu0 %v17587_v4  ;;  %16627 = vmatprep.mubr.msk.f32.mxu0 %vm43_vm0, %v20255_v2  ;;  %v13139_v2 = vld [vmem:[#allocation2 + $0x390] sm:$0xff] }
0x4592   :  { %17592 = vmatprep.subr.bf16.mxu0 %v17591_v16  ;;  %17600 = vmatprep.subr.bf16.mxu1 %v17599_v50 }
0x4593   :  { %17602 = vmatpush3.bf16.msra.mxu1 %v17599_v50 }
0x4594   :  { %16628 = vmatmul.mubr.msk.f32.vlgmr.msra.gmra.mrb[116].mxu0 %vm43_vm0, %v20262_v12  ;;  %v13140_v12 = vld [vmem:[#allocation2 + $0x398] sm:$0xff] }
0x4595   :  { %17594 = vmatpush3.bf16.msra.mxu0 %v17591_v16  ;;  %16630 = vmatprep.mubr.msk.f32.mxu0 %vm43_vm0, %v20269_v41  ;;  %v17603_v41 = vpack.c.bf16 %v13140_v12, %v13139_v2 }
0x4596   :  { %17596 = vmatprep.subr.bf16.mxu0 %v17595_v29 }
0x4597   :  { %17604 = vmatprep.subr.bf16.mxu1 %v17603_v41 }
0x4598   :  { %16631 = vmatmul.mubr.msk.f32.gmra.mrb[118].mxu0 %vm43_vm0, %v20276_v42  ;;  %17606 = vmatpush3.bf16.msra.mxu1 %v17603_v41 }
0x4599   :  { %17598 = vmatpush3.bf16.msra.mxu0 %v17595_v29  ;;  %16641 = vmatprep.mubr.msk.f32.mxu0 %vm43_vm0, %v20283_v56 }
0x459c   :  { %16642 = vmatmul.mubr.msk.f32.vlgmr.msra.gmra.mrb[116].mxu0 %vm43_vm0, %v20290_v23 }
0x459d   :  { %16644 = vmatprep.mubr.msk.f32.mxu0 %vm43_vm0, %v20297_v45 }
0x45a0   :  { %16645 = vmatmul.mubr.msk.f32.gmra.mrb[118].mxu0 %vm43_vm0, %v20304_v39 }
0x466f   :  { %v16643_v42 = vpop.f32.mrb[116].mxu0 }
0x4670   :  { %v13060_v56 = vsel %vm43_vm0, %v16643_v42, 0.0  ;;  %v13036_v23 = vpop.f32.mrb[117].mxu0 }
0x4671   :  { %v13059_v20 = vsel %vm43_vm0, %v13036_v23, 0.0 }
0x4672   :  { %v13061_v45 = vadd.f32 %v13060_v56, %v13059_v20 }
0x4673   :  { %v16646_v61 = vpop.f32.mrb[118].mxu0 }
0x4674   :  { %v13046_v11 = vpop.f32.mrb[119].mxu0  ;;  %v13064_v31 = vsel %vm43_vm0, %v16646_v61, 0.0 }
0x4675   :  { %v13062_v39 = vsel %vm43_vm0, %v13046_v11, 0.0 }
0x4676   :  { %v13063_v30 = vadd.f32 %v13062_v39, %v13061_v45 }
0x4678   :  { %v13065_v32 = vadd.f32 %v13064_v31, %v13063_v30 }
0x467a   :  { %v13066_v33 = vrot.slane %v13065_v32, 4 }
0x467c   :  { %v13067_v34 = vadd.f32 %v13066_v33, %v13065_v32 }
0x467e   :  { %v13068_v35 = vrot.slane %v13067_v34, 2 }
0x4680   :  { %v13069_v36 = vadd.f32 %v13068_v35, %v13067_v34 }
0x4682   :  { %v13070_v37 = vrot.slane %v13069_v36, 1 }
0x4684   :  { %v13071_v38 = vadd.f32 %v13070_v37, %v13069_v36 }
0x4686   :  { %v13072_v40 = vmul.f32 0.03125, %v13071_v38 }
0x4688   :  { %v13073_v46 = vsub.f32 %v13036_v23, %v13072_v40  ;;  %v13074_v57 = vsub.f32 %v16643_v42, %v13072_v40  ;;  %v13075_v55 = vsub.f32 %v13046_v11, %v13072_v40  ;;  %v13076_v18 = vsub.f32 %v16646_v61, %v13072_v40 }
0x468a   :  { %v13077_v21 = vmul.f32 %v13073_v46, %v13073_v46  ;;  %v13078_v54 = vmul.f32 %v13074_v57, %v13074_v57  ;;  %v13079_v27 = vmul.f32 %v13075_v55, %v13075_v55  ;;  %v13080_v43 = vmul.f32 %v13076_v18, %v13076_v18 }
0x468c   :  { %v13081_v24 = vsel %vm43_vm0, %v13077_v21, 0.0  ;;  %v13082_v22 = vsel %vm43_vm0, %v13078_v54, 0.0  ;;  %v13084_v1 = vsel %vm43_vm0, %v13079_v27, 0.0  ;;  %v13086_v10 = vsel %vm43_vm0, %v13080_v43, 0.0  ;;  %v18580_v21 = vld [vmem:[%s20560_s1 + $0x28] sm:$0xff]  ;;  %v18581_v27 = vld [vmem:[%s20560_s1 + $0x30] sm:$0xff] }
0x468d   :  { %v13083_v60 = vadd.f32 %v13082_v22, %v13081_v24 }
0x468f   :  { %v13085_v17 = vadd.f32 %v13084_v1, %v13083_v60  ;;  %v18582_v60 = vld [vmem:[%s20560_s1 + $0x38] sm:$0xff]  ;;  %v18583_v1 = vld [vmem:[%s20560_s1] sm:$0xff] }
0x4691   :  { %v13087_v6 = vadd.f32 %v13086_v10, %v13085_v17  ;;  %v18584_v10 = vld [vmem:[%s20560_s1 + $0x8] sm:$0xff] }
0x4693   :  { %v13088_v8 = vrot.slane %v13087_v6, 4 }
0x4695   :  { %v13089_v63 = vadd.f32 %v13088_v8, %v13087_v6  ;;  %v18585_v6 = vld [vmem:[%s20560_s1 + $0x10] sm:$0xff]  ;;  %v18586_v8 = vld [vmem:[%s20560_s1 + $0x18] sm:$0xff] }
0x4697   :  { %v13090_v53 = vrot.slane %v13089_v63, 2 }
0x4699   :  { %v13091_v0 = vadd.f32 %v13090_v53, %v13089_v63  ;;  %v18587_v63 = vld [vmem:[%s20560_s1 + $0x40] sm:$0xff]  ;;  %v18588_v53 = vld [vmem:[%s20560_s1 + $0x48] sm:$0xff] }
0x469b   :  { %v13092_v44 = vrot.slane %v13091_v0, 1 }
0x469d   :  { %v13093_v5 = vadd.f32 %v13092_v44, %v13091_v0  ;;  %v18589_v0 = vld [vmem:[%s20560_s1 + $0x50] sm:$0xff]  ;;  %v18590_v44 = vld [vmem:[%s20560_s1 + $0x58] sm:$0xff] }
0x469f   :  { %v13094_v58 = vmul.f32 0.03125, %v13093_v5 }
0x46a1   :  { %v13097_v4 = vadd.f32 1e-05, %v13094_v58 }
0x46a3   :  { %18503 = vrsqrt.f32 %v13097_v4 }
0x46ad   :  { %v18504_v59 = vpop.eup %18503 }
0x46ae   :  { %v13099_v9 = vmul.f32 %v18504_v59, %v14131_v28 }
0x46b0   :  { %v13102_v49 = vmul.f32 %v13099_v9, %v13072_v40  ;;  %v13108_v7 = vrot.slane %v13099_v9, %v18805_v52 }
0x46b2   :  { %v13103_v26 = vsub.f32 %v14132_v19, %v13102_v49  ;;  %v13112_v47 = vmul.f32 %v13108_v7, %v13046_v11  ;;  %v13110_v48 = vmul.f32 %v13108_v7, %v13036_v23  ;;  %v13111_v51 = vmul.f32 %v16643_v42, %v13108_v7  ;;  %v18579_v23 = vld [vmem:[%s20560_s1 + $0x20] sm:$0xff] }
0x46b3   :  { %v13113_v62 = vmul.f32 %v16646_v61, %v13108_v7 }
0x46b4   :  { %v13118_v15 = vrot.slane %v13103_v26, %v18805_v52 }
0x46b6   :  { %v13122_v16 = vadd.f32 %v13118_v15, %v13112_v47  ;;  %v13120_v3 = vadd.f32 %v13118_v15, %v13110_v48  ;;  %v13121_v13 = vadd.f32 %v13118_v15, %v13111_v51  ;;  %v13123_v29 = vadd.f32 %v13118_v15, %v13113_v62 }
0x46b8   :  { %vm13124_vm4 = vcmp.ge.f32.partialorder %v13120_v3, 0.0  ;;  %v13128_v14 = vmul.f32 0.2, %v13120_v3  ;;  %vm13125_vm5 = vcmp.ge.f32.partialorder %v13121_v13, 0.0  ;;  %v13129_v25 = vmul.f32 0.2, %v13121_v13 }
0x46b9   :  { %vm13126_vm6 = vcmp.ge.f32.partialorder %v13122_v16, 0.0  ;;  %v13130_v50 = vmul.f32 0.2, %v13122_v16  ;;  %v13131_v41 = vmul.f32 0.2, %v13123_v29  ;;  %vm13127_vm7 = vcmp.ge.f32.partialorder %v13123_v29, 0.0 }
0x46ba   :  { %v13132_v2 = vsel %vm13124_vm4, %v13120_v3, %v13128_v14  ;;  %v13133_v12 = vsel %vm13125_vm5, %v13121_v13, %v13129_v25 }
0x46bb   :  { %16655 = vmatprep.mubr.msk.f32.mxu1 %vm43_vm0, %v13132_v2  ;;  %v13134_v42 = vsel %vm13126_vm6, %v13122_v16, %v13130_v50  ;;  %v13135_v56 = vsel %vm13127_vm7, %v13123_v29, %v13131_v41 }
0x46bc   :  { %16656 = vmatmul.mubr.msk.f32.vlgmr.msra.gmra.mrb[108].mxu1 %vm43_vm0, %v13133_v12 }
0x46bd   :  { %16658 = vmatprep.mubr.msk.f32.mxu1 %vm43_vm0, %v13134_v42 }
0x46c0   :  { %16659 = vmatmul.mubr.msk.f32.gmra.mrb[110].mxu1 %vm43_vm0, %v13135_v56 }
0x46c1   :  { %16669 = vmatprep.mubr.msk.f32.mxu1 %vm43_vm0, %v18579_v23 }
0x478f   :  { %v16657_v20 = vpop.f32.mrb[108].mxu1 }
0x4790   :  { %v13219_v45 = vpop.f32.mrb[109].mxu1 }
0x4791   :  { %v18439_v61 = vpack.i.bf16 %v16657_v20, %v13219_v45  ;;  %v17615_v11 = vpack.c.bf16 %v16657_v20, %v13219_v45 }
0x4793   :  { %18430 = vrot.lane.b32.xlu0 %v18439_v61, %s18642_s16  ;;  %v16660_v39 = vpop.f32.mrb[110].mxu1 }
0x4794   :  { %v13229_v30 = vpop.f32.mrb[111].mxu1 }
0x4795   :  { %v18444_v31 = vpack.i.bf16 %v16660_v39, %v13229_v30  ;;  %v17619_v32 = vpack.c.bf16 %v16660_v39, %v13229_v30 }
0x4797   :  { %18440 = vrot.lane.b32.xlu0 %v18439_v61, %s18643_s18  ;;  %18435 = vrot.lane.b32.xlu1 %v18444_v31, %s18642_s16 }
0x479b   :  { %18445 = vrot.lane.b32.xlu1 %v18444_v31, %s18643_s18 }
0x4805   :  { %v18431_v33 = vpop.permute.xlu0 %18430 }
0x4806   :  { %v18433_v34 = vunpack.i.h.bf16 %v18431_v33  ;;  %v18432_v35 = vunpack.i.l.bf16 %v18431_v33 }
0x4808   :  { %v17607_v36 = vpack.c.bf16 %v18433_v34, %v18432_v35 }
0x4809   :  { %v18436_v37 = vpop.permute.xlu1 %18435  ;;  %v18441_v57 = vpop.permute.xlu0 %18440 }
0x480a   :  { %v18438_v38 = vunpack.i.h.bf16 %v18436_v37  ;;  %v18437_v40 = vunpack.i.l.bf16 %v18436_v37  ;;  %17608 = vmatprep.subr.bf16.mxu1 %v17607_v36  ;;  %v18443_v55 = vunpack.i.h.bf16 %v18441_v57  ;;  %v18442_v18 = vunpack.i.l.bf16 %v18441_v57  ;;  %v14150_v57 = vld [vmem:[%s20563_s4 + $0x1c] sm:$0x1] }
0x480b   :  { %17610 = vmatpush3.bf16.msra.mxu1 %v17607_v36 }
0x480c   :  { %v17611_v46 = vpack.c.bf16 %v18438_v38, %v18437_v40  ;;  %v17623_v43 = vpack.c.bf16 %v18443_v55, %v18442_v18  ;;  %v14149_v38 = vld [vmem:[%s20562_s3 + $0x1c] sm:$0x1]  ;;  %s18644_s3 = smov [#allocation5]  }
0x480d   :  { %v18446_v54 = vpop.permute.xlu1 %18445  ;;  %s13611_s4 = sshll.u32 %s18644_s3, 4  ;;  %s13612_s4 = int_to_ptr.vmem [resolvable:$true] %s13611_s4 }
0x480e   :  { %17612 = vmatprep.subr.bf16.mxu1 %v17611_v46  ;;  %v18448_v24 = vunpack.i.h.bf16 %v18446_v54  ;;  %v18447_v22 = vunpack.i.l.bf16 %v18446_v54  ;;  %s18613_s21 = scalar_lea.vmem %s13612_s4, 512  ;;  %p18618_p9 = scmp.lt.s32.totalorder %s13612_s4, %s13612_s4 }
0x480f   :  { %17614 = vmatpush3.bf16.msra.mxu1 %v17611_v46  ;;  %p18614_p8 = scmp.ne.s32.totalorder %s13612_s4, %s18613_s21  ;;  %p18619_p10 = scmp.lt.s32.totalorder %s18613_s21, %s18613_s21 }
0x4810   :  { %17616 = vmatprep.subr.bf16.mxu1 %v17615_v11  ;;  %v17627_v17 = vpack.c.bf16 %v18448_v24, %v18447_v22 }
0x4811   :  { %p18620_p11 = por %p18619_p10, %p18618_p9 }
0x4812   :  { %16670 = vmatmul.mubr.msk.f32.vlgmr.msra.gmra.mrb[112].mxu1 %vm43_vm0, %v18580_v21 }
0x4813   :  { %17618 = vmatpush3.bf16.msra.mxu1 %v17615_v11  ;;  %16672 = vmatprep.mubr.msk.f32.mxu1 %vm43_vm0, %v18581_v27  ;;  %p18621_p12 = pnand %p18620_p11, %p18614_p8 }
0x4814   :  { %17620 = vmatprep.subr.bf16.mxu1 %v17619_v32 }
0x4816   :  { %16673 = vmatmul.mubr.msk.f32.gmra.mrb[114].mxu1 %vm43_vm0, %v18582_v60 }
0x4817   :  { %17622 = vmatpush3.bf16.msra.mxu1 %v17619_v32  ;;  %16683 = vmatprep.mubr.msk.f32.mxu1 %vm43_vm0, %v18583_v1 }
0x4818   :  { %17624 = vmatprep.subr.bf16.mxu1 %v17623_v43 }
0x481a   :  { %16684 = vmatmul.mubr.msk.f32.vlgmr.msra.gmra.mrb[112].mxu1 %vm43_vm0, %v18584_v10 }
0x481b   :  { %17626 = vmatpush3.bf16.msra.mxu1 %v17623_v43  ;;  %16686 = vmatprep.mubr.msk.f32.mxu1 %vm43_vm0, %v18585_v6 }
0x481c   :  { %17628 = vmatprep.subr.bf16.mxu1 %v17627_v17 }
0x481e   :  { %16687 = vmatmul.mubr.msk.f32.gmra.mrb[114].mxu1 %vm43_vm0, %v18586_v8 }
0x481f   :  { %17630 = vmatpush3.bf16.msra.mxu1 %v17627_v17  ;;  %16697 = vmatprep.mubr.msk.f32.mxu1 %vm43_vm0, %v18587_v63 }
0x4822   :  { %16698 = vmatmul.mubr.msk.f32.vlgmr.msra.gmra.mrb[112].mxu1 %vm43_vm0, %v18588_v53 }
0x4823   :  { %16700 = vmatprep.mubr.msk.f32.mxu1 %vm43_vm0, %v18589_v0 }
0x4826   :  { %16701 = vmatmul.mubr.msk.f32.gmra.mrb[114].mxu1 %vm43_vm0, %v18590_v44 }
0x48f5   :  { %v16699_v5 = vpop.f32.mrb[112].mxu1 }
0x48f6   :  { %v13526_v58 = vsel %vm43_vm0, %v16699_v5, 0.0  ;;  %v13502_v4 = vpop.f32.mrb[113].mxu1 }
0x48f7   :  { %v13525_v28 = vsel %vm43_vm0, %v13502_v4, 0.0 }
0x48f8   :  { %v13527_v59 = vadd.f32 %v13526_v58, %v13525_v28 }
0x48f9   :  { %v16702_v9 = vpop.f32.mrb[114].mxu1 }
0x48fa   :  { %v13512_v19 = vpop.f32.mrb[115].mxu1  ;;  %v13530_v26 = vsel %vm43_vm0, %v16702_v9, 0.0 }
0x48fb   :  { %v13528_v49 = vsel %vm43_vm0, %v13512_v19, 0.0 }
0x48fc   :  { %v13529_v7 = vadd.f32 %v13528_v49, %v13527_v59 }
0x48fe   :  { %v13531_v47 = vadd.f32 %v13530_v26, %v13529_v7 }
0x4900   :  { %v13532_v48 = vrot.slane %v13531_v47, 4 }
0x4902   :  { %v13533_v51 = vadd.f32 %v13532_v48, %v13531_v47 }
0x4904   :  { %v13534_v62 = vrot.slane %v13533_v51, 2 }
0x4906   :  { %v13535_v15 = vadd.f32 %v13534_v62, %v13533_v51 }
0x4908   :  { %v13536_v16 = vrot.slane %v13535_v15, 1 }
0x490a   :  { %v13537_v3 = vadd.f32 %v13536_v16, %v13535_v15 }
0x490c   :  { %v13538_v13 = vmul.f32 0.03125, %v13537_v3 }
0x490e   :  { %v13539_v29 = vsub.f32 %v13502_v4, %v13538_v13  ;;  %v13540_v14 = vsub.f32 %v16699_v5, %v13538_v13  ;;  %v13541_v25 = vsub.f32 %v13512_v19, %v13538_v13  ;;  %v13542_v50 = vsub.f32 %v16702_v9, %v13538_v13 }
0x4910   :  { %v13543_v2 = vmul.f32 %v13539_v29, %v13539_v29  ;;  %v13544_v12 = vmul.f32 %v13540_v14, %v13540_v14  ;;  %v13545_v41 = vmul.f32 %v13541_v25, %v13541_v25  ;;  %v13546_v42 = vmul.f32 %v13542_v50, %v13542_v50 }
0x4912   :  { %v13547_v56 = vsel %vm43_vm0, %v13543_v2, 0.0  ;;  %v13548_v23 = vsel %vm43_vm0, %v13544_v12, 0.0  ;;  %v13550_v45 = vsel %vm43_vm0, %v13545_v41, 0.0  ;;  %v13552_v11 = vsel %vm43_vm0, %v13546_v42, 0.0 }
0x4913   :  { %v13549_v20 = vadd.f32 %v13548_v23, %v13547_v56 }
0x4915   :  { %v13551_v61 = vadd.f32 %v13550_v45, %v13549_v20 }
0x4917   :  { %v13553_v39 = vadd.f32 %v13552_v11, %v13551_v61 }
0x4919   :  { %v13554_v30 = vrot.slane %v13553_v39, 4 }
0x491b   :  { %v13555_v31 = vadd.f32 %v13554_v30, %v13553_v39 }
0x491d   :  { %v13556_v32 = vrot.slane %v13555_v31, 2 }
0x491f   :  { %v13557_v33 = vadd.f32 %v13556_v32, %v13555_v31 }
0x4921   :  { %v13558_v34 = vrot.slane %v13557_v33, 1 }
0x4923   :  { %v13559_v35 = vadd.f32 %v13558_v34, %v13557_v33 }
0x4925   :  { %v13560_v36 = vmul.f32 0.03125, %v13559_v35 }
0x4927   :  { %v13563_v37 = vadd.f32 1e-05, %v13560_v36 }
0x4929   :  { %18505 = vrsqrt.f32 %v13563_v37 }
0x4933   :  { %v18506_v40 = vpop.eup %18505 }
0x4934   :  { %v13565_v46 = vmul.f32 %v18506_v40, %v14149_v38 }
0x4936   :  { %v13568_v55 = vmul.f32 %v13565_v46, %v13538_v13  ;;  %v13574_v18 = vrot.slane %v13565_v46, %v18805_v52 }
0x4938   :  { %v13569_v21 = vsub.f32 %v14150_v57, %v13568_v55  ;;  %v13578_v54 = vmul.f32 %v13574_v18, %v13512_v19  ;;  %v13576_v27 = vmul.f32 %v13574_v18, %v13502_v4  ;;  %v13577_v43 = vmul.f32 %v16699_v5, %v13574_v18 }
0x4939   :  { %v13579_v24 = vmul.f32 %v16702_v9, %v13574_v18 }
0x493a   :  { %v13584_v22 = vrot.slane %v13569_v21, %v18805_v52 }
0x493c   :  { %v13588_v60 = vadd.f32 %v13584_v22, %v13578_v54  ;;  %v13586_v1 = vadd.f32 %v13584_v22, %v13576_v27  ;;  %v13587_v17 = vadd.f32 %v13584_v22, %v13577_v43  ;;  %v13589_v10 = vadd.f32 %v13584_v22, %v13579_v24 }
0x493e   :  { %vm13592_vm8 = vcmp.ge.f32.partialorder %v13588_v60, 0.0  ;;  %v13596_v6 = vmul.f32 0.2, %v13588_v60  ;;  %vm13590_vm9 = vcmp.ge.f32.partialorder %v13586_v1, 0.0  ;;  %vm13591_vm10 = vcmp.ge.f32.partialorder %v13587_v17, 0.0 }
0x493f   :  { %vm13593_vm11 = vcmp.ge.f32.partialorder %v13589_v10, 0.0  ;;  %v13594_v8 = vmul.f32 0.2, %v13586_v1  ;;  %v13595_v63 = vmul.f32 0.2, %v13587_v17 }
0x4940   :  { %v13600_v53 = vsel %vm13592_vm8, %v13588_v60, %v13596_v6  ;;  %v13597_v0 = vmul.f32 0.2, %v13589_v10 }
0x4941   :  { %13604 = vst.msk [vmem:[#allocation5 + $0x10] sm:$0xff] %vm43_vm0, %v13600_v53  ;;  %v13598_v44 = vsel %vm13590_vm9, %v13586_v1, %v13594_v8  ;;  %v13599_v5 = vsel %vm13591_vm10, %v13587_v17, %v13595_v63 }
0x4942   :  { %v13601_v52 = vsel %vm13593_vm11, %v13589_v10, %v13597_v0  ;;  %13602 = vst.msk [vmem:[#allocation5] sm:$0xff] %vm43_vm0, %v13598_v44  ;;  %13603 = vst.msk [vmem:[#allocation5 + $0x8] sm:$0xff] %vm43_vm0, %v13599_v5 }
0x4943   :  { %13605 = vst.msk [vmem:[#allocation5 + $0x18] sm:$0xff] %vm43_vm0, %v13601_v52 }
0x4944   :  { %18624 = shalt.err (!%p18621_p12)
}
0x4945   :  { %s18625_s22 = scalar_lea.hbm %s20564_s5, 512 }
0x4946   :  { %p18626_p13 = scmp.ne.s32.totalorder %s20564_s5, %s18625_s22  ;;  %p18629_p0 = scmp.lt.u32.totalorder %s18625_s22, %s20564_s5 }
0x4948   :  { %p18631_p1 = pnand %p18629_p0, %p18626_p13 }
0x494a   :  { %18634 = shalt.err (!%p18631_p1)
}
0x494b   :  { %13617 = dma.vmem_to_hbm [thread:$0]  %s13612_s4, 512, %s20564_s5, [#allocation4], %s18640_s28, %s18640_s28, %s18641_s29  }
0x494c   :  { %18637 = dma.done.wait [#allocation4], 512  }
0x494d   :  { %18638 = vsyncadd [#allocation4], 4294966784 }
0x494e   :  { %13621 = vsyncpa [#allocation3], 1 }
0x494f   :  { %13622 = vsyncpa [#allocation4], 1 }

</bundles_post_ra>
